<compile_context>
chip_gen: v7x
topology: tpu7x:2x2x1
jax: 0.10.0
libtpu: 0.0.40
codegen_flags: <defaults>
</compile_context>

<pallas_src>
import jax
import jax.numpy as jnp
from jax import lax
from jax.experimental import pallas as pl
from jax.experimental.pallas import tpu as pltpu

_BN_EPS = 1e-5
_VMEM_LIMIT = 32 * 1024 * 1024   # scoped-VMEM budget; actual use ~3 MiB


# ----------------------------------------------------------------------------
# In-kernel helper: 3x3 SAME conv as one fused-K, lane-dense MXU contraction
# ----------------------------------------------------------------------------
def _conv3x3_lane_dense(pad_ref, patch_ref, parts, w_ref, b_ref, hd, wd, relu):
    """parts: [(value (C_i, hd*wd), C_i), ...] channel groups (concat order).
    w_ref: (Cout, 9*sum(C_i)) bf16, BN scale pre-folded.  b_ref: (Cout, 1) f32.
    Returns (Cout, hd*wd) f32."""
    hw = hd * wd
    pw = wd + 1                       # flat zero pad: one row plus one element
    pcols = hw + 2 * pw
    ctot = sum(c for _, c in parts)

    # zero-padded flat image in the f32 pad scratch (h-edges handled by the pad)
    pad_ref[0:ctot, 0:pcols] = jnp.zeros((ctot, pcols), pad_ref.dtype)
    row = 0
    for val, c in parts:
        pad_ref[row:row + c, pw:pw + hw] = val.astype(pad_ref.dtype)
        row += c

    # lane masks for the left/right image edges (w wrap-around of the flat pad)
    wcoord = lax.broadcasted_iota(jnp.int32, (1, hw), 1) % wd
    left_ok = wcoord != 0
    right_ok = wcoord != wd - 1

    # 9 shifted taps -> (9*Ctot, HW) bf16 patch (rows: tap-major, channel-minor)
    t = 0
    for dh in (-1, 0, 1):
        for dw in (-1, 0, 1):
            off = pw + dh * wd + dw
            tap = pad_ref[0:ctot, off:off + hw]
            if dw == -1:
                tap = jnp.where(left_ok, tap, 0.0)
            elif dw == 1:
                tap = jnp.where(right_ok, tap, 0.0)
            patch_ref[t * ctot:(t + 1) * ctot, 0:hw] = tap.astype(patch_ref.dtype)
            t += 1

    # one fused-K MXU contraction; N (= HW) is the lane-dense output dim
    acc = jnp.dot(w_ref[...], patch_ref[0:9 * ctot, 0:hw],
                  preferred_element_type=jnp.float32)
    acc = acc + b_ref[...]
    return jnp.maximum(acc, 0.0) if relu else acc


def _make_decoder_kernel(blocks, out_channels):
    """blocks: list of dicts with STATIC ints cin, cskip, cout, h_in, w_in."""
    n_blocks = len(blocks)

    def kernel(*refs):
        i = 0
        x_ref = refs[i]; i += 1
        skip_refs = refs[i:i + n_blocks]; i += n_blocks
        blk_refs = [refs[i + 5 * b: i + 5 * b + 5] for b in range(n_blocks)]
        i += 5 * n_blocks
        wo_ref, bo_ref = refs[i], refs[i + 1]; i += 2
        o_ref = refs[i]; i += 1
        pad_ref, patch_ref = refs[i], refs[i + 1]

        x = x_ref[...]                                      # (C, H*W) bf16
        for b, blk in enumerate(blocks):
            s_ref, w1_ref, b1_ref, w2_ref, b2_ref = blk_refs[b]
            hd, wd = 2 * blk["h_in"], 2 * blk["w_in"]
            # nearest-2x upsample as an exact 0/1 selection matmul (lane dense)
            up = jnp.dot(x, s_ref[...], preferred_element_type=jnp.float32)
            skip = skip_refs[b][...]
            # conv1 over concat([up, skip]) -- concat realised by adjacent rows
            y = _conv3x3_lane_dense(pad_ref, patch_ref,
                                    [(up, blk["cin"]), (skip, blk["cskip"])],
                                    w1_ref, b1_ref, hd, wd, relu=True)
            # conv2 on the VMEM-resident intermediate
            y = _conv3x3_lane_dense(pad_ref, patch_ref, [(y, blk["cout"])],
                                    w2_ref, b2_ref, hd, wd, relu=True)
            x = y.astype(jnp.bfloat16)                      # block-output rounding

        last = blocks[-1]
        hd, wd = 2 * last["h_in"], 2 * last["w_in"]
        out = _conv3x3_lane_dense(pad_ref, patch_ref, [(x, last["cout"])],
                                  wo_ref, bo_ref, hd, wd, relu=False)
        o_ref[...] = out                                    # (out_c, HW) f32

    return kernel


# ----------------------------------------------------------------------------
# pallas_call wrapper (static config derived from array SHAPES only)
# ----------------------------------------------------------------------------
def _const_spec(shape):
    return pl.BlockSpec(shape, lambda b, _n=len(shape): (0,) * _n)


def temporal_unet_decoder(x_nchw, temporal_states_nchw, packed):
    """Fused forward of Temporal_UNetDecoder (concat_hidden=True, eval-mode BN)."""
    n, c0, h0, w0 = x_nchw.shape
    skips = list(reversed(temporal_states_nchw))            # block usage order

    # per-block static config (all Python ints, derived from shapes)
    blocks = []
    cin, hi, wi = c0, h0, w0
    for i, pb in enumerate(packed["blocks"]):
        cout = pb["b1"].shape[0]
        cskip = skips[i].shape[1]
        assert skips[i].shape[2:] == (2 * hi, 2 * wi), skips[i].shape
        blocks.append(dict(cin=cin, cskip=cskip, cout=cout, h_in=hi, w_in=wi))
        cin, hi, wi = cout, 2 * hi, 2 * wi
    out_c = packed["out"]["b"].shape[0]

    # scratch sizing (max over every conv executed by the fused kernel)
    conv_dims = []
    for blk in blocks:
        hw = 4 * blk["h_in"] * blk["w_in"]
        wd = 2 * blk["w_in"]
        conv_dims.append((blk["cin"] + blk["cskip"], hw, wd))
        conv_dims.append((blk["cout"], hw, wd))
    last = blocks[-1]
    conv_dims.append((last["cout"], 4 * last["h_in"] * last["w_in"],
                      2 * last["w_in"]))
    max_c = max(d[0] for d in conv_dims)
    max_p = max(d[1] + 2 * (d[2] + 1) for d in conv_dims)
    max_hw = max(d[1] for d in conv_dims)

    # lane-dense (C, H*W) planes; bf16 on the wire
    x_flat = x_nchw.reshape(n, c0, h0 * w0).astype(jnp.bfloat16)
    operands = [x_flat]
    in_specs = [pl.BlockSpec((None, c0, h0 * w0), lambda b: (b, 0, 0))]
    for s in skips:
        sf = s.reshape(s.shape[0], s.shape[1],
                       s.shape[2] * s.shape[3]).astype(jnp.bfloat16)
        operands.append(sf)
        in_specs.append(pl.BlockSpec((None,) + sf.shape[1:], lambda b: (b, 0, 0)))
    for pb in packed["blocks"]:
        for name in ("S", "w1", "b1", "w2", "b2"):
            operands.append(pb[name])
            in_specs.append(_const_spec(pb[name].shape))
    for name in ("w", "b"):
        operands.append(packed["out"][name])
        in_specs.append(_const_spec(packed["out"][name].shape))

    hw_out = 4 * last["h_in"] * last["w_in"]
    out = pl.pallas_call(
        _make_decoder_kernel(blocks, out_c),
        out_shape=jax.ShapeDtypeStruct((n, out_c, hw_out), jnp.float32),
        grid=(n,),
        in_specs=in_specs,
        out_specs=pl.BlockSpec((None, out_c, hw_out), lambda b: (b, 0, 0)),
        scratch_shapes=[pltpu.VMEM((max_c, max_p), jnp.float32),      # pad plane
                        pltpu.VMEM((9 * max_c, max_hw), jnp.bfloat16)],  # patches
        compiler_params=pltpu.CompilerParams(
            dimension_semantics=("parallel",),
            vmem_limit_bytes=_VMEM_LIMIT),
    )(*operands)
    return out.reshape(n, out_c, 2 * last["h_in"], 2 * last["w_in"])


# ----------------------------------------------------------------------------
# Parameter construction and ONE-TIME packing (outside jit)
# ----------------------------------------------------------------------------
def _init_conv(key, cin, cout):
    k1, k2 = jax.random.split(key)
    bound = 1.0 / (cin * 9) ** 0.5
    w = jax.random.uniform(k1, (3, 3, cin, cout), jnp.float32, -bound, bound)
    b = jax.random.uniform(k2, (cout,), jnp.float32, -bound, bound)
    return w, b


def _conv_bn_params(key, cin, cout):
    """Conv3x3 + eval-mode BatchNorm folded to per-channel scale / shift."""
    w, b = _init_conv(key, cin, cout)
    gamma = jnp.ones((cout,), jnp.float32)
    beta = jnp.zeros((cout,), jnp.float32)
    mean = jnp.zeros((cout,), jnp.float32)
    var = jnp.ones((cout,), jnp.float32)
    scale = gamma / jnp.sqrt(var + _BN_EPS)
    shift = beta - mean * scale + b * scale
    return {"w": w, "scale": scale, "shift": shift}


def init_decoder_params(key, out_channels, block_dims):
    blocks = []
    for (c_in, c_skip, c_out) in block_dims[1:]:
        key, k1, k2 = jax.random.split(key, 3)
        blocks.append({"c_in": c_in, "c_skip": c_skip, "c_out": c_out,
                       "conv1": _conv_bn_params(k1, c_in + c_skip, c_out),
                       "conv2": _conv_bn_params(k2, c_out, c_out)})
    key, k3 = jax.random.split(key)
    w, b = _init_conv(k3, block_dims[-1][-1], out_channels)
    return {"blocks": blocks, "out": {"w": w, "b": b}}


def _upsample_matrix(h0, w0):
    """(h0*w0, 4*h0*w0) 0/1 matrix S: x_flat @ S == flatten(nearest2x(x))."""
    wd = 2 * w0
    q = jnp.arange(4 * h0 * w0)
    src = (q // wd // 2) * w0 + (q % wd) // 2
    return (jnp.arange(h0 * w0)[:, None] == src[None, :]).astype(jnp.bfloat16)


def _fold_pack(conv):
    """HWIO conv + BN -> (Cout, 9*Cin) bf16 weight (scale folded) + (Cout,1) f32."""
    cin, cout = conv["w"].shape[2], conv["w"].shape[3]
    w = conv["w"] * conv["scale"].reshape(1, 1, 1, cout)
    w = w.reshape(9 * cin, cout).T.astype(jnp.bfloat16)
    return w, conv["shift"].reshape(cout, 1).astype(jnp.float32)


def pack_decoder_params(params, h0, w0):
    """One-time pre-packing of all weights into the fused-kernel layout."""
    packed_blocks = []
    h, w = h0, w0
    for blk in params["blocks"]:
        w1, b1 = _fold_pack(blk["conv1"])
        w2, b2 = _fold_pack(blk["conv2"])
        packed_blocks.append({"S": _upsample_matrix(h, w),
                              "w1": w1, "b1": b1, "w2": w2, "b2": b2})
        h, w = 2 * h, 2 * w
    wo = params["out"]["w"]
    cin_o, out_c = wo.shape[2], wo.shape[3]
    packed_out = {"w": wo.reshape(9 * cin_o, out_c).T.astype(jnp.bfloat16),
                  "b": params["out"]["b"].reshape(out_c, 1).astype(jnp.float32)}
    return {"blocks": packed_blocks, "out": packed_out}


# ----------------------------------------------------------------------------
# Pure-JAX reference (lax conv, same bf16 rounding points)
# ----------------------------------------------------------------------------
def _ref_conv3x3(x, w_hwio, scale, shift, relu):
    w = (w_hwio * scale.reshape(1, 1, 1, -1)).astype(jnp.bfloat16)
    y = lax.conv_general_dilated(
        x.astype(jnp.bfloat16), w, window_strides=(1, 1), padding="SAME",
        dimension_numbers=("NCHW", "HWIO", "NCHW"),
        preferred_element_type=jnp.float32)
    y = y + shift.reshape(1, -1, 1, 1)
    return jnp.maximum(y, 0.0) if relu else y


def ref_decoder(x_nchw, temporal_states_nchw, params):
    x = x_nchw.astype(jnp.bfloat16)
    for blk, skip in zip(params["blocks"], reversed(temporal_states_nchw)):
        x = jnp.repeat(jnp.repeat(x, 2, axis=2), 2, axis=3)
        x = jnp.concatenate([x, skip.astype(jnp.bfloat16)], axis=1)
        y = _ref_conv3x3(x, blk["conv1"]["w"], blk["conv1"]["scale"],
                         blk["conv1"]["shift"], True).astype(jnp.bfloat16)
        x = _ref_conv3x3(y, blk["conv2"]["w"], blk["conv2"]["scale"],
                         blk["conv2"]["shift"], True).astype(jnp.bfloat16)
    p = params["out"]
    return _ref_conv3x3(x, p["w"], jnp.ones((p["w"].shape[-1],), jnp.float32),
                        p["b"], False)


if __name__ == "__main__":
    key = jax.random.PRNGKey(0)

    # block_dims = ((32,), (32, 16, 16), (16, 8, 8)), out_channels = 3
    # -> two upsample blocks, out_block Conv2d(8 -> 3, k=3, pad=1)
    out_channels = 3
    block_dims = ((32,), (32, 16, 16), (16, 8, 8))

    kx, ks1, ks2, kp = jax.random.split(key, 4)
    x = jax.random.normal(kx, (2, 32, 8, 8), jnp.float32)        # NCHW bottleneck
    temporal_states = [
        jax.random.normal(ks1, (2, 8, 32, 32), jnp.float32),     # used by block 2
        jax.random.normal(ks2, (2, 16, 16, 16), jnp.float32),    # used by block 1
    ]
    params = init_decoder_params(kp, out_channels, block_dims)
    packed = pack_decoder_params(params, x.shape[2], x.shape[3])  # once, outside jit

    decoder = jax.jit(temporal_unet_decoder)
    out = jax.block_until_ready(decoder(x, temporal_states, packed))
    assert out.shape == (2, 3, 32, 32), out.shape

    ref = jax.block_until_ready(ref_decoder(x, temporal_states, params))
    max_err = float(jnp.max(jnp.abs(out - ref)))
    assert jnp.allclose(out, ref, rtol=2e-2, atol=2e-2), max_err

    print("KERNEL_OK")
</pallas_src>

<mosaic_0001>
module attributes {stable_mosaic.version = 11 : i64} {
  func.func @kernel(%arg0: i32, %arg1: memref<1x32x64xbf16, #tpu.memory_space<vmem>>, %arg2: memref<1x16x256xbf16, #tpu.memory_space<vmem>>, %arg3: memref<1x8x1024xbf16, #tpu.memory_space<vmem>>, %arg4: memref<64x256xbf16, #tpu.memory_space<vmem>>, %arg5: memref<16x432xbf16, #tpu.memory_space<vmem>>, %arg6: memref<16x1xf32, #tpu.memory_space<vmem>>, %arg7: memref<16x144xbf16, #tpu.memory_space<vmem>>, %arg8: memref<16x1xf32, #tpu.memory_space<vmem>>, %arg9: memref<256x1024xbf16, #tpu.memory_space<vmem>>, %arg10: memref<8x216xbf16, #tpu.memory_space<vmem>>, %arg11: memref<8x1xf32, #tpu.memory_space<vmem>>, %arg12: memref<8x72xbf16, #tpu.memory_space<vmem>>, %arg13: memref<8x1xf32, #tpu.memory_space<vmem>>, %arg14: memref<3x72xbf16, #tpu.memory_space<vmem>>, %arg15: memref<3x1xf32, #tpu.memory_space<vmem>>, %arg16: memref<1x3x1024xf32, #tpu.memory_space<vmem>>, %arg17: memref<48x1090xf32, #tpu.memory_space<vmem>>, %arg18: memref<432x1024xbf16, #tpu.memory_space<vmem>>) attributes {dimension_semantics = [#tpu.dimension_semantics<parallel>], iteration_bounds = array<i64: 2>, scalar_prefetch = 0 : i64, scratch_operands = 2 : i64, tpu.core_type = #tpu.core_type<tc>, window_params = [{transform_indices = @transform_0, window_bounds = array<i64: 1, 32, 64>}, {transform_indices = @transform_1, window_bounds = array<i64: 1, 16, 256>}, {transform_indices = @transform_2, window_bounds = array<i64: 1, 8, 1024>}, {pipeline_mode = #tpu.pipeline_mode<synchronous>, transform_indices = @transform_3, window_bounds = array<i64: 64, 256>}, {pipeline_mode = #tpu.pipeline_mode<synchronous>, transform_indices = @transform_4, window_bounds = array<i64: 16, 432>}, {pipeline_mode = #tpu.pipeline_mode<synchronous>, transform_indices = @transform_5, window_bounds = array<i64: 16, 1>}, {pipeline_mode = #tpu.pipeline_mode<synchronous>, transform_indices = @transform_6, window_bounds = array<i64: 16, 144>}, {pipeline_mode = #tpu.pipeline_mode<synchronous>, transform_indices = @transform_7, window_bounds = array<i64: 16, 1>}, {pipeline_mode = #tpu.pipeline_mode<synchronous>, transform_indices = @transform_8, window_bounds = array<i64: 256, 1024>}, {pipeline_mode = #tpu.pipeline_mode<synchronous>, transform_indices = @transform_9, window_bounds = array<i64: 8, 216>}, {pipeline_mode = #tpu.pipeline_mode<synchronous>, transform_indices = @transform_10, window_bounds = array<i64: 8, 1>}, {pipeline_mode = #tpu.pipeline_mode<synchronous>, transform_indices = @transform_11, window_bounds = array<i64: 8, 72>}, {pipeline_mode = #tpu.pipeline_mode<synchronous>, transform_indices = @transform_12, window_bounds = array<i64: 8, 1>}, {pipeline_mode = #tpu.pipeline_mode<synchronous>, transform_indices = @transform_13, window_bounds = array<i64: 3, 72>}, {pipeline_mode = #tpu.pipeline_mode<synchronous>, transform_indices = @transform_14, window_bounds = array<i64: 3, 1>}, {transform_indices = @transform_15, window_bounds = array<i64: 1, 3, 1024>}]} {
    %c0 = arith.constant 0 : index
    %c0_0 = arith.constant 0 : index
    %c0_1 = arith.constant 0 : index
    %0 = vector.load %arg1[%c0, %c0_0, %c0_1] : memref<1x32x64xbf16, #tpu.memory_space<vmem>>, vector<1x32x64xbf16>
    %1 = vector.shape_cast %0 : vector<1x32x64xbf16> to vector<32x64xbf16>
    %c0_2 = arith.constant 0 : index
    %c0_3 = arith.constant 0 : index
    %2 = vector.load %arg4[%c0_2, %c0_3] : memref<64x256xbf16, #tpu.memory_space<vmem>>, vector<64x256xbf16>
    %cst = arith.constant dense<0.000000e+00> : vector<32x256xf32>
    %3 = tpu.matmul %1, %2, %cst {dimension_numbers = #tpu.dot_dimension_numbers<[1], [0], [0], [1], [0, 0, 1, 1], [], []>} : vector<32x64xbf16>, vector<64x256xbf16>, vector<32x256xf32> -> vector<32x256xf32>
    %c0_4 = arith.constant 0 : index
    %c0_5 = arith.constant 0 : index
    %c0_6 = arith.constant 0 : index
    %4 = vector.load %arg2[%c0_4, %c0_5, %c0_6] : memref<1x16x256xbf16, #tpu.memory_space<vmem>>, vector<1x16x256xbf16>
    %5 = vector.shape_cast %4 : vector<1x16x256xbf16> to vector<16x256xbf16>
    %cst_7 = arith.constant 0.000000e+00 : f32
    %6 = vector.broadcast %cst_7 : f32 to vector<48x290xf32>
    %c0_8 = arith.constant 0 : index
    %c0_9 = arith.constant 0 : index
    %7 = vector.load %arg17[%c0_8, %c0_9] : memref<48x1090xf32, #tpu.memory_space<vmem>>, vector<48x290xf32>
    tpu.vector_store %arg17[%c0_8, %c0_9], %6 {strides = array<i32>} : memref<48x1090xf32, #tpu.memory_space<vmem>>, vector<48x290xf32>,
    %c0_10 = arith.constant 0 : index
    %c17 = arith.constant 17 : index
    %8 = vector.load %arg17[%c0_10, %c17] : memref<48x1090xf32, #tpu.memory_space<vmem>>, vector<32x256xf32>
    tpu.vector_store %arg17[%c0_10, %c17], %3 {strides = array<i32>} : memref<48x1090xf32, #tpu.memory_space<vmem>>, vector<32x256xf32>,
    %9 = arith.extf %5 : vector<16x256xbf16> to vector<16x256xf32>
    %c32 = arith.constant 32 : index
    %c17_11 = arith.constant 17 : index
    %10 = vector.load %arg17[%c32, %c17_11] : memref<48x1090xf32, #tpu.memory_space<vmem>>, vector<16x256xf32>
    tpu.vector_store %arg17[%c32, %c17_11], %9 {strides = array<i32>} : memref<48x1090xf32, #tpu.memory_space<vmem>>, vector<16x256xf32>,
    %11 = tpu.iota {dimensions = array<i32: 1>} : vector<1x256xi32>
    %c16_i32 = arith.constant 16 : i32
    %c0_i32 = arith.constant 0 : i32
    %12 = arith.cmpi eq, %c16_i32, %c0_i32 : i32
    %c1_i32 = arith.constant 1 : i32
    %13 = arith.select %12, %c1_i32, %c16_i32 : i32
    %14 = vector.broadcast %13 : i32 to vector<1x256xi32>
    %15 = arith.remsi %11, %14 : vector<1x256xi32>
    %c0_i32_12 = arith.constant 0 : i32
    %16 = vector.broadcast %c0_i32_12 : i32 to vector<1x256xi32>
    %17 = arith.cmpi ne, %15, %16 : vector<1x256xi32>
    %c0_i32_13 = arith.constant 0 : i32
    %18 = vector.broadcast %c0_i32_13 : i32 to vector<1x256xi32>
    %19 = arith.cmpi slt, %15, %18 : vector<1x256xi32>
    %c0_i32_14 = arith.constant 0 : i32
    %20 = arith.cmpi slt, %13, %c0_i32_14 : i32
    %21 = vector.broadcast %20 : i1 to vector<1x256xi1>
    %22 = vector.broadcast %21 : vector<1x256xi1> to vector<1x256xi1>
    %23 = arith.xori %19, %22 : vector<1x256xi1>
    %24 = arith.andi %23, %17 : vector<1x256xi1>
    %25 = vector.broadcast %13 : i32 to vector<1x256xi32>
    %26 = arith.addi %15, %25 : vector<1x256xi32>
    %27 = arith.select %24, %26, %15 : vector<1x256xi1>, vector<1x256xi32>
    %c0_i32_15 = arith.constant 0 : i32
    %28 = vector.broadcast %c0_i32_15 : i32 to vector<1x256xi32>
    %29 = arith.cmpi ne, %27, %28 : vector<1x256xi32>
    %c15_i32 = arith.constant 15 : i32
    %30 = vector.broadcast %c15_i32 : i32 to vector<1x256xi32>
    %31 = arith.cmpi ne, %27, %30 : vector<1x256xi32>
    %c0_16 = arith.constant 0 : index
    %c0_17 = arith.constant 0 : index
    %32 = vector.load %arg17[%c0_16, %c0_17] : memref<48x1090xf32, #tpu.memory_space<vmem>>, vector<48x256xf32>
    %cst_18 = arith.constant 0.000000e+00 : f32
    %33 = vector.shape_cast %29 : vector<1x256xi1> to vector<1x256xi1>
    %34 = vector.broadcast %33 : vector<1x256xi1> to vector<48x256xi1>
    %35 = vector.broadcast %cst_18 : f32 to vector<48x256xf32>
    %36 = arith.select %34, %32, %35 : vector<48x256xi1>, vector<48x256xf32>
    %37 = arith.truncf %36 : vector<48x256xf32> to vector<48x256xbf16>
    %c0_19 = arith.constant 0 : index
    %c0_20 = arith.constant 0 : index
    %38 = vector.load %arg18[%c0_19, %c0_20] : memref<432x1024xbf16, #tpu.memory_space<vmem>>, vector<48x256xbf16>
    tpu.vector_store %arg18[%c0_19, %c0_20], %37 {strides = array<i32>} : memref<432x1024xbf16, #tpu.memory_space<vmem>>, vector<48x256xbf16>,
    %c0_21 = arith.constant 0 : index
    %c1 = arith.constant 1 : index
    %39 = vector.load %arg17[%c0_21, %c1] : memref<48x1090xf32, #tpu.memory_space<vmem>>, vector<48x256xf32>
    %40 = arith.truncf %39 : vector<48x256xf32> to vector<48x256xbf16>
    %c48 = arith.constant 48 : index
    %c0_22 = arith.constant 0 : index
    %41 = vector.load %arg18[%c48, %c0_22] : memref<432x1024xbf16, #tpu.memory_space<vmem>>, vector<48x256xbf16>
    tpu.vector_store %arg18[%c48, %c0_22], %40 {strides = array<i32>} : memref<432x1024xbf16, #tpu.memory_space<vmem>>, vector<48x256xbf16>,
    %c0_23 = arith.constant 0 : index
    %c2 = arith.constant 2 : index
    %42 = vector.load %arg17[%c0_23, %c2] : memref<48x1090xf32, #tpu.memory_space<vmem>>, vector<48x256xf32>
    %cst_24 = arith.constant 0.000000e+00 : f32
    %43 = vector.shape_cast %31 : vector<1x256xi1> to vector<1x256xi1>
    %44 = vector.broadcast %43 : vector<1x256xi1> to vector<48x256xi1>
    %45 = vector.broadcast %cst_24 : f32 to vector<48x256xf32>
    %46 = arith.select %44, %42, %45 : vector<48x256xi1>, vector<48x256xf32>
    %47 = arith.truncf %46 : vector<48x256xf32> to vector<48x256xbf16>
    %c96 = arith.constant 96 : index
    %c0_25 = arith.constant 0 : index
    %48 = vector.load %arg18[%c96, %c0_25] : memref<432x1024xbf16, #tpu.memory_space<vmem>>, vector<48x256xbf16>
    tpu.vector_store %arg18[%c96, %c0_25], %47 {strides = array<i32>} : memref<432x1024xbf16, #tpu.memory_space<vmem>>, vector<48x256xbf16>,
    %c0_26 = arith.constant 0 : index
    %c16 = arith.constant 16 : index
    %49 = vector.load %arg17[%c0_26, %c16] : memref<48x1090xf32, #tpu.memory_space<vmem>>, vector<48x256xf32>
    %cst_27 = arith.constant 0.000000e+00 : f32
    %50 = vector.shape_cast %29 : vector<1x256xi1> to vector<1x256xi1>
    %51 = vector.broadcast %50 : vector<1x256xi1> to vector<48x256xi1>
    %52 = vector.broadcast %cst_27 : f32 to vector<48x256xf32>
    %53 = arith.select %51, %49, %52 : vector<48x256xi1>, vector<48x256xf32>
    %54 = arith.truncf %53 : vector<48x256xf32> to vector<48x256xbf16>
    %c144 = arith.constant 144 : index
    %c0_28 = arith.constant 0 : index
    %55 = vector.load %arg18[%c144, %c0_28] : memref<432x1024xbf16, #tpu.memory_space<vmem>>, vector<48x256xbf16>
    tpu.vector_store %arg18[%c144, %c0_28], %54 {strides = array<i32>} : memref<432x1024xbf16, #tpu.memory_space<vmem>>, vector<48x256xbf16>,
    %c0_29 = arith.constant 0 : index
    %c17_30 = arith.constant 17 : index
    %56 = vector.load %arg17[%c0_29, %c17_30] : memref<48x1090xf32, #tpu.memory_space<vmem>>, vector<48x256xf32>
    %57 = arith.truncf %56 : vector<48x256xf32> to vector<48x256xbf16>
    %c192 = arith.constant 192 : index
    %c0_31 = arith.constant 0 : index
    %58 = vector.load %arg18[%c192, %c0_31] : memref<432x1024xbf16, #tpu.memory_space<vmem>>, vector<48x256xbf16>
    tpu.vector_store %arg18[%c192, %c0_31], %57 {strides = array<i32>} : memref<432x1024xbf16, #tpu.memory_space<vmem>>, vector<48x256xbf16>,
    %c0_32 = arith.constant 0 : index
    %c18 = arith.constant 18 : index
    %59 = vector.load %arg17[%c0_32, %c18] : memref<48x1090xf32, #tpu.memory_space<vmem>>, vector<48x256xf32>
    %cst_33 = arith.constant 0.000000e+00 : f32
    %60 = vector.shape_cast %31 : vector<1x256xi1> to vector<1x256xi1>
    %61 = vector.broadcast %60 : vector<1x256xi1> to vector<48x256xi1>
    %62 = vector.broadcast %cst_33 : f32 to vector<48x256xf32>
    %63 = arith.select %61, %59, %62 : vector<48x256xi1>, vector<48x256xf32>
    %64 = arith.truncf %63 : vector<48x256xf32> to vector<48x256xbf16>
    %c240 = arith.constant 240 : index
    %c0_34 = arith.constant 0 : index
    %65 = vector.load %arg18[%c240, %c0_34] : memref<432x1024xbf16, #tpu.memory_space<vmem>>, vector<48x256xbf16>
    tpu.vector_store %arg18[%c240, %c0_34], %64 {strides = array<i32>} : memref<432x1024xbf16, #tpu.memory_space<vmem>>, vector<48x256xbf16>,
    %c0_35 = arith.constant 0 : index
    %c32_36 = arith.constant 32 : index
    %66 = vector.load %arg17[%c0_35, %c32_36] : memref<48x1090xf32, #tpu.memory_space<vmem>>, vector<48x256xf32>
    %cst_37 = arith.constant 0.000000e+00 : f32
    %67 = vector.shape_cast %29 : vector<1x256xi1> to vector<1x256xi1>
    %68 = vector.broadcast %67 : vector<1x256xi1> to vector<48x256xi1>
    %69 = vector.broadcast %cst_37 : f32 to vector<48x256xf32>
    %70 = arith.select %68, %66, %69 : vector<48x256xi1>, vector<48x256xf32>
    %71 = arith.truncf %70 : vector<48x256xf32> to vector<48x256xbf16>
    %c288 = arith.constant 288 : index
    %c0_38 = arith.constant 0 : index
    %72 = vector.load %arg18[%c288, %c0_38] : memref<432x1024xbf16, #tpu.memory_space<vmem>>, vector<48x256xbf16>
    tpu.vector_store %arg18[%c288, %c0_38], %71 {strides = array<i32>} : memref<432x1024xbf16, #tpu.memory_space<vmem>>, vector<48x256xbf16>,
    %c0_39 = arith.constant 0 : index
    %c33 = arith.constant 33 : index
    %73 = vector.load %arg17[%c0_39, %c33] : memref<48x1090xf32, #tpu.memory_space<vmem>>, vector<48x256xf32>
    %74 = arith.truncf %73 : vector<48x256xf32> to vector<48x256xbf16>
    %c336 = arith.constant 336 : index
    %c0_40 = arith.constant 0 : index
    %75 = vector.load %arg18[%c336, %c0_40] : memref<432x1024xbf16, #tpu.memory_space<vmem>>, vector<48x256xbf16>
    tpu.vector_store %arg18[%c336, %c0_40], %74 {strides = array<i32>} : memref<432x1024xbf16, #tpu.memory_space<vmem>>, vector<48x256xbf16>,
    %c0_41 = arith.constant 0 : index
    %c34 = arith.constant 34 : index
    %76 = vector.load %arg17[%c0_41, %c34] : memref<48x1090xf32, #tpu.memory_space<vmem>>, vector<48x256xf32>
    %cst_42 = arith.constant 0.000000e+00 : f32
    %77 = vector.shape_cast %31 : vector<1x256xi1> to vector<1x256xi1>
    %78 = vector.broadcast %77 : vector<1x256xi1> to vector<48x256xi1>
    %79 = vector.broadcast %cst_42 : f32 to vector<48x256xf32>
    %80 = arith.select %78, %76, %79 : vector<48x256xi1>, vector<48x256xf32>
    %81 = arith.truncf %80 : vector<48x256xf32> to vector<48x256xbf16>
    %c384 = arith.constant 384 : index
    %c0_43 = arith.constant 0 : index
    %82 = vector.load %arg18[%c384, %c0_43] : memref<432x1024xbf16, #tpu.memory_space<vmem>>, vector<48x256xbf16>
    tpu.vector_store %arg18[%c384, %c0_43], %81 {strides = array<i32>} : memref<432x1024xbf16, #tpu.memory_space<vmem>>, vector<48x256xbf16>,
    %c0_44 = arith.constant 0 : index
    %c0_45 = arith.constant 0 : index
    %83 = vector.load %arg5[%c0_44, %c0_45] : memref<16x432xbf16, #tpu.memory_space<vmem>>, vector<16x432xbf16>
    %c0_46 = arith.constant 0 : index
    %c0_47 = arith.constant 0 : index
    %84 = vector.load %arg18[%c0_46, %c0_47] : memref<432x1024xbf16, #tpu.memory_space<vmem>>, vector<432x256xbf16>
    %cst_48 = arith.constant dense<0.000000e+00> : vector<16x256xf32>
    %85 = tpu.matmul %83, %84, %cst_48 {dimension_numbers = #tpu.dot_dimension_numbers<[1], [0], [0], [1], [0, 0, 1, 1], [], []>} : vector<16x432xbf16>, vector<432x256xbf16>, vector<16x256xf32> -> vector<16x256xf32>
    %c0_49 = arith.constant 0 : index
    %c0_50 = arith.constant 0 : index
    %86 = vector.load %arg6[%c0_49, %c0_50] : memref<16x1xf32, #tpu.memory_space<vmem>>, vector<16x1xf32>
    %87 = vector.broadcast %86 : vector<16x1xf32> to vector<16x256xf32>
    %88 = arith.addf %85, %87 : vector<16x256xf32>
    %cst_51 = arith.constant 0.000000e+00 : f32
    %89 = vector.broadcast %cst_51 : f32 to vector<16x256xf32>
    %90 = arith.maximumf %88, %89 : vector<16x256xf32>
    %cst_52 = arith.constant 0.000000e+00 : f32
    %91 = vector.broadcast %cst_52 : f32 to vector<16x290xf32>
    %c0_53 = arith.constant 0 : index
    %c0_54 = arith.constant 0 : index
    %92 = vector.load %arg17[%c0_53, %c0_54] : memref<48x1090xf32, #tpu.memory_space<vmem>>, vector<16x290xf32>
    tpu.vector_store %arg17[%c0_53, %c0_54], %91 {strides = array<i32>} : memref<48x1090xf32, #tpu.memory_space<vmem>>, vector<16x290xf32>,
    %c0_55 = arith.constant 0 : index
    %c17_56 = arith.constant 17 : index
    %93 = vector.load %arg17[%c0_55, %c17_56] : memref<48x1090xf32, #tpu.memory_space<vmem>>, vector<16x256xf32>
    tpu.vector_store %arg17[%c0_55, %c17_56], %90 {strides = array<i32>} : memref<48x1090xf32, #tpu.memory_space<vmem>>, vector<16x256xf32>,
    %94 = tpu.iota {dimensions = array<i32: 1>} : vector<1x256xi32>
    %c16_i32_57 = arith.constant 16 : i32
    %c0_i32_58 = arith.constant 0 : i32
    %95 = arith.cmpi eq, %c16_i32_57, %c0_i32_58 : i32
    %c1_i32_59 = arith.constant 1 : i32
    %96 = arith.select %95, %c1_i32_59, %c16_i32_57 : i32
    %97 = vector.broadcast %96 : i32 to vector<1x256xi32>
    %98 = arith.remsi %94, %97 : vector<1x256xi32>
    %c0_i32_60 = arith.constant 0 : i32
    %99 = vector.broadcast %c0_i32_60 : i32 to vector<1x256xi32>
    %100 = arith.cmpi ne, %98, %99 : vector<1x256xi32>
    %c0_i32_61 = arith.constant 0 : i32
    %101 = vector.broadcast %c0_i32_61 : i32 to vector<1x256xi32>
    %102 = arith.cmpi slt, %98, %101 : vector<1x256xi32>
    %c0_i32_62 = arith.constant 0 : i32
    %103 = arith.cmpi slt, %96, %c0_i32_62 : i32
    %104 = vector.broadcast %103 : i1 to vector<1x256xi1>
    %105 = vector.broadcast %104 : vector<1x256xi1> to vector<1x256xi1>
    %106 = arith.xori %102, %105 : vector<1x256xi1>
    %107 = arith.andi %106, %100 : vector<1x256xi1>
    %108 = vector.broadcast %96 : i32 to vector<1x256xi32>
    %109 = arith.addi %98, %108 : vector<1x256xi32>
    %110 = arith.select %107, %109, %98 : vector<1x256xi1>, vector<1x256xi32>
    %c0_i32_63 = arith.constant 0 : i32
    %111 = vector.broadcast %c0_i32_63 : i32 to vector<1x256xi32>
    %112 = arith.cmpi ne, %110, %111 : vector<1x256xi32>
    %c15_i32_64 = arith.constant 15 : i32
    %113 = vector.broadcast %c15_i32_64 : i32 to vector<1x256xi32>
    %114 = arith.cmpi ne, %110, %113 : vector<1x256xi32>
    %c0_65 = arith.constant 0 : index
    %c0_66 = arith.constant 0 : index
    %115 = vector.load %arg17[%c0_65, %c0_66] : memref<48x1090xf32, #tpu.memory_space<vmem>>, vector<16x256xf32>
    %cst_67 = arith.constant 0.000000e+00 : f32
    %116 = vector.shape_cast %112 : vector<1x256xi1> to vector<1x256xi1>
    %117 = vector.broadcast %116 : vector<1x256xi1> to vector<16x256xi1>
    %118 = vector.broadcast %cst_67 : f32 to vector<16x256xf32>
    %119 = arith.select %117, %115, %118 : vector<16x256xi1>, vector<16x256xf32>
    %120 = arith.truncf %119 : vector<16x256xf32> to vector<16x256xbf16>
    %c0_68 = arith.constant 0 : index
    %c0_69 = arith.constant 0 : index
    %121 = vector.load %arg18[%c0_68, %c0_69] : memref<432x1024xbf16, #tpu.memory_space<vmem>>, vector<16x256xbf16>
    tpu.vector_store %arg18[%c0_68, %c0_69], %120 {strides = array<i32>} : memref<432x1024xbf16, #tpu.memory_space<vmem>>, vector<16x256xbf16>,
    %c0_70 = arith.constant 0 : index
    %c1_71 = arith.constant 1 : index
    %122 = vector.load %arg17[%c0_70, %c1_71] : memref<48x1090xf32, #tpu.memory_space<vmem>>, vector<16x256xf32>
    %123 = arith.truncf %122 : vector<16x256xf32> to vector<16x256xbf16>
    %c16_72 = arith.constant 16 : index
    %c0_73 = arith.constant 0 : index
    %124 = vector.load %arg18[%c16_72, %c0_73] : memref<432x1024xbf16, #tpu.memory_space<vmem>>, vector<16x256xbf16>
    tpu.vector_store %arg18[%c16_72, %c0_73], %123 {strides = array<i32>} : memref<432x1024xbf16, #tpu.memory_space<vmem>>, vector<16x256xbf16>,
    %c0_74 = arith.constant 0 : index
    %c2_75 = arith.constant 2 : index
    %125 = vector.load %arg17[%c0_74, %c2_75] : memref<48x1090xf32, #tpu.memory_space<vmem>>, vector<16x256xf32>
    %cst_76 = arith.constant 0.000000e+00 : f32
    %126 = vector.shape_cast %114 : vector<1x256xi1> to vector<1x256xi1>
    %127 = vector.broadcast %126 : vector<1x256xi1> to vector<16x256xi1>
    %128 = vector.broadcast %cst_76 : f32 to vector<16x256xf32>
    %129 = arith.select %127, %125, %128 : vector<16x256xi1>, vector<16x256xf32>
    %130 = arith.truncf %129 : vector<16x256xf32> to vector<16x256xbf16>
    %c32_77 = arith.constant 32 : index
    %c0_78 = arith.constant 0 : index
    %131 = vector.load %arg18[%c32_77, %c0_78] : memref<432x1024xbf16, #tpu.memory_space<vmem>>, vector<16x256xbf16>
    tpu.vector_store %arg18[%c32_77, %c0_78], %130 {strides = array<i32>} : memref<432x1024xbf16, #tpu.memory_space<vmem>>, vector<16x256xbf16>,
    %c0_79 = arith.constant 0 : index
    %c16_80 = arith.constant 16 : index
    %132 = vector.load %arg17[%c0_79, %c16_80] : memref<48x1090xf32, #tpu.memory_space<vmem>>, vector<16x256xf32>
    %cst_81 = arith.constant 0.000000e+00 : f32
    %133 = vector.shape_cast %112 : vector<1x256xi1> to vector<1x256xi1>
    %134 = vector.broadcast %133 : vector<1x256xi1> to vector<16x256xi1>
    %135 = vector.broadcast %cst_81 : f32 to vector<16x256xf32>
    %136 = arith.select %134, %132, %135 : vector<16x256xi1>, vector<16x256xf32>
    %137 = arith.truncf %136 : vector<16x256xf32> to vector<16x256xbf16>
    %c48_82 = arith.constant 48 : index
    %c0_83 = arith.constant 0 : index
    %138 = vector.load %arg18[%c48_82, %c0_83] : memref<432x1024xbf16, #tpu.memory_space<vmem>>, vector<16x256xbf16>
    tpu.vector_store %arg18[%c48_82, %c0_83], %137 {strides = array<i32>} : memref<432x1024xbf16, #tpu.memory_space<vmem>>, vector<16x256xbf16>,
    %c0_84 = arith.constant 0 : index
    %c17_85 = arith.constant 17 : index
    %139 = vector.load %arg17[%c0_84, %c17_85] : memref<48x1090xf32, #tpu.memory_space<vmem>>, vector<16x256xf32>
    %140 = arith.truncf %139 : vector<16x256xf32> to vector<16x256xbf16>
    %c64 = arith.constant 64 : index
    %c0_86 = arith.constant 0 : index
    %141 = vector.load %arg18[%c64, %c0_86] : memref<432x1024xbf16, #tpu.memory_space<vmem>>, vector<16x256xbf16>
    tpu.vector_store %arg18[%c64, %c0_86], %140 {strides = array<i32>} : memref<432x1024xbf16, #tpu.memory_space<vmem>>, vector<16x256xbf16>,
    %c0_87 = arith.constant 0 : index
    %c18_88 = arith.constant 18 : index
    %142 = vector.load %arg17[%c0_87, %c18_88] : memref<48x1090xf32, #tpu.memory_space<vmem>>, vector<16x256xf32>
    %cst_89 = arith.constant 0.000000e+00 : f32
    %143 = vector.shape_cast %114 : vector<1x256xi1> to vector<1x256xi1>
    %144 = vector.broadcast %143 : vector<1x256xi1> to vector<16x256xi1>
    %145 = vector.broadcast %cst_89 : f32 to vector<16x256xf32>
    %146 = arith.select %144, %142, %145 : vector<16x256xi1>, vector<16x256xf32>
    %147 = arith.truncf %146 : vector<16x256xf32> to vector<16x256xbf16>
    %c80 = arith.constant 80 : index
    %c0_90 = arith.constant 0 : index
    %148 = vector.load %arg18[%c80, %c0_90] : memref<432x1024xbf16, #tpu.memory_space<vmem>>, vector<16x256xbf16>
    tpu.vector_store %arg18[%c80, %c0_90], %147 {strides = array<i32>} : memref<432x1024xbf16, #tpu.memory_space<vmem>>, vector<16x256xbf16>,
    %c0_91 = arith.constant 0 : index
    %c32_92 = arith.constant 32 : index
    %149 = vector.load %arg17[%c0_91, %c32_92] : memref<48x1090xf32, #tpu.memory_space<vmem>>, vector<16x256xf32>
    %cst_93 = arith.constant 0.000000e+00 : f32
    %150 = vector.shape_cast %112 : vector<1x256xi1> to vector<1x256xi1>
    %151 = vector.broadcast %150 : vector<1x256xi1> to vector<16x256xi1>
    %152 = vector.broadcast %cst_93 : f32 to vector<16x256xf32>
    %153 = arith.select %151, %149, %152 : vector<16x256xi1>, vector<16x256xf32>
    %154 = arith.truncf %153 : vector<16x256xf32> to vector<16x256xbf16>
    %c96_94 = arith.constant 96 : index
    %c0_95 = arith.constant 0 : index
    %155 = vector.load %arg18[%c96_94, %c0_95] : memref<432x1024xbf16, #tpu.memory_space<vmem>>, vector<16x256xbf16>
    tpu.vector_store %arg18[%c96_94, %c0_95], %154 {strides = array<i32>} : memref<432x1024xbf16, #tpu.memory_space<vmem>>, vector<16x256xbf16>,
    %c0_96 = arith.constant 0 : index
    %c33_97 = arith.constant 33 : index
    %156 = vector.load %arg17[%c0_96, %c33_97] : memref<48x1090xf32, #tpu.memory_space<vmem>>, vector<16x256xf32>
    %157 = arith.truncf %156 : vector<16x256xf32> to vector<16x256xbf16>
    %c112 = arith.constant 112 : index
    %c0_98 = arith.constant 0 : index
    %158 = vector.load %arg18[%c112, %c0_98] : memref<432x1024xbf16, #tpu.memory_space<vmem>>, vector<16x256xbf16>
    tpu.vector_store %arg18[%c112, %c0_98], %157 {strides = array<i32>} : memref<432x1024xbf16, #tpu.memory_space<vmem>>, vector<16x256xbf16>,
    %c0_99 = arith.constant 0 : index
    %c34_100 = arith.constant 34 : index
    %159 = vector.load %arg17[%c0_99, %c34_100] : memref<48x1090xf32, #tpu.memory_space<vmem>>, vector<16x256xf32>
    %cst_101 = arith.constant 0.000000e+00 : f32
    %160 = vector.shape_cast %114 : vector<1x256xi1> to vector<1x256xi1>
    %161 = vector.broadcast %160 : vector<1x256xi1> to vector<16x256xi1>
    %162 = vector.broadcast %cst_101 : f32 to vector<16x256xf32>
    %163 = arith.select %161, %159, %162 : vector<16x256xi1>, vector<16x256xf32>
    %164 = arith.truncf %163 : vector<16x256xf32> to vector<16x256xbf16>
    %c128 = arith.constant 128 : index
    %c0_102 = arith.constant 0 : index
    %165 = vector.load %arg18[%c128, %c0_102] : memref<432x1024xbf16, #tpu.memory_space<vmem>>, vector<16x256xbf16>
    tpu.vector_store %arg18[%c128, %c0_102], %164 {strides = array<i32>} : memref<432x1024xbf16, #tpu.memory_space<vmem>>, vector<16x256xbf16>,
    %c0_103 = arith.constant 0 : index
    %c0_104 = arith.constant 0 : index
    %166 = vector.load %arg7[%c0_103, %c0_104] : memref<16x144xbf16, #tpu.memory_space<vmem>>, vector<16x144xbf16>
    %c0_105 = arith.constant 0 : index
    %c0_106 = arith.constant 0 : index
    %167 = vector.load %arg18[%c0_105, %c0_106] : memref<432x1024xbf16, #tpu.memory_space<vmem>>, vector<144x256xbf16>
    %cst_107 = arith.constant dense<0.000000e+00> : vector<16x256xf32>
    %168 = tpu.matmul %166, %167, %cst_107 {dimension_numbers = #tpu.dot_dimension_numbers<[1], [0], [0], [1], [0, 0, 1, 1], [], []>} : vector<16x144xbf16>, vector<144x256xbf16>, vector<16x256xf32> -> vector<16x256xf32>
    %c0_108 = arith.constant 0 : index
    %c0_109 = arith.constant 0 : index
    %169 = vector.load %arg8[%c0_108, %c0_109] : memref<16x1xf32, #tpu.memory_space<vmem>>, vector<16x1xf32>
    %170 = vector.broadcast %169 : vector<16x1xf32> to vector<16x256xf32>
    %171 = arith.addf %168, %170 : vector<16x256xf32>
    %cst_110 = arith.constant 0.000000e+00 : f32
    %172 = vector.broadcast %cst_110 : f32 to vector<16x256xf32>
    %173 = arith.maximumf %171, %172 : vector<16x256xf32>
    %174 = arith.truncf %173 : vector<16x256xf32> to vector<16x256xbf16>
    %c0_111 = arith.constant 0 : index
    %c0_112 = arith.constant 0 : index
    %175 = vector.load %arg9[%c0_111, %c0_112] : memref<256x1024xbf16, #tpu.memory_space<vmem>>, vector<256x1024xbf16>
    %cst_113 = arith.constant dense<0.000000e+00> : vector<16x1024xf32>
    %176 = tpu.matmul %174, %175, %cst_113 {dimension_numbers = #tpu.dot_dimension_numbers<[1], [0], [0], [1], [0, 0, 1, 1], [], []>} : vector<16x256xbf16>, vector<256x1024xbf16>, vector<16x1024xf32> -> vector<16x1024xf32>
    %c0_114 = arith.constant 0 : index
    %c0_115 = arith.constant 0 : index
    %c0_116 = arith.constant 0 : index
    %177 = vector.load %arg3[%c0_114, %c0_115, %c0_116] : memref<1x8x1024xbf16, #tpu.memory_space<vmem>>, vector<1x8x1024xbf16>
    %178 = vector.shape_cast %177 : vector<1x8x1024xbf16> to vector<8x1024xbf16>
    %cst_117 = arith.constant 0.000000e+00 : f32
    %179 = vector.broadcast %cst_117 : f32 to vector<24x1090xf32>
    %c0_118 = arith.constant 0 : index
    %c0_119 = arith.constant 0 : index
    %180 = vector.load %arg17[%c0_118, %c0_119] : memref<48x1090xf32, #tpu.memory_space<vmem>>, vector<24x1090xf32>
    tpu.vector_store %arg17[%c0_118, %c0_119], %179 {strides = array<i32>} : memref<48x1090xf32, #tpu.memory_space<vmem>>, vector<24x1090xf32>,
    %c0_120 = arith.constant 0 : index
    %c33_121 = arith.constant 33 : index
    %181 = vector.load %arg17[%c0_120, %c33_121] : memref<48x1090xf32, #tpu.memory_space<vmem>>, vector<16x1024xf32>
    tpu.vector_store %arg17[%c0_120, %c33_121], %176 {strides = array<i32>} : memref<48x1090xf32, #tpu.memory_space<vmem>>, vector<16x1024xf32>,
    %182 = arith.extf %178 : vector<8x1024xbf16> to vector<8x1024xf32>
    %c16_122 = arith.constant 16 : index
    %c33_123 = arith.constant 33 : index
    %183 = vector.load %arg17[%c16_122, %c33_123] : memref<48x1090xf32, #tpu.memory_space<vmem>>, vector<8x1024xf32>
    tpu.vector_store %arg17[%c16_122, %c33_123], %182 {strides = array<i32>} : memref<48x1090xf32, #tpu.memory_space<vmem>>, vector<8x1024xf32>,
    %184 = tpu.iota {dimensions = array<i32: 1>} : vector<1x1024xi32>
    %c32_i32 = arith.constant 32 : i32
    %c0_i32_124 = arith.constant 0 : i32
    %185 = arith.cmpi eq, %c32_i32, %c0_i32_124 : i32
    %c1_i32_125 = arith.constant 1 : i32
    %186 = arith.select %185, %c1_i32_125, %c32_i32 : i32
    %187 = vector.broadcast %186 : i32 to vector<1x1024xi32>
    %188 = arith.remsi %184, %187 : vector<1x1024xi32>
    %c0_i32_126 = arith.constant 0 : i32
    %189 = vector.broadcast %c0_i32_126 : i32 to vector<1x1024xi32>
    %190 = arith.cmpi ne, %188, %189 : vector<1x1024xi32>
    %c0_i32_127 = arith.constant 0 : i32
    %191 = vector.broadcast %c0_i32_127 : i32 to vector<1x1024xi32>
    %192 = arith.cmpi slt, %188, %191 : vector<1x1024xi32>
    %c0_i32_128 = arith.constant 0 : i32
    %193 = arith.cmpi slt, %186, %c0_i32_128 : i32
    %194 = vector.broadcast %193 : i1 to vector<1x1024xi1>
    %195 = vector.broadcast %194 : vector<1x1024xi1> to vector<1x1024xi1>
    %196 = arith.xori %192, %195 : vector<1x1024xi1>
    %197 = arith.andi %196, %190 : vector<1x1024xi1>
    %198 = vector.broadcast %186 : i32 to vector<1x1024xi32>
    %199 = arith.addi %188, %198 : vector<1x1024xi32>
    %200 = arith.select %197, %199, %188 : vector<1x1024xi1>, vector<1x1024xi32>
    %c0_i32_129 = arith.constant 0 : i32
    %201 = vector.broadcast %c0_i32_129 : i32 to vector<1x1024xi32>
    %202 = arith.cmpi ne, %200, %201 : vector<1x1024xi32>
    %c31_i32 = arith.constant 31 : i32
    %203 = vector.broadcast %c31_i32 : i32 to vector<1x1024xi32>
    %204 = arith.cmpi ne, %200, %203 : vector<1x1024xi32>
    %c0_130 = arith.constant 0 : index
    %c0_131 = arith.constant 0 : index
    %205 = vector.load %arg17[%c0_130, %c0_131] : memref<48x1090xf32, #tpu.memory_space<vmem>>, vector<24x1024xf32>
    %cst_132 = arith.constant 0.000000e+00 : f32
    %206 = vector.shape_cast %202 : vector<1x1024xi1> to vector<1x1024xi1>
    %207 = vector.broadcast %206 : vector<1x1024xi1> to vector<24x1024xi1>
    %208 = vector.broadcast %cst_132 : f32 to vector<24x1024xf32>
    %209 = arith.select %207, %205, %208 : vector<24x1024xi1>, vector<24x1024xf32>
    %210 = arith.truncf %209 : vector<24x1024xf32> to vector<24x1024xbf16>
    %c0_133 = arith.constant 0 : index
    %c0_134 = arith.constant 0 : index
    %211 = vector.load %arg18[%c0_133, %c0_134] : memref<432x1024xbf16, #tpu.memory_space<vmem>>, vector<24x1024xbf16>
    tpu.vector_store %arg18[%c0_133, %c0_134], %210 {strides = array<i32>} : memref<432x1024xbf16, #tpu.memory_space<vmem>>, vector<24x1024xbf16>,
    %c0_135 = arith.constant 0 : index
    %c1_136 = arith.constant 1 : index
    %212 = vector.load %arg17[%c0_135, %c1_136] : memref<48x1090xf32, #tpu.memory_space<vmem>>, vector<24x1024xf32>
    %213 = arith.truncf %212 : vector<24x1024xf32> to vector<24x1024xbf16>
    %c24 = arith.constant 24 : index
    %c0_137 = arith.constant 0 : index
    %214 = vector.load %arg18[%c24, %c0_137] : memref<432x1024xbf16, #tpu.memory_space<vmem>>, vector<24x1024xbf16>
    tpu.vector_store %arg18[%c24, %c0_137], %213 {strides = array<i32>} : memref<432x1024xbf16, #tpu.memory_space<vmem>>, vector<24x1024xbf16>,
    %c0_138 = arith.constant 0 : index
    %c2_139 = arith.constant 2 : index
    %215 = vector.load %arg17[%c0_138, %c2_139] : memref<48x1090xf32, #tpu.memory_space<vmem>>, vector<24x1024xf32>
    %cst_140 = arith.constant 0.000000e+00 : f32
    %216 = vector.shape_cast %204 : vector<1x1024xi1> to vector<1x1024xi1>
    %217 = vector.broadcast %216 : vector<1x1024xi1> to vector<24x1024xi1>
    %218 = vector.broadcast %cst_140 : f32 to vector<24x1024xf32>
    %219 = arith.select %217, %215, %218 : vector<24x1024xi1>, vector<24x1024xf32>
    %220 = arith.truncf %219 : vector<24x1024xf32> to vector<24x1024xbf16>
    %c48_141 = arith.constant 48 : index
    %c0_142 = arith.constant 0 : index
    %221 = vector.load %arg18[%c48_141, %c0_142] : memref<432x1024xbf16, #tpu.memory_space<vmem>>, vector<24x1024xbf16>
    tpu.vector_store %arg18[%c48_141, %c0_142], %220 {strides = array<i32>} : memref<432x1024xbf16, #tpu.memory_space<vmem>>, vector<24x1024xbf16>,
    %c0_143 = arith.constant 0 : index
    %c32_144 = arith.constant 32 : index
    %222 = vector.load %arg17[%c0_143, %c32_144] : memref<48x1090xf32, #tpu.memory_space<vmem>>, vector<24x1024xf32>
    %cst_145 = arith.constant 0.000000e+00 : f32
    %223 = vector.shape_cast %202 : vector<1x1024xi1> to vector<1x1024xi1>
    %224 = vector.broadcast %223 : vector<1x1024xi1> to vector<24x1024xi1>
    %225 = vector.broadcast %cst_145 : f32 to vector<24x1024xf32>
    %226 = arith.select %224, %222, %225 : vector<24x1024xi1>, vector<24x1024xf32>
    %227 = arith.truncf %226 : vector<24x1024xf32> to vector<24x1024xbf16>
    %c72 = arith.constant 72 : index
    %c0_146 = arith.constant 0 : index
    %228 = vector.load %arg18[%c72, %c0_146] : memref<432x1024xbf16, #tpu.memory_space<vmem>>, vector<24x1024xbf16>
    tpu.vector_store %arg18[%c72, %c0_146], %227 {strides = array<i32>} : memref<432x1024xbf16, #tpu.memory_space<vmem>>, vector<24x1024xbf16>,
    %c0_147 = arith.constant 0 : index
    %c33_148 = arith.constant 33 : index
    %229 = vector.load %arg17[%c0_147, %c33_148] : memref<48x1090xf32, #tpu.memory_space<vmem>>, vector<24x1024xf32>
    %230 = arith.truncf %229 : vector<24x1024xf32> to vector<24x1024xbf16>
    %c96_149 = arith.constant 96 : index
    %c0_150 = arith.constant 0 : index
    %231 = vector.load %arg18[%c96_149, %c0_150] : memref<432x1024xbf16, #tpu.memory_space<vmem>>, vector<24x1024xbf16>
    tpu.vector_store %arg18[%c96_149, %c0_150], %230 {strides = array<i32>} : memref<432x1024xbf16, #tpu.memory_space<vmem>>, vector<24x1024xbf16>,
    %c0_151 = arith.constant 0 : index
    %c34_152 = arith.constant 34 : index
    %232 = vector.load %arg17[%c0_151, %c34_152] : memref<48x1090xf32, #tpu.memory_space<vmem>>, vector<24x1024xf32>
    %cst_153 = arith.constant 0.000000e+00 : f32
    %233 = vector.shape_cast %204 : vector<1x1024xi1> to vector<1x1024xi1>
    %234 = vector.broadcast %233 : vector<1x1024xi1> to vector<24x1024xi1>
    %235 = vector.broadcast %cst_153 : f32 to vector<24x1024xf32>
    %236 = arith.select %234, %232, %235 : vector<24x1024xi1>, vector<24x1024xf32>
    %237 = arith.truncf %236 : vector<24x1024xf32> to vector<24x1024xbf16>
    %c120 = arith.constant 120 : index
    %c0_154 = arith.constant 0 : index
    %238 = vector.load %arg18[%c120, %c0_154] : memref<432x1024xbf16, #tpu.memory_space<vmem>>, vector<24x1024xbf16>
    tpu.vector_store %arg18[%c120, %c0_154], %237 {strides = array<i32>} : memref<432x1024xbf16, #tpu.memory_space<vmem>>, vector<24x1024xbf16>,
    %c0_155 = arith.constant 0 : index
    %c64_156 = arith.constant 64 : index
    %239 = vector.load %arg17[%c0_155, %c64_156] : memref<48x1090xf32, #tpu.memory_space<vmem>>, vector<24x1024xf32>
    %cst_157 = arith.constant 0.000000e+00 : f32
    %240 = vector.shape_cast %202 : vector<1x1024xi1> to vector<1x1024xi1>
    %241 = vector.broadcast %240 : vector<1x1024xi1> to vector<24x1024xi1>
    %242 = vector.broadcast %cst_157 : f32 to vector<24x1024xf32>
    %243 = arith.select %241, %239, %242 : vector<24x1024xi1>, vector<24x1024xf32>
    %244 = arith.truncf %243 : vector<24x1024xf32> to vector<24x1024xbf16>
    %c144_158 = arith.constant 144 : index
    %c0_159 = arith.constant 0 : index
    %245 = vector.load %arg18[%c144_158, %c0_159] : memref<432x1024xbf16, #tpu.memory_space<vmem>>, vector<24x1024xbf16>
    tpu.vector_store %arg18[%c144_158, %c0_159], %244 {strides = array<i32>} : memref<432x1024xbf16, #tpu.memory_space<vmem>>, vector<24x1024xbf16>,
    %c0_160 = arith.constant 0 : index
    %c65 = arith.constant 65 : index
    %246 = vector.load %arg17[%c0_160, %c65] : memref<48x1090xf32, #tpu.memory_space<vmem>>, vector<24x1024xf32>
    %247 = arith.truncf %246 : vector<24x1024xf32> to vector<24x1024xbf16>
    %c168 = arith.constant 168 : index
    %c0_161 = arith.constant 0 : index
    %248 = vector.load %arg18[%c168, %c0_161] : memref<432x1024xbf16, #tpu.memory_space<vmem>>, vector<24x1024xbf16>
    tpu.vector_store %arg18[%c168, %c0_161], %247 {strides = array<i32>} : memref<432x1024xbf16, #tpu.memory_space<vmem>>, vector<24x1024xbf16>,
    %c0_162 = arith.constant 0 : index
    %c66 = arith.constant 66 : index
    %249 = vector.load %arg17[%c0_162, %c66] : memref<48x1090xf32, #tpu.memory_space<vmem>>, vector<24x1024xf32>
    %cst_163 = arith.constant 0.000000e+00 : f32
    %250 = vector.shape_cast %204 : vector<1x1024xi1> to vector<1x1024xi1>
    %251 = vector.broadcast %250 : vector<1x1024xi1> to vector<24x1024xi1>
    %252 = vector.broadcast %cst_163 : f32 to vector<24x1024xf32>
    %253 = arith.select %251, %249, %252 : vector<24x1024xi1>, vector<24x1024xf32>
    %254 = arith.truncf %253 : vector<24x1024xf32> to vector<24x1024xbf16>
    %c192_164 = arith.constant 192 : index
    %c0_165 = arith.constant 0 : index
    %255 = vector.load %arg18[%c192_164, %c0_165] : memref<432x1024xbf16, #tpu.memory_space<vmem>>, vector<24x1024xbf16>
    tpu.vector_store %arg18[%c192_164, %c0_165], %254 {strides = array<i32>} : memref<432x1024xbf16, #tpu.memory_space<vmem>>, vector<24x1024xbf16>,
    %c0_166 = arith.constant 0 : index
    %c0_167 = arith.constant 0 : index
    %256 = vector.load %arg10[%c0_166, %c0_167] : memref<8x216xbf16, #tpu.memory_space<vmem>>, vector<8x216xbf16>
    %c0_168 = arith.constant 0 : index
    %c0_169 = arith.constant 0 : index
    %257 = vector.load %arg18[%c0_168, %c0_169] : memref<432x1024xbf16, #tpu.memory_space<vmem>>, vector<216x1024xbf16>
    %cst_170 = arith.constant dense<0.000000e+00> : vector<8x1024xf32>
    %258 = tpu.matmul %256, %257, %cst_170 {dimension_numbers = #tpu.dot_dimension_numbers<[1], [0], [0], [1], [0, 0, 1, 1], [], []>} : vector<8x216xbf16>, vector<216x1024xbf16>, vector<8x1024xf32> -> vector<8x1024xf32>
    %c0_171 = arith.constant 0 : index
    %c0_172 = arith.constant 0 : index
    %259 = vector.load %arg11[%c0_171, %c0_172] : memref<8x1xf32, #tpu.memory_space<vmem>>, vector<8x1xf32>
    %260 = vector.broadcast %259 : vector<8x1xf32> to vector<8x1024xf32>
    %261 = arith.addf %258, %260 : vector<8x1024xf32>
    %cst_173 = arith.constant 0.000000e+00 : f32
    %262 = vector.broadcast %cst_173 : f32 to vector<8x1024xf32>
    %263 = arith.maximumf %261, %262 : vector<8x1024xf32>
    %cst_174 = arith.constant 0.000000e+00 : f32
    %264 = vector.broadcast %cst_174 : f32 to vector<8x1090xf32>
    %c0_175 = arith.constant 0 : index
    %c0_176 = arith.constant 0 : index
    %265 = vector.load %arg17[%c0_175, %c0_176] : memref<48x1090xf32, #tpu.memory_space<vmem>>, vector<8x1090xf32>
    tpu.vector_store %arg17[%c0_175, %c0_176], %264 {strides = array<i32>} : memref<48x1090xf32, #tpu.memory_space<vmem>>, vector<8x1090xf32>,
    %c0_177 = arith.constant 0 : index
    %c33_178 = arith.constant 33 : index
    %266 = vector.load %arg17[%c0_177, %c33_178] : memref<48x1090xf32, #tpu.memory_space<vmem>>, vector<8x1024xf32>
    tpu.vector_store %arg17[%c0_177, %c33_178], %263 {strides = array<i32>} : memref<48x1090xf32, #tpu.memory_space<vmem>>, vector<8x1024xf32>,
    %267 = tpu.iota {dimensions = array<i32: 1>} : vector<1x1024xi32>
    %c32_i32_179 = arith.constant 32 : i32
    %c0_i32_180 = arith.constant 0 : i32
    %268 = arith.cmpi eq, %c32_i32_179, %c0_i32_180 : i32
    %c1_i32_181 = arith.constant 1 : i32
    %269 = arith.select %268, %c1_i32_181, %c32_i32_179 : i32
    %270 = vector.broadcast %269 : i32 to vector<1x1024xi32>
    %271 = arith.remsi %267, %270 : vector<1x1024xi32>
    %c0_i32_182 = arith.constant 0 : i32
    %272 = vector.broadcast %c0_i32_182 : i32 to vector<1x1024xi32>
    %273 = arith.cmpi ne, %271, %272 : vector<1x1024xi32>
    %c0_i32_183 = arith.constant 0 : i32
    %274 = vector.broadcast %c0_i32_183 : i32 to vector<1x1024xi32>
    %275 = arith.cmpi slt, %271, %274 : vector<1x1024xi32>
    %c0_i32_184 = arith.constant 0 : i32
    %276 = arith.cmpi slt, %269, %c0_i32_184 : i32
    %277 = vector.broadcast %276 : i1 to vector<1x1024xi1>
    %278 = vector.broadcast %277 : vector<1x1024xi1> to vector<1x1024xi1>
    %279 = arith.xori %275, %278 : vector<1x1024xi1>
    %280 = arith.andi %279, %273 : vector<1x1024xi1>
    %281 = vector.broadcast %269 : i32 to vector<1x1024xi32>
    %282 = arith.addi %271, %281 : vector<1x1024xi32>
    %283 = arith.select %280, %282, %271 : vector<1x1024xi1>, vector<1x1024xi32>
    %c0_i32_185 = arith.constant 0 : i32
    %284 = vector.broadcast %c0_i32_185 : i32 to vector<1x1024xi32>
    %285 = arith.cmpi ne, %283, %284 : vector<1x1024xi32>
    %c31_i32_186 = arith.constant 31 : i32
    %286 = vector.broadcast %c31_i32_186 : i32 to vector<1x1024xi32>
    %287 = arith.cmpi ne, %283, %286 : vector<1x1024xi32>
    %c0_187 = arith.constant 0 : index
    %c0_188 = arith.constant 0 : index
    %288 = vector.load %arg17[%c0_187, %c0_188] : memref<48x1090xf32, #tpu.memory_space<vmem>>, vector<8x1024xf32>
    %cst_189 = arith.constant 0.000000e+00 : f32
    %289 = vector.shape_cast %285 : vector<1x1024xi1> to vector<1x1024xi1>
    %290 = vector.broadcast %289 : vector<1x1024xi1> to vector<8x1024xi1>
    %291 = vector.broadcast %cst_189 : f32 to vector<8x1024xf32>
    %292 = arith.select %290, %288, %291 : vector<8x1024xi1>, vector<8x1024xf32>
    %293 = arith.truncf %292 : vector<8x1024xf32> to vector<8x1024xbf16>
    %c0_190 = arith.constant 0 : index
    %c0_191 = arith.constant 0 : index
    %294 = vector.load %arg18[%c0_190, %c0_191] : memref<432x1024xbf16, #tpu.memory_space<vmem>>, vector<8x1024xbf16>
    tpu.vector_store %arg18[%c0_190, %c0_191], %293 {strides = array<i32>} : memref<432x1024xbf16, #tpu.memory_space<vmem>>, vector<8x1024xbf16>,
    %c0_192 = arith.constant 0 : index
    %c1_193 = arith.constant 1 : index
    %295 = vector.load %arg17[%c0_192, %c1_193] : memref<48x1090xf32, #tpu.memory_space<vmem>>, vector<8x1024xf32>
    %296 = arith.truncf %295 : vector<8x1024xf32> to vector<8x1024xbf16>
    %c8 = arith.constant 8 : index
    %c0_194 = arith.constant 0 : index
    %297 = vector.load %arg18[%c8, %c0_194] : memref<432x1024xbf16, #tpu.memory_space<vmem>>, vector<8x1024xbf16>
    tpu.vector_store %arg18[%c8, %c0_194], %296 {strides = array<i32>} : memref<432x1024xbf16, #tpu.memory_space<vmem>>, vector<8x1024xbf16>,
    %c0_195 = arith.constant 0 : index
    %c2_196 = arith.constant 2 : index
    %298 = vector.load %arg17[%c0_195, %c2_196] : memref<48x1090xf32, #tpu.memory_space<vmem>>, vector<8x1024xf32>
    %cst_197 = arith.constant 0.000000e+00 : f32
    %299 = vector.shape_cast %287 : vector<1x1024xi1> to vector<1x1024xi1>
    %300 = vector.broadcast %299 : vector<1x1024xi1> to vector<8x1024xi1>
    %301 = vector.broadcast %cst_197 : f32 to vector<8x1024xf32>
    %302 = arith.select %300, %298, %301 : vector<8x1024xi1>, vector<8x1024xf32>
    %303 = arith.truncf %302 : vector<8x1024xf32> to vector<8x1024xbf16>
    %c16_198 = arith.constant 16 : index
    %c0_199 = arith.constant 0 : index
    %304 = vector.load %arg18[%c16_198, %c0_199] : memref<432x1024xbf16, #tpu.memory_space<vmem>>, vector<8x1024xbf16>
    tpu.vector_store %arg18[%c16_198, %c0_199], %303 {strides = array<i32>} : memref<432x1024xbf16, #tpu.memory_space<vmem>>, vector<8x1024xbf16>,
    %c0_200 = arith.constant 0 : index
    %c32_201 = arith.constant 32 : index
    %305 = vector.load %arg17[%c0_200, %c32_201] : memref<48x1090xf32, #tpu.memory_space<vmem>>, vector<8x1024xf32>
    %cst_202 = arith.constant 0.000000e+00 : f32
    %306 = vector.shape_cast %285 : vector<1x1024xi1> to vector<1x1024xi1>
    %307 = vector.broadcast %306 : vector<1x1024xi1> to vector<8x1024xi1>
    %308 = vector.broadcast %cst_202 : f32 to vector<8x1024xf32>
    %309 = arith.select %307, %305, %308 : vector<8x1024xi1>, vector<8x1024xf32>
    %310 = arith.truncf %309 : vector<8x1024xf32> to vector<8x1024xbf16>
    %c24_203 = arith.constant 24 : index
    %c0_204 = arith.constant 0 : index
    %311 = vector.load %arg18[%c24_203, %c0_204] : memref<432x1024xbf16, #tpu.memory_space<vmem>>, vector<8x1024xbf16>
    tpu.vector_store %arg18[%c24_203, %c0_204], %310 {strides = array<i32>} : memref<432x1024xbf16, #tpu.memory_space<vmem>>, vector<8x1024xbf16>,
    %c0_205 = arith.constant 0 : index
    %c33_206 = arith.constant 33 : index
    %312 = vector.load %arg17[%c0_205, %c33_206] : memref<48x1090xf32, #tpu.memory_space<vmem>>, vector<8x1024xf32>
    %313 = arith.truncf %312 : vector<8x1024xf32> to vector<8x1024xbf16>
    %c32_207 = arith.constant 32 : index
    %c0_208 = arith.constant 0 : index
    %314 = vector.load %arg18[%c32_207, %c0_208] : memref<432x1024xbf16, #tpu.memory_space<vmem>>, vector<8x1024xbf16>
    tpu.vector_store %arg18[%c32_207, %c0_208], %313 {strides = array<i32>} : memref<432x1024xbf16, #tpu.memory_space<vmem>>, vector<8x1024xbf16>,
    %c0_209 = arith.constant 0 : index
    %c34_210 = arith.constant 34 : index
    %315 = vector.load %arg17[%c0_209, %c34_210] : memref<48x1090xf32, #tpu.memory_space<vmem>>, vector<8x1024xf32>
    %cst_211 = arith.constant 0.000000e+00 : f32
    %316 = vector.shape_cast %287 : vector<1x1024xi1> to vector<1x1024xi1>
    %317 = vector.broadcast %316 : vector<1x1024xi1> to vector<8x1024xi1>
    %318 = vector.broadcast %cst_211 : f32 to vector<8x1024xf32>
    %319 = arith.select %317, %315, %318 : vector<8x1024xi1>, vector<8x1024xf32>
    %320 = arith.truncf %319 : vector<8x1024xf32> to vector<8x1024xbf16>
    %c40 = arith.constant 40 : index
    %c0_212 = arith.constant 0 : index
    %321 = vector.load %arg18[%c40, %c0_212] : memref<432x1024xbf16, #tpu.memory_space<vmem>>, vector<8x1024xbf16>
    tpu.vector_store %arg18[%c40, %c0_212], %320 {strides = array<i32>} : memref<432x1024xbf16, #tpu.memory_space<vmem>>, vector<8x1024xbf16>,
    %c0_213 = arith.constant 0 : index
    %c64_214 = arith.constant 64 : index
    %322 = vector.load %arg17[%c0_213, %c64_214] : memref<48x1090xf32, #tpu.memory_space<vmem>>, vector<8x1024xf32>
    %cst_215 = arith.constant 0.000000e+00 : f32
    %323 = vector.shape_cast %285 : vector<1x1024xi1> to vector<1x1024xi1>
    %324 = vector.broadcast %323 : vector<1x1024xi1> to vector<8x1024xi1>
    %325 = vector.broadcast %cst_215 : f32 to vector<8x1024xf32>
    %326 = arith.select %324, %322, %325 : vector<8x1024xi1>, vector<8x1024xf32>
    %327 = arith.truncf %326 : vector<8x1024xf32> to vector<8x1024xbf16>
    %c48_216 = arith.constant 48 : index
    %c0_217 = arith.constant 0 : index
    %328 = vector.load %arg18[%c48_216, %c0_217] : memref<432x1024xbf16, #tpu.memory_space<vmem>>, vector<8x1024xbf16>
    tpu.vector_store %arg18[%c48_216, %c0_217], %327 {strides = array<i32>} : memref<432x1024xbf16, #tpu.memory_space<vmem>>, vector<8x1024xbf16>,
    %c0_218 = arith.constant 0 : index
    %c65_219 = arith.constant 65 : index
    %329 = vector.load %arg17[%c0_218, %c65_219] : memref<48x1090xf32, #tpu.memory_space<vmem>>, vector<8x1024xf32>
    %330 = arith.truncf %329 : vector<8x1024xf32> to vector<8x1024xbf16>
    %c56 = arith.constant 56 : index
    %c0_220 = arith.constant 0 : index
    %331 = vector.load %arg18[%c56, %c0_220] : memref<432x1024xbf16, #tpu.memory_space<vmem>>, vector<8x1024xbf16>
    tpu.vector_store %arg18[%c56, %c0_220], %330 {strides = array<i32>} : memref<432x1024xbf16, #tpu.memory_space<vmem>>, vector<8x1024xbf16>,
    %c0_221 = arith.constant 0 : index
    %c66_222 = arith.constant 66 : index
    %332 = vector.load %arg17[%c0_221, %c66_222] : memref<48x1090xf32, #tpu.memory_space<vmem>>, vector<8x1024xf32>
    %cst_223 = arith.constant 0.000000e+00 : f32
    %333 = vector.shape_cast %287 : vector<1x1024xi1> to vector<1x1024xi1>
    %334 = vector.broadcast %333 : vector<1x1024xi1> to vector<8x1024xi1>
    %335 = vector.broadcast %cst_223 : f32 to vector<8x1024xf32>
    %336 = arith.select %334, %332, %335 : vector<8x1024xi1>, vector<8x1024xf32>
    %337 = arith.truncf %336 : vector<8x1024xf32> to vector<8x1024xbf16>
    %c64_224 = arith.constant 64 : index
    %c0_225 = arith.constant 0 : index
    %338 = vector.load %arg18[%c64_224, %c0_225] : memref<432x1024xbf16, #tpu.memory_space<vmem>>, vector<8x1024xbf16>
    tpu.vector_store %arg18[%c64_224, %c0_225], %337 {strides = array<i32>} : memref<432x1024xbf16, #tpu.memory_space<vmem>>, vector<8x1024xbf16>,
    %c0_226 = arith.constant 0 : index
    %c0_227 = arith.constant 0 : index
    %339 = vector.load %arg12[%c0_226, %c0_227] : memref<8x72xbf16, #tpu.memory_space<vmem>>, vector<8x72xbf16>
    %c0_228 = arith.constant 0 : index
    %c0_229 = arith.constant 0 : index
    %340 = vector.load %arg18[%c0_228, %c0_229] : memref<432x1024xbf16, #tpu.memory_space<vmem>>, vector<72x1024xbf16>
    %cst_230 = arith.constant dense<0.000000e+00> : vector<8x1024xf32>
    %341 = tpu.matmul %339, %340, %cst_230 {dimension_numbers = #tpu.dot_dimension_numbers<[1], [0], [0], [1], [0, 0, 1, 1], [], []>} : vector<8x72xbf16>, vector<72x1024xbf16>, vector<8x1024xf32> -> vector<8x1024xf32>
    %c0_231 = arith.constant 0 : index
    %c0_232 = arith.constant 0 : index
    %342 = vector.load %arg13[%c0_231, %c0_232] : memref<8x1xf32, #tpu.memory_space<vmem>>, vector<8x1xf32>
    %343 = vector.broadcast %342 : vector<8x1xf32> to vector<8x1024xf32>
    %344 = arith.addf %341, %343 : vector<8x1024xf32>
    %cst_233 = arith.constant 0.000000e+00 : f32
    %345 = vector.broadcast %cst_233 : f32 to vector<8x1024xf32>
    %346 = arith.maximumf %344, %345 : vector<8x1024xf32>
    %347 = arith.truncf %346 : vector<8x1024xf32> to vector<8x1024xbf16>
    %cst_234 = arith.constant 0.000000e+00 : f32
    %348 = vector.broadcast %cst_234 : f32 to vector<8x1090xf32>
    %c0_235 = arith.constant 0 : index
    %c0_236 = arith.constant 0 : index
    %349 = vector.load %arg17[%c0_235, %c0_236] : memref<48x1090xf32, #tpu.memory_space<vmem>>, vector<8x1090xf32>
    tpu.vector_store %arg17[%c0_235, %c0_236], %348 {strides = array<i32>} : memref<48x1090xf32, #tpu.memory_space<vmem>>, vector<8x1090xf32>,
    %350 = arith.extf %347 : vector<8x1024xbf16> to vector<8x1024xf32>
    %c0_237 = arith.constant 0 : index
    %c33_238 = arith.constant 33 : index
    %351 = vector.load %arg17[%c0_237, %c33_238] : memref<48x1090xf32, #tpu.memory_space<vmem>>, vector<8x1024xf32>
    tpu.vector_store %arg17[%c0_237, %c33_238], %350 {strides = array<i32>} : memref<48x1090xf32, #tpu.memory_space<vmem>>, vector<8x1024xf32>,
    %352 = tpu.iota {dimensions = array<i32: 1>} : vector<1x1024xi32>
    %c32_i32_239 = arith.constant 32 : i32
    %c0_i32_240 = arith.constant 0 : i32
    %353 = arith.cmpi eq, %c32_i32_239, %c0_i32_240 : i32
    %c1_i32_241 = arith.constant 1 : i32
    %354 = arith.select %353, %c1_i32_241, %c32_i32_239 : i32
    %355 = vector.broadcast %354 : i32 to vector<1x1024xi32>
    %356 = arith.remsi %352, %355 : vector<1x1024xi32>
    %c0_i32_242 = arith.constant 0 : i32
    %357 = vector.broadcast %c0_i32_242 : i32 to vector<1x1024xi32>
    %358 = arith.cmpi ne, %356, %357 : vector<1x1024xi32>
    %c0_i32_243 = arith.constant 0 : i32
    %359 = vector.broadcast %c0_i32_243 : i32 to vector<1x1024xi32>
    %360 = arith.cmpi slt, %356, %359 : vector<1x1024xi32>
    %c0_i32_244 = arith.constant 0 : i32
    %361 = arith.cmpi slt, %354, %c0_i32_244 : i32
    %362 = vector.broadcast %361 : i1 to vector<1x1024xi1>
    %363 = vector.broadcast %362 : vector<1x1024xi1> to vector<1x1024xi1>
    %364 = arith.xori %360, %363 : vector<1x1024xi1>
    %365 = arith.andi %364, %358 : vector<1x1024xi1>
    %366 = vector.broadcast %354 : i32 to vector<1x1024xi32>
    %367 = arith.addi %356, %366 : vector<1x1024xi32>
    %368 = arith.select %365, %367, %356 : vector<1x1024xi1>, vector<1x1024xi32>
    %c0_i32_245 = arith.constant 0 : i32
    %369 = vector.broadcast %c0_i32_245 : i32 to vector<1x1024xi32>
    %370 = arith.cmpi ne, %368, %369 : vector<1x1024xi32>
    %c31_i32_246 = arith.constant 31 : i32
    %371 = vector.broadcast %c31_i32_246 : i32 to vector<1x1024xi32>
    %372 = arith.cmpi ne, %368, %371 : vector<1x1024xi32>
    %c0_247 = arith.constant 0 : index
    %c0_248 = arith.constant 0 : index
    %373 = vector.load %arg17[%c0_247, %c0_248] : memref<48x1090xf32, #tpu.memory_space<vmem>>, vector<8x1024xf32>
    %cst_249 = arith.constant 0.000000e+00 : f32
    %374 = vector.shape_cast %370 : vector<1x1024xi1> to vector<1x1024xi1>
    %375 = vector.broadcast %374 : vector<1x1024xi1> to vector<8x1024xi1>
    %376 = vector.broadcast %cst_249 : f32 to vector<8x1024xf32>
    %377 = arith.select %375, %373, %376 : vector<8x1024xi1>, vector<8x1024xf32>
    %378 = arith.truncf %377 : vector<8x1024xf32> to vector<8x1024xbf16>
    %c0_250 = arith.constant 0 : index
    %c0_251 = arith.constant 0 : index
    %379 = vector.load %arg18[%c0_250, %c0_251] : memref<432x1024xbf16, #tpu.memory_space<vmem>>, vector<8x1024xbf16>
    tpu.vector_store %arg18[%c0_250, %c0_251], %378 {strides = array<i32>} : memref<432x1024xbf16, #tpu.memory_space<vmem>>, vector<8x1024xbf16>,
    %c0_252 = arith.constant 0 : index
    %c1_253 = arith.constant 1 : index
    %380 = vector.load %arg17[%c0_252, %c1_253] : memref<48x1090xf32, #tpu.memory_space<vmem>>, vector<8x1024xf32>
    %381 = arith.truncf %380 : vector<8x1024xf32> to vector<8x1024xbf16>
    %c8_254 = arith.constant 8 : index
    %c0_255 = arith.constant 0 : index
    %382 = vector.load %arg18[%c8_254, %c0_255] : memref<432x1024xbf16, #tpu.memory_space<vmem>>, vector<8x1024xbf16>
    tpu.vector_store %arg18[%c8_254, %c0_255], %381 {strides = array<i32>} : memref<432x1024xbf16, #tpu.memory_space<vmem>>, vector<8x1024xbf16>,
    %c0_256 = arith.constant 0 : index
    %c2_257 = arith.constant 2 : index
    %383 = vector.load %arg17[%c0_256, %c2_257] : memref<48x1090xf32, #tpu.memory_space<vmem>>, vector<8x1024xf32>
    %cst_258 = arith.constant 0.000000e+00 : f32
    %384 = vector.shape_cast %372 : vector<1x1024xi1> to vector<1x1024xi1>
    %385 = vector.broadcast %384 : vector<1x1024xi1> to vector<8x1024xi1>
    %386 = vector.broadcast %cst_258 : f32 to vector<8x1024xf32>
    %387 = arith.select %385, %383, %386 : vector<8x1024xi1>, vector<8x1024xf32>
    %388 = arith.truncf %387 : vector<8x1024xf32> to vector<8x1024xbf16>
    %c16_259 = arith.constant 16 : index
    %c0_260 = arith.constant 0 : index
    %389 = vector.load %arg18[%c16_259, %c0_260] : memref<432x1024xbf16, #tpu.memory_space<vmem>>, vector<8x1024xbf16>
    tpu.vector_store %arg18[%c16_259, %c0_260], %388 {strides = array<i32>} : memref<432x1024xbf16, #tpu.memory_space<vmem>>, vector<8x1024xbf16>,
    %c0_261 = arith.constant 0 : index
    %c32_262 = arith.constant 32 : index
    %390 = vector.load %arg17[%c0_261, %c32_262] : memref<48x1090xf32, #tpu.memory_space<vmem>>, vector<8x1024xf32>
    %cst_263 = arith.constant 0.000000e+00 : f32
    %391 = vector.shape_cast %370 : vector<1x1024xi1> to vector<1x1024xi1>
    %392 = vector.broadcast %391 : vector<1x1024xi1> to vector<8x1024xi1>
    %393 = vector.broadcast %cst_263 : f32 to vector<8x1024xf32>
    %394 = arith.select %392, %390, %393 : vector<8x1024xi1>, vector<8x1024xf32>
    %395 = arith.truncf %394 : vector<8x1024xf32> to vector<8x1024xbf16>
    %c24_264 = arith.constant 24 : index
    %c0_265 = arith.constant 0 : index
    %396 = vector.load %arg18[%c24_264, %c0_265] : memref<432x1024xbf16, #tpu.memory_space<vmem>>, vector<8x1024xbf16>
    tpu.vector_store %arg18[%c24_264, %c0_265], %395 {strides = array<i32>} : memref<432x1024xbf16, #tpu.memory_space<vmem>>, vector<8x1024xbf16>,
    %c0_266 = arith.constant 0 : index
    %c33_267 = arith.constant 33 : index
    %397 = vector.load %arg17[%c0_266, %c33_267] : memref<48x1090xf32, #tpu.memory_space<vmem>>, vector<8x1024xf32>
    %398 = arith.truncf %397 : vector<8x1024xf32> to vector<8x1024xbf16>
    %c32_268 = arith.constant 32 : index
    %c0_269 = arith.constant 0 : index
    %399 = vector.load %arg18[%c32_268, %c0_269] : memref<432x1024xbf16, #tpu.memory_space<vmem>>, vector<8x1024xbf16>
    tpu.vector_store %arg18[%c32_268, %c0_269], %398 {strides = array<i32>} : memref<432x1024xbf16, #tpu.memory_space<vmem>>, vector<8x1024xbf16>,
    %c0_270 = arith.constant 0 : index
    %c34_271 = arith.constant 34 : index
    %400 = vector.load %arg17[%c0_270, %c34_271] : memref<48x1090xf32, #tpu.memory_space<vmem>>, vector<8x1024xf32>
    %cst_272 = arith.constant 0.000000e+00 : f32
    %401 = vector.shape_cast %372 : vector<1x1024xi1> to vector<1x1024xi1>
    %402 = vector.broadcast %401 : vector<1x1024xi1> to vector<8x1024xi1>
    %403 = vector.broadcast %cst_272 : f32 to vector<8x1024xf32>
    %404 = arith.select %402, %400, %403 : vector<8x1024xi1>, vector<8x1024xf32>
    %405 = arith.truncf %404 : vector<8x1024xf32> to vector<8x1024xbf16>
    %c40_273 = arith.constant 40 : index
    %c0_274 = arith.constant 0 : index
    %406 = vector.load %arg18[%c40_273, %c0_274] : memref<432x1024xbf16, #tpu.memory_space<vmem>>, vector<8x1024xbf16>
    tpu.vector_store %arg18[%c40_273, %c0_274], %405 {strides = array<i32>} : memref<432x1024xbf16, #tpu.memory_space<vmem>>, vector<8x1024xbf16>,
    %c0_275 = arith.constant 0 : index
    %c64_276 = arith.constant 64 : index
    %407 = vector.load %arg17[%c0_275, %c64_276] : memref<48x1090xf32, #tpu.memory_space<vmem>>, vector<8x1024xf32>
    %cst_277 = arith.constant 0.000000e+00 : f32
    %408 = vector.shape_cast %370 : vector<1x1024xi1> to vector<1x1024xi1>
    %409 = vector.broadcast %408 : vector<1x1024xi1> to vector<8x1024xi1>
    %410 = vector.broadcast %cst_277 : f32 to vector<8x1024xf32>
    %411 = arith.select %409, %407, %410 : vector<8x1024xi1>, vector<8x1024xf32>
    %412 = arith.truncf %411 : vector<8x1024xf32> to vector<8x1024xbf16>
    %c48_278 = arith.constant 48 : index
    %c0_279 = arith.constant 0 : index
    %413 = vector.load %arg18[%c48_278, %c0_279] : memref<432x1024xbf16, #tpu.memory_space<vmem>>, vector<8x1024xbf16>
    tpu.vector_store %arg18[%c48_278, %c0_279], %412 {strides = array<i32>} : memref<432x1024xbf16, #tpu.memory_space<vmem>>, vector<8x1024xbf16>,
    %c0_280 = arith.constant 0 : index
    %c65_281 = arith.constant 65 : index
    %414 = vector.load %arg17[%c0_280, %c65_281] : memref<48x1090xf32, #tpu.memory_space<vmem>>, vector<8x1024xf32>
    %415 = arith.truncf %414 : vector<8x1024xf32> to vector<8x1024xbf16>
    %c56_282 = arith.constant 56 : index
    %c0_283 = arith.constant 0 : index
    %416 = vector.load %arg18[%c56_282, %c0_283] : memref<432x1024xbf16, #tpu.memory_space<vmem>>, vector<8x1024xbf16>
    tpu.vector_store %arg18[%c56_282, %c0_283], %415 {strides = array<i32>} : memref<432x1024xbf16, #tpu.memory_space<vmem>>, vector<8x1024xbf16>,
    %c0_284 = arith.constant 0 : index
    %c66_285 = arith.constant 66 : index
    %417 = vector.load %arg17[%c0_284, %c66_285] : memref<48x1090xf32, #tpu.memory_space<vmem>>, vector<8x1024xf32>
    %cst_286 = arith.constant 0.000000e+00 : f32
    %418 = vector.shape_cast %372 : vector<1x1024xi1> to vector<1x1024xi1>
    %419 = vector.broadcast %418 : vector<1x1024xi1> to vector<8x1024xi1>
    %420 = vector.broadcast %cst_286 : f32 to vector<8x1024xf32>
    %421 = arith.select %419, %417, %420 : vector<8x1024xi1>, vector<8x1024xf32>
    %422 = arith.truncf %421 : vector<8x1024xf32> to vector<8x1024xbf16>
    %c64_287 = arith.constant 64 : index
    %c0_288 = arith.constant 0 : index
    %423 = vector.load %arg18[%c64_287, %c0_288] : memref<432x1024xbf16, #tpu.memory_space<vmem>>, vector<8x1024xbf16>
    tpu.vector_store %arg18[%c64_287, %c0_288], %422 {strides = array<i32>} : memref<432x1024xbf16, #tpu.memory_space<vmem>>, vector<8x1024xbf16>,
    %c0_289 = arith.constant 0 : index
    %c0_290 = arith.constant 0 : index
    %424 = vector.load %arg14[%c0_289, %c0_290] : memref<3x72xbf16, #tpu.memory_space<vmem>>, vector<3x72xbf16>
    %c0_291 = arith.constant 0 : index
    %c0_292 = arith.constant 0 : index
    %425 = vector.load %arg18[%c0_291, %c0_292] : memref<432x1024xbf16, #tpu.memory_space<vmem>>, vector<72x1024xbf16>
    %cst_293 = arith.constant dense<0.000000e+00> : vector<3x1024xf32>
    %426 = tpu.matmul %424, %425, %cst_293 {dimension_numbers = #tpu.dot_dimension_numbers<[1], [0], [0], [1], [0, 0, 1, 1], [], []>} : vector<3x72xbf16>, vector<72x1024xbf16>, vector<3x1024xf32> -> vector<3x1024xf32>
    %c0_294 = arith.constant 0 : index
    %c0_295 = arith.constant 0 : index
    %427 = vector.load %arg15[%c0_294, %c0_295] : memref<3x1xf32, #tpu.memory_space<vmem>>, vector<3x1xf32>
    %428 = vector.broadcast %427 : vector<3x1xf32> to vector<3x1024xf32>
    %429 = arith.addf %426, %428 : vector<3x1024xf32>
    %c0_296 = arith.constant 0 : index
    %c0_297 = arith.constant 0 : index
    %c0_298 = arith.constant 0 : index
    %430 = vector.load %arg16[%c0_296, %c0_297, %c0_298] : memref<1x3x1024xf32, #tpu.memory_space<vmem>>, vector<1x3x1024xf32>
    %431 = vector.shape_cast %430 : vector<1x3x1024xf32> to vector<3x1024xf32>
    %432 = vector.shape_cast %429 : vector<3x1024xf32> to vector<1x3x1024xf32>
    tpu.vector_store %arg16[%c0_296, %c0_297, %c0_298], %432 {strides = array<i32>} : memref<1x3x1024xf32, #tpu.memory_space<vmem>>, vector<1x3x1024xf32>,
    return
  }
  func.func @transform_0(%arg0: i32) -> (i32, i32, i32) {
    %c0_i32 = arith.constant 0 : i32
    %c0_i32_0 = arith.constant 0 : i32
    %c0_i32_1 = arith.constant 0 : i32
    return %arg0, %c0_i32, %c0_i32_0 : i32, i32, i32
  }
  func.func @transform_1(%arg0: i32) -> (i32, i32, i32) {
    %c0_i32 = arith.constant 0 : i32
    %c0_i32_0 = arith.constant 0 : i32
    %c0_i32_1 = arith.constant 0 : i32
    return %arg0, %c0_i32, %c0_i32_0 : i32, i32, i32
  }
  func.func @transform_2(%arg0: i32) -> (i32, i32, i32) {
    %c0_i32 = arith.constant 0 : i32
    %c0_i32_0 = arith.constant 0 : i32
    %c0_i32_1 = arith.constant 0 : i32
    return %arg0, %c0_i32, %c0_i32_0 : i32, i32, i32
  }
  func.func @transform_3(%arg0: i32) -> (i32, i32) {
    %c0_i32 = arith.constant 0 : i32
    %c0_i32_0 = arith.constant 0 : i32
    %c0_i32_1 = arith.constant 0 : i32
    return %c0_i32, %c0_i32_0 : i32, i32
  }
  func.func @transform_4(%arg0: i32) -> (i32, i32) {
    %c0_i32 = arith.constant 0 : i32
    %c0_i32_0 = arith.constant 0 : i32
    %c0_i32_1 = arith.constant 0 : i32
    return %c0_i32, %c0_i32_0 : i32, i32
  }
  func.func @transform_5(%arg0: i32) -> (i32, i32) {
    %c0_i32 = arith.constant 0 : i32
    %c0_i32_0 = arith.constant 0 : i32
    %c0_i32_1 = arith.constant 0 : i32
    return %c0_i32, %c0_i32_0 : i32, i32
  }
  func.func @transform_6(%arg0: i32) -> (i32, i32) {
    %c0_i32 = arith.constant 0 : i32
    %c0_i32_0 = arith.constant 0 : i32
    %c0_i32_1 = arith.constant 0 : i32
    return %c0_i32, %c0_i32_0 : i32, i32
  }
  func.func @transform_7(%arg0: i32) -> (i32, i32) {
    %c0_i32 = arith.constant 0 : i32
    %c0_i32_0 = arith.constant 0 : i32
    %c0_i32_1 = arith.constant 0 : i32
    return %c0_i32, %c0_i32_0 : i32, i32
  }
  func.func @transform_8(%arg0: i32) -> (i32, i32) {
    %c0_i32 = arith.constant 0 : i32
    %c0_i32_0 = arith.constant 0 : i32
    %c0_i32_1 = arith.constant 0 : i32
    return %c0_i32, %c0_i32_0 : i32, i32
  }
  func.func @transform_9(%arg0: i32) -> (i32, i32) {
    %c0_i32 = arith.constant 0 : i32
    %c0_i32_0 = arith.constant 0 : i32
    %c0_i32_1 = arith.constant 0 : i32
    return %c0_i32, %c0_i32_0 : i32, i32
  }
  func.func @transform_10(%arg0: i32) -> (i32, i32) {
    %c0_i32 = arith.constant 0 : i32
    %c0_i32_0 = arith.constant 0 : i32
    %c0_i32_1 = arith.constant 0 : i32
    return %c0_i32, %c0_i32_0 : i32, i32
  }
  func.func @transform_11(%arg0: i32) -> (i32, i32) {
    %c0_i32 = arith.constant 0 : i32
    %c0_i32_0 = arith.constant 0 : i32
    %c0_i32_1 = arith.constant 0 : i32
    return %c0_i32, %c0_i32_0 : i32, i32
  }
  func.func @transform_12(%arg0: i32) -> (i32, i32) {
    %c0_i32 = arith.constant 0 : i32
    %c0_i32_0 = arith.constant 0 : i32
    %c0_i32_1 = arith.constant 0 : i32
    return %c0_i32, %c0_i32_0 : i32, i32
  }
  func.func @transform_13(%arg0: i32) -> (i32, i32) {
    %c0_i32 = arith.constant 0 : i32
    %c0_i32_0 = arith.constant 0 : i32
    %c0_i32_1 = arith.constant 0 : i32
    return %c0_i32, %c0_i32_0 : i32, i32
  }
  func.func @transform_14(%arg0: i32) -> (i32, i32) {
    %c0_i32 = arith.constant 0 : i32
    %c0_i32_0 = arith.constant 0 : i32
    %c0_i32_1 = arith.constant 0 : i32
    return %c0_i32, %c0_i32_0 : i32, i32
  }
  func.func @transform_15(%arg0: i32) -> (i32, i32, i32) {
    %c0_i32 = arith.constant 0 : i32
    %c0_i32_0 = arith.constant 0 : i32
    %c0_i32_1 = arith.constant 0 : i32
    return %arg0, %c0_i32, %c0_i32_0 : i32, i32, i32
  }
}

</mosaic_0001>

<bundles_post_ra>
// kernel: temporal_unet_decoder.1
= control target key start
LH: loop header
LB: loop body
LE: loop exit
PB: predicated region body
PF: predicated region fallthrough
CT: control target
= control target key end

     0   :  { %s9156_s18 = smov 0   ;;  %s13121_s0 = inlined_call_operand.vmem [shape: bf16[2,32,64], index: 0, kind: input, shape index: {}]   ;;  %s13122_s1 = inlined_call_operand.vmem [shape: bf16[2,16,256], index: 1, kind: input, shape index: {}]   ;;  %s13123_s2 = inlined_call_operand.vmem [shape: bf16[2,8,1024], index: 2, kind: input, shape index: {}]   ;;  %s13124_s3 = inlined_call_operand.vmem [shape: bf16[64,256], index: 3, kind: input, shape index: {}]   ;;  %s13125_s4 = inlined_call_operand.vmem [shape: bf16[16,432], index: 4, kind: input, shape index: {}]   ;;  %s13126_s5 = inlined_call_operand.vmem [shape: f32[16,1], index: 5, kind: input, shape index: {}]   ;;  %s13127_s6 = inlined_call_operand.vmem [shape: bf16[16,144], index: 6, kind: input, shape index: {}]   ;;  %s13128_s7 = inlined_call_operand.vmem [shape: f32[16,1], index: 7, kind: input, shape index: {}]   ;;  %s13129_s8 = inlined_call_operand.vmem [shape: bf16[256,1024], index: 8, kind: input, shape index: {}]   ;;  %s13130_s9 = inlined_call_operand.vmem [shape: bf16[8,216], index: 9, kind: input, shape index: {}]   ;;  %s13131_s10 = inlined_call_operand.vmem [shape: f32[8,1], index: 10, kind: input, shape index: {}]   ;;  %s13132_s11 = inlined_call_operand.vmem [shape: bf16[8,72], index: 11, kind: input, shape index: {}]   ;;  %s13133_s12 = inlined_call_operand.vmem [shape: f32[8,1], index: 12, kind: input, shape index: {}]   ;;  %s13134_s13 = inlined_call_operand.vmem [shape: bf16[3,72], index: 13, kind: input, shape index: {}]   ;;  %s13135_s14 = inlined_call_operand.vmem [shape: f32[3,1], index: 14, kind: input, shape index: {}]   ;;  %s13136_s15 = inlined_call_operand.vmem [shape: f32[2,3,1024], index: 15, kind: output, shape index: {}]  }
   0x1 LB: > { %s7696_s19 = sadd.s32 4294967295, %s9059_s18   ;;  %p7700_p0 = scmp.ge.s32.totalorder %s9059_s18, 1  ;;  %s9059_s18 = sphi %s9156_s18, %s25_s18  }
   0x2   : > { %p457_p1 = scmp.lt.s32.totalorder %s9059_s18, 3 }
   0x4   : > { %p458_p2 = pnand %p7700_p0, %p457_p1 }
   0x6   : > { %461 = sbr.rel (%p458_p2) target bundleno = 3353 (0xd19), region = 80 }
   0xd   : > { %v8797_v0 = vld [vmem:[%s13124_s3 + $0x4] ss:$8 sps:$4 sm:$0xff]   ;;  %p515_p3 = scmp.lt.s32.totalorder %s7696_s19, 1  ;;  %v8799_v1 = vld [vmem:[%s13124_s3] ss:$8 sps:$4 sm:$0xff]   ;;  %v13156_v2 = vmov 0   ;;  %v763_v28 = vlaneseq }
   0xe   : > { %637 = vmatprep.mubr.bf16.mxu0 %v13156_v2  ;;  %8155 = vset.pattern.permute.xlu0 %v13156_v2  ;;  %v8800_v3 = vld [vmem:[%s13124_s3 + $0x14] ss:$8 sps:$4 sm:$0xff]   ;;  %v8802_v4 = vld [vmem:[%s13124_s3 + $0x10] ss:$8 sps:$4 sm:$0xff]   ;;  %v8803_v5 = vld [vmem:[%s13124_s3 + $0x24] ss:$8 sps:$4 sm:$0xff]  }
   0xf   : > { %605 = vmatprep.subr.bf16.mxu0 %v8797_v0  ;;  %s13867_s19 = smov (!%p515_p3, %s7696_s19), 1  ;;  %8156 = vset.pattern.permute.xlu1 %v13156_v2  ;;  %v8805_v6 = vld [vmem:[%s13124_s3 + $0x20] ss:$8 sps:$4 sm:$0xff]   ;;  %v8806_v7 = vld [vmem:[%s13124_s3 + $0x34] ss:$8 sps:$4 sm:$0xff]   ;;  %vm13226_vm0 = vcmask 523264  }
  0x10   : > { %606 = vmatpush1.bf16.msra.mxu0 %v8799_v1  ;;  %s7885_s30 = sshll.u32 %s13867_s19, 4  ;;  %v8808_v8 = vld [vmem:[%s13124_s3 + $0x30] ss:$8 sps:$4 sm:$0xff]   ;;  %v9062_v11 = vmov 0.0   ;;  %vm662_vm1 = vcmask 277504   ;;  %s9063_s27 = smov 17  }
  0x11   : > { %607 = vmatprep.subr.bf16.mxu0 %v8800_v3  ;;  %s519_s20 = scalar_lea.vmem %s13121_s0, %s7885_s30  ;;  %660 = vst [vmem:[#allocation2] sm:$0xff] %v9062_v11  ;;  %664 = vst [vmem:[#allocation2 + $0x48] sm:$0xff] %v9062_v11  ;;  %s524_s16 = scalar_lea.vmem %s13122_s1, %s7885_s30  ;;  %v9235_v29 = vand.u32 127, %v763_v28  ;;  %vm720_vm2 = vcmask 1047688   ;;  %vm703_vm3 = vcmask 138240   ;;  %vm13152_vm8 = vcmask 1039360  }
  0x12   : > { %v8809_v9 = vld [vmem:[%s519_s20] sm:$0xff]   ;;  %v8810_v10 = vld [vmem:[%s519_s20 + $0x8] sm:$0xff]   ;;  %667 = vst [vmem:[#allocation2 + $0x90] sm:$0xff] %v9062_v11  ;;  %670 = vst [vmem:[#allocation2 + $0xd8] sm:$0xff] %v9062_v11  ;;  %s13137_s30 = smov 127   ;;  %s13148_s17 = smov 126  }
  0x13   : > { %673 = vst [vmem:[#allocation2 + $0x120] sm:$0xff] %v9062_v11  ;;  %676 = vst [vmem:[#allocation2 + $0x168] sm:$0xff] %v9062_v11  ;;  %v658_v16 = vld [vmem:[%s524_s16] sm:$0xff]  ;;  %v659_v18 = vld [vmem:[%s524_s16 + $0x8] sm:$0xff]  ;;  %v9238_v30 = vadd.s32 128, %v9235_v29  ;;  %v770_v35 = vand.u32 15, %v9235_v29 }
  0x14   : > { %608 = vmatpush1.bf16.msra.mxu0 %v8802_v4  ;;  %663 = vst.msk [vmem:[#allocation2 + $0x10] sm:$0xff] %vm662_vm1, %v9062_v11  ;;  %666 = vst.msk [vmem:[#allocation2 + $0x58] sm:$0xff] %vm662_vm1, %v9062_v11  ;;  %v733_v20 = vunpack.c.l.bf16 %v658_v16  ;;  %v734_v21 = vunpack.c.h.bf16 %v658_v16  ;;  %v735_v24 = vunpack.c.l.bf16 %v659_v18  ;;  %v736_v25 = vunpack.c.h.bf16 %v659_v18  ;;  %s9066_s20 = smov 112   ;;  %s9067_s21 = smov 111   ;;  %v2259_v51 = vld [vmem:[%s13129_s8 + $0x20] sm:$0xff] }
  0x15   : > { %609 = vmatprep.subr.bf16.mxu0 %v8803_v5  ;;  %669 = vst.msk [vmem:[#allocation2 + $0xa0] sm:$0xff] %vm662_vm1, %v9062_v11  ;;  %672 = vst.msk [vmem:[#allocation2 + $0xe8] sm:$0xff] %vm662_vm1, %v9062_v11  ;;  %v777_v32 = vand.u32 15, %v9238_v30  ;;  %vm9260_vm5 = vcmp.ne.s32.totalorder %v770_v35, 0  ;;  %s9068_s22 = smov 110   ;;  %s13141_s23 = smov 96  }
  0x16   : > { %675 = vst.msk [vmem:[#allocation2 + $0x130] sm:$0xff] %vm662_vm1, %v9062_v11  ;;  %678 = vst.msk [vmem:[#allocation2 + $0x178] sm:$0xff] %vm662_vm1, %v9062_v11  ;;  %v7920_v26 = vpack.i.bf16 %v734_v21, %v733_v20  ;;  %v7925_v27 = vpack.i.bf16 %v736_v25, %v735_v24  ;;  %v8813_v24 = vld [vmem:[%s13125_s4 + $0x4] ss:$16 sps:$4 sm:$0xff]   ;;  %s9070_s26 = smov 95   ;;  %s13139_s28 = smov 94  }
  0x17   : > { %vm9250_vm4 = vcmp.ne.s32.totalorder %v777_v32, 0  ;;  %vm9297_vm7 = vmpackc.low %vm9260_vm5, %vm9260_vm5  ;;  %1787 = vmatprep.mubr.bf16.mxu1 %v8813_v24  ;;  %vm1104_vm9 = vcmask 916480   ;;  %vm9578_vm10 = vcmp.ne.s32.totalorder %v777_v32, 15  ;;  %vm13153_vm11 = vcmask 1031168   ;;  %s13150_s29 = smov 33   ;;  %s13357_s24 = smov 126  }
  0x18   : > { %610 = vmatpush1.bf16.msra.mxu0 %v8805_v6  ;;  %vm9274_vm6 = vmpackc.low %vm9250_vm4, %vm9250_vm4  ;;  %vm9599_vm12 = vcmp.ne.s32.totalorder %v770_v35, 15  ;;  %vm1207_vm14 = vcmask 908288   ;;  %vm1298_vm15 = vcmask 900096   ;;  %s13358_s25 = smov 64  }
  0x19   : > { %611 = vmatprep.subr.bf16.mxu0 %v8806_v7  ;;  %vm9628_vm13 = vmpackc.low %vm9578_vm10, %vm9578_vm10  ;;  %vm13161_vm10 = vcmask 777216  }
  0x1c   : > { %612 = vmatpush1.bf16.msra.mxu0 %v8808_v8 }
  0x1f   : > { %7719 = vmatmul.mubr.msk.bf16.vlgmr.msra.gmra.mrb[0].mxu0 %vm13226_vm0, %v8809_v9 }
  0x20   : > { %647 = vmatprep.mubr.bf16.mxu0 %v13156_v2 }
  0x27   : > { %7720 = vmatmul.mubr.msk.bf16.gmra.mrb[4].mxu0 %vm13226_vm0, %v8810_v10 }
  0xf2   : > { %v639_v12 = vpop.f32.mrb[0].mxu0 }
  0xf3   : > { %687 = vrot.lane.b32.xlu0 %v639_v12, %s9063_s27  ;;  %v641_v13 = vpop.f32.mrb[1].mxu0 }
  0xf4   : > { %v643_v14 = vpop.f32.mrb[2].mxu0 }
  0xf5   : > { %691 = vrot.lane.b32.xlu1 %v643_v14, %s9063_s27  ;;  %v645_v15 = vpop.f32.mrb[3].mxu0 }
  0xf7   : > { %689 = vrot.lane.b32.xlu0 %v641_v13, %s9063_s27 }
  0xf9   : > { %693 = vrot.lane.b32.xlu1 %v645_v15, %s9063_s27 }
  0xfa   : > { %v649_v17 = vpop.f32.mrb[4].mxu0 }
  0xfb   : > { %695 = vrot.lane.b32.xlu0 %v649_v17, %s9063_s27  ;;  %v651_v19 = vpop.f32.mrb[5].mxu0 }
  0xfc   : > { %v653_v22 = vpop.f32.mrb[6].mxu0 }
  0xfd   : > { %697 = vrot.lane.b32.xlu1 %v651_v19, %s9063_s27  ;;  %v655_v23 = vpop.f32.mrb[7].mxu0 }
  0xff   : > { %699 = vrot.lane.b32.xlu0 %v653_v22, %s9063_s27 }
 0x101   : > { %701 = vrot.lane.b32.xlu1 %v655_v23, %s9063_s27 }
 0x103   : > { %7921 = vrot.lane.b32.xlu0 %v7920_v26, %s9063_s27 }
 0x105   : > { %7926 = vrot.lane.b32.xlu1 %v7925_v27, %s9063_s27 }
 0x165   : > { %v688_v31 = vpop.permute.xlu0 %687 }
 0x166   : > { %721 = vst.msk [vmem:[#allocation2] sm:$0xff] %vm720_vm2, %v688_v31 }
 0x167   : > { %v692_v33 = vpop.permute.xlu1 %691 }
 0x168   : > { %724 = vst.msk [vmem:[#allocation2 + $0x48] sm:$0xff] %vm720_vm2, %v692_v33 }
 0x169   : > { %v690_v34 = vpop.permute.xlu0 %689 }
 0x16a   : > { %v9245_v36 = vsel %vm703_vm3, %v688_v31, %v690_v34  ;;  %723 = vst.msk [vmem:[#allocation2 + $0x10] sm:$0xff] %vm703_vm3, %v690_v34 }
 0x16b   : > { %v694_v38 = vpop.permute.xlu1 %693 }
 0x16c   : > { %v9255_v39 = vsel %vm703_vm3, %v692_v33, %v694_v38  ;;  %726 = vst.msk [vmem:[#allocation2 + $0x58] sm:$0xff] %vm703_vm3, %v694_v38 }
 0x16d   : > { %v696_v40 = vpop.permute.xlu0 %695  ;;  %v9264_v42 = vld [vmem:[#allocation2] sm:$0xff]  ;;  %v9280_v46 = vpack.c.bf16 %v9255_v39, %v9245_v36 }
 0x16e   : > { %727 = vst.msk [vmem:[#allocation2 + $0x90] sm:$0xff] %vm720_vm2, %v696_v40  ;;  %1845 = vst [vmem:[#allocation2] sm:$0xff] %v9062_v11 }
 0x16f   : > { %v698_v43 = vpop.permute.xlu1 %697  ;;  %v9268_v44 = vld [vmem:[#allocation2 + $0x48] sm:$0xff]  ;;  %8830 = vmatprep.subr.msk.bf16.mxu1 %vm9274_vm6, %v9280_v46 }
 0x170   : > { %729 = vst.msk [vmem:[#allocation2 + $0xa0] sm:$0xff] %vm703_vm3, %v698_v43  ;;  %1848 = vst [vmem:[#allocation2 + $0x48] sm:$0xff] %v9062_v11  ;;  %v9289_v49 = vsel %vm703_vm3, %v696_v40, %v698_v43  ;;  %v9303_v52 = vpack.c.bf16 %v9268_v44, %v9264_v42  ;;  %v9379_v15 = vpack.i.bf16 %v9268_v44, %v9264_v42  ;;  %v1720_v44 = vld [vmem:[%s13126_s5] sm:$0xff] }
 0x171   : > { %v700_v47 = vpop.permute.xlu0 %699  ;;  %v9286_v48 = vld [vmem:[#allocation2 + $0x10] sm:$0xff] }
 0x172   : > { %730 = vst.msk [vmem:[#allocation2 + $0xd8] sm:$0xff] %vm720_vm2, %v700_v47  ;;  %8833 = vmatpush1.bf16.msk.msra.mxu1 %vm9297_vm7, %v9303_v52  ;;  %v9371_v14 = vpack.i.bf16 %v9286_v48, %v9245_v36 }
 0x173   : > { %1847 = vst.msk [vmem:[#allocation2 + $0x10] sm:$0xff] %vm662_vm1, %v9062_v11  ;;  %v702_v50 = vpop.permute.xlu1 %701  ;;  %v1037_v53 = vld [vmem:[#allocation2 + $0x58] sm:$0xff] }
 0x174   : > { %v9309_v54 = vsel %vm703_vm3, %v700_v47, %v702_v50  ;;  %732 = vst.msk [vmem:[#allocation2 + $0xe8] sm:$0xff] %vm703_vm3, %v702_v50  ;;  %v9386_v16 = vpack.i.bf16 %v1037_v53, %v9255_v39  ;;  %v854_v17 = vpack.c.bf16 %v1037_v53, %v9286_v48  ;;  %v1721_v48 = vld [vmem:[%s13126_s5 + $0x8] sm:$0xff] }
 0x175   : > { %1850 = vst.msk [vmem:[#allocation2 + $0x58] sm:$0xff] %vm662_vm1, %v9062_v11  ;;  %v798_v55 = vld [vmem:[#allocation2 + $0x90] sm:$0xff]  ;;  %v7922_v56 = vpop.permute.xlu0 %7921  ;;  %v9316_v57 = vpack.c.bf16 %v9309_v54, %v9289_v49  ;;  %vm9641_vm1 = vmpackc.low %vm9599_vm12, %vm9599_vm12  ;;  %vm13154_vm12 = vcmask 769024  }
 0x176   : > { %v7924_v58 = vunpack.i.h.bf16 %v7922_v56  ;;  %v7923_v59 = vunpack.i.l.bf16 %v7922_v56  ;;  %3218 = vst [vmem:[#allocation2 + $0x90] sm:$0xff] %v9062_v11 }
 0x177   : > { %v7927_v60 = vpop.permute.xlu1 %7926  ;;  %8836 = vmatprep.subr.msk.bf16.mxu1 %vm9274_vm6, %v9316_v57  ;;  %v1040_v18 = vld [vmem:[#allocation2 + $0xa0] sm:$0xff] }
 0x178   : > { %759 = vst.msk [vmem:[#allocation2 + $0x130] sm:$0xff] %vm703_vm3, %v7924_v58  ;;  %v749_v61 = vsel %vm703_vm3, %v7923_v59, %v7924_v58  ;;  %v7929_v62 = vunpack.i.h.bf16 %v7927_v60  ;;  %v7928_v63 = vunpack.i.l.bf16 %v7927_v60  ;;  %v9401_v19 = vpack.i.bf16 %v1040_v18, %v9289_v49 }
 0x179   : > { %757 = vst.msk [vmem:[#allocation2 + $0x120] sm:$0xff] %vm720_vm2, %v7923_v59  ;;  %v800_v0 = vld [vmem:[#allocation2 + $0xd8] sm:$0xff] }
 0x17a   : > { %762 = vst.msk [vmem:[#allocation2 + $0x178] sm:$0xff] %vm703_vm3, %v7929_v62  ;;  %v750_v1 = vsel %vm703_vm3, %v7928_v63, %v7929_v62  ;;  %v9332_v4 = vpack.c.bf16 %v800_v0, %v798_v55  ;;  %v9407_v20 = vpack.i.bf16 %v800_v0, %v798_v55 }
 0x17b   : > { %760 = vst.msk [vmem:[#allocation2 + $0x168] sm:$0xff] %vm720_vm2, %v7928_v63  ;;  %v9328_v3 = vpack.c.bf16 %v750_v1, %v749_v61  ;;  %v918_v21 = vld [vmem:[#allocation2 + $0xe8] sm:$0xff] }
 0x17c   : > { %8839 = vmatpush1.bf16.msk.msra.mxu1 %vm9297_vm7, %v9332_v4  ;;  %v8010_v22 = vpack.i.bf16 %v918_v21, %v9309_v54  ;;  %v857_v23 = vpack.c.bf16 %v918_v21, %v1040_v18 }
 0x17d   : > { %884 = vrot.lane.b32.xlu0 %v9328_v3, %s13137_s30  ;;  %8842 = vmatprep.subr.msk.bf16.mxu1 %vm9274_vm6, %v9328_v3 }
 0x17f   : > { %v848_v6 = vld [vmem:[#allocation2 + $0x130] sm:$0xff] }
 0x180   : > { %v846_v5 = vld [vmem:[#allocation2 + $0x120] sm:$0xff]  ;;  %v9348_v11 = vpack.i.bf16 %v848_v6, %v749_v61 }
 0x181   : > { %v851_v7 = vld [vmem:[#allocation2 + $0x178] sm:$0xff] }
 0x182   : > { %v849_v8 = vld [vmem:[#allocation2 + $0x168] sm:$0xff]  ;;  %v9340_v9 = vpack.c.bf16 %v851_v7, %v848_v6  ;;  %v9350_v12 = vpack.i.bf16 %v851_v7, %v750_v1 }
 0x183   : > { %v9342_v10 = vpack.c.bf16 %v849_v8, %v846_v5  ;;  %v9359_v13 = vpack.i.bf16 %v849_v8, %v846_v5 }
 0x184   : > { %886 = vrot.lane.b32.xlu1 %v9340_v9, %s13137_s30 }
 0x185   : > { %882 = vrot.lane.b32.xlu0 %v9342_v10, %s13137_s30  ;;  %8845 = vmatpush1.bf16.msk.msra.mxu1 %vm9297_vm7, %v9342_v10 }
 0x188   : > { %7931 = vrot.lane.b32.xlu1 %v9348_v11, %s13148_s17 }
 0x189   : > { %7936 = vrot.lane.b32.xlu0 %v9350_v12, %s13148_s17 }
 0x18c   : > { %7941 = vrot.lane.b32.xlu1 %v9359_v13, %s13148_s17 }
 0x18d   : > { %7946 = vrot.lane.b32.xlu0 %v9348_v11, %s9066_s20 }
 0x190   : > { %7951 = vrot.lane.b32.xlu1 %v9350_v12, %s9066_s20 }
 0x191   : > { %7956 = vrot.lane.b32.xlu0 %v9359_v13, %s9066_s20 }
 0x194   : > { %7961 = vrot.lane.b32.xlu1 %v9371_v14, %s13148_s17 }
 0x195   : > { %7971 = vrot.lane.b32.xlu0 %v9371_v14, %s9066_s20 }
 0x198   : > { %7966 = vrot.lane.b32.xlu1 %v9379_v15, %s13148_s17 }
 0x199   : > { %7976 = vrot.lane.b32.xlu0 %v9379_v15, %s9066_s20 }
 0x19c   : > { %7986 = vrot.lane.b32.xlu1 %v9386_v16, %s9066_s20 }
 0x19d   : > { %870 = vrot.lane.b32.xlu0 %v9303_v52, %s13137_s30 }
 0x1a0   : > { %874 = vrot.lane.b32.xlu1 %v854_v17, %s13137_s30 }
 0x1a1   : > { %7981 = vrot.lane.b32.xlu0 %v9386_v16, %s13148_s17 }
 0x1a4   : > { %1191 = vrot.lane.b32.xlu1 %v9280_v46, %s9067_s21 }
 0x1a5   : > { %872 = vrot.lane.b32.xlu0 %v9280_v46, %s13137_s30 }
 0x1a8   : > { %8001 = vrot.lane.b32.xlu1 %v9401_v19, %s9066_s20 }
 0x1a9   : > { %7991 = vrot.lane.b32.xlu0 %v9401_v19, %s13148_s17 }
 0x1ac   : > { %8006 = vrot.lane.b32.xlu1 %v9407_v20, %s9066_s20 }
 0x1ad   : > { %7996 = vrot.lane.b32.xlu0 %v9407_v20, %s13148_s17 }
 0x1b0   : > { %876 = vrot.lane.b32.xlu1 %v9332_v4, %s13137_s30 }
 0x1b1   : > { %8016 = vrot.lane.b32.xlu0 %v8010_v22, %s9066_s20 }
 0x1b4   : > { %8011 = vrot.lane.b32.xlu1 %v8010_v22, %s13148_s17 }
 0x1b5   : > { %880 = vrot.lane.b32.xlu0 %v857_v23, %s13137_s30 }
 0x1b8   : > { %878 = vrot.lane.b32.xlu1 %v9316_v57, %s13137_s30 }
 0x1b9   : > { %1193 = vrot.lane.b32.xlu0 %v854_v17, %s9067_s21 }
 0x1bc   : > { %1189 = vrot.lane.b32.xlu1 %v9303_v52, %s9067_s21 }
 0x1bd   : > { %1195 = vrot.lane.b32.xlu0 %v9332_v4, %s9067_s21 }
 0x1c0   : > { %1199 = vrot.lane.b32.xlu1 %v857_v23, %s9067_s21 }
 0x1c1   : > { %1205 = vrot.lane.b32.xlu0 %v9340_v9, %s9067_s21 }
 0x1c4   : > { %1203 = vrot.lane.b32.xlu1 %v9328_v3, %s9067_s21 }
 0x1c5   : > { %8021 = vrot.lane.b32.xlu0 %v9371_v14, %s9068_s22 }
 0x1c8   : > { %1201 = vrot.lane.b32.xlu1 %v9342_v10, %s9067_s21 }
 0x1c9   : > { %8031 = vrot.lane.b32.xlu0 %v9379_v15, %s9068_s22 }
 0x1cc   : > { %8026 = vrot.lane.b32.xlu1 %v9386_v16, %s9068_s22 }
 0x1cd   : > { %8041 = vrot.lane.b32.xlu0 %v8010_v22, %s9068_s22 }
 0x1d0   : > { %8036 = vrot.lane.b32.xlu1 %v9401_v19, %s9068_s22 }
 0x1d1   : > { %8051 = vrot.lane.b32.xlu0 %v9348_v11, %s9068_s22 }
 0x1d4   : > { %8046 = vrot.lane.b32.xlu1 %v9407_v20, %s9068_s22 }
 0x1d5   : > { %8061 = vrot.lane.b32.xlu0 %v9359_v13, %s9068_s22 }
 0x1d8   : > { %8056 = vrot.lane.b32.xlu1 %v9350_v12, %s9068_s22 }
 0x1d9   : > { %1197 = vrot.lane.b32.xlu0 %v9316_v57, %s9067_s21 }
 0x1dc   : > { %8066 = vrot.lane.b32.xlu1 %v9371_v14, %s13141_s23 }
 0x1dd   : > { %8071 = vrot.lane.b32.xlu0 %v9386_v16, %s13141_s23 }
 0x1e0   : > { %8076 = vrot.lane.b32.xlu1 %v9379_v15, %s13141_s23 }
 0x1e1   : > { %8081 = vrot.lane.b32.xlu0 %v9401_v19, %s13141_s23 }
 0x1e4   : > { %8086 = vrot.lane.b32.xlu1 %v8010_v22, %s13141_s23 }
 0x1e5   : > { %8091 = vrot.lane.b32.xlu0 %v9407_v20, %s13141_s23 }
 0x1e8   : > { %8096 = vrot.lane.b32.xlu1 %v9348_v11, %s13141_s23 }
 0x1e9   : > { %8101 = vrot.lane.b32.xlu0 %v9350_v12, %s13141_s23 }
 0x1ec   : > { %8106 = vrot.lane.b32.xlu1 %v9359_v13, %s13141_s23 }
 0x1ed   : > { %1506 = vrot.lane.b32.xlu0 %v9280_v46, %s9070_s26 }
 0x1ef   : > { %v9477_v25 = vpop.permute.xlu0 %884 }
 0x1f0   : > { %1508 = vrot.lane.b32.xlu1 %v854_v17, %s9070_s26 }
 0x1f1   : > { %1504 = vrot.lane.b32.xlu0 %v9303_v52, %s9070_s26 }
 0x1f4   : > { %1510 = vrot.lane.b32.xlu1 %v9332_v4, %s9070_s26 }
 0x1f5   : > { %1514 = vrot.lane.b32.xlu0 %v857_v23, %s9070_s26 }
 0x1f6   : > { %v9482_v26 = vpop.permute.xlu1 %886 }
 0x1f7   : > { %v9484_v27 = vpop.permute.xlu0 %882  ;;  %v894_v21 = vsel %vm13152_vm8, %v9477_v25, %v9482_v26 }
 0x1f8   : > { %1520 = vrot.lane.b32.xlu1 %v9340_v9, %s9070_s26 }
 0x1f9   : > { %1518 = vrot.lane.b32.xlu0 %v9328_v3, %s9070_s26 }
 0x1fa   : > { %v9490_v28 = vpop.permute.xlu1 %7931 }
 0x1fb   : > { %v9492_v31 = vpop.permute.xlu0 %7936  ;;  %v7934_v37 = vunpack.i.h.bf16 %v9490_v28 }
 0x1fc   : > { %8111 = vrot.lane.b32.xlu1 %v9371_v14, %s13139_s28 }
 0x1fd   : > { %1516 = vrot.lane.b32.xlu0 %v9342_v10, %s9070_s26 }
 0x1fe   : > { %v9498_v33 = vpop.permute.xlu1 %7941 }
 0x1ff   : > { %v9500_v34 = vpop.permute.xlu0 %7946 }
 0x200   : > { %1512 = vrot.lane.b32.xlu1 %v9316_v57, %s9070_s26 }
 0x201   : > { %8116 = vrot.lane.b32.xlu0 %v9386_v16, %s13139_s28 }
 0x202   : > { %v9506_v36 = vpop.permute.xlu1 %7951 }
 0x203   : > { %v9508_v38 = vpop.permute.xlu0 %7956 }
 0x204   : > { %8121 = vrot.lane.b32.xlu1 %v9379_v15, %s13139_s28 }
 0x205   : > { %8126 = vrot.lane.b32.xlu0 %v9401_v19, %s13139_s28 }
 0x206   : > { %v9514_v39 = vpop.permute.xlu1 %7961 }
 0x207   : > { %v9516_v40 = vpop.permute.xlu0 %7971  ;;  %v7964_v19 = vunpack.i.h.bf16 %v9514_v39 }
 0x208   : > { %8131 = vrot.lane.b32.xlu1 %v8010_v22, %s13139_s28 }
 0x209   : > { %8136 = vrot.lane.b32.xlu0 %v9407_v20, %s13139_s28  ;;  %v7963_v20 = vunpack.i.l.bf16 %v9514_v39 }
 0x20a   : > { %v9521_v42 = vpop.permute.xlu1 %7966 }
 0x20b   : > { %v9523_v43 = vpop.permute.xlu0 %7976  ;;  %v7969_v26 = vunpack.i.h.bf16 %v9521_v42 }
 0x20c   : > { %8141 = vrot.lane.b32.xlu1 %v9348_v11, %s13139_s28 }
 0x20d   : > { %8146 = vrot.lane.b32.xlu0 %v9350_v12, %s13139_s28 }
 0x20e   : > { %v9532_v46 = vpop.permute.xlu1 %7986 }
 0x20f   : > { %v871_v47 = vpop.permute.xlu0 %870 }
 0x210   : > { %8151 = vrot.lane.b32.xlu1 %v9359_v13, %s13139_s28 }
 0x211   : > { %1724 = vperm.xlu0 %8155, %v1720_v44  }
 0x212   : > { %v875_v49 = vpop.permute.xlu1 %874 }
 0x213   : > { %v7982_v50 = vpop.permute.xlu0 %7981 }
 0x214   : > { %1729 = vperm.xlu1 %8156, %v1721_v48   ;;  %v7984_v7 = vunpack.i.h.bf16 %v7982_v50  ;;  %v7983_v8 = vunpack.i.l.bf16 %v7982_v50  ;;  %v985_v50 = vsel %vm13153_vm11, %v7963_v20, %v7964_v19  ;;  %v7979_v19 = vunpack.i.h.bf16 %v9523_v43 }
 0x216   : > { %v9539_v52 = vpop.permute.xlu1 %1191  ;;  %v987_v22 = vsel %vm13153_vm11, %v7983_v8, %v7984_v7 }
 0x217   : > { %v873_v53 = vpop.permute.xlu0 %872 }
 0x218   : > { %v889_v54 = vsel %vm13152_vm8, %v871_v47, %v873_v53  ;;  %v890_v55 = vsel %vm13152_vm8, %v873_v53, %v875_v49  ;;  %v7968_v47 = vunpack.i.l.bf16 %v9521_v42  ;;  %v7933_v49 = vunpack.i.l.bf16 %v9490_v28 }
 0x219   : > { %1761 = vmatprep.subr.bf16.mxu1 %v890_v55  ;;  %v7939_v55 = vunpack.i.h.bf16 %v9492_v31  ;;  %v7944_v28 = vunpack.i.h.bf16 %v9498_v33  ;;  %v7958_v42 = vunpack.i.l.bf16 %v9508_v38 }
 0x21a   : > { %1762 = vmatpush1.bf16.msra.mxu1 %v889_v54  ;;  %v8002_v56 = vpop.permute.xlu1 %8001 }
 0x21b   : > { %v9543_v57 = vpop.permute.xlu0 %7991  ;;  %v8004_v58 = vunpack.i.h.bf16 %v8002_v56  ;;  %v8003_v59 = vunpack.i.l.bf16 %v8002_v56  ;;  %v7938_v56 = vunpack.i.l.bf16 %v9492_v31  ;;  %v984_v31 = vsel %vm13153_vm11, %v7968_v47, %v7963_v20 }
 0x21c   : > { %v7994_v53 = vunpack.i.h.bf16 %v9543_v57  ;;  %v7993_v54 = vunpack.i.l.bf16 %v9543_v57  ;;  %v7978_v20 = vunpack.i.l.bf16 %v9523_v43  ;;  %v7948_v43 = vunpack.i.l.bf16 %v9500_v34 }
 0x21d   : > { %v9548_v63 = vsel %vm1104_vm9, %v8003_v59, %v8004_v58  ;;  %v986_v58 = vsel %vm13153_vm11, %v7969_v26, %v7983_v8  ;;  %v7989_v8 = vunpack.i.h.bf16 %v9532_v46  ;;  %v7953_v26 = vunpack.i.l.bf16 %v9506_v36 }
 0x21e   : > { %v8007_v60 = vpop.permute.xlu1 %8006  ;;  %v1134_v11 = vsel %vm9250_vm4, %v9548_v63, 0.0 }
 0x21f   : > { %v9545_v61 = vpop.permute.xlu0 %7996  ;;  %v8008_v62 = vunpack.i.l.bf16 %v8007_v60  ;;  %v8009_v3 = vunpack.i.h.bf16 %v8007_v60 }
 0x220   : > { %v7998_v35 = vunpack.i.l.bf16 %v9545_v61 }
 0x221   : > { %v9551_v4 = vsel %vm1104_vm9, %v8008_v62, %v8003_v59  ;;  %v7943_v59 = vunpack.i.l.bf16 %v9498_v33  ;;  %v993_v33 = vsel %vm13153_vm11, %v7933_v49, %v7934_v37 }
 0x222   : > { %v877_v0 = vpop.permute.xlu1 %876  ;;  %v1133_v12 = vsel %vm9260_vm5, %v9551_v4, 0.0 }
 0x223   : > { %v8017_v1 = vpop.permute.xlu0 %8016  ;;  %v992_v7 = vsel %vm13153_vm11, %v7943_v59, %v7933_v49 }
 0x224   : > { %v8019_v5 = vunpack.i.h.bf16 %v8017_v1  ;;  %v8018_v6 = vunpack.i.l.bf16 %v8017_v1  ;;  %v893_v1 = vsel %vm13152_vm8, %v9484_v27, %v9477_v25  ;;  %v8847_v27 = vpack.c.bf16 %v987_v22, %v985_v50  ;;  %v2275_v25 = vld [vmem:[%s13129_s8 + $0xa0] sm:$0xff] }
 0x225   : > { %v7949_v22 = vunpack.i.h.bf16 %v9500_v34  ;;  %v7959_v34 = vunpack.i.h.bf16 %v9508_v38 }
 0x226   : > { %v9554_v9 = vsel %vm1104_vm9, %v8009_v3, %v8018_v6  ;;  %v9557_v10 = vsel %vm1104_vm9, %v8018_v6, %v8019_v5  ;;  %v8012_v13 = vpop.permute.xlu1 %8011  ;;  %v989_v3 = vsel %vm13153_vm11, %v7993_v54, %v7994_v53  ;;  %v995_v5 = vsel %vm13153_vm11, %v7938_v56, %v7939_v55 }
 0x227   : > { %v1135_v14 = vsel %vm9260_vm5, %v9554_v9, 0.0  ;;  %v1136_v15 = vsel %vm9250_vm4, %v9557_v10, 0.0  ;;  %v881_v16 = vpop.permute.xlu0 %880  ;;  %v8014_v23 = vunpack.i.h.bf16 %v8012_v13  ;;  %v8013_v24 = vunpack.i.l.bf16 %v8012_v13 }
 0x228   : > { %v1143_v17 = vpack.c.bf16 %v1135_v14, %v1133_v12  ;;  %v1144_v18 = vpack.c.bf16 %v1136_v15, %v1134_v11  ;;  %v7988_v11 = vunpack.i.l.bf16 %v9532_v46  ;;  %v994_v13 = vsel %vm13153_vm11, %v7944_v28, %v7938_v56 }
 0x229   : > { %v991_v57 = vsel %vm13153_vm11, %v8013_v24, %v8014_v23  ;;  %v988_v14 = vsel %vm13153_vm11, %v7998_v35, %v7993_v54  ;;  %v7974_v46 = vunpack.i.h.bf16 %v9516_v40  ;;  %v7973_v15 = vunpack.i.l.bf16 %v9516_v40 }
 0x22a   : > { %1149 = vst [vmem:[#allocation3 + $0x280] sm:$0xff] %v1143_v17  ;;  %1150 = vst [vmem:[#allocation3 + $0x288] sm:$0xff] %v1144_v18  ;;  %v879_v39 = vpop.permute.xlu1 %878  ;;  %v8850_v17 = vpack.c.bf16 %v986_v58, %v984_v31  ;;  %v1108_v18 = vsel %vm1104_vm9, %v7988_v11, %v7989_v8  ;;  %v8853_v41 = vpack.c.bf16 %v991_v57, %v989_v3  ;;  %vm13227_vm4 = vcmask 785408  }
 0x22b   : > { %v9584_v44 = vpop.permute.xlu0 %1193  ;;  %v891_v32 = vsel %vm13152_vm8, %v877_v0, %v879_v39  ;;  %v892_v48 = vsel %vm13152_vm8, %v879_v39, %v881_v16  ;;  %v7999_v0 = vunpack.i.h.bf16 %v9545_v61  ;;  %v1106_v23 = vsel %vm1104_vm9, %v7973_v15, %v7974_v46  ;;  %v2279_v16 = vld [vmem:[%s13129_s8 + $0xc0] sm:$0xff] }
 0x22c   : > { %1763 = vmatprep.subr.bf16.mxu1 %v892_v48  ;;  %v7954_v39 = vunpack.i.h.bf16 %v9506_v36  ;;  %v8859_v54 = vpack.c.bf16 %v995_v5, %v993_v33  ;;  %v1114_v58 = vsel %vm1104_vm9, %v7948_v43, %v7949_v22  ;;  %v8862_v28 = vpack.c.bf16 %v994_v13, %v992_v7 }
 0x22d   : > { %1764 = vmatpush1.bf16.msra.mxu1 %v891_v32  ;;  %v990_v6 = vsel %vm13153_vm11, %v7999_v0, %v8013_v24  ;;  %v1107_v24 = vsel %vm1104_vm9, %v7979_v19, %v7988_v11  ;;  %v1105_v32 = vsel %vm1104_vm9, %v7978_v20, %v7973_v15  ;;  %v1113_v7 = vsel %vm1104_vm9, %v7958_v42, %v7948_v43 }
 0x22e   : > { %v9606_v60 = vpop.permute.xlu1 %1189  ;;  %1765 = vmatprep.subr.bf16.mxu1 %v894_v21  ;;  %v8856_v47 = vpack.c.bf16 %v990_v6, %v988_v14  ;;  %v1116_v56 = vsel %vm1104_vm9, %v7953_v26, %v7954_v39  ;;  %v1115_v6 = vsel %vm1104_vm9, %v7959_v34, %v7953_v26  ;;  %v8871_v46 = vpack.c.bf16 %v9557_v10, %v9548_v63 }
 0x22f   : > { %v9608_v62 = vpop.permute.xlu0 %1195  ;;  %v8874_v19 = vpack.c.bf16 %v9554_v9, %v9551_v4  ;;  %v8877_v22 = vpack.c.bf16 %v1116_v56, %v1114_v58  ;;  %v8880_v39 = vpack.c.bf16 %v1115_v6, %v1113_v7  ;;  %vm1751_vm5 = vcmask 392192  }
 0x231   : > { %1766 = vmatpush1.bf16.msra.mxu1 %v893_v1  ;;  %v8865_v1 = vpack.c.bf16 %v1108_v18, %v1106_v23 }
 0x232   : > { %v9623_v61 = vpop.permute.xlu1 %1199  ;;  %8848 = vmatprep.subr.msk.bf16.mxu1 %vm9628_vm13, %v8847_v27 }
 0x233   : > { %v1206_v12 = vpop.permute.xlu0 %1205 }
 0x235   : > { %8851 = vmatpush1.bf16.msk.msra.mxu1 %vm9641_vm1, %v8850_v17 }
 0x236   : > { %v1204_v40 = vpop.permute.xlu1 %1203  ;;  %8854 = vmatprep.subr.msk.bf16.mxu1 %vm9628_vm13, %v8853_v41 }
 0x237   : > { %v8022_v21 = vpop.permute.xlu0 %8021  ;;  %v9653_v37 = vsel %vm1207_vm14, %v1204_v40, %v1206_v12  ;;  %v8868_v12 = vpack.c.bf16 %v1107_v24, %v1105_v32  ;;  %v1209_v24 = vsel %vm1207_vm14, %v9539_v52, %v9584_v44 }
 0x238   : > { %v8024_v49 = vunpack.i.h.bf16 %v8022_v21  ;;  %v8023_v50 = vunpack.i.l.bf16 %v8022_v21 }
 0x239   : > { %8857 = vmatpush1.bf16.msk.msra.mxu1 %vm9641_vm1, %v8856_v47 }
 0x23a   : > { %v1202_v48 = vpop.permute.xlu1 %1201  ;;  %8860 = vmatprep.subr.msk.bf16.mxu1 %vm9628_vm13, %v8859_v54  ;;  %v9676_v59 = vsel %vm1298_vm15, %v8023_v50, %v8024_v49 }
 0x23b   : > { %v8032_v53 = vpop.permute.xlu0 %8031  ;;  %v9667_v55 = vsel %vm1207_vm14, %v1202_v48, %v1204_v40 }
 0x23c   : > { %v8033_v36 = vunpack.i.l.bf16 %v8032_v53  ;;  %v8034_v31 = vunpack.i.h.bf16 %v8032_v53 }
 0x23d   : > { %8863 = vmatpush1.bf16.msk.msra.mxu1 %vm9641_vm1, %v8862_v28 }
 0x23e   : > { %v8027_v57 = vpop.permute.xlu1 %8026  ;;  %v9679_v0 = vsel %vm1298_vm15, %v8033_v36, %v8023_v50  ;;  %8866 = vmatprep.subr.msk.bf16.mxu1 %vm9274_vm6, %v8865_v1  ;;  %v1208_v50 = vsel %vm1207_vm14, %v9606_v60, %v9539_v52 }
 0x23f   : > { %v8042_v35 = vpop.permute.xlu0 %8041  ;;  %v8029_v3 = vunpack.i.h.bf16 %v8027_v57  ;;  %v8028_v33 = vunpack.i.l.bf16 %v8027_v57 }
 0x240   : > { %v8044_v38 = vunpack.i.h.bf16 %v8042_v35  ;;  %v8043_v5 = vunpack.i.l.bf16 %v8042_v35 }
 0x241   : > { %v9686_v8 = vsel %vm1298_vm15, %v8028_v33, %v8029_v3  ;;  %v9689_v11 = vsel %vm1298_vm15, %v8034_v31, %v8028_v33  ;;  %8869 = vmatpush1.bf16.msk.msra.mxu1 %vm9297_vm7, %v8868_v12 }
 0x242   : > { %v8037_v27 = vpop.permute.xlu1 %8036  ;;  %v9694_v13 = vsel %vm1298_vm15, %v8043_v5, %v8044_v38  ;;  %8872 = vmatprep.subr.msk.bf16.mxu1 %vm9274_vm6, %v8871_v46  ;;  %v8883_v12 = vpack.c.bf16 %v9686_v8, %v9676_v59  ;;  %v8814_v59 = vld [vmem:[%s13125_s4 + $0xc] ss:$16 sps:$4 sm:$0xff]  }
 0x243   : > { %v8052_v14 = vpop.permute.xlu0 %8051  ;;  %v8039_v15 = vunpack.i.h.bf16 %v8037_v27  ;;  %v8038_v17 = vunpack.i.l.bf16 %v8037_v27 }
 0x244   : > { %v8054_v40 = vunpack.i.h.bf16 %v8052_v14  ;;  %v8053_v21 = vunpack.i.l.bf16 %v8052_v14 }
 0x245   : > { %v9701_v18 = vsel %vm1298_vm15, %v8038_v17, %v8039_v15  ;;  %8875 = vmatpush1.bf16.msk.msra.mxu1 %vm9297_vm7, %v8874_v19  ;;  %v8886_v19 = vpack.c.bf16 %v9689_v11, %v9679_v0 }
 0x246   : > { %v8047_v20 = vpop.permute.xlu1 %8046  ;;  %8878 = vmatprep.subr.msk.bf16.mxu1 %vm9274_vm6, %v8877_v22  ;;  %v9721_v26 = vsel %vm1298_vm15, %v8053_v21, %v8054_v40 }
 0x247   : > { %v8062_v41 = vpop.permute.xlu0 %8061  ;;  %v8049_v63 = vunpack.i.h.bf16 %v8047_v20  ;;  %v8048_v10 = vunpack.i.l.bf16 %v8047_v20 }
 0x248   : > { %v8063_v23 = vunpack.i.l.bf16 %v8062_v41  ;;  %v8064_v47 = vunpack.i.h.bf16 %v8062_v41  ;;  %v8889_v41 = vpack.c.bf16 %v9694_v13, %v9701_v18 }
 0x249   : > { %v9713_v4 = vsel %vm1298_vm15, %v8048_v10, %v8038_v17  ;;  %v9716_v9 = vsel %vm1298_vm15, %v8049_v63, %v8043_v5  ;;  %8881 = vmatpush1.bf16.msk.msra.mxu1 %vm9297_vm7, %v8880_v39  ;;  %v8811_v17 = vld [vmem:[%s13125_s4] ss:$16 sps:$4 sm:$0xff]  }
 0x24a   : > { %v8057_v43 = vpop.permute.xlu1 %8056  ;;  %1779 = vmatprep.subr.bf16.mxu1 %v1209_v24  ;;  %v9724_v44 = vsel %vm1298_vm15, %v8063_v23, %v8053_v21  ;;  %v8892_v23 = vpack.c.bf16 %v9716_v9, %v9713_v4 }
 0x24b   : > { %v1198_v32 = vpop.permute.xlu0 %1197  ;;  %v8059_v48 = vunpack.i.h.bf16 %v8057_v43  ;;  %v8058_v49 = vunpack.i.l.bf16 %v8057_v43 }
 0x24c   : > { %v1210_v53 = vsel %vm1207_vm14, %v9608_v62, %v1198_v32  ;;  %v1211_v54 = vsel %vm1207_vm14, %v1198_v32, %v9623_v61 }
 0x24d   : > { %v1310_v36 = vsel %vm1298_vm15, %v8058_v49, %v8059_v48  ;;  %v9735_v34 = vsel %vm1298_vm15, %v8064_v47, %v8058_v49  ;;  %1222 = vst [vmem:[#allocation3 + $0x340] sm:$0xff] %v1210_v53  ;;  %1223 = vst [vmem:[#allocation3 + $0x348] sm:$0xff] %v1211_v54  ;;  %1780 = vmatpush1.bf16.msra.mxu1 %v1208_v50 }
 0x24e   : > { %v8067_v56 = vpop.permute.xlu1 %8066  ;;  %1781 = vmatprep.subr.bf16.mxu1 %v1211_v54  ;;  %v8895_v39 = vpack.c.bf16 %v1310_v36, %v9721_v26  ;;  %v8898_v9 = vpack.c.bf16 %v9735_v34, %v9724_v44 }
 0x24f   : > { %v8072_v58 = vpop.permute.xlu0 %8071  ;;  %v8069_v42 = vunpack.i.h.bf16 %v8067_v56  ;;  %v8068_v52 = vunpack.i.l.bf16 %v8067_v56 }
 0x250   : > { %v8074_v60 = vunpack.i.h.bf16 %v8072_v58  ;;  %v8073_v28 = vunpack.i.l.bf16 %v8072_v58 }
 0x251   : > { %v1421_v62 = vsel %vm13227_vm4, %v8068_v52, %v8069_v42  ;;  %1782 = vmatpush1.bf16.msra.mxu1 %v1210_v53 }
 0x252   : > { %v8077_v61 = vpop.permute.xlu1 %8076  ;;  %v1423_v57 = vsel %vm13227_vm4, %v8073_v28, %v8074_v60  ;;  %1783 = vmatprep.subr.bf16.mxu1 %v9653_v37 }
 0x253   : > { %v8082_v31 = vpop.permute.xlu0 %8081  ;;  %v8079_v35 = vunpack.i.h.bf16 %v8077_v61  ;;  %v8078_v1 = vunpack.i.l.bf16 %v8077_v61  ;;  %v8901_v50 = vpack.c.bf16 %v1423_v57, %v1421_v62 }
 0x254   : > { %v8084_v3 = vunpack.i.h.bf16 %v8082_v31  ;;  %v8083_v33 = vunpack.i.l.bf16 %v8082_v31 }
 0x255   : > { %v1420_v38 = vsel %vm13227_vm4, %v8078_v1, %v8068_v52  ;;  %v1422_v5 = vsel %vm13227_vm4, %v8079_v35, %v8073_v28  ;;  %1784 = vmatpush1.bf16.msra.mxu1 %v9667_v55 }
 0x256   : > { %v8087_v6 = vpop.permute.xlu1 %8086  ;;  %8884 = vmatprep.subr.msk.bf16.mxu1 %vm9628_vm13, %v8883_v12  ;;  %v1425_v14 = vsel %vm13227_vm4, %v8083_v33, %v8084_v3  ;;  %v8904_v54 = vpack.c.bf16 %v1422_v5, %v1420_v38 }
 0x257   : > { %v8092_v7 = vpop.permute.xlu0 %8091  ;;  %v8089_v27 = vunpack.i.h.bf16 %v8087_v6  ;;  %v8088_v37 = vunpack.i.l.bf16 %v8087_v6 }
 0x258   : > { %v8094_v46 = vunpack.i.h.bf16 %v8092_v7  ;;  %v8093_v15 = vunpack.i.l.bf16 %v8092_v7 }
 0x259   : > { %v1427_v55 = vsel %vm13227_vm4, %v8088_v37, %v8089_v27  ;;  %8887 = vmatpush1.bf16.msk.msra.mxu1 %vm9641_vm1, %v8886_v19 }
 0x25a   : > { %v8097_v8 = vpop.permute.xlu1 %8096  ;;  %v1426_v20 = vsel %vm13227_vm4, %v8094_v46, %v8088_v37  ;;  %v1424_v40 = vsel %vm13227_vm4, %v8093_v15, %v8083_v33  ;;  %8890 = vmatprep.subr.msk.bf16.mxu1 %vm9628_vm13, %v8889_v41  ;;  %v8907_v44 = vpack.c.bf16 %v1427_v55, %v1425_v14 }
 0x25b   : > { %v8102_v21 = vpop.permute.xlu0 %8101  ;;  %v8099_v0 = vunpack.i.h.bf16 %v8097_v8  ;;  %v8098_v11 = vunpack.i.l.bf16 %v8097_v8  ;;  %v8910_v34 = vpack.c.bf16 %v1426_v20, %v1424_v40 }
 0x25c   : > { %v8104_v22 = vunpack.i.h.bf16 %v8102_v21  ;;  %v8103_v63 = vunpack.i.l.bf16 %v8102_v21  ;;  %1788 = vmatmul.mubr.bf16.vlgmr.msra.gmra.mrb[0].mxu1 %v8811_v17 }
 0x25d   : > { %v1429_v10 = vsel %vm13227_vm4, %v8098_v11, %v8099_v0  ;;  %8893 = vmatpush1.bf16.msk.msra.mxu1 %vm9641_vm1, %v8892_v23  ;;  %7725 = vmatprep.mubr.msk.bf16.mxu1 %vm1751_vm5, %v8814_v59 }
 0x25e   : > { %v8107_v24 = vpop.permute.xlu1 %8106  ;;  %v1431_v13 = vsel %vm13227_vm4, %v8103_v63, %v8104_v22  ;;  %8896 = vmatprep.subr.msk.bf16.mxu1 %vm9628_vm13, %v8895_v39 }
 0x25f   : > { %v1507_v18 = vpop.permute.xlu0 %1506  ;;  %v8109_v43 = vunpack.i.h.bf16 %v8107_v24  ;;  %v8108_v47 = vunpack.i.l.bf16 %v8107_v24  ;;  %v8913_v52 = vpack.c.bf16 %v1431_v13, %v1429_v10 }
 0x261   : > { %v1428_v32 = vsel %vm13227_vm4, %v8108_v47, %v8098_v11  ;;  %v1430_v4 = vsel %vm13227_vm4, %v8109_v43, %v8103_v63  ;;  %8899 = vmatpush1.bf16.msk.msra.mxu1 %vm9641_vm1, %v8898_v9 }
 0x262   : > { %v1509_v48 = vpop.permute.xlu1 %1508  ;;  %8902 = vmatprep.subr.msk.bf16.mxu1 %vm9274_vm6, %v8901_v50  ;;  %v8916_v28 = vpack.c.bf16 %v1430_v4, %v1428_v32 }
 0x263   : > { %v1505_v49 = vpop.permute.xlu0 %1504  ;;  %v1524_v26 = vsel %vm13161_vm10, %v1507_v18, %v1509_v48 }
 0x264   : > { %v1523_v53 = vsel %vm13161_vm10, %v1505_v49, %v1507_v18 }
 0x265   : > { %8905 = vmatpush1.bf16.msk.msra.mxu1 %vm9297_vm7, %v8904_v54 }
 0x266   : > { %v1511_v36 = vpop.permute.xlu1 %1510  ;;  %8908 = vmatprep.subr.msk.bf16.mxu1 %vm9274_vm6, %v8907_v44 }
 0x267   : > { %v1515_v56 = vpop.permute.xlu0 %1514 }
 0x269   : > { %8911 = vmatpush1.bf16.msk.msra.mxu1 %vm9297_vm7, %v8910_v34 }
 0x26a   : > { %v1521_v58 = vpop.permute.xlu1 %1520  ;;  %8914 = vmatprep.subr.msk.bf16.mxu1 %vm9274_vm6, %v8913_v52 }
 0x26b   : > { %v1519_v42 = vpop.permute.xlu0 %1518 }
 0x26c   : > { %v1528_v60 = vsel %vm13161_vm10, %v1519_v42, %v1521_v58 }
 0x26d   : > { %8917 = vmatpush1.bf16.msk.msra.mxu1 %vm9297_vm7, %v8916_v28 }
 0x26e   : > { %v8112_v62 = vpop.permute.xlu1 %8111  ;;  %1808 = vmatprep.subr.bf16.mxu1 %v1524_v26 }
 0x26f   : > { %v1517_v61 = vpop.permute.xlu0 %1516  ;;  %v8114_v57 = vunpack.i.h.bf16 %v8112_v62  ;;  %v8113_v31 = vunpack.i.l.bf16 %v8112_v62 }
 0x270   : > { %v1527_v35 = vsel %vm13161_vm10, %v1517_v61, %v1519_v42 }
 0x271   : > { %1809 = vmatpush1.bf16.msra.mxu1 %v1523_v53  ;;  %v1615_v1 = vsel %vm13154_vm12, %v8113_v31, %v8114_v57 }
 0x272   : > { %v1513_v3 = vpop.permute.xlu1 %1512 }
 0x273   : > { %v8117_v33 = vpop.permute.xlu0 %8116  ;;  %v1525_v38 = vsel %vm13161_vm10, %v1511_v36, %v1513_v3  ;;  %v1526_v5 = vsel %vm13161_vm10, %v1513_v3, %v1515_v56  ;;  %v8816_v56 = vld [vmem:[%s13125_s4 + $0x8] ss:$16 sps:$4 sm:$0xff]  }
 0x274   : > { %v8119_v6 = vunpack.i.h.bf16 %v8117_v33  ;;  %v8118_v7 = vunpack.i.l.bf16 %v8117_v33  ;;  %1810 = vmatprep.subr.bf16.mxu1 %v1526_v5 }
 0x275   : > { %1811 = vmatpush1.bf16.msra.mxu1 %v1525_v38 }
 0x276   : > { %v1617_v12 = vsel %vm13154_vm12, %v8118_v7, %v8119_v6  ;;  %v8122_v27 = vpop.permute.xlu1 %8121  ;;  %1812 = vmatprep.subr.bf16.mxu1 %v1528_v60 }
 0x277   : > { %v8127_v37 = vpop.permute.xlu0 %8126  ;;  %v8124_v14 = vunpack.i.h.bf16 %v8122_v27  ;;  %v8123_v46 = vunpack.i.l.bf16 %v8122_v27  ;;  %v8919_v20 = vpack.c.bf16 %v1617_v12, %v1615_v1 }
 0x278   : > { %v8129_v15 = vunpack.i.h.bf16 %v8127_v37  ;;  %v8128_v17 = vunpack.i.l.bf16 %v8127_v37 }
 0x279   : > { %v1614_v55 = vsel %vm13154_vm12, %v8123_v46, %v8113_v31  ;;  %v1616_v19 = vsel %vm13154_vm12, %v8124_v14, %v8118_v7  ;;  %1813 = vmatpush1.bf16.msra.mxu1 %v1527_v35  ;;  %v9835_v46 = vld [vmem:[#allocation2 + $0x90] sm:$0xff] }
 0x27a   : > { %v8132_v59 = vpop.permute.xlu1 %8131  ;;  %8920 = vmatprep.subr.msk.bf16.mxu1 %vm9628_vm13, %v8919_v20  ;;  %v1619_v41 = vsel %vm13154_vm12, %v8128_v17, %v8129_v15  ;;  %v8922_v63 = vpack.c.bf16 %v1616_v19, %v1614_v55  ;;  %13313 = vst [vmem:[#allocation4_spill] sm:$0xff] %v9835_v46 }
 0x27b   : > { %v8137_v8 = vpop.permute.xlu0 %8136  ;;  %v8134_v40 = vunpack.i.h.bf16 %v8132_v59  ;;  %v8133_v21 = vunpack.i.l.bf16 %v8132_v59 }
 0x27c   : > { %v8139_v0 = vunpack.i.h.bf16 %v8137_v8  ;;  %v8138_v11 = vunpack.i.l.bf16 %v8137_v8 }
 0x27d   : > { %v1621_v22 = vsel %vm13154_vm12, %v8133_v21, %v8134_v40  ;;  %8923 = vmatpush1.bf16.msk.msra.mxu1 %vm9641_vm1, %v8922_v63 }
 0x27e   : > { %v8142_v10 = vpop.permute.xlu1 %8141  ;;  %v1620_v23 = vsel %vm13154_vm12, %v8139_v0, %v8133_v21  ;;  %v1618_v24 = vsel %vm13154_vm12, %v8138_v11, %v8128_v17  ;;  %v8925_v4 = vpack.c.bf16 %v1621_v22, %v1619_v41  ;;  %v8819_v21 = vld [vmem:[%s13127_s6 + $0x4] ss:$8 sps:$4 sm:$0xff]  }
 0x27f   : > { %v8147_v13 = vpop.permute.xlu0 %8146  ;;  %v8144_v18 = vunpack.i.h.bf16 %v8142_v10  ;;  %v8143_v39 = vunpack.i.l.bf16 %v8142_v10  ;;  %v8928_v26 = vpack.c.bf16 %v1620_v23, %v1618_v24  ;;  %v2182_v41 = vld [vmem:[%s13128_s7 + $0x8] sm:$0xff]  ;;  %v2181_v0 = vld [vmem:[%s13128_s7] sm:$0xff] }
 0x280   : > { %v8149_v43 = vunpack.i.h.bf16 %v8147_v13  ;;  %v8148_v47 = vunpack.i.l.bf16 %v8147_v13  ;;  %8926 = vmatprep.subr.msk.bf16.mxu1 %vm9628_vm13, %v8925_v4  ;;  %v2256_v11 = vld [vmem:[%s13129_s8 + $0x8] sm:$0xff] }
 0x281   : > { %v1623_v32 = vsel %vm13154_vm12, %v8143_v39, %v8144_v18  ;;  %8929 = vmatpush1.bf16.msk.msra.mxu1 %vm9641_vm1, %v8928_v26  ;;  %v2260_v22 = vld [vmem:[%s13129_s8 + $0x28] sm:$0xff] }
 0x282   : > { %v8152_v9 = vpop.permute.xlu1 %8151  ;;  %v1625_v48 = vsel %vm13154_vm12, %v8148_v47, %v8149_v43  ;;  %v7731_v63 = vcombine.low %v2256_v11, %v2260_v22  ;;  %v7732_v10 = vcombine.high %v2256_v11, %v2260_v22  ;;  %v2264_v23 = vld [vmem:[%s13129_s8 + $0x48] sm:$0xff] }
 0x283   : > { %v8154_v49 = vunpack.i.h.bf16 %v8152_v9  ;;  %v8153_v50 = vunpack.i.l.bf16 %v8152_v9  ;;  %v8931_v36 = vpack.c.bf16 %v1625_v48, %v1623_v32  ;;  %v2268_v24 = vld [vmem:[%s13129_s8 + $0x68] sm:$0xff] }
 0x284   : > { %v7740_v13 = vcombine.high %v2264_v23, %v2268_v24  ;;  %v2272_v18 = vld [vmem:[%s13129_s8 + $0x88] sm:$0xff]  ;;  %v7739_v43 = vcombine.low %v2264_v23, %v2268_v24 }
 0x285   : > { %v1622_v53 = vsel %vm13154_vm12, %v8153_v50, %v8143_v39  ;;  %v1624_v54 = vsel %vm13154_vm12, %v8154_v49, %v8148_v47  ;;  %8932 = vmatprep.subr.msk.bf16.mxu1 %vm9628_vm13, %v8931_v36  ;;  %v2276_v39 = vld [vmem:[%s13129_s8 + $0xa8] sm:$0xff] }
 0x286   : > { %v8934_v44 = vpack.c.bf16 %v1624_v54, %v1622_v53  ;;  %v7748_v50 = vcombine.high %v2272_v18, %v2276_v39  ;;  %v2280_v54 = vld [vmem:[%s13129_s8 + $0xc8] sm:$0xff] }
 0x287   : > { %v2284_v36 = vld [vmem:[%s13129_s8 + $0xe8] sm:$0xff] }
 0x288   : > { %8935 = vmatpush1.bf16.msk.msra.mxu1 %vm9641_vm1, %v8934_v44  ;;  %v7756_v44 = vcombine.high %v2280_v54, %v2284_v36  ;;  %v2356_v11 = vld [vmem:[%s13129_s8 + $0x328] sm:$0xff] }
 0x289   : > { %3066 = vmatprep.subr.bf16.mxu1 %v7732_v10  ;;  %v2360_v10 = vld [vmem:[%s13129_s8 + $0x348] sm:$0xff] }
 0x28a   : > { %v2364_v23 = vld [vmem:[%s13129_s8 + $0x368] sm:$0xff] }
 0x28b   : > { %1831 = vmatmul.mubr.bf16.vlgmr.msra.gmra.mrb[0].mxu1 %v8816_v56  ;;  %v7747_v56 = vcombine.low %v2272_v18, %v2276_v39  ;;  %v7835_v18 = vcombine.low %v2360_v10, %v2364_v23 }
 0x28c   : > { %3067 = vmatpush1.bf16.msra.mxu1 %v7731_v63 }
 0x28d   : > { %3068 = vmatprep.subr.bf16.mxu1 %v7740_v13  ;;  %v7836_v13 = vcombine.high %v2360_v10, %v2364_v23 }
 0x290   : > { %v1725_v34 = vpop.permute.xlu0 %1724  ;;  %3069 = vmatpush1.bf16.msra.mxu1 %v7739_v43 }
 0x291   : > { %3070 = vmatprep.subr.bf16.mxu1 %v7748_v50 }
 0x293   : > { %v1730_v42 = vpop.permute.xlu1 %1729 }
 0x294   : > { %3071 = vmatpush1.bf16.msra.mxu1 %v7747_v56 }
 0x295   : > { %3072 = vmatprep.subr.bf16.mxu1 %v7756_v44 }
 0x35e   : > { %v1832_v58 = vpop.f32.mrb[0].mxu1 }
 0x35f   : > { %v7889_v52 = vadd.f32 %v1832_v58, %v1725_v34  ;;  %v1834_v60 = vpop.f32.mrb[1].mxu1  ;;  %v2292_v58 = vld [vmem:[%s13129_s8 + $0x128] sm:$0xff] }
 0x360   : > { %v7890_v28 = vadd.f32 %v1834_v60, %v1725_v34  ;;  %v1836_v62 = vpop.f32.mrb[2].mxu1  ;;  %v2288_v34 = vld [vmem:[%s13129_s8 + $0x108] sm:$0xff] }
 0x361   : > { %v1841_v61 = vmax.f32 %v7889_v52, 0.0  ;;  %v7891_v57 = vadd.f32 %v1836_v62, %v1730_v42  ;;  %v1838_v31 = vpop.f32.mrb[3].mxu1  ;;  %v7764_v52 = vcombine.high %v2288_v34, %v2292_v58  ;;  %v2296_v60 = vld [vmem:[%s13129_s8 + $0x148] sm:$0xff]  ;;  %v7763_v62 = vcombine.low %v2288_v34, %v2292_v58 }
 0x362   : > { %v1842_v35 = vmax.f32 %v7890_v28, 0.0  ;;  %v7892_v1 = vadd.f32 %v1838_v31, %v1730_v42  ;;  %v7755_v42 = vcombine.low %v2280_v54, %v2284_v36  ;;  %v2300_v28 = vld [vmem:[%s13129_s8 + $0x168] sm:$0xff] }
 0x363   : > { %1855 = vrot.lane.b32.xlu1 %v1841_v61, %s9063_s27  ;;  %v1843_v3 = vmax.f32 %v7891_v57, 0.0  ;;  %v7772_v61 = vcombine.high %v2296_v60, %v2300_v28  ;;  %v2304_v57 = vld [vmem:[%s13129_s8 + $0x188] sm:$0xff] }
 0x364   : > { %1857 = vrot.lane.b32.xlu0 %v1842_v35, %s9063_s27  ;;  %v1844_v33 = vmax.f32 %v7892_v1, 0.0  ;;  %3073 = vmatpush1.bf16.msra.mxu1 %v7755_v42  ;;  %v2308_v31 = vld [vmem:[%s13129_s8 + $0x1a8] sm:$0xff]  ;;  %v7771_v35 = vcombine.low %v2296_v60, %v2300_v28 }
 0x365   : > { %3074 = vmatprep.subr.bf16.mxu1 %v7764_v52  ;;  %v7780_v1 = vcombine.high %v2304_v57, %v2308_v31 }
 0x367   : > { %1859 = vrot.lane.b32.xlu1 %v1843_v3, %s9063_s27  ;;  %v2312_v3 = vld [vmem:[%s13129_s8 + $0x1c8] sm:$0xff] }
 0x368   : > { %1861 = vrot.lane.b32.xlu0 %v1844_v33, %s9063_s27  ;;  %s13143_s27 = sshll.u32 %s13867_s19, 5  ;;  %3075 = vmatpush1.bf16.msra.mxu1 %v7763_v62  ;;  %v2316_v33 = vld [vmem:[%s13129_s8 + $0x1e8] sm:$0xff] }
 0x369   : > { %3076 = vmatprep.subr.bf16.mxu1 %v7772_v61 }
 0x36c   : > { %3077 = vmatpush1.bf16.msra.mxu1 %v7771_v35 }
 0x36d   : > { %3078 = vmatprep.subr.bf16.mxu1 %v7780_v1 }
 0x3d5   : > { %v1856_v38 = vpop.permute.xlu1 %1855 }
 0x3d6   : > { %1871 = vst.msk [vmem:[#allocation2] sm:$0xff] %vm720_vm2, %v1856_v38  ;;  %v1858_v5 = vpop.permute.xlu0 %1857 }
 0x3d7   : > { %1873 = vst.msk [vmem:[#allocation2 + $0x10] sm:$0xff] %vm703_vm3, %v1858_v5  ;;  %v1863_v6 = vsel %vm703_vm3, %v1856_v38, %v1858_v5  ;;  %v7779_v38 = vcombine.low %v2304_v57, %v2308_v31  ;;  %v7788_v5 = vcombine.high %v2312_v3, %v2316_v33 }
 0x3d9   : > { %v1860_v7 = vpop.permute.xlu1 %1859  ;;  %3079 = vmatpush1.bf16.msra.mxu1 %v7779_v38 }
 0x3da   : > { %1874 = vst.msk [vmem:[#allocation2 + $0x48] sm:$0xff] %vm720_vm2, %v1860_v7  ;;  %v1862_v12 = vpop.permute.xlu0 %1861  ;;  %vm2202_vm2 = vcmask 130048   ;;  %3080 = vmatprep.subr.bf16.mxu1 %v7788_v5 }
 0x3db   : > { %v1864_v27 = vsel %vm703_vm3, %v1860_v7, %v1862_v12  ;;  %1876 = vst.msk [vmem:[#allocation2 + $0x58] sm:$0xff] %vm703_vm3, %v1862_v12  ;;  %7728 = vmatprep.mubr.msk.bf16.mxu0 %vm2202_vm2, %v8819_v21  ;;  %v2324_v7 = vld [vmem:[%s13129_s8 + $0x228] sm:$0xff]  ;;  %v7787_v12 = vcombine.low %v2312_v3, %v2316_v33  ;;  %vm13164_vm3 = vcmask 269312  }
 0x3dc   : > { %v8937_v17 = vpack.c.bf16 %v1864_v27, %v1863_v6 }
 0x3dd   : > { %v1877_v37 = vld [vmem:[#allocation2] sm:$0xff]  ;;  %3081 = vmatpush1.bf16.msra.mxu1 %v7787_v12 }
 0x3de   : > { %v1955_v14 = vld [vmem:[#allocation2 + $0x10] sm:$0xff]  ;;  %3199 = vst [vmem:[#allocation2] sm:$0xff] %v9835_v46  ;;  %8938 = vmatprep.subr.msk.bf16.mxu0 %vm9274_vm6, %v8937_v17 }
 0x3df   : > { %v8167_v15 = vpack.i.bf16 %v1955_v14, %v1863_v6  ;;  %v2320_v6 = vld [vmem:[%s13129_s8 + $0x208] sm:$0xff] }
 0x3e1   : > { %v1879_v55 = vld [vmem:[#allocation2 + $0x48] sm:$0xff]  ;;  %8168 = vrot.lane.b32.xlu1 %v8167_v15, %s9066_s20  ;;  %8158 = vrot.lane.b32.xlu0 %v8167_v15, %s13148_s17 }
 0x3e2   : > { %v8172_v19 = vpack.i.bf16 %v1879_v55, %v1877_v37  ;;  %3209 = vst [vmem:[#allocation2 + $0x48] sm:$0xff] %v9835_v46  ;;  %v1958_v59 = vld [vmem:[#allocation2 + $0x58] sm:$0xff]  ;;  %v8940_v8 = vpack.c.bf16 %v1879_v55, %v1877_v37  ;;  %v2328_v37 = vld [vmem:[%s13129_s8 + $0x248] sm:$0xff] }
 0x3e3   : > { %v8182_v20 = vpack.i.bf16 %v1958_v59, %v1864_v27  ;;  %v1897_v40 = vpack.c.bf16 %v1958_v59, %v1955_v14  ;;  %v7796_v27 = vcombine.high %v2320_v6, %v2324_v7  ;;  %v2332_v14 = vld [vmem:[%s13129_s8 + $0x268] sm:$0xff] }
 0x3e4   : > { %8941 = vmatpush1.bf16.msk.msra.mxu0 %vm9297_vm7, %v8940_v8  ;;  %v2336_v55 = vld [vmem:[%s13129_s8 + $0x288] sm:$0xff]  ;;  %v7803_v59 = vcombine.low %v2328_v37, %v2332_v14 }
 0x3e5   : > { %8173 = vrot.lane.b32.xlu1 %v8172_v19, %s9066_s20  ;;  %8163 = vrot.lane.b32.xlu0 %v8172_v19, %s13148_s17 }
 0x3e6   : > { %3082 = vmatprep.subr.bf16.mxu1 %v7796_v27 }
 0x3e9   : > { %1901 = vrot.lane.b32.xlu1 %v8940_v8, %s13137_s30  ;;  %8183 = vrot.lane.b32.xlu0 %v8182_v20, %s9066_s20  ;;  %s13144_s20 = smov 62  }
 0x3ed   : > { %1905 = vrot.lane.b32.xlu0 %v1897_v40, %s13137_s30  ;;  %8178 = vrot.lane.b32.xlu1 %v8182_v20, %s13148_s17 }
 0x3f1   : > { %2005 = vrot.lane.b32.xlu0 %v8940_v8, %s9067_s21  ;;  %1903 = vrot.lane.b32.xlu1 %v8937_v17, %s13137_s30  ;;  %s13360_s30 = smov 127  }
 0x3f5   : > { %8193 = vrot.lane.b32.xlu0 %v8182_v20, %s9068_s22  ;;  %2009 = vrot.lane.b32.xlu1 %v1897_v40, %s9067_s21 }
 0x3f9   : > { %8203 = vrot.lane.b32.xlu0 %v8167_v15, %s13141_s23  ;;  %8188 = vrot.lane.b32.xlu1 %v8167_v15, %s9068_s22 }
 0x3fd   : > { %2007 = vrot.lane.b32.xlu0 %v8937_v17, %s9067_s21  ;;  %8198 = vrot.lane.b32.xlu1 %v8172_v19, %s9068_s22  ;;  %s9888_s21 = scalar_lea.vmem %s13123_s2, %s13143_s27  ;;  %s13356_s22 = smov 33  }
 0x3fe   : > { %v3196_v47 = vld [vmem:[%s9888_s21 + $0x8] sm:$0xff]  ;;  %v3195_v32 = vld [vmem:[%s9888_s21] sm:$0xff]  ;;  %s13359_s27 = smov 62  }
 0x3ff   : > { %v3329_v4 = vunpack.c.l.bf16 %v3196_v47  ;;  %v3330_v9 = vunpack.c.h.bf16 %v3196_v47  ;;  %v3327_v48 = vunpack.c.l.bf16 %v3195_v32  ;;  %v3328_v49 = vunpack.c.h.bf16 %v3195_v32 }
 0x401   : > { %8213 = vrot.lane.b32.xlu0 %v8172_v19, %s13141_s23  ;;  %8208 = vrot.lane.b32.xlu1 %v8182_v20, %s13141_s23  ;;  %v8237_v26 = vpack.i.bf16 %v3330_v9, %v3329_v4  ;;  %v8232_v53 = vpack.i.bf16 %v3328_v49, %v3327_v48  ;;  %s13318_s23 = smov 94  }
 0x405   : > { %2113 = vrot.lane.b32.xlu0 %v1897_v40, %s9070_s26  ;;  %2109 = vrot.lane.b32.xlu1 %v8940_v8, %s9070_s26  ;;  %v2348_v40 = vld [vmem:[%s13129_s8 + $0x2e8] sm:$0xff] }
 0x409   : > { %8218 = vrot.lane.b32.xlu0 %v8167_v15, %s13139_s28  ;;  %2111 = vrot.lane.b32.xlu1 %v8937_v17, %s9070_s26  ;;  %v7795_v15 = vcombine.low %v2320_v6, %v2324_v7  ;;  %v7804_v17 = vcombine.high %v2328_v37, %v2332_v14 }
 0x40b   : > { %3083 = vmatpush1.bf16.msra.mxu1 %v7795_v15 }
 0x40c   : > { %3084 = vmatprep.subr.bf16.mxu1 %v7804_v17 }
 0x40d   : > { %8228 = vrot.lane.b32.xlu0 %v8172_v19, %s13139_s28  ;;  %8223 = vrot.lane.b32.xlu1 %v8182_v20, %s13139_s28  ;;  %v2340_v19 = vld [vmem:[%s13129_s8 + $0x2a8] sm:$0xff]  ;;  %s13146_s28 = smov 64  }
 0x40e   : > { %v7812_v8 = vcombine.high %v2336_v55, %v2340_v19  ;;  %v2344_v20 = vld [vmem:[%s13129_s8 + $0x2c8] sm:$0xff]  ;;  %v7811_v21 = vcombine.low %v2336_v55, %v2340_v19 }
 0x40f   : > { %3085 = vmatpush1.bf16.msra.mxu1 %v7803_v59  ;;  %v7819_v22 = vcombine.low %v2344_v20, %v2348_v40 }
 0x410   : > { %3086 = vmatprep.subr.bf16.mxu1 %v7812_v8 }
 0x411   : > { %2190 = vperm.xlu0 %8155, %v2182_v41   ;;  %2185 = vperm.xlu1 %8156, %v2181_v0   ;;  %v7820_v41 = vcombine.high %v2344_v20, %v2348_v40  ;;  %v2352_v0 = vld [vmem:[%s13129_s8 + $0x308] sm:$0xff] }
 0x412   : > { %v7828_v63 = vcombine.high %v2352_v0, %v2356_v11  ;;  %v7827_v24 = vcombine.low %v2352_v0, %v2356_v11 }
 0x413   : > { %3087 = vmatpush1.bf16.msra.mxu1 %v7811_v21 }
 0x414   : > { %3088 = vmatprep.subr.bf16.mxu1 %v7820_v41 }
 0x415   : > { %8238 = vrot.lane.b32.xlu0 %v8237_v26, %s13150_s29  ;;  %8233 = vrot.lane.b32.xlu1 %v8232_v53, %s13150_s29 }
 0x417   : > { %3089 = vmatpush1.bf16.msra.mxu1 %v7819_v22 }
 0x418   : > { %3090 = vmatprep.subr.bf16.mxu1 %v7828_v63 }
 0x41b   : > { %3091 = vmatpush1.bf16.msra.mxu1 %v7827_v24 }
 0x41c   : > { %3092 = vmatprep.subr.bf16.mxu1 %v7836_v13 }
 0x41f   : > { %3093 = vmatpush1.bf16.msra.mxu1 %v7835_v18 }
 0x453   : > { %v8159_v39 = vpop.permute.xlu0 %8158  ;;  %v8169_v43 = vpop.permute.xlu1 %8168 }
 0x454   : > { %v8161_v4 = vunpack.i.h.bf16 %v8159_v39  ;;  %v8160_v9 = vunpack.i.l.bf16 %v8159_v39  ;;  %v8171_v50 = vunpack.i.h.bf16 %v8169_v43  ;;  %v8170_v26 = vunpack.i.l.bf16 %v8169_v43 }
 0x456   : > { %v1938_v53 = vsel %vm13153_vm11, %v8160_v9, %v8161_v4  ;;  %v1978_v60 = vsel %vm1104_vm9, %v8170_v26, %v8171_v50 }
 0x457   : > { %v8164_v47 = vpop.permute.xlu0 %8163  ;;  %v8174_v32 = vpop.permute.xlu1 %8173 }
 0x458   : > { %v8166_v34 = vunpack.i.h.bf16 %v8164_v47  ;;  %v8165_v58 = vunpack.i.l.bf16 %v8164_v47  ;;  %v8176_v61 = vunpack.i.h.bf16 %v8174_v32  ;;  %v8175_v57 = vunpack.i.l.bf16 %v8174_v32 }
 0x45a   : > { %v1937_v3 = vsel %vm13153_vm11, %v8165_v58, %v8160_v9  ;;  %v1977_v27 = vsel %vm1104_vm9, %v8175_v57, %v8170_v26 }
 0x45b   : > { %v8184_v48 = vpop.permute.xlu0 %8183  ;;  %v1902_v49 = vpop.permute.xlu1 %1901 }
 0x45c   : > { %v8186_v54 = vunpack.i.h.bf16 %v8184_v48  ;;  %v8185_v36 = vunpack.i.l.bf16 %v8184_v48 }
 0x45e   : > { %v1980_v31 = vsel %vm1104_vm9, %v8185_v36, %v8186_v54  ;;  %v1979_v5 = vsel %vm1104_vm9, %v8176_v61, %v8185_v36  ;;  %vm13165_vm9 = vcmask 539648  }
 0x45f   : > { %v1906_v56 = vpop.permute.xlu0 %1905  ;;  %v8179_v44 = vpop.permute.xlu1 %8178  ;;  %v8949_v19 = vpack.c.bf16 %v1980_v31, %v1978_v60  ;;  %v8952_v21 = vpack.c.bf16 %v1979_v5, %v1977_v27  ;;  %v2267_v27 = vld [vmem:[%s13129_s8 + $0x60] sm:$0xff]  ;;  %3226 = vst.msk [vmem:[#allocation2 + $0xd0] sm:$0xff] %vm13165_vm9, %v9835_v46  ;;  %3208 = vst.msk [vmem:[#allocation2 + $0x40] sm:$0xff] %vm13165_vm9, %v9835_v46 }
 0x460   : > { %v8181_v42 = vunpack.i.h.bf16 %v8179_v44  ;;  %v8180_v52 = vunpack.i.l.bf16 %v8179_v44  ;;  %3217 = vst.msk [vmem:[#allocation2 + $0x88] sm:$0xff] %vm13165_vm9, %v9835_v46 }
 0x462   : > { %v1939_v28 = vsel %vm13153_vm11, %v8166_v34, %v8180_v52  ;;  %v1940_v62 = vsel %vm13153_vm11, %v8180_v52, %v8181_v42 }
 0x463   : > { %v2006_v35 = vpop.permute.xlu0 %2005  ;;  %v1904_v1 = vpop.permute.xlu1 %1903  ;;  %v8943_v12 = vpack.c.bf16 %v1940_v62, %v1938_v53  ;;  %v8946_v15 = vpack.c.bf16 %v1939_v28, %v1937_v3 }
 0x464   : > { %v1907_v33 = vsel %vm13152_vm8, %v1902_v49, %v1904_v1  ;;  %v1908_v38 = vsel %vm13152_vm8, %v1904_v1, %v1906_v56 }
 0x465   : > { %1911 = vst [vmem:[#allocation3 + $0x40] sm:$0xff] %v1907_v33  ;;  %1912 = vst [vmem:[#allocation3 + $0x48] sm:$0xff] %v1908_v38  ;;  %2208 = vmatprep.subr.bf16.mxu0 %v1908_v38 }
 0x466   : > { %2209 = vmatpush1.bf16.msra.mxu0 %v1907_v33  ;;  %v2255_v33 = vld [vmem:[%s13129_s8] sm:$0xff] }
 0x467   : > { %v8194_v6 = vpop.permute.xlu0 %8193  ;;  %v2010_v7 = vpop.permute.xlu1 %2009  ;;  %8944 = vmatprep.subr.msk.bf16.mxu0 %vm9628_vm13, %v8943_v12  ;;  %v2263_v12 = vld [vmem:[%s13129_s8 + $0x40] sm:$0xff] }
 0x468   : > { %v8196_v37 = vunpack.i.h.bf16 %v8194_v6  ;;  %v8195_v14 = vunpack.i.l.bf16 %v8194_v6 }
 0x46a   : > { %8947 = vmatpush1.bf16.msk.msra.mxu0 %vm9641_vm1, %v8946_v15  ;;  %v2044_v59 = vsel %vm1298_vm15, %v8195_v14, %v8196_v37 }
 0x46b   : > { %v8204_v17 = vpop.permute.xlu0 %8203  ;;  %v8189_v55 = vpop.permute.xlu1 %8188  ;;  %8950 = vmatprep.subr.msk.bf16.mxu0 %vm9274_vm6, %v8949_v19  ;;  %v2271_v19 = vld [vmem:[%s13129_s8 + $0x80] sm:$0xff] }
 0x46c   : > { %v8191_v8 = vunpack.i.h.bf16 %v8189_v55  ;;  %v8190_v20 = vunpack.i.l.bf16 %v8189_v55  ;;  %v8206_v10 = vunpack.i.h.bf16 %v8204_v17  ;;  %v8205_v23 = vunpack.i.l.bf16 %v8204_v17 }
 0x46d   : > { %v7729_v17 = vcombine.low %v2255_v33, %v2259_v51  ;;  %v7738_v55 = vcombine.high %v2263_v12, %v2267_v27 }
 0x46e   : > { %v2042_v40 = vsel %vm1298_vm15, %v8190_v20, %v8191_v8  ;;  %8953 = vmatpush1.bf16.msk.msra.mxu0 %vm9297_vm7, %v8952_v21  ;;  %v2082_v48 = vsel %vm13227_vm4, %v8205_v23, %v8206_v10  ;;  %v7746_v8 = vcombine.high %v2271_v19, %v2275_v25  ;;  %v2299_v10 = vld [vmem:[%s13129_s8 + $0x160] sm:$0xff] }
 0x46f   : > { %v2008_v41 = vpop.permute.xlu0 %2007  ;;  %v8199_v0 = vpop.permute.xlu1 %8198  ;;  %v8955_v47 = vpack.c.bf16 %v2044_v59, %v2042_v40  ;;  %v7737_v59 = vcombine.low %v2263_v12, %v2267_v27  ;;  %v7745_v40 = vcombine.low %v2271_v19, %v2275_v25  ;;  %v2372_v12 = vld [vmem:[%s13129_s8 + $0x3a8] sm:$0xff] }
 0x470   : > { %v2011_v11 = vsel %vm1207_vm14, %v2006_v35, %v2008_v41  ;;  %v2012_v22 = vsel %vm1207_vm14, %v2008_v41, %v2010_v7  ;;  %v8201_v63 = vunpack.i.h.bf16 %v8199_v0  ;;  %v8200_v24 = vunpack.i.l.bf16 %v8199_v0  ;;  %v2287_v41 = vld [vmem:[%s13129_s8 + $0x100] sm:$0xff]  ;;  %v2380_v25 = vld [vmem:[%s13129_s8 + $0x3e8] sm:$0xff] }
 0x471   : > { %2015 = vst [vmem:[#allocation3 + $0x100] sm:$0xff] %v2011_v11  ;;  %2016 = vst [vmem:[#allocation3 + $0x108] sm:$0xff] %v2012_v22  ;;  %2214 = vmatprep.subr.bf16.mxu0 %v2012_v22  ;;  %v7730_v7 = vcombine.high %v2255_v33, %v2259_v51  ;;  %v2291_v0 = vld [vmem:[%s13129_s8 + $0x120] sm:$0xff] }
 0x472   : > { %v2043_v13 = vsel %vm1298_vm15, %v8201_v63, %v8195_v14  ;;  %2215 = vmatpush1.bf16.msra.mxu0 %v2011_v11  ;;  %v2041_v18 = vsel %vm1298_vm15, %v8200_v24, %v8190_v20  ;;  %v8817_v14 = vld [vmem:[%s13127_s6] ss:$8 sps:$4 sm:$0xff]   ;;  %v7762_v22 = vcombine.high %v2287_v41, %v2291_v0 }
 0x473   : > { %v8214_v39 = vpop.permute.xlu0 %8213  ;;  %v8209_v43 = vpop.permute.xlu1 %8208  ;;  %8956 = vmatprep.subr.msk.bf16.mxu0 %vm9628_vm13, %v8955_v47  ;;  %v8958_v56 = vpack.c.bf16 %v2043_v13, %v2041_v18  ;;  %v2283_v20 = vld [vmem:[%s13129_s8 + $0xe0] sm:$0xff] }
 0x474   : > { %v8216_v32 = vunpack.i.h.bf16 %v8214_v39  ;;  %v8215_v4 = vunpack.i.l.bf16 %v8214_v39  ;;  %v8211_v9 = vunpack.i.h.bf16 %v8209_v43  ;;  %v8210_v49 = vunpack.i.l.bf16 %v8209_v43  ;;  %v2295_v63 = vld [vmem:[%s13129_s8 + $0x140] sm:$0xff] }
 0x475   : > { %v7754_v21 = vcombine.high %v2279_v16, %v2283_v20  ;;  %v7753_v11 = vcombine.low %v2279_v16, %v2283_v20  ;;  %v7770_v24 = vcombine.high %v2295_v63, %v2299_v10  ;;  %v2303_v13 = vld [vmem:[%s13129_s8 + $0x180] sm:$0xff]  ;;  %v7769_v39 = vcombine.low %v2295_v63, %v2299_v10  ;;  %v10132_v20 = vld [vmem:[%s13129_s8 + $0x10] sm:$0xff] }
 0x476   : > { %v2081_v50 = vsel %vm13227_vm4, %v8215_v4, %v8205_v23  ;;  %v2083_v26 = vsel %vm13227_vm4, %v8216_v32, %v8210_v49  ;;  %v2084_v53 = vsel %vm13227_vm4, %v8210_v49, %v8211_v9  ;;  %8959 = vmatpush1.bf16.msk.msra.mxu0 %vm9641_vm1, %v8958_v56  ;;  %v7761_v23 = vcombine.low %v2287_v41, %v2291_v0  ;;  %v2307_v18 = vld [vmem:[%s13129_s8 + $0x1a0] sm:$0xff] }
 0x477   : > { %v2114_v54 = vpop.permute.xlu0 %2113  ;;  %v2110_v36 = vpop.permute.xlu1 %2109  ;;  %v8961_v58 = vpack.c.bf16 %v2084_v53, %v2082_v48  ;;  %v8964_v62 = vpack.c.bf16 %v2083_v26, %v2081_v50  ;;  %v7778_v43 = vcombine.high %v2303_v13, %v2307_v18  ;;  %v2311_v47 = vld [vmem:[%s13129_s8 + $0x1c0] sm:$0xff]  ;;  %v7777_v4 = vcombine.low %v2303_v13, %v2307_v18 }
 0x478   : > { %v2315_v32 = vld [vmem:[%s13129_s8 + $0x1e0] sm:$0xff] }
 0x479   : > { %8962 = vmatprep.subr.msk.bf16.mxu0 %vm9274_vm6, %v8961_v58  ;;  %v7786_v9 = vcombine.high %v2311_v47, %v2315_v32  ;;  %v2319_v48 = vld [vmem:[%s13129_s8 + $0x200] sm:$0xff]  ;;  %v7785_v50 = vcombine.low %v2311_v47, %v2315_v32  ;;  %vm13160_vm6 = vcmask 1047816   ;;  %v3197_v32 = vld [vmem:[%s9888_s21 + $0x10] sm:$0xff] }
 0x47a   : > { %8965 = vmatpush1.bf16.msk.msra.mxu0 %vm9297_vm7, %v8964_v62  ;;  %v2323_v49 = vld [vmem:[%s13129_s8 + $0x220] sm:$0xff] }
 0x47b   : > { %v8219_v44 = vpop.permute.xlu0 %8218  ;;  %v2112_v34 = vpop.permute.xlu1 %2111  ;;  %v7794_v26 = vcombine.high %v2319_v48, %v2323_v49  ;;  %v2327_v53 = vld [vmem:[%s13129_s8 + $0x240] sm:$0xff] }
 0x47c   : > { %v8221_v42 = vunpack.i.h.bf16 %v8219_v44  ;;  %v8220_v52 = vunpack.i.l.bf16 %v8219_v44  ;;  %v2115_v60 = vsel %vm13161_vm10, %v2110_v36, %v2112_v34  ;;  %v2116_v28 = vsel %vm13161_vm10, %v2112_v34, %v2114_v54  ;;  %v2331_v54 = vld [vmem:[%s13129_s8 + $0x260] sm:$0xff] }
 0x47d   : > { %2119 = vst [vmem:[#allocation3 + $0x1c0] sm:$0xff] %v2115_v60  ;;  %2120 = vst [vmem:[#allocation3 + $0x1c8] sm:$0xff] %v2116_v28  ;;  %2220 = vmatprep.subr.bf16.mxu0 %v2116_v28  ;;  %v7793_v36 = vcombine.low %v2319_v48, %v2323_v49  ;;  %v7802_v56 = vcombine.high %v2327_v53, %v2331_v54  ;;  %v2335_v44 = vld [vmem:[%s13129_s8 + $0x280] sm:$0xff]  ;;  %v7801_v58 = vcombine.low %v2327_v53, %v2331_v54 }
 0x47e   : > { %v2146_v61 = vsel %vm13154_vm12, %v8220_v52, %v8221_v42  ;;  %2221 = vmatpush1.bf16.msra.mxu0 %v2115_v60  ;;  %v2339_v34 = vld [vmem:[%s13129_s8 + $0x2a0] sm:$0xff]  ;;  %v3394_v49 = vand.u32 31, %v9235_v29 }
 0x47f   : > { %v8229_v57 = vpop.permute.xlu0 %8228  ;;  %v8224_v31 = vpop.permute.xlu1 %8223  ;;  %v7810_v42 = vcombine.high %v2335_v44, %v2339_v34  ;;  %v2347_v60 = vld [vmem:[%s13129_s8 + $0x2e0] sm:$0xff]  ;;  %v7809_v28 = vcombine.low %v2335_v44, %v2339_v34  ;;  %v3198_v34 = vld [vmem:[%s9888_s21 + $0x18] sm:$0xff]  ;;  %s13317_s21 = smov 96  }
 0x480   : > { %v8231_v35 = vunpack.i.h.bf16 %v8229_v57  ;;  %v8230_v45 = vunpack.i.l.bf16 %v8229_v57  ;;  %v8226_v1 = vunpack.i.h.bf16 %v8224_v31  ;;  %v8225_v3 = vunpack.i.l.bf16 %v8224_v31  ;;  %v2355_v57 = vld [vmem:[%s13129_s8 + $0x320] sm:$0xff] }
 0x481   : > { %vm10178_vm7 = vcmp.ne.s32.totalorder %v3394_v49, 0 }
 0x482   : > { %v2145_v38 = vsel %vm13154_vm12, %v8230_v45, %v8220_v52  ;;  %v2147_v5 = vsel %vm13154_vm12, %v8231_v35, %v8225_v3  ;;  %v2148_v6 = vsel %vm13154_vm12, %v8225_v3, %v8226_v1  ;;  %v2343_v52 = vld [vmem:[%s13129_s8 + $0x2c0] sm:$0xff]  ;;  %vm13155_vm12 = vcmask 506880  }
 0x483   : > { %v8967_v37 = vpack.c.bf16 %v2148_v6, %v2146_v61  ;;  %v8970_v15 = vpack.c.bf16 %v2147_v5, %v2145_v38  ;;  %v7818_v62 = vcombine.high %v2343_v52, %v2347_v60  ;;  %v2351_v61 = vld [vmem:[%s13129_s8 + $0x300] sm:$0xff]  ;;  %v7817_v31 = vcombine.low %v2343_v52, %v2347_v60  ;;  %v2368_v6 = vld [vmem:[%s13129_s8 + $0x388] sm:$0xff] }
 0x484   : > { %v7826_v35 = vcombine.high %v2351_v61, %v2355_v57  ;;  %v2359_v45 = vld [vmem:[%s13129_s8 + $0x340] sm:$0xff]  ;;  %v7825_v3 = vcombine.low %v2351_v61, %v2355_v57  ;;  %v3333_v60 = vunpack.c.l.bf16 %v3198_v34 }
 0x485   : > { %8968 = vmatprep.subr.msk.bf16.mxu0 %vm9628_vm13, %v8967_v37  ;;  %v2363_v1 = vld [vmem:[%s13129_s8 + $0x360] sm:$0xff]  ;;  %v7843_v37 = vcombine.low %v2368_v6, %v2372_v12 }
 0x486   : > { %8971 = vmatpush1.bf16.msk.msra.mxu0 %vm9641_vm1, %v8970_v15  ;;  %v7834_v33 = vcombine.high %v2359_v45, %v2363_v1  ;;  %v7833_v51 = vcombine.low %v2359_v45, %v2363_v1  ;;  %v2367_v38 = vld [vmem:[%s13129_s8 + $0x380] sm:$0xff] }
 0x487   : > { %3023 = vmatprep.subr.bf16.mxu0 %v7730_v7  ;;  %v2371_v5 = vld [vmem:[%s13129_s8 + $0x3a0] sm:$0xff] }
 0x488   : > { %v7842_v7 = vcombine.high %v2367_v38, %v2371_v5  ;;  %v7841_v27 = vcombine.low %v2367_v38, %v2371_v5  ;;  %v2375_v15 = vld [vmem:[%s13129_s8 + $0x3c0] sm:$0xff] }
 0x489   : > { %2239 = vmatmul.mubr.bf16.vlgmr.msra.gmra.mrb[8].mxu0 %v8817_v14  ;;  %v7844_v14 = vcombine.high %v2368_v6, %v2372_v12 }
 0x48a   : > { %3024 = vmatpush1.bf16.msra.mxu0 %v7729_v17  ;;  %v2379_v17 = vld [vmem:[%s13129_s8 + $0x3e0] sm:$0xff] }
 0x48b   : > { %3025 = vmatprep.subr.bf16.mxu0 %v7738_v55  ;;  %3094 = vmatprep.subr.bf16.mxu1 %v7844_v14  ;;  %v2376_v55 = vld [vmem:[%s13129_s8 + $0x3c8] sm:$0xff]  ;;  %v7850_v19 = vcombine.high %v2375_v15, %v2379_v17 }
 0x48c   : > { %3095 = vmatpush1.bf16.msra.mxu1 %v7843_v37  ;;  %v7852_v16 = vcombine.high %v2376_v55, %v2380_v25  ;;  %v2265_v37 = vld [vmem:[%s13129_s8 + $0x50] sm:$0xff] }
 0x48e   : > { %3026 = vmatpush1.bf16.msra.mxu0 %v7737_v59  ;;  %v7849_v59 = vcombine.low %v2375_v15, %v2379_v17  ;;  %3096 = vmatprep.subr.bf16.mxu1 %v7852_v16  ;;  %v2269_v15 = vld [vmem:[%s13129_s8 + $0x70] sm:$0xff]  ;;  %v2266_v17 = vld [vmem:[%s13129_s8 + $0x58] sm:$0xff] }
 0x48f   : > { %3027 = vmatprep.subr.bf16.mxu0 %v7746_v8  ;;  %v7851_v8 = vcombine.low %v2376_v55, %v2380_v25  ;;  %v2270_v55 = vld [vmem:[%s13129_s8 + $0x78] sm:$0xff]  ;;  %v2273_v25 = vld [vmem:[%s13129_s8 + $0x90] sm:$0xff] }
 0x490   : > { %v2191_v10 = vpop.permute.xlu0 %2190  ;;  %v2277_v16 = vld [vmem:[%s13129_s8 + $0xb0] sm:$0xff] }
 0x491   : > { %3097 = vmatpush1.bf16.msra.mxu1 %v7851_v8  ;;  %v7744_v8 = vcombine.high %v2266_v17, %v2270_v55 }
 0x492   : > { %3028 = vmatpush1.bf16.msra.mxu0 %v7745_v40  ;;  %v10137_v40 = vld [vmem:[%s13129_s8 + $0x30] sm:$0xff] }
 0x493   : > { %3029 = vmatprep.subr.bf16.mxu0 %v7754_v21  ;;  %v10142_v21 = vld [vmem:[%s13129_s8 + $0x18] sm:$0xff]  ;;  %v7733_v41 = vcombine.low %v10132_v20, %v10137_v40  ;;  %v7734_v0 = vcombine.high %v10132_v20, %v10137_v40  ;;  %v2285_v20 = vld [vmem:[%s13129_s8 + $0xf0] sm:$0xff] }
 0x494   : > { %v2282_v40 = vld [vmem:[%s13129_s8 + $0xd8] sm:$0xff] }
 0x496   : > { %3030 = vmatpush1.bf16.msra.mxu0 %v7753_v11  ;;  %v10151_v11 = vld [vmem:[%s13129_s8 + $0x38] sm:$0xff] }
 0x497   : > { %3031 = vmatprep.subr.bf16.mxu0 %v7762_v22  ;;  %v7735_v22 = vcombine.low %v10142_v21, %v10151_v11  ;;  %v7736_v63 = vcombine.high %v10142_v21, %v10151_v11  ;;  %v2286_v21 = vld [vmem:[%s13129_s8 + $0xf8] sm:$0xff] }
 0x499   : > { %3152 = vmatprep.subr.bf16.mxu1 %v7736_v63  ;;  %v2278_v63 = vld [vmem:[%s13129_s8 + $0xb8] sm:$0xff] }
 0x49a   : > { %3032 = vmatpush1.bf16.msra.mxu0 %v7761_v23  ;;  %v2186_v23 = vpop.permute.xlu1 %2185 }
 0x49b   : > { %3033 = vmatprep.subr.bf16.mxu0 %v7770_v24  ;;  %v10157_v24 = vpop.permute.xlu0 %8238 }
 0x49c   : > { %v8241_v18 = vunpack.i.h.bf16 %v10157_v24 }
 0x49e   : > { %3034 = vmatpush1.bf16.msra.mxu0 %v7769_v39  ;;  %v8234_v13 = vpop.permute.xlu1 %8233  ;;  %v8240_v39 = vunpack.i.l.bf16 %v10157_v24 }
 0x49f   : > { %3035 = vmatprep.subr.bf16.mxu0 %v7778_v43  ;;  %v8236_v43 = vunpack.i.h.bf16 %v8234_v13  ;;  %v8235_v47 = vunpack.i.l.bf16 %v8234_v13  ;;  %v7750_v13 = vcombine.high %v2273_v25, %v2277_v16 }
 0x4a1   : > { %v10169_v48 = vsel %vm13164_vm3, %v8235_v47, %v8236_v43  ;;  %3375 = vst.msk [vmem:[#allocation2 + $0x90] sm:$0xff] %vm13160_vm6, %v8235_v47  ;;  %v7760_v47 = vcombine.high %v2282_v40, %v2286_v21 }
 0x4a2   : > { %3036 = vmatpush1.bf16.msra.mxu0 %v7777_v4  ;;  %v3361_v4 = vsel %vm13164_vm3, %v8240_v39, %v8241_v18 }
 0x4a3   : > { %3037 = vmatprep.subr.bf16.mxu0 %v7786_v9  ;;  %v10166_v9 = vsel %vm13164_vm3, %v8236_v43, %v8240_v39  ;;  %3378 = vst [vmem:[#allocation2 + $0xa8] sm:$0xff] %v3361_v4  ;;  %v10211_v61 = vpack.c.bf16 %v3361_v4, %v3361_v4  ;;  %v2281_v43 = vld [vmem:[%s13129_s8 + $0xd0] sm:$0xff] }
 0x4a4   : > { %3377 = vst [vmem:[#allocation2 + $0xa0] sm:$0xff] %v10166_v9  ;;  %v8247_v54 = vpack.i.bf16 %v10166_v9, %v10169_v48  ;;  %v10216_v57 = vpack.c.bf16 %v10166_v9, %v10166_v9  ;;  %v2293_v4 = vld [vmem:[%s13129_s8 + $0x130] sm:$0xff] }
 0x4a6   : > { %3038 = vmatpush1.bf16.msra.mxu0 %v7785_v50  ;;  %v3331_v50 = vunpack.c.l.bf16 %v3197_v32  ;;  %8248 = vrot.lane.b32.xlu0 %v8247_v54, %s13148_s17 }
 0x4a7   : > { %3039 = vmatprep.subr.bf16.mxu0 %v7794_v26  ;;  %v3332_v26 = vunpack.c.h.bf16 %v3197_v32  ;;  %v2289_v32 = vld [vmem:[%s13129_s8 + $0x110] sm:$0xff] }
 0x4a8   : > { %v10188_v44 = vld [vmem:[#allocation2 + $0x90] sm:$0xff] }
 0x4a9   : > { %v8242_v53 = vpack.i.bf16 %v3332_v26, %v3331_v50  ;;  %v10204_v52 = vpack.c.bf16 %v10188_v44, %v10188_v44  ;;  %v2290_v50 = vld [vmem:[%s13129_s8 + $0x118] sm:$0xff] }
 0x4aa   : > { %3040 = vmatpush1.bf16.msra.mxu0 %v7793_v36  ;;  %v13314_v36 = vmov 0  ;;  %8253 = vrot.lane.b32.xlu0 %v8247_v54, %s13317_s21  ;;  %v2294_v26 = vld [vmem:[%s13129_s8 + $0x138] sm:$0xff] }
 0x4ab   : > { %3041 = vmatprep.subr.bf16.mxu0 %v7802_v56  ;;  %v13315_v36 = vsel %vm10178_vm7, 4294967295, %v13314_v36  ;;  %8243 = vrot.lane.b32.xlu1 %v8242_v53, %s13150_s29  ;;  %v10185_v56 = vpack.c.bf16 %v10169_v48, %v10169_v48  ;;  %v7757_v53 = vcombine.low %v2281_v43, %v2285_v20 }
 0x4ac   : > { %13316 = vst [vmem:[#allocation5_spill] sm:$0xff] %v13315_v36 }
 0x4ae   : > { %3042 = vmatpush1.bf16.msra.mxu0 %v7801_v58  ;;  %v3558_v58 = vsel %vm10178_vm7, %v10188_v44, 0.0  ;;  %8258 = vrot.lane.b32.xlu0 %v8247_v54, %s13318_s23 }
 0x4af   : > { %3043 = vmatprep.subr.bf16.mxu0 %v7810_v42  ;;  %v3574_v42 = vpack.c.bf16 %v3558_v58, %v3558_v58  ;;  %4352 = vrot.lane.b32.xlu1 %v10185_v56, %s9070_s26  ;;  %v7768_v58 = vcombine.high %v2290_v50, %v2294_v26 }
 0x4b1   : > { %3590 = vst [vmem:[#allocation3 + $0x40] sm:$0xf] %v3574_v42  ;;  %v2297_v42 = vld [vmem:[%s13129_s8 + $0x150] sm:$0xff] }
 0x4b2   : > { %3044 = vmatpush1.bf16.msra.mxu0 %v7809_v28  ;;  %v3334_v28 = vunpack.c.h.bf16 %v3198_v34  ;;  %v7766_v34 = vcombine.high %v2289_v32, %v2293_v4 }
 0x4b3   : > { %3045 = vmatprep.subr.bf16.mxu0 %v7818_v62  ;;  %4350 = vrot.lane.b32.xlu1 %v10204_v52, %s9070_s26 }
 0x4b4   : > { %v8262_v62 = vpack.i.bf16 %v3334_v28, %v3333_v60  ;;  %v2301_v60 = vld [vmem:[%s13129_s8 + $0x170] sm:$0xff]  ;;  %v2298_v28 = vld [vmem:[%s13129_s8 + $0x158] sm:$0xff] }
 0x4b6   : > { %3046 = vmatpush1.bf16.msra.mxu0 %v7817_v31  ;;  %8263 = vrot.lane.b32.xlu0 %v8262_v62, %s13150_s29  ;;  %v8272_v31 = vpack.i.bf16 %v10169_v48, %v10188_v44  ;;  %v2302_v62 = vld [vmem:[%s13129_s8 + $0x178] sm:$0xff] }
 0x4b7   : > { %3047 = vmatprep.subr.bf16.mxu0 %v7826_v35  ;;  %8268 = vrot.lane.b32.xlu1 %v8247_v54, %s13146_s28  ;;  %v7759_v54 = vcombine.low %v2282_v40, %v2286_v21  ;;  %v2330_v40 = vld [vmem:[%s13129_s8 + $0x258] sm:$0xff]  ;;  %s9075_s28 = smov 63  }
 0x4b8   : > { %v2334_v21 = vld [vmem:[%s13129_s8 + $0x278] sm:$0xff] }
 0x4ba   : > { %3048 = vmatpush1.bf16.msra.mxu0 %v7825_v3  ;;  %4354 = vrot.lane.b32.xlu0 %v10216_v57, %s9070_s26 }
 0x4bb   : > { %3049 = vmatprep.subr.bf16.mxu0 %v7834_v33  ;;  %4356 = vrot.lane.b32.xlu1 %v10211_v61, %s9070_s26 }
 0x4be   : > { %3050 = vmatpush1.bf16.msra.mxu0 %v7833_v51  ;;  %8273 = vrot.lane.b32.xlu0 %v8272_v31, %s13144_s20  ;;  %v7765_v31 = vcombine.low %v2289_v32, %v2293_v4  ;;  %v2337_v32 = vld [vmem:[%s13129_s8 + $0x290] sm:$0xff] }
 0x4bf   : > { %3051 = vmatprep.subr.bf16.mxu0 %v7842_v7  ;;  %v2341_v4 = vld [vmem:[%s13129_s8 + $0x2b0] sm:$0xff] }
 0x4c2   : > { %3052 = vmatpush1.bf16.msra.mxu0 %v7841_v27 }
 0x4c3   : > { %3053 = vmatprep.subr.bf16.mxu0 %v7850_v19 }
 0x4c6   : > { %3054 = vmatpush1.bf16.msra.mxu0 %v7849_v59  ;;  %v7742_v59 = vcombine.high %v2265_v37, %v2269_v15 }
 0x4c7   : > { %3109 = vmatprep.subr.bf16.mxu0 %v7734_v0  ;;  %v2274_v0 = vld [vmem:[%s13129_s8 + $0x98] sm:$0xff] }
 0x4c8   : > { %v7752_v39 = vcombine.high %v2274_v0, %v2278_v63  ;;  %v7751_v11 = vcombine.low %v2274_v0, %v2278_v63  ;;  %v2322_v0 = vld [vmem:[%s13129_s8 + $0x218] sm:$0xff] }
 0x4c9   : > { %v2326_v63 = vld [vmem:[%s13129_s8 + $0x238] sm:$0xff] }
 0x55c   : > { %v2240_v35 = vpop.f32.mrb[8].mxu0 }
 0x55d   : > { %v2241_v45 = vadd.f32 %v2240_v35, %v2186_v23  ;;  %v2242_v1 = vpop.f32.mrb[9].mxu0  ;;  %v7767_v35 = vcombine.low %v2290_v50, %v2294_v26  ;;  %v2338_v50 = vld [vmem:[%s13129_s8 + $0x298] sm:$0xff] }
 0x55e   : > { %v2243_v3 = vadd.f32 %v2242_v1, %v2186_v23  ;;  %v2244_v33 = vpop.f32.mrb[10].mxu0  ;;  %v7743_v23 = vcombine.low %v2266_v17, %v2270_v55  ;;  %v7776_v1 = vcombine.high %v2298_v28, %v2302_v62  ;;  %v2318_v17 = vld [vmem:[%s13129_s8 + $0x1f8] sm:$0xff] }
 0x55f   : > { %v2245_v51 = vadd.f32 %v2244_v33, %v2191_v10  ;;  %v2246_v38 = vpop.f32.mrb[11].mxu0  ;;  %v2249_v6 = vmax.f32 %v2241_v45, 0.0  ;;  %v7774_v45 = vcombine.high %v2297_v42, %v2301_v60  ;;  %v2309_v33 = vld [vmem:[%s13129_s8 + $0x1b0] sm:$0xff]  ;;  %v2342_v26 = vld [vmem:[%s13129_s8 + $0x2b8] sm:$0xff] }
 0x560   : > { %v2247_v5 = vadd.f32 %v2246_v38, %v2191_v10  ;;  %v2250_v12 = vmax.f32 %v2243_v3, 0.0  ;;  %v7741_v10 = vcombine.low %v2265_v37, %v2269_v15  ;;  %v2305_v3 = vld [vmem:[%s13129_s8 + $0x190] sm:$0xff]  ;;  %v2310_v38 = vld [vmem:[%s13129_s8 + $0x1b8] sm:$0xff] }
 0x561   : > { %v2251_v7 = vmax.f32 %v2245_v51, 0.0  ;;  %v2306_v51 = vld [vmem:[%s13129_s8 + $0x198] sm:$0xff]  ;;  %v2317_v37 = vld [vmem:[%s13129_s8 + $0x1f0] sm:$0xff]  ;;  %v7781_v55 = vcombine.low %v2305_v3, %v2309_v33 }
 0x562   : > { %v2252_v27 = vmax.f32 %v2247_v5, 0.0  ;;  %v7773_v5 = vcombine.low %v2297_v42, %v2301_v60  ;;  %v2314_v15 = vld [vmem:[%s13129_s8 + $0x1d8] sm:$0xff]  ;;  %v2345_v42 = vld [vmem:[%s13129_s8 + $0x2d0] sm:$0xff] }
 0x563   : > { %v10228_v14 = vpack.c.bf16 %v2251_v7, %v2249_v6  ;;  %v7775_v6 = vcombine.low %v2298_v28, %v2302_v62  ;;  %v7782_v7 = vcombine.high %v2305_v3, %v2309_v33  ;;  %v2349_v60 = vld [vmem:[%s13129_s8 + $0x2f0] sm:$0xff]  ;;  %v2346_v28 = vld [vmem:[%s13129_s8 + $0x2d8] sm:$0xff] }
 0x564   : > { %v2254_v19 = vpack.c.bf16 %v2252_v27, %v2250_v12  ;;  %v7784_v12 = vcombine.high %v2306_v51, %v2310_v38  ;;  %v2313_v27 = vld [vmem:[%s13129_s8 + $0x1d0] sm:$0xff]  ;;  %v2350_v62 = vld [vmem:[%s13129_s8 + $0x2f8] sm:$0xff] }
 0x565   : > { %v2353_v3 = vld [vmem:[%s13129_s8 + $0x310] sm:$0xff] }
 0x566   : > { %3055 = vmatprep.mubr.bf16.mxu0 %v2254_v19  ;;  %3098 = vmatprep.mubr.bf16.mxu1 %v2254_v19  ;;  %v2357_v33 = vld [vmem:[%s13129_s8 + $0x330] sm:$0xff] }
 0x567   : > { %3056 = vmatmul.mubr.bf16.vlgmr.msra.gmra.mrb[12].mxu0 %v10228_v14  ;;  %3099 = vmatmul.mubr.bf16.vlgmr.msra.gmra.mrb[4].mxu1 %v10228_v14 }
 0x568   : > { %3110 = vmatpush1.bf16.msra.mxu0 %v7733_v41  ;;  %3153 = vmatpush1.bf16.msra.mxu1 %v7735_v22  ;;  %v7749_v41 = vcombine.low %v2273_v25, %v2277_v16  ;;  %v7758_v22 = vcombine.high %v2281_v43, %v2285_v20  ;;  %v7790_v25 = vcombine.high %v2313_v27, %v2317_v37  ;;  %v2325_v16 = vld [vmem:[%s13129_s8 + $0x230] sm:$0xff] }
 0x569   : > { %3141 = vmatprep.mubr.bf16.mxu0 %v2254_v19  ;;  %3184 = vmatprep.mubr.bf16.mxu1 %v2254_v19  ;;  %v7783_v19 = vcombine.low %v2306_v51, %v2310_v38  ;;  %v2329_v43 = vld [vmem:[%s13129_s8 + $0x250] sm:$0xff]  ;;  %v2354_v51 = vld [vmem:[%s13129_s8 + $0x318] sm:$0xff] }
 0x56a   : > { %3111 = vmatprep.subr.bf16.mxu0 %v7742_v59  ;;  %3154 = vmatprep.subr.bf16.mxu1 %v7744_v8  ;;  %v7792_v59 = vcombine.high %v2314_v15, %v2318_v17  ;;  %v2321_v8 = vld [vmem:[%s13129_s8 + $0x210] sm:$0xff]  ;;  %v2358_v38 = vld [vmem:[%s13129_s8 + $0x338] sm:$0xff] }
 0x56b   : > { %v2333_v20 = vld [vmem:[%s13129_s8 + $0x270] sm:$0xff] }
 0x56c   : > { %3112 = vmatpush1.bf16.msra.mxu0 %v7741_v10  ;;  %3155 = vmatpush1.bf16.msra.mxu1 %v7743_v23  ;;  %v7789_v10 = vcombine.low %v2313_v27, %v2317_v37  ;;  %v7791_v23 = vcombine.low %v2314_v15, %v2318_v17  ;;  %v2361_v27 = vld [vmem:[%s13129_s8 + $0x350] sm:$0xff]  ;;  %v2362_v15 = vld [vmem:[%s13129_s8 + $0x358] sm:$0xff] }
 0x56d   : > { %3113 = vmatprep.subr.bf16.mxu0 %v7750_v13  ;;  %3156 = vmatprep.subr.bf16.mxu1 %v7752_v39  ;;  %v7798_v13 = vcombine.high %v2321_v8, %v2325_v16  ;;  %v7800_v39 = vcombine.high %v2322_v0, %v2326_v63  ;;  %v2365_v37 = vld [vmem:[%s13129_s8 + $0x370] sm:$0xff]  ;;  %v2366_v17 = vld [vmem:[%s13129_s8 + $0x378] sm:$0xff] }
 0x570   : > { %3114 = vmatpush1.bf16.msra.mxu0 %v7749_v41  ;;  %3157 = vmatpush1.bf16.msra.mxu1 %v7751_v11  ;;  %v7797_v41 = vcombine.low %v2321_v8, %v2325_v16  ;;  %v7799_v11 = vcombine.low %v2322_v0, %v2326_v63  ;;  %v2369_v8 = vld [vmem:[%s13129_s8 + $0x390] sm:$0xff]  ;;  %v2370_v0 = vld [vmem:[%s13129_s8 + $0x398] sm:$0xff] }
 0x571   : > { %3115 = vmatprep.subr.bf16.mxu0 %v7758_v22  ;;  %3158 = vmatprep.subr.bf16.mxu1 %v7760_v47  ;;  %v7806_v22 = vcombine.high %v2329_v43, %v2333_v20  ;;  %v7808_v47 = vcombine.high %v2330_v40, %v2334_v21  ;;  %v2373_v16 = vld [vmem:[%s13129_s8 + $0x3b0] sm:$0xff]  ;;  %v2374_v63 = vld [vmem:[%s13129_s8 + $0x3b8] sm:$0xff] }
 0x574   : > { %3116 = vmatpush1.bf16.msra.mxu0 %v7757_v53  ;;  %3159 = vmatpush1.bf16.msra.mxu1 %v7759_v54  ;;  %v7805_v53 = vcombine.low %v2329_v43, %v2333_v20  ;;  %v7807_v54 = vcombine.low %v2330_v40, %v2334_v21  ;;  %v2377_v43 = vld [vmem:[%s13129_s8 + $0x3d0] sm:$0xff]  ;;  %v3401_v40 = vand.u32 31, %v9238_v30  ;;  %v2378_v21 = vld [vmem:[%s13129_s8 + $0x3d8] sm:$0xff]  ;;  %v13320_v30 = vmov 0 }
 0x575   : > { %3117 = vmatprep.subr.bf16.mxu0 %v7766_v34  ;;  %3160 = vmatprep.subr.bf16.mxu1 %v7768_v58  ;;  %v7814_v34 = vcombine.high %v2337_v32, %v2341_v4  ;;  %v7816_v58 = vcombine.high %v2338_v50, %v2342_v26  ;;  %v2381_v20 = vld [vmem:[%s13129_s8 + $0x3f0] sm:$0xff] }
 0x576   : > { %vm10418_vm13 = vcmp.ne.s32.totalorder %v3401_v40, 31  ;;  %vm10457_vm14 = vcmp.ne.s32.totalorder %v3401_v40, 0 }
 0x577   : > { %v13321_v30 = vsel %vm10418_vm13, 4294967295, %v13320_v30 }
 0x578   : > { %3118 = vmatpush1.bf16.msra.mxu0 %v7765_v31  ;;  %3161 = vmatpush1.bf16.msra.mxu1 %v7767_v35  ;;  %v7813_v31 = vcombine.low %v2337_v32, %v2341_v4  ;;  %v7815_v35 = vcombine.low %v2338_v50, %v2342_v26  ;;  %v10416_v50 = vpop.permute.xlu0 %8248  ;;  %v7854_v26 = vcombine.high %v2377_v43, %v2381_v20 }
 0x579   : > { %3119 = vmatprep.subr.bf16.mxu0 %v7774_v45  ;;  %3162 = vmatprep.subr.bf16.mxu1 %v7776_v1  ;;  %v7822_v45 = vcombine.high %v2345_v42, %v2349_v60  ;;  %v7824_v1 = vcombine.high %v2346_v28, %v2350_v62  ;;  %13319 = vst [vmem:[#allocation6_spill] sm:$0xff] %v10416_v50  ;;  %13322 = vst [vmem:[#allocation7_spill] sm:$0xff] %v13321_v30 }
 0x57c   : > { %3120 = vmatpush1.bf16.msra.mxu0 %v7773_v5  ;;  %3163 = vmatpush1.bf16.msra.mxu1 %v7775_v6  ;;  %v7821_v5 = vcombine.low %v2345_v42, %v2349_v60  ;;  %v7823_v6 = vcombine.low %v2346_v28, %v2350_v62  ;;  %v7853_v62 = vcombine.low %v2377_v43, %v2381_v20  ;;  %v10503_v43 = vadd.s32 768, %v9235_v29 }
 0x57d   : > { %3121 = vmatprep.subr.bf16.mxu0 %v7782_v7  ;;  %3164 = vmatprep.subr.bf16.mxu1 %v7784_v12  ;;  %v7830_v7 = vcombine.high %v2353_v3, %v2357_v33  ;;  %v7832_v12 = vcombine.high %v2354_v51, %v2358_v38 }
 0x57e   : > { %13340 = vst [vmem:[#allocation17_spill] sm:$0xff] %v10503_v43  ;;  %v13159_v40 = vand.u32 31, %v10503_v43 }
 0x580   : > { %3122 = vmatpush1.bf16.msra.mxu0 %v7781_v55  ;;  %3165 = vmatpush1.bf16.msra.mxu1 %v7783_v19  ;;  %v7829_v55 = vcombine.low %v2353_v3, %v2357_v33  ;;  %v7831_v19 = vcombine.low %v2354_v51, %v2358_v38  ;;  %v10452_v3 = vadd.s32 384, %v9235_v29  ;;  %v10455_v33 = vadd.s32 512, %v9235_v29 }
 0x581   : > { %3123 = vmatprep.subr.bf16.mxu0 %v7790_v25  ;;  %3166 = vmatprep.subr.bf16.mxu1 %v7792_v59  ;;  %v7838_v25 = vcombine.high %v2361_v27, %v2365_v37  ;;  %v7840_v59 = vcombine.high %v2362_v15, %v2366_v17  ;;  %v13327_v51 = vmov 0  ;;  %vm10515_vm8 = vcmp.ne.s32.totalorder %v13159_v40, 0 }
 0x582   : > { %13325 = vst [vmem:[#allocation10_spill] sm:$0xff] %v10452_v3  ;;  %13326 = vst [vmem:[#allocation11_spill] sm:$0xff] %v10455_v33  ;;  %v13328_v51 = vsel %vm10457_vm14, 4294967295, %v13327_v51 }
 0x583   : > { %13329 = vst [vmem:[#allocation12_spill] sm:$0xff] %v13328_v51 }
 0x584   : > { %3124 = vmatpush1.bf16.msra.mxu0 %v7789_v10  ;;  %3167 = vmatpush1.bf16.msra.mxu1 %v7791_v23  ;;  %v7837_v10 = vcombine.low %v2361_v27, %v2365_v37  ;;  %v7839_v23 = vcombine.low %v2362_v15, %v2366_v17  ;;  %v13330_v15 = vmov 0  ;;  %v13333_v17 = vmov 0 }
 0x585   : > { %3125 = vmatprep.subr.bf16.mxu0 %v7798_v13  ;;  %3168 = vmatprep.subr.bf16.mxu1 %v7800_v39  ;;  %v7846_v13 = vcombine.high %v2369_v8, %v2373_v16  ;;  %v7848_v39 = vcombine.high %v2370_v0, %v2374_v63 }
 0x588   : > { %3126 = vmatpush1.bf16.msra.mxu0 %v7797_v41  ;;  %3169 = vmatpush1.bf16.msra.mxu1 %v7799_v11  ;;  %v2382_v41 = vld [vmem:[%s13129_s8 + $0x3f8] sm:$0xff]  ;;  %v8244_v11 = vpop.permute.xlu1 %8243 }
 0x589   : > { %3127 = vmatprep.subr.bf16.mxu0 %v7806_v22  ;;  %3170 = vmatprep.subr.bf16.mxu1 %v7808_v47  ;;  %v7845_v22 = vcombine.low %v2369_v8, %v2373_v16  ;;  %v7847_v47 = vcombine.low %v2370_v0, %v2374_v63  ;;  %v8246_v32 = vunpack.i.h.bf16 %v8244_v11  ;;  %v8245_v4 = vunpack.i.l.bf16 %v8244_v11 }
 0x58b   : > { %v10430_v42 = vsel %vm13164_vm3, %v8245_v4, %v8246_v32 }
 0x58c   : > { %3128 = vmatpush1.bf16.msra.mxu0 %v7805_v53  ;;  %3171 = vmatpush1.bf16.msra.mxu1 %v7807_v54  ;;  %v13173_v53 = vunpack.i.h.bf16 %v10416_v50  ;;  %v8250_v54 = vunpack.i.l.bf16 %v10416_v50  ;;  %3380 = vst [vmem:[#allocation2 + $0xb8] sm:$0xff] %v10430_v42 }
 0x58d   : > { %3129 = vmatprep.subr.bf16.mxu0 %v7814_v34  ;;  %3172 = vmatprep.subr.bf16.mxu1 %v7816_v58  ;;  %v7856_v34 = vcombine.high %v2378_v21, %v2382_v41  ;;  %v10427_v58 = vsel %vm13164_vm3, %v8241_v18, %v8245_v4  ;;  %v10443_v18 = vpop.permute.xlu0 %8253 }
 0x58e   : > { %3379 = vst [vmem:[#allocation2 + $0xb0] sm:$0xff] %v10427_v58  ;;  %v3914_v60 = vsel %vm13153_vm11, %v8250_v54, %v13173_v53  ;;  %v4309_v28 = vpack.c.bf16 %v10427_v58, %v10427_v58  ;;  %13323 = vst [vmem:[#allocation8_spill] sm:$0xff] %v10443_v18  ;;  %vm10529_vm11 = vcmp.ne.s32.totalorder %v3394_v49, 31 }
 0x58f   : > { %v3962_v24 = vsel %vm10418_vm13, %v3914_v60, 0.0 }
 0x590   : > { %3130 = vmatpush1.bf16.msra.mxu0 %v7813_v31  ;;  %3173 = vmatpush1.bf16.msra.mxu1 %v7815_v35  ;;  %v7855_v31 = vcombine.low %v2378_v21, %v2382_v41  ;;  %v3978_v35 = vpack.c.bf16 %v3962_v24, %v3962_v24  ;;  %v13341_v21 = vmov 0  ;;  %v13344_v41 = vmov 0 }
 0x591   : > { %3131 = vmatprep.subr.bf16.mxu0 %v7822_v45  ;;  %3174 = vmatprep.subr.bf16.mxu1 %v7824_v1  ;;  %v10446_v45 = vpop.permute.xlu0 %8258  ;;  %v10449_v1 = vadd.s32 256, %v9235_v29  ;;  %v13345_v41 = vsel %vm10515_vm8, 4294967295, %v13344_v41 }
 0x592   : > { %3994 = vst [vmem:[#allocation3 + $0x108] sm:$0xf] %v3978_v35  ;;  %4358 = vrot.lane.b32.xlu0 %v4309_v28, %s9070_s26  ;;  %13324 = vst [vmem:[#allocation9_spill] sm:$0xff] %v10446_v45  ;;  %v13348_v35 = vmov 0 }
 0x593   : > { %v13175_v38 = vand.u32 31, %v10449_v1  ;;  %13346 = vst [vmem:[#allocation19_spill] sm:$0xff] %v13345_v41  ;;  %v3523_v11 = vld [vmem:[#allocation2 + $0xb8] sm:$0xff]  ;;  %v13349_v35 = vsel %vm10529_vm11, 4294967295, %v13348_v35 }
 0x594   : > { %3132 = vmatpush1.bf16.msra.mxu0 %v7821_v5  ;;  %3175 = vmatpush1.bf16.msra.mxu1 %v7823_v6  ;;  %v13174_v5 = vand.u32 31, %v10452_v3  ;;  %v13169_v6 = vand.u32 31, %v10455_v33  ;;  %13350 = vst [vmem:[#allocation21_spill] sm:$0xff] %v13349_v35 }
 0x595   : > { %3133 = vmatprep.subr.bf16.mxu0 %v7830_v7  ;;  %3176 = vmatprep.subr.bf16.mxu1 %v7832_v12  ;;  %v3559_v7 = vsel %vm10457_vm14, %v10169_v48, 0.0  ;;  %v8264_v12 = vpop.permute.xlu0 %8263  ;;  %vm10471_vm15 = vcmp.ne.s32.totalorder %v13175_v38, 0  ;;  %v3522_v8 = vld [vmem:[#allocation2 + $0xb0] sm:$0xff] }
 0x596   : > { %v8266_v27 = vunpack.i.h.bf16 %v8264_v12  ;;  %v8265_v37 = vunpack.i.l.bf16 %v8264_v12  ;;  %v13331_v15 = vsel %vm10471_vm15, 4294967295, %v13330_v15  ;;  %vm10477_vm1 = vcmp.ne.s32.totalorder %v13174_v5, 0 }
 0x597   : > { %13332 = vst [vmem:[#allocation13_spill] sm:$0xff] %v13331_v15  ;;  %v13334_v17 = vsel %vm10477_vm1, 4294967295, %v13333_v17  ;;  %vm10488_vm5 = vcmp.ne.s32.totalorder %v13169_v6, 0 }
 0x598   : > { %3134 = vmatpush1.bf16.msra.mxu0 %v7829_v55  ;;  %3177 = vmatpush1.bf16.msra.mxu1 %v7831_v19  ;;  %13335 = vst [vmem:[#allocation14_spill] sm:$0xff] %v13334_v17  ;;  %3383 = vst.msk [vmem:[#allocation2 + $0xd0] sm:$0xff] %vm13164_vm3, %v8266_v27  ;;  %v10483_v48 = vsel %vm13164_vm3, %v8246_v32, %v8265_v37  ;;  %v13336_v55 = vmov 0  ;;  %v3575_v19 = vpack.c.bf16 %v3559_v7, %v3559_v7  ;;  %v3562_v63 = vsel %vm10488_vm5, %v3522_v8, 0.0 }
 0x599   : > { %3135 = vmatprep.subr.bf16.mxu0 %v7838_v25  ;;  %3178 = vmatprep.subr.bf16.mxu1 %v7840_v59  ;;  %v13337_v55 = vsel %vm10488_vm5, 4294967295, %v13336_v55  ;;  %3381 = vst [vmem:[#allocation2 + $0xc0] sm:$0xff] %v10483_v48  ;;  %v3521_v25 = vld [vmem:[#allocation2 + $0xa8] sm:$0xff]  ;;  %v3520_v59 = vld [vmem:[#allocation2 + $0xa0] sm:$0xff]  ;;  %v4355_v28 = vpop.permute.xlu0 %4354 }
 0x59a   : > { %13338 = vst [vmem:[#allocation15_spill] sm:$0xff] %v13337_v55  ;;  %3591 = vst [vmem:[#allocation3 + $0x48] sm:$0xf] %v3575_v19  ;;  %v3561_v16 = vsel %vm10477_vm1, %v3521_v25, 0.0  ;;  %v3560_v0 = vsel %vm10471_vm15, %v3520_v59, 0.0 }
 0x59c   : > { %3136 = vmatpush1.bf16.msra.mxu0 %v7837_v10  ;;  %3179 = vmatpush1.bf16.msra.mxu1 %v7839_v23  ;;  %v3577_v10 = vpack.c.bf16 %v3561_v16, %v3561_v16  ;;  %v3576_v23 = vpack.c.bf16 %v3560_v0, %v3560_v0 }
 0x59d   : > { %3137 = vmatprep.subr.bf16.mxu0 %v7846_v13  ;;  %3180 = vmatprep.subr.bf16.mxu1 %v7848_v39  ;;  %v3578_v13 = vpack.c.bf16 %v3562_v63, %v3562_v63  ;;  %v10500_v39 = vadd.s32 640, %v9235_v29  ;;  %v10533_v7 = vpop.permute.xlu0 %8273 }
 0x59e   : > { %3593 = vst [vmem:[#allocation3 + $0x58] sm:$0xf] %v3577_v10  ;;  %3592 = vst [vmem:[#allocation3 + $0x50] sm:$0xf] %v3576_v23 }
 0x59f   : > { %3594 = vst [vmem:[#allocation3 + $0x60] sm:$0xf] %v3578_v13  ;;  %13339 = vst [vmem:[#allocation16_spill] sm:$0xff] %v10500_v39  ;;  %v13170_v20 = vand.u32 31, %v10500_v39  ;;  %v10557_v13 = vadd.s32 896, %v9235_v29 }
 0x5a0   : > { %3138 = vmatpush1.bf16.msra.mxu0 %v7845_v22  ;;  %3181 = vmatpush1.bf16.msra.mxu1 %v7847_v47  ;;  %v3524_v22 = vld [vmem:[#allocation2 + $0xc0] sm:$0xff] }
 0x5a1   : > { %3139 = vmatprep.subr.bf16.mxu0 %v7854_v26  ;;  %3182 = vmatprep.subr.bf16.mxu1 %v7856_v34  ;;  %vm10509_vm2 = vcmp.ne.s32.totalorder %v13170_v20, 0  ;;  %v3564_v32 = vsel %vm10515_vm8, %v3524_v22, 0.0  ;;  %v4353_v34 = vpop.permute.xlu1 %4352  ;;  %13352 = vst [vmem:[#allocation23_spill] sm:$0xff] %v10557_v13  ;;  %v13353_v22 = vmov 0 }
 0x5a2   : > { %v13342_v21 = vsel %vm10509_vm2, 4294967295, %v13341_v21  ;;  %v3563_v47 = vsel %vm10509_vm2, %v3523_v11, 0.0  ;;  %v3580_v26 = vpack.c.bf16 %v3564_v32, %v3564_v32  ;;  %v13158_v11 = vand.u32 31, %v10557_v13 }
 0x5a3   : > { %13343 = vst [vmem:[#allocation18_spill] sm:$0xff] %v13342_v21  ;;  %v3579_v4 = vpack.c.bf16 %v3563_v47, %v3563_v47 }
 0x5a4   : > { %3140 = vmatpush1.bf16.msra.mxu0 %v7853_v62  ;;  %3183 = vmatpush1.bf16.msra.mxu1 %v7855_v31  ;;  %3596 = vst [vmem:[#allocation3 + $0x70] sm:$0xf] %v3580_v26  ;;  %v4377_v62 = vsel %vm13161_vm10, %v4353_v34, %v4355_v28 }
 0x5a5   : > { %3595 = vst [vmem:[#allocation3 + $0x68] sm:$0xf] %v3579_v4  ;;  %v4351_v60 = vpop.permute.xlu1 %4350  ;;  %4409 = vst [vmem:[#allocation3 + $0x1c8] sm:$0xf] %v4377_v62 }
 0x5a6   : > { %v4376_v24 = vsel %vm13161_vm10, %v4351_v60, %v4353_v34 }
 0x5a7   : > { %3142 = vmatmul.mubr.bf16.vlgmr.msra.gmra.mrb[16].mxu0 %v10228_v14  ;;  %3185 = vmatmul.mubr.bf16.vlgmr.msra.gmra.mrb[8].mxu1 %v10228_v14  ;;  %v3365_v14 = vsel %vm13164_vm3, %v8265_v37, %v8266_v27  ;;  %4408 = vst [vmem:[#allocation3 + $0x1c0] sm:$0xf] %v4376_v24  ;;  %v13176_v37 = vunpack.i.h.bf16 %v10533_v7 }
 0x5a8   : > { %3382 = vst [vmem:[#allocation2 + $0xc8] sm:$0xff] %v3365_v14  ;;  %v8275_v14 = vunpack.i.l.bf16 %v10533_v7 }
 0x5a9   : > { %v10525_v31 = vpop.permute.xlu1 %8268 }
 0x5aa   : > { %13347 = vst [vmem:[#allocation20_spill] sm:$0xff] %v10525_v31  ;;  %v13168_v12 = vunpack.i.h.bf16 %v10525_v31  ;;  %v13178_v27 = vunpack.i.l.bf16 %v10525_v31  ;;  %v5196_v19 = vsel %vm13155_vm12, %v8275_v14, %v13176_v37  ;;  %vm10562_vm12 = vcmp.ne.s32.totalorder %v13158_v11, 0 }
 0x5ab   : > { %v5244_v59 = vsel %vm10529_vm11, %v5196_v19, 0.0  ;;  %v13354_v22 = vsel %vm10562_vm12, 4294967295, %v13353_v22 }
 0x5ac   : > { %v4809_v49 = vsel %vm13226_vm0, %v13178_v27, %v13168_v12  ;;  %v5260_v0 = vpack.c.bf16 %v5244_v59, %v5244_v59  ;;  %13355 = vst [vmem:[#allocation24_spill] sm:$0xff] %v13354_v22 }
 0x5ad   : > { %v4857_v25 = vsel %vm10457_vm14, %v4809_v49, 0.0  ;;  %v4357_v8 = vpop.permute.xlu1 %4356 }
 0x5ae   : > { %v4873_v16 = vpack.c.bf16 %v4857_v25, %v4857_v25  ;;  %v4378_v63 = vsel %vm13161_vm10, %v4355_v28, %v4357_v8  ;;  %5276 = vst [vmem:[#allocation3 + $0x340] sm:$0xf] %v5260_v0 }
 0x5af   : > { %4410 = vst [vmem:[#allocation3 + $0x1d0] sm:$0xf] %v4378_v63  ;;  %v3525_v47 = vld [vmem:[#allocation2 + $0xc8] sm:$0xff] }
 0x5b0   : > { %4889 = vst [vmem:[#allocation3 + $0x288] sm:$0xf] %v4873_v16  ;;  %v3565_v32 = vsel %vm10562_vm12, %v3525_v47, 0.0  ;;  %v10931_v43 = vld [vmem:[#allocation2 + $0xc8] sm:$0xff] }
 0x5b1   : > { %v3581_v4 = vpack.c.bf16 %v3565_v32, %v3565_v32 }
 0x5b3   : > { %3597 = vst [vmem:[#allocation3 + $0x78] sm:$0xf] %v3581_v4 }
 0x604   : > { %v10552_v10 = vpop.permute.xlu0 %4358 }
 0x605   : > { %13351 = vst [vmem:[#allocation22_spill] sm:$0xff] %v10552_v10  ;;  %v4379_v23 = vsel %vm13161_vm10, %v4357_v8, %v10552_v10  ;;  %vm13162_vm10 = vmpackc.low %vm10178_vm7, %vm10178_vm7 }
 0x606   : > { %4411 = vst [vmem:[#allocation3 + $0x1d8] sm:$0xf] %v4379_v23 }
 0x63a   : > { %v3057_v26 = vpop.f32.mrb[12].mxu0  ;;  %v3100_v34 = vpop.f32.mrb[4].mxu1 }
 0x63b   : > { %v3102_v60 = vpop.f32.mrb[5].mxu1  ;;  %3243 = vrot.lane.b32.xlu1 %v3057_v26, %s13356_s22  ;;  %v3059_v29 = vpop.f32.mrb[13].mxu0 }
 0x63c   : > { %v3104_v28 = vpop.f32.mrb[6].mxu1  ;;  %3245 = vrot.lane.b32.xlu0 %v3059_v29, %s13356_s22  ;;  %v3061_v24 = vpop.f32.mrb[14].mxu0 }
 0x63d   : > { %v3063_v62 = vpop.f32.mrb[15].mxu0  ;;  %v3106_v14 = vpop.f32.mrb[7].mxu1 }
 0x63f   : > { %3247 = vrot.lane.b32.xlu1 %v3100_v34, %s13356_s22 }
 0x640   : > { %3259 = vrot.lane.b32.xlu0 %v3061_v24, %s13356_s22 }
 0x643   : > { %3249 = vrot.lane.b32.xlu1 %v3102_v60, %s13356_s22 }
 0x644   : > { %3263 = vrot.lane.b32.xlu0 %v3104_v28, %s13356_s22 }
 0x647   : > { %3261 = vrot.lane.b32.xlu1 %v3063_v62, %s13356_s22 }
 0x64b   : > { %3265 = vrot.lane.b32.xlu1 %v3106_v14, %s13356_s22 }
 0x67a   : > { %v3143_v49 = vpop.f32.mrb[16].mxu0  ;;  %v3186_v19 = vpop.f32.mrb[8].mxu1 }
 0x67b   : > { %v3188_v25 = vpop.f32.mrb[9].mxu1  ;;  %3251 = vrot.lane.b32.xlu0 %v3143_v49, %s13356_s22  ;;  %v3145_v59 = vpop.f32.mrb[17].mxu0 }
 0x67c   : > { %v3190_v8 = vpop.f32.mrb[10].mxu1  ;;  %3253 = vrot.lane.b32.xlu1 %v3145_v59, %s13356_s22  ;;  %v3147_v16 = vpop.f32.mrb[18].mxu0 }
 0x67d   : > { %v3149_v0 = vpop.f32.mrb[19].mxu0  ;;  %v3192_v63 = vpop.f32.mrb[11].mxu1 }
 0x67f   : > { %3255 = vrot.lane.b32.xlu0 %v3186_v19, %s13356_s22 }
 0x680   : > { %3269 = vrot.lane.b32.xlu1 %v3149_v0, %s13356_s22 }
 0x683   : > { %3257 = vrot.lane.b32.xlu0 %v3188_v25, %s13356_s22 }
 0x684   : > { %3273 = vrot.lane.b32.xlu1 %v3192_v63, %s13356_s22 }
 0x687   : > { %3267 = vrot.lane.b32.xlu0 %v3147_v16, %s13356_s22 }
 0x68b   : > { %3271 = vrot.lane.b32.xlu0 %v3190_v8, %s13356_s22 }
 0x6ad   : > { %v3244_v23 = vpop.permute.xlu1 %3243 }
 0x6ae   : > { %3309 = vst.msk [vmem:[#allocation2] sm:$0xff] %vm13160_vm6, %v3244_v23  ;;  %v3246_v47 = vpop.permute.xlu0 %3245 }
 0x6af   : > { %v3276_v4 = vsel %vm13164_vm3, %v3244_v23, %v3246_v47 }
 0x6b0   : > { %v3543_v49 = vsel %vm10457_vm14, %v3276_v4, 0.0 }
 0x6b1   : > { %v3248_v32 = vpop.permute.xlu1 %3247 }
 0x6b2   : > { %v10587_v26 = vsel %vm13164_vm3, %v3246_v47, %v3248_v32  ;;  %v3260_v34 = vpop.permute.xlu0 %3259 }
 0x6b3   : > { %3318 = vst.msk [vmem:[#allocation2 + $0x48] sm:$0xff] %vm13160_vm6, %v3260_v34  ;;  %v8277_v60 = vpack.i.bf16 %v10587_v26, %v3276_v4  ;;  %v3544_v23 = vsel %vm10471_vm15, %v10587_v26, 0.0  ;;  %vm13163_vm6 = vmpackc.low %vm10457_vm14, %vm10457_vm14 }
 0x6b5   : > { %v3502_v29 = vld [vmem:[#allocation2] sm:$0xff]  ;;  %v10591_v28 = vpop.permute.xlu1 %3249  ;;  %8278 = vrot.lane.b32.xlu0 %v8277_v60, %s13357_s24  ;;  %8288 = vrot.lane.b32.xlu1 %v8277_v60, %s13317_s21 }
 0x6b6   : > { %5610 = vst [vmem:[#allocation2] sm:$0xff] %v9835_v46  ;;  %v3264_v24 = vpop.permute.xlu0 %3263  ;;  %v3542_v14 = vsel %vm10178_vm7, %v3502_v29, 0.0 }
 0x6b9   : > { %v3262_v62 = vpop.permute.xlu1 %3261 }
 0x6ba   : > { %v3510_v19 = vld [vmem:[#allocation2 + $0x48] sm:$0xff]  ;;  %v3283_v25 = vsel %vm13164_vm3, %v3260_v34, %v3262_v62  ;;  %v3284_v59 = vsel %vm13164_vm3, %v3262_v62, %v3264_v24  ;;  %v3278_v34 = vsel %vm13164_vm3, %v3248_v32, %v10591_v28 }
 0x6bb   : > { %v3550_v8 = vsel %vm10178_vm7, %v3510_v19, 0.0  ;;  %3320 = vst [vmem:[#allocation2 + $0x58] sm:$0xff] %v3284_v59  ;;  %v3551_v16 = vsel %vm10457_vm14, %v3283_v25, 0.0  ;;  %v3552_v0 = vsel %vm10471_vm15, %v3284_v59, 0.0  ;;  %v8282_v63 = vpack.i.bf16 %v3510_v19, %v3502_v29 }
 0x6bc   : > { %v3566_v47 = vpack.c.bf16 %v3550_v8, %v3542_v14  ;;  %v3567_v62 = vpack.c.bf16 %v3551_v16, %v3543_v49  ;;  %v3568_v11 = vpack.c.bf16 %v3552_v0, %v3544_v23  ;;  %v8973_v14 = vpack.c.bf16 %v3283_v25, %v3276_v4 }
 0x6bd   : > { %v10613_v2 = vpop.permute.xlu1 %3265  ;;  %8283 = vrot.lane.b32.xlu0 %v8282_v63, %s13357_s24  ;;  %8293 = vrot.lane.b32.xlu1 %v8282_v63, %s13317_s21  ;;  %v8297_v49 = vpack.i.bf16 %v3278_v34, %v10188_v44  ;;  %v3545_v4 = vsel %vm10477_vm1, %v3278_v34, 0.0 }
 0x6be   : > { %3582 = vst [vmem:[#allocation3] sm:$0xff] %v3566_v47  ;;  %3583 = vst [vmem:[#allocation3 + $0x8] sm:$0xff] %v3567_v62  ;;  %v10619_v40 = vsel %vm13164_vm3, %v3264_v24, %v10613_v2  ;;  %8974 = vmatprep.subr.msk.bf16.mxu0 %vm13163_vm6, %v8973_v14  ;;  %v8976_v24 = vpack.c.bf16 %v3510_v19, %v3502_v29  ;;  %v8347_v29 = vpack.i.bf16 %v3278_v34, %v10166_v9 }
 0x6bf   : > { %v3553_v32 = vsel %vm10477_vm1, %v10619_v40, 0.0  ;;  %3584 = vst [vmem:[#allocation3 + $0x10] sm:$0xff] %v3568_v11  ;;  %v8357_v11 = vpack.i.bf16 %v3284_v59, %v3283_v25  ;;  %v4968_v9 = vrot.slane %v10204_v52, 4  ;;  %v4298_v25 = vpack.c.bf16 %v3284_v59, %v10587_v26  ;;  %vm13167_vm6 = vmpackc.low %vm10509_vm2, %vm10509_vm2 }
 0x6c0   : > { %8977 = vmatpush1.bf16.msk.msra.mxu0 %vm13162_vm10, %v8976_v24  ;;  %v3569_v44 = vpack.c.bf16 %v3553_v32, %v3545_v4  ;;  %v3662_v19 = vrot.slane %v8976_v24, 4  ;;  %vm13228_vm10 = vcmask 1043456   ;;  %v3663_v16 = vrot.slane %v8973_v14, 4 }
 0x6c1   : > { %8308 = vrot.lane.b32.xlu0 %v8277_v60, %s13318_s23  ;;  %8298 = vrot.lane.b32.xlu1 %v8297_v49, %s13357_s24  ;;  %v4961_v52 = vrot.slane %v4298_v25, 4 }
 0x6c2   : > { %3585 = vst [vmem:[#allocation3 + $0x18] sm:$0xff] %v3569_v44  ;;  %v4969_v8 = vsel %vm13228_vm10, %v3662_v19, %v4968_v9 }
 0x6c5   : > { %8313 = vrot.lane.b32.xlu0 %v8282_v63, %s13318_s23  ;;  %8303 = vrot.lane.b32.xlu1 %v8297_v49, %s13317_s21 }
 0x6c9   : > { %8323 = vrot.lane.b32.xlu0 %v8277_v60, %s13358_s25  ;;  %8318 = vrot.lane.b32.xlu1 %v8297_v49, %s13318_s23 }
 0x6cd   : > { %8328 = vrot.lane.b32.xlu0 %v8282_v63, %s13358_s25  ;;  %8338 = vrot.lane.b32.xlu1 %v8277_v60, %s13359_s27  ;;  %v4299_v60 = vpack.c.bf16 %v10619_v40, %v3278_v34 }
 0x6cf   : > { %v3665_v34 = vrot.slane %v4299_v60, 4 }
 0x6d1   : > { %8333 = vrot.lane.b32.xlu0 %v8297_v49, %s13358_s25  ;;  %8343 = vrot.lane.b32.xlu1 %v8282_v63, %s13359_s27  ;;  %v3675_v49 = vrot.slane %v10216_v57, 4  ;;  %v3673_v57 = vrot.slane %v10185_v56, 4 }
 0x6d3   : > { %v3676_v4 = vsel %vm13228_vm10, %v4961_v52, %v3675_v49  ;;  %v3677_v49 = vrot.slane %v10211_v61, 4 }
 0x6d5   : > { %8358 = vrot.lane.b32.xlu0 %v8357_v11, %s13317_s21  ;;  %8348 = vrot.lane.b32.xlu1 %v8347_v29, %s13359_s27 }
 0x6d9   : > { %8373 = vrot.lane.b32.xlu0 %v8357_v11, %s13359_s27  ;;  %8353 = vrot.lane.b32.xlu1 %v8357_v11, %s13357_s24 }
 0x6dd   : > { %3689 = vrot.lane.b32.xlu0 %v3662_v19, %s13360_s30  ;;  %8363 = vrot.lane.b32.xlu1 %v8357_v11, %s13318_s23 }
 0x6e1   : > { %4334 = vrot.lane.b32.xlu0 %v8973_v14, %s9070_s26  ;;  %4332 = vrot.lane.b32.xlu1 %v8976_v24, %s9070_s26 }
 0x6e5   : > { %4338 = vrot.lane.b32.xlu0 %v4299_v60, %s9070_s26  ;;  %8368 = vrot.lane.b32.xlu1 %v8357_v11, %s13358_s25 }
 0x6e9   : > { %5004 = vrot.lane.b32.xlu0 %v4969_v8, %s9075_s28  ;;  %4336 = vrot.lane.b32.xlu1 %v4298_v25, %s9070_s26 }
 0x6ed   : > { %v3252_v0 = vpop.permute.xlu0 %3251  ;;  %3691 = vrot.lane.b32.xlu0 %v3663_v16, %s13360_s30  ;;  %4986 = vrot.lane.b32.xlu1 %v3662_v19, %s9075_s28 }
 0x6ee   : > { %v3254_v63 = vpop.permute.xlu1 %3253  ;;  %v3279_v24 = vsel %vm13164_vm3, %v10591_v28, %v3252_v0 }
 0x6ef   : > { %v10673_v23 = vsel %vm13164_vm3, %v3252_v0, %v3254_v63  ;;  %v3546_v19 = vsel %vm10488_vm5, %v3279_v24, 0.0 }
 0x6f0   : > { %3314 = vst [vmem:[#allocation2 + $0x28] sm:$0xff] %v10673_v23  ;;  %v3547_v28 = vsel %vm10509_vm2, %v10673_v23, 0.0 }
 0x6f1   : > { %v3256_v26 = vpop.permute.xlu0 %3255  ;;  %4990 = vrot.lane.b32.xlu0 %v4961_v52, %s9075_s28  ;;  %3707 = vrot.lane.b32.xlu1 %v4969_v8, %s13360_s30 }
 0x6f2   : > { %v10679_v59 = vsel %vm13164_vm3, %v3254_v63, %v3256_v26  ;;  %v3270_v47 = vpop.permute.xlu1 %3269 }
 0x6f3   : > { %3315 = vst [vmem:[#allocation2 + $0x30] sm:$0xff] %v10679_v59 }
 0x6f5   : > { %v3258_v62 = vpop.permute.xlu0 %3257  ;;  %3695 = vrot.lane.b32.xlu0 %v3665_v34, %s13360_s30  ;;  %3693 = vrot.lane.b32.xlu1 %v4961_v52, %s13360_s30 }
 0x6f6   : > { %v10685_v14 = vsel %vm13164_vm3, %v3256_v26, %v3258_v62  ;;  %3317 = vst.msk [vmem:[#allocation2 + $0x40] sm:$0xff] %vm13164_vm3, %v3258_v62  ;;  %v3274_v32 = vpop.permute.xlu1 %3273 }
 0x6f7   : > { %3316 = vst [vmem:[#allocation2 + $0x38] sm:$0xff] %v10685_v14  ;;  %3326 = vst.msk [vmem:[#allocation2 + $0x88] sm:$0xff] %vm13164_vm3, %v3274_v32  ;;  %v3549_v61 = vsel %vm10562_vm12, %v10685_v14, 0.0 }
 0x6f9   : > { %v3268_v44 = vpop.permute.xlu0 %3267  ;;  %3711 = vrot.lane.b32.xlu0 %v3676_v4, %s13360_s30  ;;  %4988 = vrot.lane.b32.xlu1 %v3663_v16, %s9075_s28 }
 0x6fa   : > { %v3286_v11 = vsel %vm13164_vm3, %v10613_v2, %v3268_v44  ;;  %v10699_v29 = vsel %vm13164_vm3, %v3268_v44, %v3270_v47  ;;  %v3674_v2 = vsel %vm13228_vm10, %v3663_v16, %v3673_v57 }
 0x6fb   : > { %v3554_v60 = vsel %vm10488_vm5, %v3286_v11, 0.0  ;;  %v3555_v9 = vsel %vm10509_vm2, %v10699_v29, 0.0  ;;  %v10719_v63 = vpack.c.bf16 %v10699_v29, %v10673_v23  ;;  %v10742_v16 = vpack.c.bf16 %v3286_v11, %v3279_v24 }
 0x6fc   : > { %v3571_v25 = vpack.c.bf16 %v3555_v9, %v3547_v28  ;;  %v3570_v8 = vpack.c.bf16 %v3554_v60, %v3546_v19  ;;  %v3678_v28 = vsel %vm13228_vm10, %v3665_v34, %v3677_v49  ;;  %v3548_v60 = vsel %vm10515_vm8, %v10679_v59, 0.0 }
 0x6fd   : > { %v3272_v0 = vpop.permute.xlu0 %3271  ;;  %4992 = vrot.lane.b32.xlu0 %v3665_v34, %s9075_s28  ;;  %3709 = vrot.lane.b32.xlu1 %v3674_v2, %s13360_s30  ;;  %v10715_v56 = vld [vmem:[#allocation2 + $0x40] sm:$0xff]  ;;  %v8407_v34 = vpack.i.bf16 %v10673_v23, %v10427_v58  ;;  %v10821_v49 = vpack.i.bf16 %v10699_v29, %v10679_v59 }
 0x6fe   : > { %13361 = vst [vmem:[#allocation25_spill] sm:$0xff] %v10715_v56  ;;  %v10722_v52 = vsel %vm13164_vm3, %v3270_v47, %v3272_v0  ;;  %v10725_v26 = vsel %vm13164_vm3, %v3272_v0, %v3274_v32  ;;  %3587 = vst [vmem:[#allocation3 + $0x28] sm:$0xff] %v3571_v25  ;;  %8980 = vmatprep.subr.msk.bf16.mxu1 %vm13167_vm6, %v10719_v63  ;;  %v8392_v25 = vpack.i.bf16 %v10619_v40, %v3279_v24  ;;  %v4022_v40 = vld [vmem:[#allocation2 + $0xa8] sm:$0xff]  ;;  %vm13368_vm6 = vcmask 1031168  }
 0x6ff   : > { %3586 = vst [vmem:[#allocation3 + $0x20] sm:$0xff] %v3570_v8  ;;  %5618 = vst.msk [vmem:[#allocation2 + $0x40] sm:$0xff] %vm13165_vm9, %v9835_v46  ;;  %v10752_v47 = vpack.c.bf16 %v10722_v52, %v10679_v59  ;;  %v10756_v62 = vpack.i.bf16 %v10725_v26, %v10715_v56  ;;  %v3556_v44 = vsel %vm10515_vm8, %v10722_v52, 0.0  ;;  %v3557_v57 = vsel %vm10562_vm12, %v10725_v26, 0.0 }
 0x700   : > { %3325 = vst [vmem:[#allocation2 + $0x80] sm:$0xff] %v10725_v26  ;;  %vm13166_vm3 = vmpackc.low %vm10488_vm5, %vm10488_vm5  ;;  %v3573_v9 = vpack.c.bf16 %v3557_v57, %v3549_v61  ;;  %v8437_v24 = vpack.i.bf16 %v4022_v40, %v3286_v11  ;;  %v8462_v23 = vpack.i.bf16 %v10430_v42, %v10722_v52  ;;  %vm13215_vm9 = vcmask 719872  }
 0x701   : > { %8983 = vmatpush1.bf16.msk.msra.mxu1 %vm13166_vm3, %v10742_v16  ;;  %5006 = vrot.lane.b32.xlu0 %v3674_v2, %s9075_s28  ;;  %v3572_v2 = vpack.c.bf16 %v3556_v44, %v3548_v60  ;;  %v8255_v59 = vunpack.i.l.bf16 %v10443_v18  ;;  %v13171_v60 = vunpack.i.h.bf16 %v10446_v45  ;;  %v13177_v61 = vunpack.i.l.bf16 %v10446_v45 }
 0x702   : > { %5169 = vrot.lane.b32.xlu1 %v10427_v58, %s13359_s27  ;;  %3589 = vst [vmem:[#allocation3 + $0x38] sm:$0xff] %v3573_v9  ;;  %v8422_v58 = vpack.i.bf16 %v10685_v14, %v10483_v48  ;;  %vm13367_vm3 = vcmask 769024  }
 0x703   : > { %3588 = vst [vmem:[#allocation3 + $0x30] sm:$0xff] %v3572_v2 }
 0x705   : > { %3713 = vrot.lane.b32.xlu0 %v3678_v28, %s13360_s30 }
 0x706   : > { %5008 = vrot.lane.b32.xlu1 %v3676_v4, %s9075_s28  ;;  %v8823_v4 = vld [vmem:[#allocation2 + $0xa8] sm:$0xff] }
 0x707   : > { %v8432_v8 = vpack.i.bf16 %v8823_v4, %v3286_v11  ;;  %v10807_v11 = vld [vmem:[%s13130_s9] sm:$0xff] }
 0x708   : > { %13362 = vst [vmem:[#allocation26_spill] sm:$0xff] %v10807_v11  ;;  %v10813_v0 = vcombine.high %v10807_v11, %v10807_v11  ;;  %v10967_v11 = vrot.slane %v10752_v47, 4 }
 0x709   : > { %5010 = vrot.lane.b32.xlu0 %v3678_v28, %s9075_s28  ;;  %v13172_v28 = vunpack.i.h.bf16 %v10443_v18 }
 0x70a   : > { %8393 = vrot.lane.b32.xlu1 %v8392_v25, %s13358_s25  ;;  %13363 = vst [vmem:[#allocation27_spill] sm:$0xff] %v10813_v0  ;;  %7860 = vmatprep.mubr.msk.bf16.mxu0 %vm13215_vm9, %v10813_v0 }
 0x70b   : > { %7864 = vmatprep.mubr.msk.bf16.mxu1 %vm13215_vm9, %v10813_v0  ;;  %v4126_v40 = vsel %vm13227_vm4, %v8255_v59, %v13172_v28  ;;  %vm13400_vm9 = vcmask 777216  }
 0x70d   : > { %8378 = vrot.lane.b32.xlu0 %v8392_v25, %s13357_s24 }
 0x70e   : > { %8408 = vrot.lane.b32.xlu1 %v8407_v34, %s13317_s21 }
 0x711   : > { %8383 = vrot.lane.b32.xlu0 %v8392_v25, %s13317_s21 }
 0x712   : > { %8418 = vrot.lane.b32.xlu1 %v8407_v34, %s13358_s25 }
 0x715   : > { %8388 = vrot.lane.b32.xlu0 %v8392_v25, %s13318_s23 }
 0x716   : > { %8433 = vrot.lane.b32.xlu1 %v8432_v8, %s13357_s24  ;;  %v10848_v8 = vld [vmem:[#allocation2 + $0x88] sm:$0xff] }
 0x717   : > { %13366 = vst [vmem:[#allocation30_spill] sm:$0xff] %v10848_v8  ;;  %v10878_v28 = vpack.c.bf16 %v10848_v8, %v10715_v56  ;;  %v13374_v56 = vunpack.i.l.bf16 %v10525_v31 }
 0x719   : > { %8398 = vrot.lane.b32.xlu0 %v8392_v25, %s13359_s27  ;;  %v3666_v25 = vrot.slane %v10742_v16, 4 }
 0x71a   : > { %8438 = vrot.lane.b32.xlu1 %v8437_v24, %s13317_s21 }
 0x71d   : > { %8403 = vrot.lane.b32.xlu0 %v8407_v34, %s13357_s24 }
 0x71e   : > { %8443 = vrot.lane.b32.xlu1 %v8437_v24, %s13318_s23 }
 0x721   : > { %8413 = vrot.lane.b32.xlu0 %v8407_v34, %s13318_s23  ;;  %v3620_v34 = vld [vmem:[#allocation2 + $0xb0] sm:$0xff] }
 0x722   : > { %8453 = vrot.lane.b32.xlu1 %v8437_v24, %s13359_s27 }
 0x725   : > { %8423 = vrot.lane.b32.xlu0 %v8422_v58, %s13357_s24 }
 0x726   : > { %8463 = vrot.lane.b32.xlu1 %v8462_v23, %s13357_s24 }
 0x727   : > { %v10815_v48 = vpop.permute.xlu0 %8278  ;;  %v10817_v42 = vpop.permute.xlu1 %8288 }
 0x728   : > { %13364 = vst [vmem:[#allocation28_spill] sm:$0xff] %v10817_v42  ;;  %v13372_v10 = vunpack.i.h.bf16 %v10817_v42 }
 0x729   : > { %8428 = vrot.lane.b32.xlu0 %v8422_v58, %s13317_s21  ;;  %v10864_v58 = vld [vmem:[#allocation2 + $0xb8] sm:$0xff] }
 0x72a   : > { %8473 = vrot.lane.b32.xlu1 %v8462_v23, %s13317_s21  ;;  %v3638_v23 = vpack.c.bf16 %v3620_v34, %v3620_v34 }
 0x72d   : > { %8448 = vrot.lane.b32.xlu0 %v8437_v24, %s13358_s25  ;;  %v4541_v24 = vsel %vm13367_vm3, %v13177_v61, %v13171_v60  ;;  %v10874_v60 = vpack.i.bf16 %v10864_v58, %v10722_v52  ;;  %vm13371_vm3 = vmmov %vm13368_vm6 }
 0x72e   : > { %8478 = vrot.lane.b32.xlu1 %v10821_v49, %s13318_s23  ;;  %v4589_v34 = vsel %vm10418_vm13, %v4541_v24, 0.0  ;;  %v10900_v24 = vpack.c.bf16 %v10864_v58, %v10864_v58 }
 0x72f   : > { %v10830_v44 = vpop.permute.xlu0 %8283  ;;  %v10832_v57 = vpop.permute.xlu1 %8293  ;;  %v4605_v5 = vpack.c.bf16 %v4589_v34, %v4589_v34 }
 0x730   : > { %v8285_v37 = vunpack.i.l.bf16 %v10830_v44  ;;  %v8295_v61 = vunpack.i.l.bf16 %v10832_v57  ;;  %v8296_v21 = vunpack.i.h.bf16 %v10832_v57 }
 0x731   : > { %8458 = vrot.lane.b32.xlu0 %v10821_v49, %s13357_s24 }
 0x732   : > { %4340 = vrot.lane.b32.xlu1 %v10742_v16, %s9070_s26 }
 0x733   : > { %v10842_v9 = vpop.permute.xlu0 %8308  ;;  %v10844_v2 = vpop.permute.xlu1 %8298 }
 0x734   : > { %13365 = vst [vmem:[#allocation29_spill] sm:$0xff] %v10842_v9  ;;  %v8300_v4 = vunpack.i.l.bf16 %v10844_v2  ;;  %v8310_v39 = vunpack.i.l.bf16 %v10842_v9  ;;  %v13375_v57 = vunpack.i.h.bf16 %v10842_v9 }
 0x735   : > { %8468 = vrot.lane.b32.xlu0 %v10821_v49, %s13317_s21 }
 0x736   : > { %3697 = vrot.lane.b32.xlu1 %v3666_v25, %s13360_s30  ;;  %v3913_v16 = vsel %vm13368_vm6, %v8300_v4, %v8250_v54  ;;  %v4174_v54 = vsel %vm10457_vm14, %v4126_v40, 0.0  ;;  %v10893_v40 = vrot.slane %v10878_v28, 4  ;;  %vm13373_vm6 = vmmov %vm13371_vm3 }
 0x737   : > { %v3961_v12 = vsel %vm10529_vm11, %v3913_v16, 0.0  ;;  %v10868_v6 = vpop.permute.xlu0 %8313  ;;  %v10870_v20 = vpop.permute.xlu1 %8303  ;;  %v3679_v16 = vrot.slane %v3638_v23, 4  ;;  %v4190_v53 = vpack.c.bf16 %v4174_v54, %v4174_v54  ;;  %v8280_v54 = vunpack.i.l.bf16 %v10815_v48 }
 0x738   : > { %v3977_v4 = vpack.c.bf16 %v3961_v12, %v3961_v12  ;;  %v8305_v38 = vunpack.i.l.bf16 %v10870_v20  ;;  %v10918_v23 = vrot.slane %v4605_v5, 4  ;;  %v8315_v17 = vunpack.i.l.bf16 %v10868_v6 }
 0x739   : > { %8483 = vrot.lane.b32.xlu0 %v10874_v60, %s13318_s23  ;;  %v10896_v12 = vsel %vm13228_vm10, %v3666_v25, %v3679_v16  ;;  %v10912_v16 = vld [vmem:[#allocation2 + $0xd0] sm:$0xff]  ;;  %v10916_v27 = vrot.slane %v4190_v53, 4  ;;  %v10952_v53 = vpack.i.bf16 %v10931_v43, %v10848_v8  ;;  %v10956_v55 = vsel %vm13373_vm6, %v8285_v37, %v8280_v54 }
 0x73a   : > { %4994 = vrot.lane.b32.xlu1 %v3666_v25, %s9075_s28  ;;  %3993 = vst [vmem:[#allocation3 + $0x100] sm:$0xf] %v3977_v4  ;;  %v8290_v4 = vunpack.i.l.bf16 %v10817_v42  ;;  %v10910_v25 = vld [vmem:[#allocation2 + $0xc0] sm:$0xff]  ;;  %v4125_v34 = vsel %vm13227_vm4, %v8305_v38, %v8255_v59  ;;  %v10936_v5 = vpack.c.bf16 %v10912_v16, %v10912_v16  ;;  %v13370_v38 = vunpack.i.h.bf16 %v10815_v48 }
 0x73b   : > { %v10888_v19 = vpop.permute.xlu0 %8323  ;;  %v10890_v32 = vpop.permute.xlu1 %8318  ;;  %v8487_v41 = vpack.i.bf16 %v10685_v14, %v10910_v25  ;;  %v10929_v13 = vpack.c.bf16 %v10910_v25, %v10910_v25 }
 0x73c   : > { %13369 = vst [vmem:[#allocation31_spill] sm:$0xff] %v10890_v32  ;;  %v10941_v59 = vsel %vm13371_vm3, %v8280_v54, %v13370_v38  ;;  %v4110_v0 = vsel %vm13227_vm4, %v8290_v4, %v13372_v10  ;;  %v4109_v38 = vsel %vm13227_vm4, %v8295_v61, %v8290_v4  ;;  %v4173_v10 = vsel %vm10178_vm7, %v4125_v34, 0.0 }
 0x73d   : > { %3705 = vrot.lane.b32.xlu0 %v10893_v40, %s13360_s30  ;;  %v4158_v61 = vsel %vm10457_vm14, %v4110_v0, 0.0  ;;  %v4189_v33 = vpack.c.bf16 %v4173_v10, %v4173_v10  ;;  %v8320_v0 = vunpack.i.l.bf16 %v10890_v32  ;;  %vm13376_vm3 = vcmask 769024  }
 0x73e   : > { %3715 = vrot.lane.b32.xlu1 %v10896_v12, %s13360_s30  ;;  %vm13377_vm6 = vmmov %vm13376_vm3 }
 0x73f   : > { %v10921_v46 = vpop.permute.xlu0 %8328  ;;  %v10923_v22 = vpop.permute.xlu1 %8338  ;;  %v10998_v10 = vsel %vm13377_vm6, %v8315_v17, %v8310_v39  ;;  %vm13380_vm6 = vcmask 506880  }
 0x740   : > { %v8340_v54 = vunpack.i.l.bf16 %v10923_v22 }
 0x741   : > { %4344 = vrot.lane.b32.xlu0 %v10752_v47, %s9070_s26  ;;  %v4157_v47 = vsel %vm10178_vm7, %v4109_v38, 0.0  ;;  %v10994_v38 = vsel %vm13376_vm3, %v8310_v39, %v13375_v57  ;;  %v4221_v57 = vrot.slane %v4189_v33, 4 }
 0x742   : > { %4342 = vrot.lane.b32.xlu1 %v10719_v63, %s9070_s26 }
 0x743   : > { %v10964_v18 = vpop.permute.xlu0 %8333  ;;  %v8344_v50 = vpop.permute.xlu1 %8343 }
 0x744   : > { %v8335_v34 = vunpack.i.l.bf16 %v10964_v18  ;;  %v8345_v42 = vunpack.i.l.bf16 %v8344_v50  ;;  %v8346_v17 = vunpack.i.h.bf16 %v8344_v50 }
 0x745   : > { %4360 = vrot.lane.b32.xlu0 %v10900_v24, %s9070_s26 }
 0x746   : > { %8488 = vrot.lane.b32.xlu1 %v8487_v41, %s13318_s23  ;;  %v4808_v4 = vsel %vm13226_vm0, %v8335_v34, %v13374_v56 }
 0x747   : > { %v4856_v3 = vsel %vm10178_vm7, %v4808_v4, 0.0  ;;  %v11002_v37 = vpop.permute.xlu0 %8358  ;;  %v11004_v8 = vpop.permute.xlu1 %8348  ;;  %v13379_v4 = vunpack.i.h.bf16 %v10923_v22 }
 0x748   : > { %v4872_v31 = vpack.c.bf16 %v4856_v3, %v4856_v3  ;;  %v13210_v56 = vunpack.i.h.bf16 %v11002_v37  ;;  %v8360_v34 = vunpack.i.l.bf16 %v11002_v37  ;;  %v13378_v3 = vunpack.i.l.bf16 %v10446_v45 }
 0x749   : > { %8493 = vrot.lane.b32.xlu0 %v10756_v62, %s13357_s24  ;;  %v11021_v33 = vsel %vm13380_vm6, %v8340_v54, %v13379_v4 }
 0x74a   : > { %4362 = vrot.lane.b32.xlu1 %v10929_v13, %s9070_s26  ;;  %v4540_v39 = vsel %vm13376_vm3, %v8320_v0, %v13378_v3  ;;  %13381 = vst [vmem:[#allocation32_spill] sm:$0xff] %v11021_v33  ;;  %4888 = vst [vmem:[#allocation3 + $0x280] sm:$0xf] %v4872_v31  ;;  %v4117_v41 = vsel %vm13227_vm4, %v8296_v21, %v8360_v34  ;;  %v4118_v9 = vsel %vm13227_vm4, %v8360_v34, %v13210_v56 }
 0x74b   : > { %v4165_v32 = vsel %vm10178_vm7, %v4117_v41, 0.0  ;;  %v4166_v45 = vsel %vm10457_vm14, %v4118_v9, 0.0  ;;  %v13382_v0 = vunpack.i.l.bf16 %v11004_v8  ;;  %v13383_v3 = vunpack.i.h.bf16 %v10533_v7  ;;  %vm13384_vm3 = vmmov %vm13380_vm6  ;;  %v11036_v31 = vpop.permute.xlu0 %8373  ;;  %v11038_v21 = vpop.permute.xlu1 %8353 }
 0x74c   : > { %vm13385_vm6 = vmmov %vm13384_vm3  ;;  %v4181_v50 = vpack.c.bf16 %v4165_v32, %v4157_v47  ;;  %v4182_v34 = vpack.c.bf16 %v4166_v45, %v4158_v61  ;;  %v13213_v9 = vunpack.i.h.bf16 %v11036_v31  ;;  %v8375_v36 = vunpack.i.l.bf16 %v11036_v31 }
 0x74d   : > { %v5197_v4 = vsel %vm13384_vm3, %v13383_v3, %v13382_v0  ;;  %v11041_v33 = vsel %vm13385_vm6, %v8345_v42, %v8340_v54  ;;  %v13214_v7 = vunpack.i.h.bf16 %v11038_v21  ;;  %8503 = vrot.lane.b32.xlu0 %v10756_v62, %s13317_s21  ;;  %v4588_v32 = vsel %vm10529_vm11, %v4540_v39, 0.0  ;;  %vm13388_vm6 = vmmov %vm13384_vm3 }
 0x74e   : > { %13386 = vst [vmem:[#allocation33_spill] sm:$0xff] %v11041_v33  ;;  %v5245_v41 = vsel %vm10418_vm13, %v5197_v4, 0.0  ;;  %8498 = vrot.lane.b32.xlu1 %v10952_v53, %s13357_s24  ;;  %v4213_v45 = vrot.slane %v4181_v50, 4  ;;  %v4214_v42 = vrot.slane %v4182_v34, 4  ;;  %v8355_v61 = vunpack.i.l.bf16 %v11038_v21 }
 0x74f   : > { %v5261_v56 = vpack.c.bf16 %v5245_v41, %v5245_v41  ;;  %v11056_v54 = vsel %vm13384_vm3, %v8346_v17, %v8375_v36  ;;  %v11061_v47 = vsel %vm13388_vm6, %v8375_v36, %v13213_v9  ;;  %v11063_v0 = vpop.permute.xlu0 %3689  ;;  %v11065_v3 = vpop.permute.xlu1 %8363  ;;  %vm13391_vm3 = vcmask 1031168  }
 0x750   : > { %13387 = vst [vmem:[#allocation34_spill] sm:$0xff] %v11056_v54  ;;  %13389 = vst [vmem:[#allocation35_spill] sm:$0xff] %v11061_v47  ;;  %v11068_v4 = vsel %vm13228_vm10, %v4213_v45, %v4221_v57  ;;  %v11072_v39 = vsel %vm13228_vm10, %v4214_v42, %v10916_v27  ;;  %v8365_v50 = vunpack.i.l.bf16 %v11065_v3  ;;  %v13393_v34 = vrot.slane %v10719_v63, 4 }
 0x751   : > { %5277 = vst [vmem:[#allocation3 + $0x348] sm:$0xf] %v5261_v56  ;;  %4253 = vst [vmem:[#allocation3 + $0x100] sm:$0xf0] %v4213_v45  ;;  %v13390_v56 = vunpack.i.h.bf16 %v10830_v44  ;;  %v4604_v41 = vpack.c.bf16 %v4588_v32, %v4588_v32  ;;  %v8330_v45 = vunpack.i.l.bf16 %v10921_v46  ;;  %v13396_v54 = vunpack.i.h.bf16 %v10868_v6 }
 0x752   : > { %4254 = vst [vmem:[#allocation3 + $0x108] sm:$0xf0] %v4214_v42  ;;  %vm13392_vm6 = vmmov %vm13391_vm3  ;;  %3701 = vrot.lane.b32.xlu1 %v10967_v11, %s13360_s30  ;;  %3699 = vrot.lane.b32.xlu0 %v13393_v34, %s13360_s30  ;;  %v13394_v42 = vsel %vm10529_vm11, %v10956_v55, 0.0  ;;  %v13398_v32 = vunpack.i.h.bf16 %v11065_v3  ;;  %v4572_v6 = vsel %vm10529_vm11, %v10998_v10, 0.0  ;;  %v3687_v10 = vrot.slane %v10936_v5, 4 }
 0x753   : > { %v11077_v17 = vsel %vm13391_vm3, %v13390_v56, %v8355_v61  ;;  %v11082_v36 = vsel %vm13392_vm6, %v8355_v61, %v13214_v7  ;;  %v13395_v56 = vsel %vm10418_vm13, %v10941_v59, 0.0  ;;  %v4335_v7 = vpop.permute.xlu0 %4334  ;;  %v4333_v44 = vpop.permute.xlu1 %4332  ;;  %vm13397_vm3 = vcmask 769024  }
 0x754   : > { %v3953_v27 = vsel %vm10529_vm11, %v11077_v17, 0.0  ;;  %v3954_v57 = vsel %vm10418_vm13, %v11082_v36, 0.0  ;;  %v4532_v33 = vsel %vm13397_vm3, %v13396_v54, %v8365_v50  ;;  %vm13399_vm6 = vmmov %vm13397_vm3  ;;  %v11113_v47 = vsel %vm13400_vm9, %v4333_v44, %v4335_v7 }
 0x755   : > { %v3969_v61 = vpack.c.bf16 %v3953_v27, %v13394_v42  ;;  %v3970_v9 = vpack.c.bf16 %v3954_v57, %v13395_v56  ;;  %v4533_v34 = vsel %vm13399_vm6, %v8365_v50, %v13398_v32  ;;  %v13401_v27 = vrot.slane %v10900_v24, 4  ;;  %vm13407_vm3 = vmmov %vm13400_vm9 }
 0x756   : > { %v13402_v42 = vrot.slane %v10719_v63, 4  ;;  %v4573_v57 = vsel %vm10418_vm13, %v10994_v38, 0.0  ;;  %v4580_v54 = vsel %vm10529_vm11, %v4532_v33, 0.0  ;;  %v4581_v44 = vsel %vm10418_vm13, %v4533_v34, 0.0  ;;  %5012 = vrot.lane.b32.xlu1 %v10896_v12, %s9075_s28 }
 0x757   : > { %3985 = vst [vmem:[#allocation3 + $0xc0] sm:$0xff] %v3969_v61  ;;  %3986 = vst [vmem:[#allocation3 + $0xc8] sm:$0xff] %v3970_v9  ;;  %v4596_v63 = vpack.c.bf16 %v4580_v54, %v4572_v6  ;;  %v4597_v50 = vpack.c.bf16 %v4581_v44, %v4573_v57  ;;  %v13403_v38 = vpack.c.bf16 %v10725_v26, %v10685_v14  ;;  %v13404_v9 = vunpack.i.h.bf16 %v10888_v19  ;;  %v11152_v14 = vpop.permute.xlu1 %8368 }
 0x758   : > { %v3682_v51 = vsel %vm13228_vm10, %v13402_v42, %v13401_v27  ;;  %v13405_v33 = vunpack.i.l.bf16 %v10888_v19  ;;  %v4636_v32 = vrot.slane %v4604_v41, 4  ;;  %v8331_v12 = vunpack.i.h.bf16 %v10921_v46  ;;  %v11150_v27 = vpop.permute.xlu0 %4338 }
 0x759   : > { %3717 = vrot.lane.b32.xlu0 %v3682_v51, %s13360_s30  ;;  %v3669_v56 = vrot.slane %v13403_v38, 4  ;;  %v4628_v42 = vrot.slane %v4596_v63, 4  ;;  %v4629_v57 = vrot.slane %v4597_v50, 4  ;;  %v13218_v6 = vunpack.i.h.bf16 %v11152_v14 }
 0x75a   : > { %v11142_v61 = vsel %vm13226_vm0, %v13405_v33, %v13404_v9  ;;  %v13406_v34 = vmov %v13405_v33  ;;  %v8370_v54 = vunpack.i.l.bf16 %v11152_v14  ;;  %v11159_v46 = vsel %vm13228_vm10, %v10893_v40, %v3687_v10 }
 0x75b   : > { %v11148_v51 = vsel %vm13226_vm0, %v8330_v45, %v13406_v34  ;;  %3703 = vrot.lane.b32.xlu1 %v3669_v56, %s13360_s30  ;;  %v11162_v41 = vsel %vm13228_vm10, %v4628_v42, %v4636_v32  ;;  %v11166_v45 = vsel %vm13228_vm10, %v4629_v57, %v10918_v23  ;;  %4668 = vst [vmem:[#allocation3 + $0x1c0] sm:$0xf0] %v4628_v42  ;;  %4669 = vst [vmem:[#allocation3 + $0x1c8] sm:$0xf0] %v4629_v57  ;;  %v4337_v38 = vpop.permute.xlu1 %4336  ;;  %vm13408_vm6 = vcmask 1039360  }
 0x75c   : > { %v11169_v44 = vsel %vm13226_vm0, %v8331_v12, %v8370_v54  ;;  %v11174_v63 = vsel %vm13226_vm0, %v8370_v54, %v13218_v6  ;;  %v5005_v50 = vpop.permute.xlu0 %5004  ;;  %v11179_v10 = vsel %vm13400_vm9, %v4335_v7, %v4337_v38  ;;  %v4370_v23 = vsel %vm13407_vm3, %v4337_v38, %v11150_v27  ;;  %vm13409_vm9 = vmmov %vm13408_vm6 }
 0x75d   : > { %3895 = vrot.lane.b32.xlu0 %v10912_v16, %s13357_s24  ;;  %4402 = vst [vmem:[#allocation3 + $0x190] sm:$0xff] %v4370_v23  ;;  %v3683_v9 = vrot.slane %v10929_v13, 4  ;;  %v11200_v13 = vpack.c.bf16 %v10931_v43, %v10931_v43  ;;  %vm13410_vm3 = vmmov %vm13408_vm6 }
 0x75f   : > { %3723 = vrot.lane.b32.xlu1 %v11159_v46, %s13360_s30  ;;  %v4987_v32 = vpop.permute.xlu1 %4986  ;;  %v11192_v7 = vsel %vm13228_vm10, %v10967_v11, %v3683_v9  ;;  %v13224_v57 = vrot.slane %v11200_v13, 4 }
 0x760   : > { %v3692_v33 = vpop.permute.xlu0 %3691 }
 0x761   : > { %8518 = vrot.lane.b32.xlu0 %v10874_v60, %s13358_s25  ;;  %v3725_v12 = vsel %vm13408_vm6, %v11063_v0, %v3692_v33  ;;  %v3686_v23 = vsel %vm13228_vm10, %v3669_v56, %v13224_v57  ;;  %vm13220_vm6 = vcmask 515072  }
 0x762   : > { %3757 = vst [vmem:[#allocation3 + $0x40] sm:$0xf0] %v3725_v12 }
 0x763   : > { %3719 = vrot.lane.b32.xlu1 %v11192_v7, %s13360_s30  ;;  %v3708_v60 = vpop.permute.xlu1 %3707 }
 0x764   : > { %v4991_v34 = vpop.permute.xlu0 %4990 }
 0x765   : > { %4786 = vrot.lane.b32.xlu0 %v10910_v25, %s13358_s25 }
 0x767   : > { %8508 = vrot.lane.b32.xlu1 %v10952_v53, %s13317_s21  ;;  %v3694_v42 = vpop.permute.xlu1 %3693 }
 0x768   : > { %v11206_v0 = vpop.permute.xlu0 %3695  ;;  %v3726_v54 = vsel %vm13409_vm9, %v3692_v33, %v3694_v42  ;;  %vm13411_vm9 = vmmov %vm13410_vm3 }
 0x769   : > { %4998 = vrot.lane.b32.xlu0 %v10967_v11, %s9075_s28  ;;  %v3727_v38 = vsel %vm13410_vm3, %v3694_v42, %v11206_v0  ;;  %3758 = vst [vmem:[#allocation3 + $0x48] sm:$0xf0] %v3726_v54  ;;  %v4901_v11 = vld [vmem:[#allocation2 + $0x28] sm:$0xff] }
 0x76a   : > { %3759 = vst [vmem:[#allocation3 + $0x50] sm:$0xf0] %v3727_v38  ;;  %v4928_v33 = vpack.c.bf16 %v10699_v29, %v4901_v11 }
 0x76b   : > { %8513 = vrot.lane.b32.xlu1 %v10821_v49, %s13358_s25  ;;  %v4989_v12 = vpop.permute.xlu1 %4988 }
 0x76c   : > { %v3712_v9 = vpop.permute.xlu0 %3711  ;;  %v5023_v6 = vsel %vm13220_vm6, %v4987_v32, %v4989_v12  ;;  %v5024_v42 = vsel %vm13220_vm6, %v4989_v12, %v4991_v34  ;;  %v11227_v54 = vrot.slane %v4928_v33, 4 }
 0x76d   : > { %3721 = vrot.lane.b32.xlu0 %v3686_v23, %s13360_s30  ;;  %5055 = vst [vmem:[#allocation3 + $0x280] sm:$0xf0] %v5023_v6  ;;  %5056 = vst [vmem:[#allocation3 + $0x288] sm:$0xf0] %v5024_v42  ;;  %v13413_v42 = vpack.i.bf16 %v10722_v52, %v10699_v29  ;;  %v13223_v29 = vunpack.i.h.bf16 %v10964_v18 }
 0x76f   : > { %4107 = vrot.lane.b32.xlu1 %v10912_v16, %s13317_s21  ;;  %v3710_v56 = vpop.permute.xlu1 %3709 }
 0x770   : > { %v11225_v49 = vpop.permute.xlu0 %4992  ;;  %v3733_v32 = vsel %vm13411_vm9, %v3708_v60, %v3710_v56  ;;  %v3734_v23 = vsel %vm13410_vm3, %v3710_v56, %v3712_v9  ;;  %v5294_v6 = vld [vmem:[#allocation3 + $0x48] sm:$0xff]  ;;  %vm13219_vm9 = vmpackc.low %vm10418_vm13, %vm10418_vm13 }
 0x771   : > { %8528 = vrot.lane.b32.xlu0 %v10952_v53, %s13318_s23  ;;  %v5025_v38 = vsel %vm13220_vm6, %v4991_v34, %v11225_v49  ;;  %3765 = vst [vmem:[#allocation3 + $0x80] sm:$0xff] %v3733_v32  ;;  %3766 = vst [vmem:[#allocation3 + $0x88] sm:$0xff] %v3734_v23  ;;  %5440 = vmatprep.subr.bf16.mxu0 %v5294_v6  ;;  %v5293_v53 = vld [vmem:[#allocation3 + $0x40] sm:$0xff]  ;;  %v11242_v60 = vld [vmem:[#allocation2 + $0x38] sm:$0xff]  ;;  %v13415_v6 = vunpack.i.h.bf16 %v10888_v19  ;;  %v8542_v19 = vpack.i.bf16 %v10910_v25, %v10864_v58 }
 0x772   : > { %5057 = vst [vmem:[#allocation3 + $0x290] sm:$0xf0] %v5025_v38  ;;  %5441 = vmatpush1.bf16.msra.mxu0 %v5293_v53  ;;  %v4303_v38 = vpack.c.bf16 %v10725_v26, %v11242_v60 }
 0x773   : > { %4996 = vrot.lane.b32.xlu1 %v11227_v54, %s9075_s28  ;;  %5442 = vmatprep.subr.bf16.mxu0 %v3734_v23 }
 0x774   : > { %v5007_v12 = vpop.permute.xlu0 %5006  ;;  %v11237_v33 = vpop.permute.xlu1 %5169 }
 0x775   : > { %4348 = vrot.lane.b32.xlu0 %v10878_v28, %s9070_s26  ;;  %13412 = vst [vmem:[#allocation36_spill] sm:$0xff] %v11237_v33  ;;  %v11240_v34 = vsel %vm13220_vm6, %v5005_v50, %v5007_v12  ;;  %v8985_v50 = vpack.c.bf16 %v11082_v36, %v10941_v59  ;;  %v8988_v59 = vpack.c.bf16 %v11077_v17, %v10956_v55  ;;  %v5318_v36 = vld [vmem:[#allocation3 + $0x108] sm:$0xff] }
 0x776   : > { %5443 = vmatpush1.bf16.msra.mxu0 %v3733_v32  ;;  %v4794_v55 = vsel %vm13226_vm0, %v13415_v6, %v13223_v29 }
 0x777   : > { %8523 = vrot.lane.b32.xlu1 %v10756_v62, %s13318_s23  ;;  %8986 = vmatprep.subr.msk.bf16.mxu0 %vm13219_vm9, %v8985_v50  ;;  %v5077_v62 = vld [vmem:[#allocation2 + $0x30] sm:$0xff]  ;;  %vm13221_vm9 = vmpackc.low %vm10529_vm11, %vm10529_vm11  ;;  %v4842_v50 = vsel %vm10471_vm15, %v4794_v55, 0.0  ;;  %v13422_v55 = vld [vmem:[#allocation31_spill] sm:$0xff] }
 0x778   : > { %v11250_v28 = vpop.permute.xlu0 %3713  ;;  %v5009_v56 = vpop.permute.xlu1 %5008  ;;  %v8532_v23 = vpack.i.bf16 %v5077_v62, %v4901_v11  ;;  %v5317_v11 = vld [vmem:[#allocation3 + $0x100] sm:$0xff] }
 0x779   : > { %8538 = vrot.lane.b32.xlu0 %v13413_v42, %s13359_s27  ;;  %v11267_v52 = vsel %vm13410_vm3, %v3712_v9, %v11250_v28  ;;  %v11270_v26 = vsel %vm13220_vm6, %v5007_v12, %v5009_v56  ;;  %v11299_v12 = vld [vmem:[#allocation2 + $0x80] sm:$0xff] }
 0x77a   : > { %3767 = vst [vmem:[#allocation3 + $0x90] sm:$0xff] %v11267_v52  ;;  %8989 = vmatpush1.bf16.msk.msra.mxu0 %vm13221_vm9, %v8988_v59  ;;  %v4930_v58 = vpack.c.bf16 %v11299_v12, %v11242_v60 }
 0x77b   : > { %4346 = vrot.lane.b32.xlu1 %v4303_v38, %s9070_s26  ;;  %5446 = vmatprep.subr.bf16.mxu0 %v5318_v36  ;;  %v13418_v38 = vmov 0  ;;  %v13230_v36 = vunpack.i.h.bf16 %v10870_v20 }
 0x77c   : > { %v11286_v9 = vpop.permute.xlu0 %5010  ;;  %v11288_v32 = vpop.permute.xlu1 %8393 }
 0x77d   : > { %5016 = vrot.lane.b32.xlu0 %v11192_v7, %s9075_s28  ;;  %13414 = vst [vmem:[#allocation37_spill] sm:$0xff] %v11286_v9  ;;  %v8301_v7 = vunpack.i.h.bf16 %v10844_v2  ;;  %v5033_v17 = vsel %vm13220_vm6, %v5009_v56, %v11286_v9  ;;  %v13222_v53 = vunpack.i.h.bf16 %v11288_v32  ;;  %v13416_v2 = vunpack.i.h.bf16 %v11152_v14 }
 0x77e   : > { %5065 = vst [vmem:[#allocation3 + $0x2d0] sm:$0xff] %v5033_v17  ;;  %5447 = vmatpush1.bf16.msra.mxu0 %v5317_v11  ;;  %v13417_v56 = vand.u32 31, %v10449_v1  ;;  %v13420_v1 = vunpack.i.h.bf16 %v10815_v48  ;;  %vm13421_vm6 = vcmask 1031168   ;;  %v13423_v48 = vunpack.i.h.bf16 %v11038_v21  ;;  %v13428_v11 = vld [vmem:[#allocation30_spill] sm:$0xff] }
 0x77f   : > { %8533 = vrot.lane.b32.xlu1 %v8532_v23, %s13359_s27  ;;  %v4802_v42 = vsel %vm13226_vm0, %v13416_v2, %v13222_v53  ;;  %5448 = vmatprep.subr.bf16.mxu0 %v11072_v39  ;;  %vm13424_vm9 = vmmov %vm13421_vm6  ;;  %v13425_v21 = vrot.slane %v10900_v24, 4  ;;  %v8552_v39 = vpack.i.bf16 %v13428_v11, %v11299_v12  ;;  %v13429_v17 = vld [vmem:[#allocation10_spill] sm:$0xff]  ;;  %v13431_v9 = vmov 0 }
 0x780   : > { %vm11313_vm3 = vcmp.ne.s32.totalorder %v13417_v56, 31  ;;  %v4850_v14 = vsel %vm10471_vm15, %v4802_v42, 0.0  ;;  %v11321_v62 = vpop.permute.xlu0 %8378  ;;  %v11323_v59 = vpop.permute.xlu1 %8408  ;;  %v11331_v25 = vsel %vm13421_vm6, %v13420_v1, %v8301_v7  ;;  %v5389_v42 = vld [vmem:[#allocation3 + $0x340] sm:$0xf]  ;;  %v13430_v24 = vand.u32 31, %v13429_v17  ;;  %v13435_v17 = vld [vmem:[#allocation29_spill] sm:$0xff] }
 0x781   : > { %4364 = vrot.lane.b32.xlu0 %v11200_v13, %s9070_s26  ;;  %v13419_v38 = vsel %vm11313_vm3, 4294967295, %v13418_v38  ;;  %v4866_v23 = vpack.c.bf16 %v4850_v14, %v4842_v50  ;;  %v8381_v6 = vunpack.i.h.bf16 %v11321_v62  ;;  %v3947_v56 = vsel %vm11313_vm3, %v11331_v25, 0.0 }
 0x782   : > { %5449 = vmatpush1.bf16.msra.mxu0 %v11068_v4  ;;  %v4966_v4 = vrot.slane %v4930_v58, 4  ;;  %vm11372_vm6 = vcmp.ne.s32.totalorder %v13430_v24, 31  ;;  %v11383_v58 = vpack.i.bf16 %v10912_v16, %v10931_v43  ;;  %v13434_v11 = vunpack.i.h.bf16 %v13422_v55  ;;  %v11411_v24 = vld [vmem:[#allocation2 + $0x88] sm:$0xff] }
 0x783   : > { %4522 = vrot.lane.b32.xlu1 %v10912_v16, %s13318_s23  ;;  %4882 = vst [vmem:[#allocation3 + $0x250] sm:$0xff] %v4866_v23  ;;  %v11343_v2 = vsel %vm13424_vm9, %v13423_v48, %v8381_v6  ;;  %5450 = vmatprep.subr.bf16.mxu0 %v11179_v10  ;;  %v13426_v23 = vld [vmem:[#allocation28_spill] sm:$0xff]  ;;  %v13432_v9 = vsel %vm11372_vm6, 4294967295, %v13431_v9  ;;  %v13433_v10 = vld [vmem:[#allocation25_spill] sm:$0xff]  ;;  %vm13437_vm9 = vcmask 769024   ;;  %vm13440_vm0 = vcmask 506880  }
 0x784   : > { %v3955_v50 = vsel %vm11313_vm3, %v11343_v2, 0.0  ;;  %v11353_v14 = vpop.permute.xlu0 %8383  ;;  %v11355_v1 = vpop.permute.xlu1 %8418  ;;  %v13427_v48 = vunpack.i.h.bf16 %v13426_v23  ;;  %v13438_v23 = vunpack.i.h.bf16 %v11004_v8  ;;  %v13443_v16 = vunpack.i.h.bf16 %v11002_v37 }
 0x785   : > { %8543 = vrot.lane.b32.xlu0 %v8542_v19, %s13359_s27  ;;  %v4979_v19 = vsel %vm13228_vm10, %v11227_v54, %v13425_v21  ;;  %v3971_v29 = vpack.c.bf16 %v3955_v50, %v3947_v56  ;;  %v13229_v57 = vunpack.i.h.bf16 %v11353_v14  ;;  %v11379_v54 = vpack.i.bf16 %v13433_v10, %v11242_v60 }
 0x786   : > { %v4111_v53 = vsel %vm13227_vm4, %v13427_v48, %v13230_v36  ;;  %v11386_v56 = vsel %vm13228_vm10, %v5389_v42, 0  ;;  %v13436_v50 = vunpack.i.h.bf16 %v13435_v17  ;;  %v13441_v48 = vunpack.i.l.bf16 %v11321_v62  ;;  %5451 = vmatpush1.bf16.msra.mxu0 %v11113_v47 }
 0x787   : > { %5014 = vrot.lane.b32.xlu1 %v4979_v19, %s9075_s28  ;;  %v13439_v19 = vunpack.i.h.bf16 %v10923_v22  ;;  %vm13442_vm4 = vcmask 1031168   ;;  %3987 = vst [vmem:[#allocation3 + $0xd0] sm:$0xff] %v3971_v29  ;;  %vm13444_vm10 = vcmask 785408   ;;  %v4159_v22 = vsel %vm10471_vm15, %v4111_v53, 0.0  ;;  %v5342_v29 = vld [vmem:[#allocation3 + $0x1c8] sm:$0xff] }
 0x788   : > { %v4526_v21 = vsel %vm13437_vm9, %v13436_v50, %v13434_v11  ;;  %v11403_v43 = vsel %vm13442_vm4, %v8301_v7, %v13441_v48  ;;  %v4119_v42 = vsel %vm13444_vm10, %v13443_v16, %v13229_v57  ;;  %v11417_v11 = vpop.permute.xlu0 %8388  ;;  %v11419_v7 = vpop.permute.xlu1 %8433  ;;  %v13445_v37 = vrot.slane %v11200_v13, 4  ;;  %5452 = vmatprep.subr.bf16.mxu0 %v5342_v29  ;;  %vm13450_vm4 = vmmov %vm13437_vm9 }
 0x789   : > { %v11398_v60 = vsel %vm13440_vm0, %v13439_v19, %v13438_v23  ;;  %8553 = vrot.lane.b32.xlu0 %v8552_v39, %s13358_s25  ;;  %v4167_v10 = vsel %vm10471_vm15, %v4119_v42, 0.0  ;;  %vm13446_vm0 = vcmask 1043456   ;;  %v13232_v53 = vunpack.i.h.bf16 %v11417_v11  ;;  %v13447_v19 = vld [vmem:[#allocation26_spill] sm:$0xff]  ;;  %v5341_v39 = vld [vmem:[#allocation3 + $0x1c0] sm:$0xff] }
 0x78a   : > { %v4983_v17 = vsel %vm13446_vm0, %v4966_v4, %v13445_v37  ;;  %v11427_v50 = vpack.c.bf16 %v4167_v10, %v4159_v22  ;;  %v8436_v23 = vunpack.i.h.bf16 %v11419_v7  ;;  %v11433_v48 = vcombine.low %v13447_v19, %v13447_v19  ;;  %5453 = vmatpush1.bf16.msra.mxu0 %v5341_v39 }
 0x78b   : > { %v4574_v47 = vsel %vm11313_vm3, %v4526_v21, 0.0  ;;  %v3948_v13 = vsel %vm11372_vm6, %v11403_v43, 0.0  ;;  %v13231_v16 = vunpack.i.l.bf16 %v11419_v7  ;;  %4366 = vrot.lane.b32.xlu1 %v10936_v5, %s9070_s26  ;;  %v13234_v42 = vunpack.i.l.bf16 %v11353_v14  ;;  %v13451_v21 = vld [vmem:[#allocation6_spill] sm:$0xff]  ;;  %5454 = vmatprep.subr.bf16.mxu0 %v11166_v45 }
 0x78c   : > { %13448 = vst [vmem:[#allocation31_spill] sm:$0xff] %v11433_v48  ;;  %v13233_v22 = vrot.slane %v11427_v50, 4  ;;  %v13449_v10 = vunpack.i.h.bf16 %v11065_v3  ;;  %v13452_v37 = vunpack.i.h.bf16 %v13451_v21  ;;  %vm13453_vm10 = vcmask 1031168   ;;  %v11468_v21 = vpop.permute.xlu1 %8438 }
 0x78d   : > { %5000 = vrot.lane.b32.xlu0 %v4966_v4, %s9075_s28  ;;  %v13237_v5 = vunpack.i.l.bf16 %v11417_v11  ;;  %vm13454_vm9 = vmmov %vm13453_vm10  ;;  %v13236_v39 = vunpack.i.l.bf16 %v11468_v21  ;;  %vm13457_vm0 = vcmask 785408  }
 0x78e   : > { %v4534_v29 = vsel %vm13450_vm4, %v13449_v10, %v13232_v53  ;;  %v3915_v19 = vsel %vm13453_vm10, %v13452_v37, %v8436_v23  ;;  %v11464_v3 = vsel %vm13454_vm9, %v8381_v6, %v13231_v16  ;;  %v11466_v10 = vpop.permute.xlu0 %8398  ;;  %4255 = vst [vmem:[#allocation3 + $0x110] sm:$0xf0] %v13233_v22  ;;  %v13239_v6 = vunpack.i.l.bf16 %v11288_v32  ;;  %vm13464_vm9 = vmmov %vm13457_vm0  ;;  %5455 = vmatpush1.bf16.msra.mxu0 %v11162_v41 }
 0x78f   : > { %v4582_v57 = vsel %vm11313_vm3, %v4534_v29, 0.0  ;;  %v3963_v36 = vsel %vm11313_vm3, %v3915_v19, 0.0  ;;  %13455 = vst [vmem:[#allocation28_spill] sm:$0xff] %v11466_v10  ;;  %v3956_v29 = vsel %vm11372_vm6, %v11464_v3, 0.0  ;;  %v13235_v19 = vunpack.i.h.bf16 %v11466_v10  ;;  %8548 = vrot.lane.b32.xlu1 %v11379_v54, %s13358_s25 }
 0x790   : > { %v11472_v4 = vpack.c.bf16 %v4582_v57, %v4574_v47  ;;  %v3979_v37 = vpack.c.bf16 %v3963_v36, %v3963_v36  ;;  %v3972_v16 = vpack.c.bf16 %v3956_v29, %v3948_v13  ;;  %v8441_v53 = vunpack.i.h.bf16 %v11468_v21 }
 0x791   : > { %v13238_v57 = vunpack.i.l.bf16 %v11323_v59  ;;  %v13456_v36 = vunpack.i.h.bf16 %v10870_v20  ;;  %v13458_v13 = vunpack.i.h.bf16 %v11036_v31  ;;  %vm13459_vm4 = vcmask 506880   ;;  %5018 = vrot.lane.b32.xlu0 %v4983_v17, %s9075_s28  ;;  %v11514_v17 = vpop.permute.xlu1 %8443 }
 0x792   : > { %v13240_v45 = vrot.slane %v11472_v4, 4  ;;  %3995 = vst [vmem:[#allocation3 + $0x110] sm:$0xf] %v3979_v37  ;;  %v13460_v22 = vunpack.i.h.bf16 %v13422_v55  ;;  %vm13461_vm10 = vcmask 769024   ;;  %3988 = vst [vmem:[#allocation3 + $0xd8] sm:$0xff] %v3972_v16  ;;  %v13465_v31 = vunpack.i.h.bf16 %v11353_v14 }
 0x793   : > { %v4112_v47 = vsel %vm13457_vm0, %v13456_v36, %v13234_v42  ;;  %v11496_v29 = vsel %vm13459_vm4, %v13458_v13, %v13235_v19  ;;  %v13462_v36 = vld [vmem:[#allocation8_spill] sm:$0xff]  ;;  %v11512_v19 = vpop.permute.xlu0 %8403  ;;  %v13241_v55 = vunpack.i.l.bf16 %v11466_v10  ;;  %vm13466_vm4 = vmmov %vm13457_vm0  ;;  %8558 = vrot.lane.b32.xlu1 %v11383_v58, %s13358_s25 }
 0x794   : > { %v4527_v20 = vsel %vm13461_vm10, %v13460_v22, %v13237_v5  ;;  %v13463_v42 = vunpack.i.h.bf16 %v13462_v36  ;;  %v4120_v13 = vsel %vm13457_vm0, %v13465_v31, %v13236_v39  ;;  %4670 = vst [vmem:[#allocation3 + $0x1d0] sm:$0xf0] %v13240_v45  ;;  %v8991_v22 = vpack.c.bf16 %v11174_v63, %v11142_v61  ;;  %vm13468_vm10 = vmpackc.low %vm10457_vm14, %vm10457_vm14 }
 0x795   : > { %v4160_v31 = vsel %vm10477_vm1, %v4112_v47, 0.0  ;;  %8563 = vrot.lane.b32.xlu0 %v11379_v54, %s13359_s27  ;;  %v13470_v47 = vunpack.i.h.bf16 %v10964_v18  ;;  %v8994_v54 = vpack.c.bf16 %v11169_v44, %v11148_v51  ;;  %vm13474_vm0 = vmpackc.low %vm10178_vm7, %vm10178_vm7  ;;  %v5366_v18 = vld [vmem:[#allocation3 + $0x288] sm:$0xff]  ;;  %v13478_v44 = vld [vmem:[#allocation16_spill] sm:$0xff]  ;;  %vm13601_vm14 = vcmask 1031168  }
 0x796   : > { %v4127_v37 = vsel %vm13464_vm9, %v13463_v42, %v8441_v53  ;;  %v4128_v42 = vsel %vm13466_vm4, %v8441_v53, %v13238_v57  ;;  %8992 = vmatprep.subr.msk.bf16.mxu0 %vm13468_vm10, %v8991_v22  ;;  %v13246_v53 = vunpack.i.l.bf16 %v11512_v19  ;;  %v8446_v57 = vunpack.i.h.bf16 %v11514_v17 }
 0x797   : > { %v4175_v16 = vsel %vm10471_vm15, %v4127_v37, 0.0  ;;  %v4168_v37 = vsel %vm10477_vm1, %v4120_v13, 0.0  ;;  %v4176_v5 = vsel %vm10477_vm1, %v4128_v42, 0.0  ;;  %vm13471_vm9 = vcmask 523264   ;;  %v11554_v22 = vpop.permute.xlu0 %8413  ;;  %8995 = vmatpush1.bf16.msk.msra.mxu0 %vm13474_vm0, %v8994_v54  ;;  %5002 = vrot.lane.b32.xlu1 %v10893_v40, %s9075_s28  ;;  %v5365_v40 = vld [vmem:[#allocation3 + $0x280] sm:$0xff] }
 0x798   : > { %v4191_v39 = vpack.c.bf16 %v4175_v16, %v4175_v16  ;;  %v4184_v61 = vpack.c.bf16 %v4168_v37, %v4160_v31  ;;  %v4192_v63 = vpack.c.bf16 %v4176_v5, %v4176_v5  ;;  %v11549_v13 = vsel %vm13471_vm9, %v13470_v47, %v13239_v6  ;;  %v11556_v31 = vpop.permute.xlu1 %8453  ;;  %5458 = vmatprep.subr.bf16.mxu0 %v5366_v18 }
 0x799   : > { %v4575_v16 = vsel %vm11372_vm6, %v4527_v20, 0.0  ;;  %13472 = vst [vmem:[#allocation30_spill] sm:$0xff] %v11556_v31  ;;  %vm13476_vm4 = vcmask 506880   ;;  %vm13477_vm10 = vcmask 1031168   ;;  %v13479_v45 = vand.u32 31, %v13478_v44  ;;  %8573 = vrot.lane.b32.xlu0 %v11383_v58, %s13359_s27 }
 0x79a   : > { %v4225_v42 = vrot.slane %v4191_v39, 4  ;;  %v13475_v39 = vunpack.i.h.bf16 %v11004_v8  ;;  %v4216_v47 = vrot.slane %v4184_v61, 4  ;;  %v4227_v6 = vrot.slane %v4192_v63, 4  ;;  %v13484_v63 = vld [vmem:[#allocation9_spill] sm:$0xff] }
 0x79b   : > { %v3916_v51 = vsel %vm13477_vm10, %v8436_v23, %v13246_v53  ;;  %vm11579_vm9 = vcmp.ne.s32.totalorder %v13479_v45, 31  ;;  %v13480_v54 = vmov 0  ;;  %v13482_v5 = vrot.slane %v11427_v50, 4  ;;  %5459 = vmatpush1.bf16.msra.mxu0 %v5365_v40  ;;  %5020 = vrot.lane.b32.xlu1 %v11159_v46, %s9075_s28 }
 0x79c   : > { %v11570_v20 = vsel %vm13476_vm4, %v13475_v39, %v13241_v55  ;;  %v13481_v54 = vsel %vm11579_vm9, 4294967295, %v13480_v54  ;;  %vm13483_vm0 = vcmask 1043456   ;;  %v3964_v61 = vsel %vm11372_vm6, %v3916_v51, 0.0  ;;  %4256 = vst [vmem:[#allocation3 + $0x118] sm:$0xf0] %v4216_v47  ;;  %5460 = vmatprep.subr.bf16.mxu0 %v11270_v26 }
 0x79d   : > { %v11586_v39 = vsel %vm13483_vm0, %v13482_v5, %v4225_v42  ;;  %v13485_v55 = vunpack.i.h.bf16 %v13484_v63  ;;  %vm13486_vm4 = vcmask 769024   ;;  %v13487_v23 = vunpack.i.l.bf16 %v11514_v17  ;;  %vm13490_vm7 = vmmov %vm13483_vm0  ;;  %v13491_v42 = vld [vmem:[#allocation11_spill] sm:$0xff] }
 0x79e   : > { %v13488_v45 = vunpack.i.h.bf16 %v11417_v11  ;;  %vm13489_vm10 = vmmov %vm13486_vm4  ;;  %v11601_v50 = vsel %vm13490_vm7, %v4216_v47, %v4227_v6  ;;  %v13492_v5 = vand.u32 31, %v13491_v42  ;;  %v13250_v6 = vunpack.i.h.bf16 %v11323_v59  ;;  %v11617_v42 = vpop.permute.xlu0 %8423 }
 0x79f   : > { %v4542_v37 = vsel %vm13486_vm4, %v13485_v55, %v8446_v57  ;;  %v3980_v55 = vpack.c.bf16 %v3964_v61, %v3964_v61  ;;  %v8456_v61 = vunpack.i.h.bf16 %v11556_v31  ;;  %vm13495_vm7 = vmmov %vm13486_vm4  ;;  %vm13496_vm4 = vcmask 506880   ;;  %5461 = vmatpush1.bf16.msra.mxu0 %v11240_v34 }
 0x7a0   : > { %v4535_v44 = vsel %vm13489_vm10, %v13488_v45, %v13487_v23  ;;  %vm11605_vm0 = vcmp.ne.s32.totalorder %v13492_v5, 31  ;;  %v4590_v51 = vsel %vm11313_vm3, %v4542_v37, 0.0  ;;  %v13245_v45 = vunpack.i.l.bf16 %v11554_v22  ;;  %v11619_v5 = vpop.permute.xlu1 %8463  ;;  %vm13498_vm10 = vmmov %vm13496_vm4 }
 0x7a1   : > { %v4583_v63 = vsel %vm11372_vm6, %v4535_v44, 0.0  ;;  %v4606_v47 = vpack.c.bf16 %v4590_v51, %v4590_v51  ;;  %3996 = vst [vmem:[#allocation3 + $0x118] sm:$0xf] %v3980_v55  ;;  %v13247_v44 = vunpack.i.l.bf16 %v11556_v31  ;;  %v5199_v40 = vsel %vm13496_vm4, %v8456_v61, %v11237_v33 }
 0x7a2   : > { %v4599_v23 = vpack.c.bf16 %v4583_v63, %v4575_v16  ;;  %v4543_v63 = vsel %vm13495_vm7, %v8446_v57, %v13245_v45  ;;  %v13497_v26 = vunpack.i.h.bf16 %v11466_v10  ;;  %v13499_v57 = vrot.slane %v11472_v4, 4  ;;  %v11653_v53 = vpop.permute.xlu0 %8428 }
 0x7a3   : > { %v4640_v51 = vrot.slane %v4606_v47, 4  ;;  %v4591_v55 = vsel %vm11372_vm6, %v4543_v63, 0.0  ;;  %vm13500_vm7 = vcmask 1043456   ;;  %v5247_v63 = vsel %vm11372_vm6, %v5199_v40, 0.0 }
 0x7a4   : > { %v4631_v16 = vrot.slane %v4599_v23, 4  ;;  %v11640_v47 = vsel %vm13498_vm10, %v13497_v26, %v13247_v44  ;;  %v4607_v46 = vpack.c.bf16 %v4591_v55, %v4591_v55  ;;  %v13501_v37 = vunpack.i.l.bf16 %v11004_v8  ;;  %v11655_v26 = vpop.permute.xlu1 %8473  ;;  %v13502_v55 = vld [vmem:[#allocation32_spill] sm:$0xff]  ;;  %vm13504_vm10 = vmpackc.low %vm10418_vm13, %vm10418_vm13 }
 0x7a5   : > { %v11646_v45 = vsel %vm13500_vm7, %v13499_v57, %v4640_v51  ;;  %v5263_v44 = vpack.c.bf16 %v5247_v63, %v5247_v63  ;;  %v8466_v51 = vunpack.i.h.bf16 %v11619_v5  ;;  %v13503_v57 = vld [vmem:[#allocation35_spill] sm:$0xff]  ;;  %v13255_v8 = vunpack.i.h.bf16 %v11554_v22 }
 0x7a6   : > { %4671 = vst [vmem:[#allocation3 + $0x1d8] sm:$0xf0] %v4631_v16  ;;  %v5198_v58 = vsel %vm13496_vm4, %v13501_v37, %v8456_v61  ;;  %v8997_v23 = vpack.c.bf16 %v13503_v57, %v13502_v55  ;;  %v4642_v37 = vrot.slane %v4607_v46, 4  ;;  %v13505_v34 = vpack.i.bf16 %v11411_v24, %v11299_v12  ;;  %v5397_v12 = vld [vmem:[%s13131_s10] sm:$0xff] }
 0x7a7   : > { %v5246_v4 = vsel %vm11313_vm3, %v5198_v58, 0.0  ;;  %v13506_v58 = vunpack.i.l.bf16 %v11353_v14  ;;  %vm13507_vm7 = vcmask 785408   ;;  %5279 = vst [vmem:[#allocation3 + $0x358] sm:$0xf] %v5263_v44  ;;  %v13508_v63 = vunpack.i.l.bf16 %v11512_v19 }
 0x7a8   : > { %8998 = vmatprep.subr.msk.bf16.mxu0 %vm13504_vm10, %v8997_v23  ;;  %v5262_v61 = vpack.c.bf16 %v5246_v4, %v5246_v4  ;;  %8568 = vrot.lane.b32.xlu1 %v13505_v34, %s13359_s27  ;;  %vm13509_vm4 = vcmask 1031168   ;;  %v13510_v46 = vunpack.i.l.bf16 %v11617_v42  ;;  %vm13512_vm13 = vcmask 1043456   ;;  %v11698_v34 = vpop.permute.xlu0 %8448 }
 0x7a9   : > { %v11678_v40 = vsel %vm13507_vm7, %v13506_v58, %v13250_v6  ;;  %v3917_v23 = vsel %vm13509_vm4, %v13508_v63, %v8466_v51  ;;  %vm13511_vm10 = vmmov %vm13509_vm4  ;;  %v11691_v14 = vsel %vm13512_vm13, %v4631_v16, %v4642_v37  ;;  %v8476_v57 = vunpack.i.h.bf16 %v11655_v26  ;;  %v13513_v58 = vld [vmem:[#allocation33_spill] sm:$0xff]  ;;  %v13514_v63 = vld [vmem:[#allocation34_spill] sm:$0xff] }
 0x7aa   : > { %v3918_v4 = vsel %vm13511_vm10, %v8466_v51, %v13510_v46  ;;  %5278 = vst [vmem:[#allocation3 + $0x350] sm:$0xf] %v5262_v61  ;;  %v3965_v24 = vsel %vm11605_vm0, %v3917_v23, 0.0  ;;  %v11700_v51 = vpop.permute.xlu1 %8478  ;;  %v9000_v46 = vpack.c.bf16 %v13514_v63, %v13513_v58  ;;  %vm13515_vm13 = vmpackc.low %vm10529_vm11, %vm10529_vm11  ;;  %v5390_v16 = vld [vmem:[#allocation3 + $0x348] sm:$0xf]  ;;  %v13516_v37 = vunpack.i.h.bf16 %v11512_v19 }
 0x7ab   : > { %v3966_v44 = vsel %vm11579_vm9, %v3918_v4, 0.0  ;;  %v13517_v61 = vunpack.i.l.bf16 %v11321_v62  ;;  %vm13518_vm7 = vmmov %vm13509_vm4  ;;  %v3981_v4 = vpack.c.bf16 %v3965_v24, %v3965_v24  ;;  %v8451_v55 = vunpack.i.h.bf16 %v11698_v34 }
 0x7ac   : > { %9001 = vmatpush1.bf16.msk.msra.mxu0 %vm13515_vm13, %v9000_v46  ;;  %v3982_v6 = vpack.c.bf16 %v3966_v44, %v3966_v44  ;;  %vm13519_vm4 = vcmask 1043456   ;;  %v13521_v46 = vunpack.i.l.bf16 %v11417_v11  ;;  %vm13522_vm10 = vcmask 769024   ;;  %5400 = vperm.xlu1 %8156, %v5397_v12  }
 0x7ad   : > { %v11714_v23 = vsel %vm13518_vm7, %v13517_v61, %v13516_v37  ;;  %7859 = vmatprep.subr.msk.bf16.mxu0 %vm13519_vm4, %v5390_v16  ;;  %v13256_v62 = vunpack.i.l.bf16 %v11698_v34  ;;  %3997 = vst [vmem:[#allocation3 + $0x120] sm:$0xf] %v3981_v4  ;;  %v13523_v24 = vunpack.i.l.bf16 %v11653_v53  ;;  %vm13524_vm13 = vcmask 785408   ;;  %v13525_v16 = vld [vmem:[#allocation20_spill] sm:$0xff] }
 0x7ae   : > { %v4528_v35 = vsel %vm13522_vm10, %v13521_v46, %v13255_v8  ;;  %3998 = vst [vmem:[#allocation3 + $0x128] sm:$0xf] %v3982_v6  ;;  %v13526_v37 = vunpack.i.h.bf16 %v13525_v16  ;;  %vm13527_vm7 = vcmask 523264   ;;  %v13528_v63 = vunpack.i.l.bf16 %v11355_v1  ;;  %vm13531_vm10 = vmmov %vm13524_vm13  ;;  %v13539_v8 = vld [vmem:[#allocation27_spill] sm:$0xff] }
 0x7af   : > { %v4130_v44 = vsel %vm13524_vm13, %v8476_v57, %v13523_v24  ;;  %vm13529_vm4 = vmmov %vm13527_vm7  ;;  %v3949_v12 = vsel %vm11605_vm0, %v11714_v23, 0.0  ;;  %v13530_v6 = vunpack.i.l.bf16 %v11323_v59  ;;  %v13532_v24 = vunpack.i.h.bf16 %v11288_v32 }
 0x7b0   : > { %v4810_v61 = vsel %vm13527_vm7, %v13526_v37, %v8451_v55  ;;  %v4811_v30 = vsel %vm13529_vm4, %v8451_v55, %v13528_v63  ;;  %vm13533_vm13 = vmmov %vm13529_vm4  ;;  %v11752_v55 = vpop.permute.xlu0 %8458  ;;  %v11754_v63 = vpop.permute.xlu1 %4340  ;;  %5465 = vmatpush1.bf16.msra.mxu0 %v11386_v56  ;;  %v4576_v37 = vsel %vm11605_vm0, %v4528_v35, 0.0  ;;  %v13535_v56 = vunpack.i.h.bf16 %v11700_v51 }
 0x7b1   : > { %v4129_v4 = vsel %vm13531_vm10, %v13530_v6, %v8476_v57  ;;  %v4858_v46 = vsel %vm10471_vm15, %v4810_v61, 0.0  ;;  %v11750_v16 = vsel %vm13533_vm13, %v13532_v24, %v13256_v62  ;;  %v4859_v61 = vsel %vm10477_vm1, %v4811_v30, 0.0  ;;  %v8824_v6 = vld [vmem:[#allocation3 + $0x18] sm:$0xff] }
 0x7b2   : > { %v4874_v57 = vpack.c.bf16 %v4858_v46, %v4858_v46  ;;  %5479 = vmatprep.subr.bf16.mxu0 %v8824_v6  ;;  %v11764_v24 = vsel %vm10509_vm2, %v4130_v44, 0.0  ;;  %v4875_v62 = vpack.c.bf16 %v4859_v61, %v4859_v61  ;;  %v4177_v15 = vsel %vm10488_vm5, %v4129_v4, 0.0 }
 0x7b3   : > { %v13536_v35 = vunpack.i.l.bf16 %v11514_v17  ;;  %vm13537_vm7 = vcmask 769024   ;;  %v8461_v30 = vunpack.i.h.bf16 %v11752_v55  ;;  %v13262_v6 = vunpack.i.l.bf16 %v11752_v55  ;;  %5471 = vmatmul.mubr.bf16.vlgmr.msra.gmra.mrb[20].mxu0 %v11433_v48 }
 0x7b4   : > { %4890 = vst [vmem:[#allocation3 + $0x290] sm:$0xf] %v4874_v57  ;;  %4891 = vst [vmem:[#allocation3 + $0x298] sm:$0xf] %v4875_v62  ;;  %vm13538_vm4 = vcmask 777216   ;;  %v11785_v57 = vpop.permute.xlu0 %8468  ;;  %vm13540_vm10 = vcmask 719872   ;;  %v4194_v62 = vpack.c.bf16 %v11764_v24, %v11764_v24  ;;  %v13543_v61 = vunpack.i.l.bf16 %v11419_v7 }
 0x7b5   : > { %v4536_v46 = vsel %vm13537_vm7, %v13536_v35, %v13535_v56  ;;  %v11783_v17 = vsel %vm13538_vm4, %v11150_v27, %v11754_v63  ;;  %v11787_v56 = vpop.permute.xlu1 %3697  ;;  %v8825_v35 = vld [vmem:[#allocation3 + $0x10] sm:$0xff]  ;;  %7862 = vmatprep.mubr.msk.bf16.mxu0 %vm13540_vm10, %v13539_v8  ;;  %vm13542_vm13 = vcmask 1031168   ;;  %v13545_v33 = vunpack.i.l.bf16 %v11619_v5 }
 0x7b6   : > { %v4584_v4 = vsel %vm11605_vm0, %v4536_v46, 0.0  ;;  %5480 = vmatpush1.bf16.msra.mxu0 %v8825_v35  ;;  %v13541_v46 = vunpack.i.h.bf16 %v11512_v19  ;;  %vm13544_vm7 = vmmov %vm13542_vm13  ;;  %v4193_v35 = vpack.c.bf16 %v4177_v15, %v4177_v15  ;;  %v8471_v15 = vunpack.i.h.bf16 %v11785_v57 }
 0x7b7   : > { %v4600_v44 = vpack.c.bf16 %v4584_v4, %v4576_v37  ;;  %v11803_v36 = vsel %vm13544_vm7, %v13543_v61, %v8461_v30  ;;  %vm13546_vm4 = vmmov %vm13544_vm7  ;;  %v13547_v4 = vunpack.i.l.bf16 %v11700_v51  ;;  %vm13549_vm10 = vcmask 769024  }
 0x7b8   : > { %v11798_v27 = vsel %vm13542_vm13, %v13541_v46, %v13262_v6  ;;  %v11808_v10 = vsel %vm13546_vm4, %v8461_v30, %v13545_v33  ;;  %v3957_v19 = vsel %vm11605_vm0, %v11803_v36, 0.0  ;;  %v13548_v33 = vunpack.i.h.bf16 %v11554_v22  ;;  %v11829_v31 = vpop.permute.xlu0 %8483 }
 0x7b9   : > { %v3950_v37 = vsel %vm11579_vm9, %v11798_v27, 0.0  ;;  %v4632_v24 = vrot.slane %v4600_v44, 4  ;;  %v3958_v7 = vsel %vm11579_vm9, %v11808_v10, 0.0  ;;  %v3973_v61 = vpack.c.bf16 %v3957_v19, %v3949_v12  ;;  %v11831_v8 = vpop.permute.xlu1 %4994 }
 0x7ba   : > { %v4529_v30 = vsel %vm13549_vm10, %v13548_v33, %v13547_v4  ;;  %v3974_v46 = vpack.c.bf16 %v3958_v7, %v3950_v37  ;;  %v13267_v6 = vunpack.i.l.bf16 %v11785_v57  ;;  %vm13550_vm13 = vcmask 1039360  }
 0x7bb   : > { %v3728_v44 = vsel %vm13550_vm13, %v11206_v0, %v11787_v56  ;;  %4672 = vst [vmem:[#allocation3 + $0x1e0] sm:$0xf0] %v4632_v24  ;;  %3989 = vst [vmem:[#allocation3 + $0xe0] sm:$0xff] %v3973_v61  ;;  %v13551_v12 = vunpack.i.l.bf16 %v11468_v21  ;;  %vm13552_vm7 = vcmask 785408   ;;  %v13553_v48 = vunpack.i.l.bf16 %v11655_v26 }
 0x7bc   : > { %vm13554_vm4 = vmmov %vm13552_vm7  ;;  %3760 = vst [vmem:[#allocation3 + $0x58] sm:$0xf0] %v3728_v44  ;;  %v8486_v7 = vunpack.i.h.bf16 %v11829_v31  ;;  %v13266_v4 = vunpack.i.l.bf16 %v11829_v31  ;;  %v4229_v0 = vrot.slane %v4193_v35, 4  ;;  %v13555_v33 = vunpack.i.h.bf16 %v11323_v59 }
 0x7bd   : > { %v4121_v19 = vsel %vm13552_vm7, %v13551_v12, %v8471_v15  ;;  %v4122_v37 = vsel %vm13554_vm4, %v8471_v15, %v13553_v48  ;;  %3990 = vst [vmem:[#allocation3 + $0xe8] sm:$0xff] %v3974_v46  ;;  %vm13556_vm10 = vmmov %vm13554_vm4  ;;  %v4577_v48 = vsel %vm11579_vm9, %v4529_v30, 0.0  ;;  %v13557_v35 = vsel %vm10488_vm5, %v11678_v40, 0.0  ;;  %v11871_v40 = vpop.permute.xlu0 %3705 }
 0x7be   : > { %v4114_v61 = vsel %vm13556_vm10, %v13555_v33, %v13267_v6  ;;  %v4169_v21 = vsel %vm10488_vm5, %v4121_v19, 0.0  ;;  %v4170_v12 = vsel %vm10509_vm2, %v4122_v37, 0.0  ;;  %v13558_v59 = vunpack.i.l.bf16 %v11554_v22 }
 0x7bf   : > { %v4162_v15 = vsel %vm10509_vm2, %v4114_v61, 0.0  ;;  %v4185_v46 = vpack.c.bf16 %v4169_v21, %v13557_v35  ;;  %vm13559_vm13 = vcmask 769024   ;;  %v13560_v30 = vunpack.i.h.bf16 %v11700_v51  ;;  %v11873_v21 = vpop.permute.xlu1 %3715 }
 0x7c0   : > { %v4544_v44 = vsel %vm13559_vm13, %v13558_v59, %v8486_v7  ;;  %v4186_v33 = vpack.c.bf16 %v4170_v12, %v4162_v15  ;;  %vm13561_vm7 = vmmov %vm13559_vm13  ;;  %vm13562_vm4 = vcmask 515072   ;;  %vm13563_vm10 = vcmask 1039360  }
 0x7c1   : > { %v4592_v19 = vsel %vm11605_vm0, %v4544_v44, 0.0  ;;  %v4537_v37 = vsel %vm13561_vm7, %v13560_v30, %v13266_v4  ;;  %v5026_v61 = vsel %vm13562_vm4, %v11225_v49, %v11831_v8  ;;  %v4217_v22 = vrot.slane %v4185_v46, 4 }
 0x7c2   : > { %v4608_v35 = vpack.c.bf16 %v4592_v19, %v4592_v19  ;;  %v4585_v12 = vsel %vm11579_vm9, %v4537_v37, 0.0  ;;  %5058 = vst [vmem:[#allocation3 + $0x298] sm:$0xf0] %v5026_v61  ;;  %v3736_v15 = vsel %vm13563_vm10, %v11250_v28, %v11873_v21  ;;  %v4231_v59 = vrot.slane %v4194_v62, 4  ;;  %v11886_v61 = vpop.permute.xlu0 %4344  ;;  %v5295_v62 = vld [vmem:[#allocation3 + $0x50] sm:$0xff] }
 0x7c3   : > { %v4218_v44 = vrot.slane %v4186_v33, 4  ;;  %v4601_v30 = vpack.c.bf16 %v4585_v12, %v4577_v48  ;;  %3768 = vst [vmem:[#allocation3 + $0x98] sm:$0xff] %v3736_v15  ;;  %vm13564_vm13 = vcmask 1043456   ;;  %4257 = vst [vmem:[#allocation3 + $0x120] sm:$0xf0] %v4217_v22  ;;  %v5296_v37 = vld [vmem:[#allocation3 + $0x58] sm:$0xff]  ;;  %v4343_v6 = vpop.permute.xlu1 %4342  ;;  %v9003_v12 = vpack.c.bf16 %v11464_v3, %v11403_v43 }
 0x7c4   : > { %v11881_v49 = vsel %vm13564_vm13, %v4217_v22, %v4229_v0  ;;  %v4644_v4 = vrot.slane %v4608_v35, 4  ;;  %vm13565_vm7 = vmmov %vm13564_vm13  ;;  %5481 = vmatprep.subr.bf16.mxu0 %v5296_v37  ;;  %vm13567_vm10 = vcmask 777216   ;;  %v13569_v35 = vld [vmem:[#allocation22_spill] sm:$0xff]  ;;  %v13577_v43 = vunpack.i.l.bf16 %v11752_v55  ;;  %v5320_v55 = vld [vmem:[#allocation3 + $0x118] sm:$0xff] }
 0x7c5   : > { %v11884_v46 = vsel %vm13565_vm7, %v4218_v44, %v4231_v59  ;;  %4258 = vst [vmem:[#allocation3 + $0x128] sm:$0xf0] %v4218_v44  ;;  %v4633_v19 = vrot.slane %v4601_v30, 4  ;;  %vm13566_vm4 = vmmov %vm13565_vm7  ;;  %v11893_v0 = vsel %vm13567_vm10, %v11754_v63, %v4343_v6  ;;  %5482 = vmatpush1.bf16.msra.mxu0 %v5295_v62  ;;  %v8426_v63 = vunpack.i.h.bf16 %v11617_v42 }
 0x7c6   : > { %v11889_v28 = vsel %vm13566_vm4, %v4632_v24, %v4644_v4  ;;  %vm13568_vm13 = vmmov %vm13567_vm10  ;;  %5483 = vmatprep.subr.bf16.mxu0 %v3736_v15  ;;  %v4361_v33 = vpop.permute.xlu0 %4360  ;;  %vm13571_vm4 = vcmask 769024   ;;  %v13574_v59 = vmov 0  ;;  %vm13590_vm11 = vcmask 1031168  }
 0x7c7   : > { %v11897_v48 = vsel %vm13568_vm13, %v4343_v6, %v11886_v61  ;;  %4673 = vst [vmem:[#allocation3 + $0x1e8] sm:$0xf0] %v4633_v19  ;;  %v11899_v22 = vpop.permute.xlu1 %8488  ;;  %vm13570_vm7 = vmmov %vm13567_vm10 }
 0x7c8   : > { %v4380_v24 = vsel %vm13570_vm7, %v13569_v35, %v4361_v33  ;;  %v13269_v4 = vunpack.i.l.bf16 %v11899_v22  ;;  %vm13268_vm10 = vmpackc.low %vm11372_vm6, %vm11372_vm6  ;;  %vm13578_vm7 = vcmask 1031168  }
 0x7c9   : > { %4412 = vst [vmem:[#allocation3 + $0x1e0] sm:$0xf] %v4380_v24  ;;  %5484 = vmatpush1.bf16.msra.mxu0 %v11267_v52  ;;  %v13572_v52 = vld [vmem:[#allocation17_spill] sm:$0xff]  ;;  %v11932_v3 = vsel %vm13578_vm7, %v13577_v43, %v8426_v63  ;;  %v13583_v43 = vunpack.i.l.bf16 %v11785_v57 }
 0x7ca   : > { %v4545_v6 = vsel %vm13571_vm4, %v8486_v7, %v13269_v4  ;;  %9004 = vmatprep.subr.msk.bf16.mxu0 %vm13268_vm10, %v9003_v12  ;;  %v13573_v15 = vand.u32 31, %v13572_v52  ;;  %v8494_v44 = vpop.permute.xlu0 %8493  ;;  %13579 = vst [vmem:[#allocation25_spill] sm:$0xff] %v11932_v3  ;;  %vm13580_vm4 = vcmask 777216   ;;  %vm13270_vm10 = vmpackc.low %vm11313_vm3, %vm11313_vm3  ;;  %v8431_v12 = vunpack.i.h.bf16 %v11653_v53 }
 0x7cb   : > { %v4593_v7 = vsel %vm11579_vm9, %v4545_v6, 0.0  ;;  %v11927_v30 = vpop.permute.xlu1 %4362  ;;  %v8496_v62 = vunpack.i.h.bf16 %v8494_v44  ;;  %v8495_v24 = vunpack.i.l.bf16 %v8494_v44  ;;  %v9006_v6 = vpack.c.bf16 %v11343_v2, %v11331_v25 }
 0x7cc   : > { %vm11921_vm13 = vcmp.ne.s32.totalorder %v13573_v15, 31  ;;  %13576 = vst [vmem:[#allocation10_spill] sm:$0xff] %v11927_v30  ;;  %v4609_v37 = vpack.c.bf16 %v4593_v7, %v4593_v7  ;;  %v4381_v35 = vsel %vm13580_vm4, %v4361_v33, %v11927_v30  ;;  %v13581_v33 = vunpack.i.l.bf16 %v11619_v5 }
 0x7cd   : > { %v13575_v59 = vsel %vm11921_vm13, 4294967295, %v13574_v59  ;;  %4413 = vst [vmem:[#allocation3 + $0x1e8] sm:$0xf] %v4381_v35  ;;  %9007 = vmatpush1.bf16.msk.msra.mxu0 %vm13270_vm10, %v9006_v6  ;;  %v3951_v25 = vsel %vm11921_vm13, %v11932_v3, 0.0  ;;  %vm13584_vm4 = vcmask 785408   ;;  %v11976_v3 = vsel %vm13590_vm11, %v8426_v63, %v8495_v24 }
 0x7ce   : > { %v4646_v52 = vrot.slane %v4609_v37, 4  ;;  %v11950_v15 = vsel %vm13578_vm7, %v13581_v33, %v8496_v62  ;;  %5487 = vmatprep.subr.bf16.mxu0 %v5320_v55  ;;  %v11958_v7 = vpop.permute.xlu0 %8503  ;;  %v4115_v5 = vsel %vm13584_vm4, %v13583_v43, %v8431_v12  ;;  %vm13585_vm7 = vcmask 1043456   ;;  %v5319_v55 = vld [vmem:[#allocation3 + $0x110] sm:$0xff]  ;;  %v13586_v33 = vld [vmem:[#allocation23_spill] sm:$0xff] }
 0x7cf   : > { %13582 = vst [vmem:[#allocation29_spill] sm:$0xff] %v11950_v15  ;;  %v3959_v2 = vsel %vm11921_vm13, %v11950_v15, 0.0  ;;  %v8499_v44 = vpop.permute.xlu1 %8498  ;;  %v8506_v6 = vunpack.i.h.bf16 %v11958_v7  ;;  %v13587_v4 = vand.u32 31, %v13586_v33  ;;  %v13588_v15 = vmov 0 }
 0x7d0   : > { %v11966_v37 = vsel %vm13585_vm7, %v4633_v19, %v4646_v52  ;;  %v3975_v35 = vpack.c.bf16 %v3959_v2, %v3951_v25  ;;  %v8501_v30 = vunpack.i.h.bf16 %v8499_v44  ;;  %v8500_v57 = vunpack.i.l.bf16 %v8499_v44  ;;  %vm13594_vm7 = vmmov %vm13590_vm11 }
 0x7d1   : > { %vm11971_vm10 = vcmp.ne.s32.totalorder %v13587_v4, 31  ;;  %5488 = vmatpush1.bf16.msra.mxu0 %v5319_v55  ;;  %v13591_v19 = vunpack.i.l.bf16 %v11655_v26  ;;  %v4163_v4 = vsel %vm10515_vm8, %v4115_v5, 0.0  ;;  %v13593_v63 = vunpack.i.l.bf16 %v11617_v42 }
 0x7d2   : > { %v13589_v15 = vsel %vm11971_vm10, 4294967295, %v13588_v15  ;;  %3991 = vst [vmem:[#allocation3 + $0xf0] sm:$0xff] %v3975_v35  ;;  %5489 = vmatprep.subr.bf16.mxu0 %v11601_v50  ;;  %v11992_v44 = vsel %vm13594_vm7, %v8496_v62, %v8500_v57  ;;  %v3952_v26 = vsel %vm11971_vm10, %v11976_v3, 0.0  ;;  %v3700_v42 = vpop.permute.xlu0 %3699  ;;  %vm13598_vm7 = vcmask 515072  }
 0x7d3   : > { %v4123_v52 = vsel %vm13584_vm4, %v13591_v19, %v8506_v6  ;;  %v3919_v24 = vsel %vm13590_vm11, %v13593_v63, %v8501_v30  ;;  %v3702_v43 = vpop.permute.xlu1 %3701  ;;  %v3960_v5 = vsel %vm11971_vm10, %v11992_v44, 0.0  ;;  %vm13595_vm4 = vcmask 1039360  }
 0x7d4   : > { %v4171_v2 = vsel %vm10515_vm8, %v4123_v52, 0.0  ;;  %v3967_v50 = vsel %vm11921_vm13, %v3919_v24, 0.0  ;;  %v3976_v33 = vpack.c.bf16 %v3960_v5, %v3952_v26  ;;  %v3729_v62 = vsel %vm13595_vm4, %v11787_v56, %v3700_v42  ;;  %vm13596_vm11 = vmmov %vm13595_vm4  ;;  %v13597_v56 = vld [vmem:[#allocation37_spill] sm:$0xff]  ;;  %v5344_v24 = vld [vmem:[#allocation3 + $0x1d8] sm:$0xff] }
 0x7d5   : > { %v11997_v35 = vpack.c.bf16 %v4171_v2, %v4163_v4  ;;  %v3983_v55 = vpack.c.bf16 %v3967_v50, %v3967_v50  ;;  %v3730_v57 = vsel %vm13596_vm11, %v3700_v42, %v3702_v43  ;;  %5490 = vmatpush1.bf16.msra.mxu0 %v11586_v39  ;;  %3761 = vst [vmem:[#allocation3 + $0x60] sm:$0xf0] %v3729_v62  ;;  %v5335_v39 = vld [vmem:[#allocation3 + $0x190] sm:$0xff]  ;;  %vm13599_vm11 = vmmov %vm13595_vm4 }
 0x7d6   : > { %3762 = vst [vmem:[#allocation3 + $0x68] sm:$0xf0] %v3730_v57  ;;  %5491 = vmatprep.subr.bf16.mxu0 %v11783_v17  ;;  %3992 = vst [vmem:[#allocation3 + $0xf8] sm:$0xff] %v3976_v33  ;;  %v3718_v4 = vpop.permute.xlu0 %3717  ;;  %v5343_v42 = vld [vmem:[#allocation3 + $0x1d0] sm:$0xff] }
 0x7d7   : > { %v4219_v19 = vrot.slane %v11997_v35, 4  ;;  %3999 = vst [vmem:[#allocation3 + $0x130] sm:$0xf] %v3983_v55  ;;  %v12010_v52 = vpop.permute.xlu1 %5012  ;;  %v3737_v63 = vsel %vm13595_vm4, %v11873_v21, %v3718_v4  ;;  %vm13600_vm15 = vmmov %vm13595_vm4 }
 0x7d8   : > { %v12017_v2 = vsel %vm13598_vm7, %v13597_v56, %v12010_v52  ;;  %3769 = vst [vmem:[#allocation3 + $0xa0] sm:$0xff] %v3737_v63  ;;  %vm13604_vm7 = vmmov %vm13595_vm4 }
 0x7d9   : > { %4259 = vst [vmem:[#allocation3 + $0x130] sm:$0xf0] %v4219_v19  ;;  %5492 = vmatpush1.bf16.msra.mxu0 %v5335_v39 }
 0x7da   : > { %5493 = vmatprep.subr.bf16.mxu0 %v5344_v24  ;;  %v3896_v26 = vpop.permute.xlu0 %3895 }
 0x7db   : > { %v3704_v17 = vpop.permute.xlu1 %3703  ;;  %v3920_v55 = vsel %vm13601_vm14, %v8501_v30, %v3896_v26  ;;  %vm9008_vm14 = vmpackc.low %vm10477_vm1, %vm10477_vm1  ;;  %v9009_v30 = vpack.c.bf16 %v11750_v16, %v11549_v13  ;;  %v5368_v16 = vld [vmem:[#allocation3 + $0x298] sm:$0xff] }
 0x7dc   : > { %v3731_v50 = vsel %vm13599_vm11, %v3702_v43, %v3704_v17  ;;  %v3732_v5 = vsel %vm13600_vm15, %v3704_v17, %v11871_v40  ;;  %v5297_v62 = vld [vmem:[#allocation3 + $0x60] sm:$0xff]  ;;  %v3968_v21 = vsel %vm11971_vm10, %v3920_v55, 0.0  ;;  %vm13603_vm15 = vcmask 523264   ;;  %vm9011_vm11 = vmpackc.low %vm11579_vm9, %vm11579_vm9 }
 0x7dd   : > { %3763 = vst [vmem:[#allocation3 + $0x70] sm:$0xf0] %v3731_v50  ;;  %3764 = vst [vmem:[#allocation3 + $0x78] sm:$0xf0] %v3732_v5  ;;  %v5298_v33 = vld [vmem:[#allocation3 + $0x68] sm:$0xff]  ;;  %5494 = vmatpush1.bf16.msra.mxu0 %v5343_v42  ;;  %v3984_v57 = vpack.c.bf16 %v3968_v21, %v3968_v21  ;;  %v8505_v17 = vunpack.i.l.bf16 %v11958_v7  ;;  %v5359_v5 = vld [vmem:[#allocation3 + $0x250] sm:$0xff]  ;;  %v8421_v55 = vunpack.i.h.bf16 %v11355_v1 }
 0x7de   : > { %5522 = vmatprep.subr.bf16.mxu1 %v5298_v33  ;;  %5495 = vmatprep.subr.bf16.mxu0 %v11691_v14  ;;  %v12028_v56 = vpop.permute.xlu0 %8518  ;;  %v13602_v14 = vunpack.i.l.bf16 %v11355_v1  ;;  %vm13605_vm4 = vmmov %vm13603_vm15 }
 0x7df   : > { %5523 = vmatpush1.bf16.msra.mxu1 %v5297_v62  ;;  %v3724_v43 = vpop.permute.xlu1 %3723  ;;  %4000 = vst [vmem:[#allocation3 + $0x138] sm:$0xf] %v3984_v57  ;;  %v8521_v40 = vunpack.i.h.bf16 %v12028_v56 }
 0x7e1   : > { %5496 = vmatpush1.bf16.msra.mxu0 %v11646_v45  ;;  %v4812_v39 = vsel %vm13603_vm15, %v13602_v14, %v8521_v40  ;;  %v13607_v14 = vunpack.i.l.bf16 %v11288_v32  ;;  %vm13608_vm15 = vmmov %vm13605_vm4  ;;  %v9015_v32 = vpack.c.bf16 %v11803_v36, %v11714_v23 }
 0x7e2   : > { %9010 = vmatprep.subr.msk.bf16.mxu0 %vm9008_vm14, %v9009_v30  ;;  %v4860_v26 = vsel %vm10488_vm5, %v4812_v39, 0.0  ;;  %v12043_v50 = vpop.permute.xlu0 %4786  ;;  %vm13606_vm14 = vcmask 785408   ;;  %v5367_v30 = vld [vmem:[#allocation3 + $0x290] sm:$0xff] }
 0x7e3   : > { %v3720_v24 = vpop.permute.xlu1 %3719  ;;  %v4876_v42 = vpack.c.bf16 %v4860_v26, %v4860_v26  ;;  %v4813_v13 = vsel %vm13605_vm4, %v8521_v40, %v12043_v50  ;;  %v4116_v1 = vsel %vm13606_vm14, %v8431_v12, %v8505_v17 }
 0x7e4   : > { %v3738_v45 = vsel %vm13604_vm7, %v3718_v4, %v3720_v24  ;;  %v4861_v33 = vsel %vm10509_vm2, %v4813_v13, 0.0  ;;  %v9012_v4 = vpack.c.bf16 %v11808_v10, %v11798_v27  ;;  %v12069_v10 = vsel %vm13608_vm15, %v13607_v14, %v8421_v55  ;;  %vm13610_vm7 = vmmov %vm13606_vm14 }
 0x7e5   : > { %3770 = vst [vmem:[#allocation3 + $0xa8] sm:$0xff] %v3738_v45  ;;  %5498 = vmatpush1.bf16.msra.mxu0 %v5359_v5  ;;  %5524 = vmatprep.subr.bf16.mxu1 %v3738_v45  ;;  %4892 = vst [vmem:[#allocation3 + $0x2a0] sm:$0xf] %v4876_v42  ;;  %v4877_v62 = vpack.c.bf16 %v4861_v33, %v4861_v33  ;;  %v13609_v27 = vunpack.i.l.bf16 %v11653_v53  ;;  %v5322_v53 = vld [vmem:[#allocation3 + $0x128] sm:$0xff]  ;;  %v4164_v7 = vsel %vm10562_vm12, %v4116_v1, 0.0  ;;  %vm13613_vm15 = vcmask 1039360  }
 0x7e6   : > { %5499 = vmatprep.subr.bf16.mxu0 %v5368_v16  ;;  %5525 = vmatpush1.bf16.msra.mxu1 %v3737_v63  ;;  %v12064_v63 = vpop.permute.xlu0 %4998  ;;  %vm13611_vm4 = vmmov %vm13610_vm7  ;;  %v5375_v16 = vld [vmem:[#allocation3 + $0x2d0] sm:$0xff] }
 0x7e7   : > { %v8509_v21 = vpop.permute.xlu1 %8508  ;;  %9013 = vmatprep.subr.msk.bf16.mxu1 %vm9011_vm11, %v9012_v4  ;;  %4893 = vst [vmem:[#allocation3 + $0x2a8] sm:$0xf] %v4877_v62  ;;  %vm13280_vm14 = vmpackc.low %vm11605_vm0, %vm11605_vm0 }
 0x7e8   : > { %v8511_v57 = vunpack.i.h.bf16 %v8509_v21  ;;  %v8510_v40 = vunpack.i.l.bf16 %v8509_v21  ;;  %v5321_v21 = vld [vmem:[#allocation3 + $0x120] sm:$0xff] }
 0x7e9   : > { %5500 = vmatpush1.bf16.msra.mxu0 %v5367_v30 }
 0x7ea   : > { %v4131_v39 = vsel %vm13610_vm7, %v13609_v27, %v8511_v57  ;;  %v4124_v12 = vsel %vm13611_vm4, %v8506_v6, %v8510_v40  ;;  %5501 = vmatprep.subr.bf16.mxu0 %v12017_v2  ;;  %9016 = vmatpush1.bf16.msk.msra.mxu1 %vm13280_vm14, %v9015_v32  ;;  %v8520_v6 = vunpack.i.l.bf16 %v12028_v56  ;;  %v3722_v5 = vpop.permute.xlu0 %3721  ;;  %vm13614_vm7 = vmmov %vm13613_vm15  ;;  %v13615_v40 = vunpack.i.l.bf16 %v11698_v34 }
 0x7eb   : > { %v4179_v2 = vsel %vm10515_vm8, %v4131_v39, 0.0  ;;  %v4172_v26 = vsel %vm10562_vm12, %v4124_v12, 0.0  ;;  %v12095_v45 = vpop.permute.xlu1 %8513  ;;  %5528 = vmatprep.subr.bf16.mxu1 %v5322_v53  ;;  %v12100_v33 = vsel %vm13613_vm15, %v3720_v24, %v3722_v5  ;;  %v12103_v62 = vsel %vm13614_vm7, %v3722_v5, %v3724_v43  ;;  %vm13618_vm7 = vmpackc.low %vm11372_vm6, %vm11372_vm6  ;;  %v5391_v39 = vld [vmem:[#allocation3 + $0x350] sm:$0xf] }
 0x7ec   : > { %v4195_v36 = vpack.c.bf16 %v4179_v2, %v4179_v2  ;;  %v4188_v23 = vpack.c.bf16 %v4172_v26, %v4164_v7  ;;  %v8516_v42 = vunpack.i.h.bf16 %v12095_v45  ;;  %v8515_v13 = vunpack.i.l.bf16 %v12095_v45  ;;  %3771 = vst [vmem:[#allocation3 + $0xb0] sm:$0xff] %v12100_v33  ;;  %3772 = vst [vmem:[#allocation3 + $0xb8] sm:$0xff] %v12103_v62 }
 0x7ed   : > { %5502 = vmatpush1.bf16.msra.mxu0 %v5375_v16  ;;  %vm13616_vm4 = vcmask 523264   ;;  %v9018_v43 = vpack.c.bf16 %v11640_v47, %v11570_v20  ;;  %v9021_v32 = vpack.c.bf16 %v11496_v29, %v11398_v60  ;;  %v8491_v29 = vunpack.i.h.bf16 %v11899_v22 }
 0x7ee   : > { %v4233_v4 = vrot.slane %v4195_v36, 4  ;;  %v4220_v1 = vrot.slane %v4188_v23, 4  ;;  %v12110_v30 = vsel %vm13616_vm4, %v13615_v40, %v8516_v42  ;;  %vm13617_vm15 = vmmov %vm13616_vm4  ;;  %5529 = vmatpush1.bf16.msra.mxu1 %v5321_v21  ;;  %v12135_v20 = vpop.permute.xlu0 %8528 }
 0x7ef   : > { %v12115_v24 = vsel %vm13617_vm15, %v8516_v42, %v8520_v6  ;;  %9019 = vmatprep.subr.msk.bf16.mxu0 %vm13618_vm7, %v9018_v43  ;;  %vm13619_vm14 = vmmov %vm13616_vm4  ;;  %v4108_v14 = vpop.permute.xlu1 %4107  ;;  %5530 = vmatprep.subr.bf16.mxu1 %v11884_v46  ;;  %vm13620_vm4 = vcmask 1043456   ;;  %vm13621_vm15 = vcmask 785408   ;;  %v8531_v12 = vunpack.i.h.bf16 %v12135_v20  ;;  %v5392_v46 = vld [vmem:[#allocation3 + $0x358] sm:$0xf] }
 0x7f0   : > { %v12127_v34 = vsel %vm13619_vm14, %v8421_v55, %v8515_v13  ;;  %v12133_v27 = vsel %vm13620_vm4, %v4219_v19, %v4233_v4  ;;  %4260 = vst [vmem:[#allocation3 + $0x138] sm:$0xf0] %v4220_v1  ;;  %v4132_v47 = vsel %vm13621_vm15, %v8511_v57, %v4108_v14  ;;  %vm13622_vm14 = vmpackc.low %vm11313_vm3, %vm11313_vm3  ;;  %v13624_v19 = vunpack.i.l.bf16 %v11899_v22  ;;  %v5346_v22 = vld [vmem:[#allocation3 + $0x1e8] sm:$0xff]  ;;  %v13632_v43 = vld [vmem:[#allocation31_spill] sm:$0xff] }
 0x7f1   : > { %v4180_v55 = vsel %vm10562_vm12, %v4132_v47, 0.0  ;;  %9022 = vmatpush1.bf16.msk.msra.mxu0 %vm13622_vm14, %v9021_v32  ;;  %vm13623_vm7 = vmmov %vm13620_vm4  ;;  %vm13625_vm4 = vcmask 769024   ;;  %vm13627_vm14 = vcmask 515072   ;;  %v8530_v16 = vunpack.i.l.bf16 %v12135_v20  ;;  %v8827_v14 = vld [vmem:[#allocation3 + $0x30] sm:$0xff]  ;;  %v5300_v47 = vld [vmem:[#allocation3 + $0x78] sm:$0xff] }
 0x7f2   : > { %v4196_v35 = vpack.c.bf16 %v4180_v55, %v4180_v55  ;;  %7861 = vmatprep.subr.msk.bf16.mxu0 %vm13623_vm7, %v5392_v46  ;;  %5531 = vmatpush1.bf16.msra.mxu1 %v11881_v49  ;;  %v4546_v57 = vsel %vm13625_vm4, %v13624_v19, %v8531_v12  ;;  %vm13626_vm15 = vmmov %vm13623_vm7  ;;  %v4349_v2 = vpop.permute.xlu0 %4348 }
 0x7f3   : > { %v4997_v53 = vpop.permute.xlu1 %4996  ;;  %v5421_v60 = vsel %vm13626_vm15, %v5391_v39, 0  ;;  %5532 = vmatprep.subr.bf16.mxu1 %v11897_v48  ;;  %vm13628_vm7 = vmmov %vm13627_vm14  ;;  %v4594_v36 = vsel %vm11921_vm13, %v4546_v57, 0.0  ;;  %v8826_v48 = vld [vmem:[#allocation3 + $0x38] sm:$0xff] }
 0x7f4   : > { %v4235_v7 = vrot.slane %v4196_v35, 4  ;;  %v5027_v26 = vsel %vm13627_vm14, %v11831_v8, %v4997_v53  ;;  %v5028_v49 = vsel %vm13628_vm7, %v4997_v53, %v12064_v63  ;;  %vm13629_vm4 = vmmov %vm13626_vm15  ;;  %v13630_v8 = vunpack.i.l.bf16 %v11700_v51  ;;  %v13633_v39 = vld [vmem:[#allocation27_spill] sm:$0xff] }
 0x7f5   : > { %5059 = vst [vmem:[#allocation3 + $0x2a0] sm:$0xf0] %v5027_v26  ;;  %5060 = vst [vmem:[#allocation3 + $0x2a8] sm:$0xf0] %v5028_v49  ;;  %5506 = vmatpush1.bf16.msra.mxu0 %v5421_v60  ;;  %vm13631_vm15 = vcmask 769024   ;;  %vm13634_vm14 = vcmask 719872   ;;  %v13635_v51 = vunpack.i.l.bf16 %v11829_v31 }
 0x7f6   : > { %v12165_v23 = vsel %vm13629_vm4, %v4220_v1, %v4235_v7  ;;  %5561 = vmatprep.subr.bf16.mxu0 %v8826_v48  ;;  %5533 = vmatpush1.bf16.msra.mxu1 %v11893_v0  ;;  %v4530_v42 = vsel %vm13631_vm15, %v13630_v8, %v8491_v29  ;;  %v12172_v21 = vpop.permute.xlu0 %8538  ;;  %v4610_v1 = vpack.c.bf16 %v4594_v36, %v4594_v36  ;;  %v5345_v0 = vld [vmem:[#allocation3 + $0x1e0] sm:$0xff]  ;;  %vm13636_vm7 = vmmov %vm13631_vm15  ;;  %v5299_v49 = vld [vmem:[#allocation3 + $0x70] sm:$0xff] }
 0x7f7   : > { %v8524_v5 = vpop.permute.xlu1 %8523  ;;  %5534 = vmatprep.subr.bf16.mxu1 %v5346_v22  ;;  %vm13637_vm4 = vmmov %vm13636_vm7  ;;  %v4578_v35 = vsel %vm11921_vm13, %v4530_v42, 0.0  ;;  %v8540_v19 = vunpack.i.l.bf16 %v12172_v21  ;;  %v8541_v60 = vunpack.i.h.bf16 %v12172_v21  ;;  %v13641_v8 = vld [vmem:[#allocation30_spill] sm:$0xff]  ;;  %v5324_v20 = vld [vmem:[#allocation3 + $0x138] sm:$0xff] }
 0x7f8   : > { %v8526_v4 = vunpack.i.h.bf16 %v8524_v5  ;;  %v8525_v40 = vunpack.i.l.bf16 %v8524_v5  ;;  %5512 = vmatmul.mubr.bf16.vlgmr.msra.gmra.mrb[24].mxu0 %v13632_v43  ;;  %vm13638_vm15 = vmmov %vm13637_vm4  ;;  %v4648_v5 = vrot.slane %v4610_v1, 4  ;;  %v13642_v42 = vunpack.i.l.bf16 %v13641_v8 }
 0x7f9   : > { %5562 = vmatpush1.bf16.msra.mxu0 %v8827_v14  ;;  %7866 = vmatprep.mubr.msk.bf16.mxu0 %vm13634_vm14, %v13633_v39  ;;  %vm13639_vm14 = vcmask 777216  }
 0x7fa   : > { %v4538_v55 = vsel %vm13636_vm7, %v13635_v51, %v8526_v4  ;;  %v4539_v32 = vsel %vm13637_vm4, %v8526_v4, %v8530_v16  ;;  %v4531_v46 = vsel %vm13638_vm15, %v8491_v29, %v8525_v40  ;;  %5563 = vmatprep.subr.bf16.mxu0 %v5300_v47  ;;  %5535 = vmatpush1.bf16.msra.mxu1 %v5345_v0  ;;  %v12193_v26 = vpop.permute.xlu0 %5016  ;;  %vm13640_vm7 = vmmov %vm13639_vm14  ;;  %vm13643_vm4 = vcmask 506880   ;;  %v13649_v47 = vld [vmem:[#allocation28_spill] sm:$0xff] }
 0x7fb   : > { %v4586_v57 = vsel %vm11921_vm13, %v4538_v55, 0.0  ;;  %v4587_v53 = vsel %vm11971_vm10, %v4539_v32, 0.0  ;;  %v4347_v31 = vpop.permute.xlu1 %4346  ;;  %5536 = vmatprep.subr.bf16.mxu1 %v11966_v37  ;;  %v4579_v29 = vsel %vm11971_vm10, %v4531_v46, 0.0  ;;  %v12207_v16 = vsel %vm13643_vm4, %v13642_v42, %v8540_v19  ;;  %vm13644_vm15 = vmpackc.low %vm10509_vm2, %vm10509_vm2 }
 0x7fc   : > { %v4602_v7 = vpack.c.bf16 %v4586_v57, %v4578_v35  ;;  %v4603_v36 = vpack.c.bf16 %v4587_v53, %v4579_v29  ;;  %v12197_v48 = vsel %vm13639_vm14, %v11886_v61, %v4347_v31  ;;  %v12200_v22 = vsel %vm13640_vm7, %v4347_v31, %v4349_v2  ;;  %vm13645_vm14 = vmmov %vm13643_vm4  ;;  %v5370_v32 = vld [vmem:[#allocation3 + $0x2a8] sm:$0xff]  ;;  %v13656_v29 = vld [vmem:[#allocation36_spill] sm:$0xff] }
 0x7fd   : > { %5564 = vmatpush1.bf16.msra.mxu0 %v5299_v49  ;;  %v9024_v61 = vpack.c.bf16 %v12115_v24, %v12127_v34  ;;  %vm13646_vm7 = vcmask 1043456   ;;  %v13647_v24 = vld [vmem:[#allocation10_spill] sm:$0xff]  ;;  %vm13648_vm4 = vcmask 777216   ;;  %v13650_v0 = vunpack.i.l.bf16 %v13649_v47  ;;  %v13655_v57 = vld [vmem:[#allocation29_spill] sm:$0xff] }
 0x7fe   : > { %v4634_v37 = vrot.slane %v4602_v7, 4  ;;  %5565 = vmatprep.subr.bf16.mxu0 %v12103_v62  ;;  %5537 = vmatpush1.bf16.msra.mxu1 %v11889_v28  ;;  %v4635_v4 = vrot.slane %v4603_v36, 4  ;;  %v5193_v28 = vsel %vm13645_vm14, %v8540_v19, %v8541_v60  ;;  %v4365_v2 = vpop.permute.xlu0 %4364  ;;  %v9027_v55 = vpack.c.bf16 %v11992_v44, %v11976_v3 }
 0x7ff   : > { %v12209_v40 = vpop.permute.xlu1 %8533  ;;  %9025 = vmatprep.subr.msk.bf16.mxu1 %vm13644_vm15, %v9024_v61  ;;  %v4382_v34 = vsel %vm13648_vm4, %v13647_v24, %v4365_v2  ;;  %vm13651_vm15 = vmmov %vm13645_vm14 }
 0x800   : > { %v12222_v62 = vsel %vm13646_vm7, %v4634_v37, %v4648_v5  ;;  %4674 = vst [vmem:[#allocation3 + $0x1f0] sm:$0xf0] %v4634_v37  ;;  %v8536_v1 = vunpack.i.h.bf16 %v12209_v40  ;;  %v8535_v14 = vunpack.i.l.bf16 %v12209_v40  ;;  %4675 = vst [vmem:[#allocation3 + $0x1f8] sm:$0xf0] %v4635_v4 }
 0x801   : > { %5566 = vmatpush1.bf16.msra.mxu0 %v12100_v33  ;;  %4414 = vst [vmem:[#allocation3 + $0x1f0] sm:$0xf] %v4382_v34  ;;  %vm13282_vm7 = vmpackc.low %vm11971_vm10, %vm11971_vm10  ;;  %v9030_v33 = vpack.c.bf16 %v12110_v30, %v12069_v10  ;;  %v13654_v30 = vld [vmem:[#allocation25_spill] sm:$0xff] }
 0x802   : > { %v5184_v39 = vsel %vm13651_vm15, %v13650_v0, %v8535_v14  ;;  %v5185_v51 = vsel %vm13645_vm14, %v8535_v14, %v8536_v1  ;;  %9028 = vmatprep.subr.msk.bf16.mxu0 %vm13282_vm7, %v9027_v55  ;;  %vm13652_vm4 = vmpackc.low %vm10488_vm5, %vm10488_vm5  ;;  %v12252_v35 = vpop.permute.xlu0 %8543  ;;  %vm13653_vm15 = vcmask 769024   ;;  %v9033_v53 = vpack.c.bf16 %v13655_v57, %v13654_v30  ;;  %v5323_v14 = vld [vmem:[#allocation3 + $0x130] sm:$0xff] }
 0x803   : > { %9031 = vmatpush1.bf16.msk.msra.mxu1 %vm13652_vm4, %v9030_v33  ;;  %v4523_v46 = vpop.permute.xlu1 %4522  ;;  %v8546_v44 = vunpack.i.h.bf16 %v12252_v35  ;;  %v8545_v19 = vunpack.i.l.bf16 %v12252_v35  ;;  %vm13281_vm14 = vmpackc.low %vm11921_vm13, %vm11921_vm13  ;;  %vm13657_vm4 = vcmask 506880   ;;  %vm13662_vm7 = vcmask 777216  }
 0x804   : > { %5540 = vmatprep.subr.bf16.mxu1 %v5370_v32  ;;  %v4547_v3 = vsel %vm13653_vm15, %v8531_v12, %v4523_v46  ;;  %v5369_v12 = vld [vmem:[#allocation3 + $0x2a0] sm:$0xff]  ;;  %vm13658_vm15 = vmmov %vm13657_vm4 }
 0x805   : > { %v4595_v10 = vsel %vm11971_vm10, %v4547_v3, 0.0  ;;  %9034 = vmatpush1.bf16.msk.msra.mxu0 %vm13281_vm14, %v9033_v53  ;;  %v5200_v7 = vsel %vm13657_vm4, %v13656_v29, %v8545_v19  ;;  %v5201_v49 = vsel %vm13658_vm15, %v8545_v19, %v8546_v44  ;;  %vm13659_vm14 = vcmask 515072  }
 0x806   : > { %v4611_v31 = vpack.c.bf16 %v4595_v10, %v4595_v10  ;;  %5569 = vmatprep.subr.bf16.mxu0 %v5324_v20  ;;  %v5248_v5 = vsel %vm11605_vm0, %v5200_v7, 0.0  ;;  %v5249_v37 = vsel %vm11579_vm9, %v5201_v49, 0.0  ;;  %v8554_v42 = vpop.permute.xlu0 %8553  ;;  %vm13660_vm4 = vcmask 1043456   ;;  %vm13661_vm15 = vmmov %vm13659_vm14 }
 0x807   : > { %5541 = vmatpush1.bf16.msra.mxu1 %v5369_v12  ;;  %v5015_v36 = vpop.permute.xlu1 %5014  ;;  %v5264_v24 = vpack.c.bf16 %v5248_v5, %v5248_v5  ;;  %v5265_v34 = vpack.c.bf16 %v5249_v37, %v5249_v37  ;;  %v8555_v55 = vunpack.i.l.bf16 %v8554_v42  ;;  %v8556_v32 = vunpack.i.h.bf16 %v8554_v42 }
 0x808   : > { %v4650_v8 = vrot.slane %v4611_v31, 4  ;;  %v5035_v61 = vsel %vm13659_vm14, %v12010_v52, %v5015_v36  ;;  %v5036_v0 = vsel %vm13661_vm15, %v5015_v36, %v12193_v26  ;;  %vm13666_vm15 = vmmov %vm13659_vm14  ;;  %v13673_v5 = vmov 0  }
 0x809   : > { %5570 = vmatpush1.bf16.msra.mxu0 %v5323_v14  ;;  %5280 = vst [vmem:[#allocation3 + $0x360] sm:$0xf] %v5264_v24  ;;  %5281 = vst [vmem:[#allocation3 + $0x368] sm:$0xf] %v5265_v34  ;;  %5542 = vmatprep.subr.bf16.mxu1 %v5036_v0 }
 0x80a   : > { %v4651_v47 = vsel %vm13660_vm4, %v4635_v4, %v4650_v8  ;;  %5571 = vmatprep.subr.bf16.mxu0 %v12165_v23  ;;  %v5001_v46 = vpop.permute.xlu0 %5000  ;;  %v9036_v4 = vpack.c.bf16 %v5193_v28, %v5185_v51  ;;  %v9039_v28 = vpack.c.bf16 %v12207_v16, %v5184_v39 }
 0x80b   : > { %v4367_v33 = vpop.permute.xlu1 %4366  ;;  %5543 = vmatpush1.bf16.msra.mxu1 %v5035_v61  ;;  %v5029_v3 = vsel %vm13659_vm14, %v12064_v63, %v5001_v46 }
 0x80c   : > { %v4383_v52 = vsel %vm13662_vm7, %v4365_v2, %v4367_v33  ;;  %9037 = vmatprep.subr.msk.bf16.mxu1 %vm9011_vm11, %v9036_v4  ;;  %5061 = vst [vmem:[#allocation3 + $0x2b0] sm:$0xf0] %v5029_v3  ;;  %vm13663_vm7 = vcmask 523264   ;;  %vm13665_vm11 = vmpackc.low %vm11605_vm0, %vm11605_vm0 }
 0x80d   : > { %4415 = vst [vmem:[#allocation3 + $0x1f8] sm:$0xf] %v4383_v52  ;;  %5572 = vmatpush1.bf16.msra.mxu0 %v12133_v27  ;;  %v4806_v23 = vsel %vm13663_vm7, %v8520_v6, %v8555_v55  ;;  %vm13664_vm4 = vmmov %vm13663_vm7 }
 0x80e   : > { %5573 = vmatprep.subr.bf16.mxu0 %v12200_v22  ;;  %v4807_v63 = vsel %vm13664_vm4, %v8555_v55, %v8556_v32  ;;  %v5019_v19 = vpop.permute.xlu0 %5018  ;;  %vm13667_vm14 = vmmov %vm13664_vm4 }
 0x80f   : > { %v8549_v2 = vpop.permute.xlu1 %8548  ;;  %9040 = vmatpush1.bf16.msk.msra.mxu1 %vm13665_vm11, %v9039_v28  ;;  %v12308_v22 = vsel %vm13666_vm15, %v12193_v26, %v5019_v19  ;;  %vm13668_vm7 = vmmov %vm13664_vm4  ;;  %vm13669_vm4 = vcmask 1043456  }
 0x810   : > { %v8551_v10 = vunpack.i.h.bf16 %v8549_v2  ;;  %v8550_v27 = vunpack.i.l.bf16 %v8549_v2  ;;  %v5394_v51 = vld [vmem:[#allocation3 + $0x368] sm:$0xf]  ;;  %v5393_v16 = vld [vmem:[#allocation3 + $0x360] sm:$0xf]  ;;  %vm13670_vm9 = vmmov %vm13669_vm4 }
 0x811   : > { %5574 = vmatpush1.bf16.msra.mxu0 %v12197_v48  ;;  %7863 = vmatprep.subr.msk.bf16.mxu1 %vm13669_vm4, %v5394_v51  ;;  %v5427_v30 = vsel %vm13670_vm9, %v5393_v16, 0  ;;  %v5347_v48 = vld [vmem:[#allocation3 + $0x1f0] sm:$0xff]  ;;  %vm13671_vm11 = vmmov %vm13668_vm7  ;;  %vm13674_vm9 = vcmask 515072  }
 0x812   : > { %v4798_v56 = vsel %vm13667_vm14, %v8515_v13, %v8550_v27  ;;  %v4799_v6 = vsel %vm13668_vm7, %v8550_v27, %v8551_v10  ;;  %v8564_v57 = vpop.permute.xlu0 %8563  ;;  %vm13672_vm15 = vmmov %vm13668_vm7  ;;  %vm13675_vm14 = vcmask 506880  }
 0x813   : > { %v8559_v39 = vpop.permute.xlu1 %8558  ;;  %5547 = vmatpush1.bf16.msra.mxu1 %v5427_v30  ;;  %v8566_v42 = vunpack.i.h.bf16 %v8564_v57  ;;  %vm13676_vm7 = vmmov %vm13675_vm14  ;;  %v9042_v34 = vpack.c.bf16 %v4807_v63, %v4799_v6  ;;  %v9045_v33 = vpack.c.bf16 %v4806_v23, %v4798_v56 }
 0x814   : > { %v8561_v53 = vunpack.i.h.bf16 %v8559_v39  ;;  %v8560_v20 = vunpack.i.l.bf16 %v8559_v39  ;;  %v5348_v26 = vld [vmem:[#allocation3 + $0x1f8] sm:$0xff]  ;;  %vm9041_vm4 = vmpackc.low %vm10562_vm12, %vm10562_vm12 }
 0x815   : > { %5575 = vmatprep.subr.bf16.mxu0 %v5348_v26 }
 0x816   : > { %v4814_v45 = vsel %vm13671_vm11, %v12043_v50, %v8560_v20  ;;  %v4815_v13 = vsel %vm13672_vm15, %v8560_v20, %v8561_v53  ;;  %5576 = vmatpush1.bf16.msra.mxu0 %v5347_v48  ;;  %5553 = vmatmul.mubr.bf16.vlgmr.msra.gmra.mrb[12].mxu1 %v13632_v43  ;;  %v8574_v36 = vpop.permute.xlu0 %8573  ;;  %vm13677_vm11 = vmmov %vm13674_vm9 }
 0x817   : > { %v4862_v12 = vsel %vm10515_vm8, %v4814_v45, 0.0  ;;  %v4863_v31 = vsel %vm10562_vm12, %v4815_v13, 0.0  ;;  %v5003_v29 = vpop.permute.xlu1 %5002  ;;  %5577 = vmatprep.subr.bf16.mxu0 %v4651_v47  ;;  %6460 = vmatprep.mubr.bf16.mxu1 %v13673_v5  ;;  %v8576_v37 = vunpack.i.h.bf16 %v8574_v36  ;;  %v8575_v50 = vunpack.i.l.bf16 %v8574_v36  ;;  %vm9044_vm15 = vmpackc.low %vm10515_vm8, %vm10515_vm8 }
 0x818   : > { %v4878_v7 = vpack.c.bf16 %v4862_v12, %v4862_v12  ;;  %v4879_v49 = vpack.c.bf16 %v4863_v31, %v4863_v31  ;;  %v5030_v8 = vsel %vm13674_vm9, %v5001_v46, %v5003_v29  ;;  %v8565_v47 = vunpack.i.l.bf16 %v8564_v57  ;;  %vm13678_vm9 = vmmov %vm13676_vm7 }
 0x819   : > { %5062 = vst [vmem:[#allocation3 + $0x2b8] sm:$0xf0] %v5030_v8  ;;  %v5202_v61 = vsel %vm13675_vm14, %v8546_v44, %v8575_v50  ;;  %v5203_v14 = vsel %vm13676_vm7, %v8575_v50, %v8576_v37  ;;  %vm13679_vm14 = vmmov %vm13676_vm7 }
 0x81a   : > { %4894 = vst [vmem:[#allocation3 + $0x2b0] sm:$0xf] %v4878_v7  ;;  %4895 = vst [vmem:[#allocation3 + $0x2b8] sm:$0xf] %v4879_v49  ;;  %5578 = vmatpush1.bf16.msra.mxu0 %v12222_v62  ;;  %v5250_v0 = vsel %vm11921_vm13, %v5202_v61, 0.0  ;;  %v5251_v62 = vsel %vm11971_vm10, %v5203_v14, 0.0  ;;  %v5186_v46 = vsel %vm13678_vm9, %v8536_v1, %v8565_v47  ;;  %v5187_v52 = vsel %vm13679_vm14, %v8565_v47, %v8566_v42 }
 0x81b   : > { %v5021_v24 = vpop.permute.xlu1 %5020  ;;  %9043 = vmatprep.subr.msk.bf16.mxu0 %vm9041_vm4, %v9042_v34  ;;  %v5266_v55 = vpack.c.bf16 %v5250_v0, %v5250_v0  ;;  %v5267_v44 = vpack.c.bf16 %v5251_v62, %v5251_v62  ;;  %vm13680_vm4 = vmmov %vm13676_vm7  ;;  %vm13683_vm9 = vcmask 1043456   ;;  %v13687_v14 = vld [vmem:[#allocation12_spill] sm:$0xff] }
 0x81c   : > { %v5038_v35 = vsel %vm13677_vm11, %v5019_v19, %v5021_v24  ;;  %vm13681_vm11 = vmpackc.low %vm11971_vm10, %vm11971_vm10  ;;  %vm13706_vm10 = vcmask 769024  }
 0x81d   : > { %5282 = vst [vmem:[#allocation3 + $0x370] sm:$0xf] %v5266_v55  ;;  %5283 = vst [vmem:[#allocation3 + $0x378] sm:$0xf] %v5267_v44 }
 0x81e   : > { %9046 = vmatpush1.bf16.msk.msra.mxu0 %vm9044_vm15, %v9045_v33  ;;  %vm13682_vm15 = vmpackc.low %vm11921_vm13, %vm11921_vm13 }
 0x81f   : > { %v8569_v32 = vpop.permute.xlu1 %8568  ;;  %vm13684_vm14 = vmmov %vm13683_vm9 }
 0x820   : > { %v8571_v3 = vunpack.i.h.bf16 %v8569_v32  ;;  %v8570_v4 = vunpack.i.l.bf16 %v8569_v32 }
 0x821   : > { %v5372_v2 = vld [vmem:[#allocation3 + $0x2b8] sm:$0xff]  ;;  %v5371_v63 = vld [vmem:[#allocation3 + $0x2b0] sm:$0xff] }
 0x822   : > { %v5194_v19 = vsel %vm13676_vm7, %v8541_v60, %v8570_v4  ;;  %v5195_v23 = vsel %vm13680_vm4, %v8570_v4, %v8571_v3  ;;  %5581 = vmatprep.subr.bf16.mxu0 %v5372_v2  ;;  %vm13685_vm7 = vcmask 1047816   ;;  %vm13686_vm4 = vcmask 269312   ;;  %v13691_v2 = vld [vmem:[#allocation4_spill] sm:$0xff] }
 0x823   : > { %5582 = vmatpush1.bf16.msra.mxu0 %v5371_v63  ;;  %v9048_v40 = vpack.c.bf16 %v5195_v23, %v5187_v52  ;;  %v9051_v1 = vpack.c.bf16 %v5194_v19, %v5186_v46  ;;  %v13689_v46 = vld [vmem:[#allocation5_spill] sm:$0xff] }
 0x824   : > { %5583 = vmatprep.subr.bf16.mxu0 %v5038_v35  ;;  %v5396_v21 = vld [vmem:[#allocation3 + $0x378] sm:$0xf]  ;;  %v5395_v60 = vld [vmem:[#allocation3 + $0x370] sm:$0xf] }
 0x825   : > { %v5433_v10 = vsel %vm13684_vm14, %v5395_v60, 0 }
 0x827   : > { %5584 = vmatpush1.bf16.msra.mxu0 %v12308_v22 }
 0x828   : > { %9049 = vmatprep.subr.msk.bf16.mxu0 %vm13681_vm11, %v9048_v40  ;;  %vm13688_vm11 = vnez %v13687_v14 }
 0x82b   : > { %9052 = vmatpush1.bf16.msk.msra.mxu0 %vm13682_vm15, %v9051_v1  ;;  %v5401_v27 = vpop.permute.xlu1 %5400  ;;  %vm13690_vm15 = vnez %v13689_v46 }
 0x82c   : > { %7865 = vmatprep.subr.msk.bf16.mxu0 %vm13683_vm9, %v5396_v21  ;;  %vm13692_vm9 = vmmov %vm13686_vm4 }
 0x82f   : > { %5588 = vmatpush1.bf16.msra.mxu0 %v5433_v10  ;;  %v13693_v10 = vld [vmem:[#allocation13_spill] sm:$0xff] }
 0x830   : > { %vm13694_vm14 = vnez %v13693_v10 }
 0x832   : > { %5594 = vmatmul.mubr.bf16.vlgmr.msra.gmra.mrb[28].mxu0 %v13632_v43 }
 0x833   : > { %6583 = vmatprep.mubr.bf16.mxu0 %v13673_v5 }
 0x886   : > { %v5472_v28 = vpop.f32.mrb[20].mxu0 }
 0x887   : > { %v5473_v22 = vadd.f32 %v5472_v28, %v5401_v27  ;;  %v5474_v56 = vpop.f32.mrb[21].mxu0 }
 0x888   : > { %v5475_v6 = vadd.f32 %v5474_v56, %v5401_v27  ;;  %v5476_v51 = vpop.f32.mrb[22].mxu0 }
 0x889   : > { %v5602_v16 = vmax.f32 %v5473_v22, 0.0  ;;  %v5477_v39 = vpop.f32.mrb[23].mxu0 }
 0x88a   : > { %v5603_v30 = vmax.f32 %v5475_v6, 0.0 }
 0x88b   : > { %5627 = vrot.lane.b32.xlu0 %v5602_v16, %s13356_s22 }
 0x88c   : > { %5629 = vrot.lane.b32.xlu1 %v5603_v30, %s13356_s22 }
 0x8cb   : > { %v5513_v57 = vpop.f32.mrb[24].mxu0 }
 0x8cc   : > { %v5514_v53 = vadd.f32 %v5513_v57, %v5401_v27  ;;  %v5515_v20 = vpop.f32.mrb[25].mxu0 }
 0x8cd   : > { %v5516_v26 = vadd.f32 %v5515_v20, %v5401_v27  ;;  %v5517_v43 = vpop.f32.mrb[26].mxu0 }
 0x8ce   : > { %v5604_v48 = vmax.f32 %v5514_v53, 0.0  ;;  %v5518_v45 = vpop.f32.mrb[27].mxu0 }
 0x8cf   : > { %v5605_v13 = vmax.f32 %v5516_v26, 0.0 }
 0x8d0   : > { %5631 = vrot.lane.b32.xlu0 %v5604_v48, %s13356_s22 }
 0x8d1   : > { %5633 = vrot.lane.b32.xlu1 %v5605_v13, %s13356_s22 }
 0x8e9   : > { %v5554_v12 = vpop.f32.mrb[12].mxu1 }
 0x8ea   : > { %v5555_v31 = vadd.f32 %v5554_v12, %v5401_v27  ;;  %v5556_v29 = vpop.f32.mrb[13].mxu1 }
 0x8eb   : > { %v5557_v7 = vadd.f32 %v5556_v29, %v5401_v27  ;;  %v5558_v49 = vpop.f32.mrb[14].mxu1 }
 0x8ec   : > { %v5606_v36 = vmax.f32 %v5555_v31, 0.0  ;;  %v5559_v37 = vpop.f32.mrb[15].mxu1 }
 0x8ed   : > { %v5607_v50 = vmax.f32 %v5557_v7, 0.0 }
 0x8ee   : > { %5635 = vrot.lane.b32.xlu0 %v5606_v36, %s13356_s22 }
 0x8ef   : > { %5637 = vrot.lane.b32.xlu1 %v5607_v50, %s13356_s22 }
 0x8fd   : > { %v5628_v8 = vpop.permute.xlu0 %5627 }
 0x8fe   : > { %5659 = vst.msk [vmem:[#allocation2] sm:$0xff] %vm13685_vm7, %v5628_v8  ;;  %v5630_v42 = vpop.permute.xlu1 %5629  ;;  %vm13695_vm7 = vmmov %vm13686_vm4 }
 0x8ff   : > { %v5643_v61 = vsel %vm13686_vm4, %v5628_v8, %v5630_v42 }
 0x900   : > { %v5677_v24 = vsel %vm13688_vm11, %v5643_v61, 0.0  ;;  %v6209_v23 = vpack.c.bf16 %v5643_v61, %v5643_v61 }
 0x901   : > { %v5685_v34 = vpack.c.bf16 %v5677_v24, %v5677_v24 }
 0x902   : > { %v6227_v40 = vrot.slane %v6209_v23, 4 }
 0x903   : > { %5693 = vst [vmem:[#allocation3 + $0x8] sm:$0xf] %v5685_v34 }
 0x905   : > { %v5595_v47 = vpop.f32.mrb[28].mxu0  ;;  %v5668_v44 = vld [vmem:[#allocation2] sm:$0xff] }
 0x906   : > { %v5596_v0 = vadd.f32 %v5595_v47, %v5401_v27  ;;  %v5597_v62 = vpop.f32.mrb[29].mxu0  ;;  %v5676_v52 = vsel %vm13690_vm15, %v5668_v44, 0.0  ;;  %v5709_v4 = vpack.c.bf16 %v5668_v44, %v5668_v44  ;;  %6608 = vst [vmem:[#allocation2] sm:$0xff] %v13691_v2  ;;  %v8617_v30 = vpack.i.bf16 %v5643_v61, %v5668_v44 }
 0x907   : > { %v5598_v35 = vadd.f32 %v5597_v62, %v5401_v27  ;;  %v5599_v55 = vpop.f32.mrb[30].mxu0  ;;  %v5684_v63 = vpack.c.bf16 %v5676_v52, %v5676_v52 }
 0x908   : > { %v5608_v33 = vmax.f32 %v5596_v0, 0.0  ;;  %v5600_v32 = vpop.f32.mrb[31].mxu0  ;;  %v5727_v19 = vrot.slane %v5709_v4, 4 }
 0x909   : > { %v5609_v3 = vmax.f32 %v5598_v35, 0.0  ;;  %5692 = vst [vmem:[#allocation3] sm:$0xf] %v5684_v63 }
 0x90a   : > { %5639 = vrot.lane.b32.xlu0 %v5608_v33, %s13356_s22 }
 0x90b   : > { %5641 = vrot.lane.b32.xlu1 %v5609_v3, %s13356_s22 }
 0x90e   : > { %5736 = vrot.lane.b32.xlu0 %v5727_v19, %s13360_s30 }
 0x90f   : > { %5981 = vrot.lane.b32.xlu1 %v5709_v4, %s9070_s26 }
 0x912   : > { %6237 = vrot.lane.b32.xlu0 %v6227_v40, %s9075_s28 }
 0x913   : > { %5983 = vrot.lane.b32.xlu1 %v6209_v23, %s9070_s26 }
 0x917   : > { %5738 = vrot.lane.b32.xlu1 %v6227_v40, %s13360_s30 }
 0x942   : > { %v5632_v1 = vpop.permute.xlu0 %5631 }
 0x943   : > { %v5644_v21 = vsel %vm13692_vm9, %v5630_v42, %v5632_v1  ;;  %v5634_v60 = vpop.permute.xlu1 %5633  ;;  %vm13696_vm9 = vmmov %vm13686_vm4 }
 0x944   : > { %v5678_v27 = vsel %vm13694_vm14, %v5644_v21, 0.0  ;;  %v5645_v28 = vsel %vm13695_vm7, %v5632_v1, %v5634_v60  ;;  %v8577_v22 = vpack.i.bf16 %v5644_v21, %v5643_v61  ;;  %v5965_v39 = vpack.c.bf16 %v5644_v21, %v5644_v21  ;;  %vm13697_vm7 = vmmov %vm13686_vm4 }
 0x945   : > { %v5686_v56 = vpack.c.bf16 %v5678_v27, %v5678_v27  ;;  %v5679_v6 = vsel %vm10477_vm1, %v5645_v28, 0.0  ;;  %v8602_v16 = vpack.i.bf16 %v5645_v28, %v5668_v44  ;;  %v8622_v53 = vpack.i.bf16 %v5645_v28, %v5644_v21  ;;  %v6394_v27 = vld [vmem:[%s13133_s12] sm:$0xff] }
 0x946   : > { %v5687_v51 = vpack.c.bf16 %v5679_v6, %v5679_v6  ;;  %8578 = vrot.lane.b32.xlu0 %v8577_v22, %s13317_s21  ;;  %8583 = vrot.lane.b32.xlu1 %v8577_v22, %s13357_s24  ;;  %v5729_v57 = vrot.slane %v5965_v39, 4  ;;  %v5966_v7 = vpack.c.bf16 %v5645_v28, %v5645_v28 }
 0x947   : > { %5694 = vst [vmem:[#allocation3 + $0x10] sm:$0xf] %v5686_v56 }
 0x948   : > { %5695 = vst [vmem:[#allocation3 + $0x18] sm:$0xf] %v5687_v51  ;;  %v5730_v49 = vrot.slane %v5966_v7, 4 }
 0x94a   : > { %8593 = vrot.lane.b32.xlu0 %v8577_v22, %s13358_s25  ;;  %8588 = vrot.lane.b32.xlu1 %v8577_v22, %s13318_s23 }
 0x94e   : > { %8603 = vrot.lane.b32.xlu0 %v8602_v16, %s13357_s24  ;;  %8598 = vrot.lane.b32.xlu1 %v8602_v16, %s13317_s21 }
 0x952   : > { %8608 = vrot.lane.b32.xlu0 %v8602_v16, %s13318_s23  ;;  %8613 = vrot.lane.b32.xlu1 %v8602_v16, %s13358_s25 }
 0x956   : > { %5985 = vrot.lane.b32.xlu0 %v5965_v39, %s9070_s26  ;;  %8618 = vrot.lane.b32.xlu1 %v8617_v30, %s13359_s27 }
 0x95a   : > { %5740 = vrot.lane.b32.xlu0 %v5729_v57, %s13360_s30 }
 0x95e   : > { %6235 = vrot.lane.b32.xlu0 %v5727_v19, %s9075_s28 }
 0x960   : > { %v5636_v20 = vpop.permute.xlu0 %5635 }
 0x961   : > { %v5646_v26 = vsel %vm13686_vm4, %v5634_v60, %v5636_v20  ;;  %v5638_v43 = vpop.permute.xlu1 %5637 }
 0x962   : > { %8623 = vrot.lane.b32.xlu0 %v8622_v53, %s13359_s27  ;;  %v5680_v48 = vsel %vm10488_vm5, %v5646_v26, 0.0  ;;  %v5647_v45 = vsel %vm13696_vm9, %v5636_v20, %v5638_v43  ;;  %v5967_v36 = vpack.c.bf16 %v5646_v26, %v5646_v26  ;;  %vm13698_vm9 = vmmov %vm13686_vm4  ;;  %v13704_v53 = vld [vmem:[#allocation7_spill] sm:$0xff] }
 0x963   : > { %v5688_v13 = vpack.c.bf16 %v5680_v48, %v5680_v48  ;;  %v5681_v12 = vsel %vm10509_vm2, %v5647_v45, 0.0  ;;  %v8627_v31 = vpack.i.bf16 %v5647_v45, %v5646_v26  ;;  %v5968_v8 = vpack.c.bf16 %v5647_v45, %v5647_v45 }
 0x964   : > { %v5689_v29 = vpack.c.bf16 %v5681_v12, %v5681_v12  ;;  %v6230_v37 = vrot.slane %v5967_v36, 4 }
 0x965   : > { %5696 = vst [vmem:[#allocation3 + $0x20] sm:$0xf] %v5688_v13  ;;  %8628 = vrot.lane.b32.xlu1 %v8627_v31, %s13317_s21  ;;  %v5732_v33 = vrot.slane %v5968_v8, 4 }
 0x966   : > { %8633 = vrot.lane.b32.xlu0 %v8627_v31, %s13357_s24  ;;  %5697 = vst [vmem:[#allocation3 + $0x28] sm:$0xf] %v5689_v29 }
 0x969   : > { %8638 = vrot.lane.b32.xlu1 %v8627_v31, %s13318_s23 }
 0x96a   : > { %5987 = vrot.lane.b32.xlu0 %v5966_v7, %s9070_s26 }
 0x96d   : > { %6239 = vrot.lane.b32.xlu1 %v5729_v57, %s9075_s28 }
 0x96e   : > { %5742 = vrot.lane.b32.xlu0 %v5730_v49, %s13360_s30 }
 0x971   : > { %5989 = vrot.lane.b32.xlu1 %v5967_v36, %s9070_s26 }
 0x972   : > { %8643 = vrot.lane.b32.xlu0 %v8627_v31, %s13358_s25 }
 0x975   : > { %5744 = vrot.lane.b32.xlu1 %v6230_v37, %s13360_s30 }
 0x976   : > { %6243 = vrot.lane.b32.xlu0 %v6230_v37, %s9075_s28 }
 0x979   : > { %6303 = vrot.lane.b32.xlu1 %v5646_v26, %s13359_s27 }
 0x97c   : > { %v5640_v50 = vpop.permute.xlu0 %5639 }
 0x97d   : > { %v5648_v42 = vsel %vm13697_vm7, %v5638_v43, %v5640_v50  ;;  %v5642_v61 = vpop.permute.xlu1 %5641  ;;  %5991 = vrot.lane.b32.xlu1 %v5968_v8, %s9070_s26  ;;  %vm13699_vm7 = vcmask 777216  }
 0x97e   : > { %v5682_v24 = vsel %vm10515_vm8, %v5648_v42, 0.0  ;;  %v5649_v34 = vsel %vm13686_vm4, %v5640_v50, %v5642_v61  ;;  %5667 = vst.msk [vmem:[#allocation2 + $0x40] sm:$0xff] %vm13698_vm9, %v5642_v61  ;;  %5884 = vrot.lane.b32.xlu0 %v5648_v42, %s13317_s21  ;;  %v5715_v35 = vpack.c.bf16 %v5648_v42, %v5648_v42  ;;  %vm13700_vm4 = vcmask 539648  }
 0x97f   : > { %v5690_v47 = vpack.c.bf16 %v5682_v24, %v5682_v24  ;;  %v5683_v0 = vsel %vm10562_vm12, %v5649_v34, 0.0  ;;  %vm13701_vm9 = vcmask 1039360   ;;  %v8647_v23 = vpack.i.bf16 %v5648_v42, %v5647_v45 }
 0x980   : > { %v5691_v62 = vpack.c.bf16 %v5683_v0, %v5683_v0  ;;  %v5733_v44 = vrot.slane %v5715_v35, 4  ;;  %v5737_v4 = vpop.permute.xlu0 %5736 }
 0x981   : > { %5698 = vst [vmem:[#allocation3 + $0x30] sm:$0xf] %v5690_v47  ;;  %v5982_v55 = vpop.permute.xlu1 %5981  ;;  %6241 = vrot.lane.b32.xlu1 %v5730_v49, %s9075_s28 }
 0x982   : > { %5699 = vst [vmem:[#allocation3 + $0x38] sm:$0xf] %v5691_v62  ;;  %6053 = vrot.lane.b32.xlu0 %v5648_v42, %s13318_s23 }
 0x984   : > { %v12465_v28 = vpop.permute.xlu0 %6237 }
 0x985   : > { %v12433_v32 = vpop.permute.xlu1 %5983  ;;  %v5862_v52 = vld [vmem:[#allocation2 + $0x40] sm:$0xff]  ;;  %5746 = vrot.lane.b32.xlu1 %v5732_v33, %s13360_s30 }
 0x986   : > { %v5999_v3 = vsel %vm13699_vm7, %v5982_v55, %v12433_v32  ;;  %5748 = vrot.lane.b32.xlu0 %v5733_v44, %s13360_s30  ;;  %6616 = vst.msk [vmem:[#allocation2 + $0x40] sm:$0xff] %vm13700_vm4, %v13691_v2  ;;  %v8652_v40 = vpack.i.bf16 %v5862_v52, %v5649_v34  ;;  %v5716_v2 = vpack.c.bf16 %v5649_v34, %v5649_v34  ;;  %vm13702_vm7 = vcmask 1031168  }
 0x987   : > { %6015 = vst [vmem:[#allocation3 + $0x80] sm:$0xf] %v5999_v3  ;;  %v5717_v1 = vpack.c.bf16 %v5862_v52, %v5862_v52  ;;  %vm13703_vm4 = vcmask 785408  }
 0x988   : > { %v5734_v21 = vrot.slane %v5716_v2, 4 }
 0x989   : > { %v12441_v63 = vpop.permute.xlu1 %5738  ;;  %5808 = vrot.lane.b32.xlu1 %v5648_v42, %s13357_s24  ;;  %v5735_v60 = vrot.slane %v5717_v1, 4 }
 0x98a   : > { %v5754_v19 = vsel %vm13701_vm9, %v5737_v4, %v12441_v63  ;;  %5993 = vrot.lane.b32.xlu0 %v5715_v35, %s9070_s26  ;;  %vm13705_vm9 = vnez %v13704_v53 }
 0x98b   : > { %5770 = vst [vmem:[#allocation3] sm:$0xf0] %v5754_v19 }
 0x98d   : > { %6153 = vrot.lane.b32.xlu1 %v5648_v42, %s13358_s25 }
 0x98e   : > { %6245 = vrot.lane.b32.xlu0 %v5732_v33, %s9075_s28 }
 0x991   : > { %8653 = vrot.lane.b32.xlu1 %v8652_v40, %s13317_s21 }
 0x992   : > { %8648 = vrot.lane.b32.xlu0 %v8647_v23, %s13359_s27 }
 0x995   : > { %6247 = vrot.lane.b32.xlu1 %v5733_v44, %s9075_s28 }
 0x996   : > { %8658 = vrot.lane.b32.xlu0 %v8652_v40, %s13357_s24 }
 0x999   : > { %5752 = vrot.lane.b32.xlu1 %v5735_v60, %s13360_s30 }
 0x99a   : > { %5750 = vrot.lane.b32.xlu0 %v5734_v21, %s13360_s30 }
 0x99d   : > { %8663 = vrot.lane.b32.xlu1 %v8652_v40, %s13318_s23 }
 0x99e   : > { %5995 = vrot.lane.b32.xlu0 %v5716_v2, %s9070_s26 }
 0x9a1   : > { %5997 = vrot.lane.b32.xlu1 %v5717_v1, %s9070_s26 }
 0x9a2   : > { %8668 = vrot.lane.b32.xlu0 %v8652_v40, %s13358_s25 }
 0x9a5   : > { %6249 = vrot.lane.b32.xlu1 %v5734_v21, %s9075_s28 }
 0x9a6   : > { %6251 = vrot.lane.b32.xlu0 %v5735_v60, %s9075_s28  ;;  %v13711_v60 = vld [vmem:[#allocation21_spill] sm:$0xff] }
 0x9a9   : > { %8673 = vrot.lane.b32.xlu1 %v8652_v40, %s13359_s27 }
 0x9aa   : > { %6397 = vperm.xlu0 %8155, %v6394_v27  }
 0x9b8   : > { %v8584_v22 = vpop.permute.xlu1 %8583  ;;  %v8579_v56 = vpop.permute.xlu0 %8578 }
 0x9b9   : > { %v8586_v6 = vunpack.i.h.bf16 %v8584_v22  ;;  %v8585_v51 = vunpack.i.l.bf16 %v8584_v22  ;;  %v8581_v16 = vunpack.i.h.bf16 %v8579_v56  ;;  %v8580_v39 = vunpack.i.l.bf16 %v8579_v56 }
 0x9bb   : > { %v5815_v30 = vsel %vm13702_vm7, %v8585_v51, %v8586_v6  ;;  %v5891_v57 = vsel %vm13703_vm4, %v8580_v39, %v8581_v16  ;;  %vm13707_vm7 = vcmask 523264  }
 0x9bc   : > { %v5831_v20 = vsel %vm13705_vm9, %v5815_v30, 0.0  ;;  %v5907_v26 = vsel %vm13688_vm11, %v5891_v57, 0.0  ;;  %v8589_v43 = vpop.permute.xlu1 %8588  ;;  %v8594_v48 = vpop.permute.xlu0 %8593 }
 0x9bd   : > { %v5839_v45 = vpack.c.bf16 %v5831_v20, %v5831_v20  ;;  %v5915_v13 = vpack.c.bf16 %v5907_v26, %v5907_v26  ;;  %v8591_v12 = vunpack.i.h.bf16 %v8589_v43  ;;  %v8590_v31 = vunpack.i.l.bf16 %v8589_v43 }
 0x9be   : > { %v8596_v29 = vunpack.i.h.bf16 %v8594_v48  ;;  %v8595_v7 = vunpack.i.l.bf16 %v8594_v48 }
 0x9bf   : > { %5847 = vst [vmem:[#allocation3 + $0x48] sm:$0xf] %v5839_v45  ;;  %v5931_v49 = vrot.slane %v5915_v13, 4  ;;  %v6060_v36 = vsel %vm13706_vm10, %v8590_v31, %v8591_v12  ;;  %vm13708_vm10 = vmmov %vm13703_vm4 }
 0x9c0   : > { %v6076_v37 = vsel %vm13705_vm9, %v6060_v36, 0.0  ;;  %v6160_v50 = vsel %vm13707_vm7, %v8595_v7, %v8596_v29  ;;  %v12477_v8 = vpop.permute.xlu1 %8598  ;;  %v12479_v42 = vpop.permute.xlu0 %8603  ;;  %vm13709_vm7 = vcmask 1031168  }
 0x9c1   : > { %5947 = vst [vmem:[#allocation3 + $0x48] sm:$0xf0] %v5931_v49  ;;  %v6084_v61 = vpack.c.bf16 %v6076_v37, %v6076_v37  ;;  %v6176_v24 = vsel %vm13688_vm11, %v6160_v50, 0.0  ;;  %v8601_v34 = vunpack.i.h.bf16 %v12477_v8  ;;  %v8600_v47 = vunpack.i.l.bf16 %v12477_v8  ;;  %vm13710_vm11 = vmmov %vm13709_vm7 }
 0x9c2   : > { %v6184_v0 = vpack.c.bf16 %v6176_v24, %v6176_v24  ;;  %v8606_v62 = vunpack.i.h.bf16 %v12479_v42  ;;  %v8605_v35 = vunpack.i.l.bf16 %v12479_v42 }
 0x9c3   : > { %v6100_v55 = vrot.slane %v6084_v61, 4  ;;  %v5890_v44 = vsel %vm13708_vm10, %v8600_v47, %v8580_v39  ;;  %v5892_v33 = vsel %vm13703_vm4, %v8581_v16, %v8601_v34  ;;  %vm13712_vm10 = vnez %v13711_v60 }
 0x9c4   : > { %6192 = vst [vmem:[#allocation3 + $0xc8] sm:$0xf] %v6184_v0  ;;  %v5906_v52 = vsel %vm13690_vm15, %v5890_v44, 0.0  ;;  %v5908_v3 = vsel %vm13694_vm14, %v5892_v33, 0.0  ;;  %v5816_v4 = vsel %vm13709_vm7, %v8586_v6, %v8606_v62  ;;  %v5814_v19 = vsel %vm13710_vm11, %v8605_v35, %v8585_v51  ;;  %v12499_v23 = vpop.permute.xlu1 %8613  ;;  %v12501_v40 = vpop.permute.xlu0 %8608 }
 0x9c5   : > { %6116 = vst [vmem:[#allocation3 + $0x88] sm:$0xf0] %v6100_v55  ;;  %v5914_v2 = vpack.c.bf16 %v5906_v52, %v5906_v52  ;;  %v5916_v1 = vpack.c.bf16 %v5908_v3, %v5908_v3  ;;  %v5832_v21 = vsel %vm11313_vm3, %v5816_v4, 0.0  ;;  %v5830_v27 = vsel %vm13712_vm10, %v5814_v19, 0.0 }
 0x9c6   : > { %v5840_v22 = vpack.c.bf16 %v5832_v21, %v5832_v21  ;;  %v5838_v56 = vpack.c.bf16 %v5830_v27, %v5830_v27  ;;  %v8616_v16 = vunpack.i.h.bf16 %v12499_v23  ;;  %v8615_v6 = vunpack.i.l.bf16 %v12499_v23  ;;  %v6354_v21 = vld [vmem:[#allocation3] sm:$0xff] }
 0x9c7   : > { %v5930_v51 = vrot.slane %v5914_v2, 4  ;;  %v5932_v39 = vrot.slane %v5916_v1, 4  ;;  %v8611_v30 = vunpack.i.h.bf16 %v12501_v40  ;;  %v8610_v57 = vunpack.i.l.bf16 %v12501_v40 }
 0x9c8   : > { %5848 = vst [vmem:[#allocation3 + $0x50] sm:$0xf] %v5840_v22  ;;  %5846 = vst [vmem:[#allocation3 + $0x40] sm:$0xf] %v5838_v56  ;;  %vm13713_vm11 = vcmask 523264   ;;  %v8619_v43 = vpop.permute.xlu1 %8618  ;;  %v12515_v48 = vpop.permute.xlu0 %5985  ;;  %vm13715_vm7 = vcmask 769024  }
 0x9c9   : > { %v6159_v20 = vsel %vm13713_vm11, %v8615_v6, %v8595_v7  ;;  %vm13714_vm4 = vmmov %vm13713_vm11  ;;  %5946 = vst [vmem:[#allocation3 + $0x40] sm:$0xf0] %v5930_v51  ;;  %v6061_v49 = vsel %vm13715_vm7, %v8591_v12, %v8611_v30  ;;  %v8621_v47 = vunpack.i.h.bf16 %v8619_v43  ;;  %v8620_v0 = vunpack.i.l.bf16 %v8619_v43  ;;  %v6363_v56 = vld [vmem:[#allocation3 + $0x48] sm:$0xff] }
 0x9ca   : > { %v6161_v26 = vsel %vm13714_vm4, %v8596_v29, %v8616_v16  ;;  %5948 = vst [vmem:[#allocation3 + $0x50] sm:$0xf0] %v5932_v39  ;;  %v6175_v45 = vsel %vm13690_vm15, %v6159_v20, 0.0  ;;  %vm13716_vm11 = vmmov %vm13715_vm7  ;;  %v6077_v29 = vsel %vm11313_vm3, %v6061_v49, 0.0  ;;  %vm13717_vm4 = vcmask 777216  }
 0x9cb   : > { %v6177_v13 = vsel %vm13694_vm14, %v6161_v26, 0.0  ;;  %v6059_v7 = vsel %vm13716_vm11, %v8610_v57, %v8590_v31  ;;  %v6183_v36 = vpack.c.bf16 %v6175_v45, %v6175_v45  ;;  %v6085_v61 = vpack.c.bf16 %v6077_v29, %v6077_v29 }
 0x9cc   : > { %v6185_v37 = vpack.c.bf16 %v6177_v13, %v6177_v13  ;;  %v6075_v50 = vsel %vm13712_vm10, %v6059_v7, 0.0  ;;  %v6000_v12 = vsel %vm13717_vm4, %v12433_v32, %v12515_v48  ;;  %v12532_v35 = vpop.permute.xlu0 %5740  ;;  %vm13718_vm7 = vcmask 506880  }
 0x9cd   : > { %v6083_v24 = vpack.c.bf16 %v6075_v50, %v6075_v50  ;;  %6191 = vst [vmem:[#allocation3 + $0xc0] sm:$0xf] %v6183_v36  ;;  %v6101_v31 = vrot.slane %v6085_v61, 4  ;;  %v6313_v44 = vsel %vm13718_vm7, %v8620_v0, %v8621_v47  ;;  %6016 = vst [vmem:[#allocation3 + $0x88] sm:$0xf] %v6000_v12  ;;  %vm13719_vm11 = vcmask 1039360  }
 0x9ce   : > { %6193 = vst [vmem:[#allocation3 + $0xd0] sm:$0xf] %v6185_v37  ;;  %v5755_v33 = vsel %vm13719_vm11, %v12441_v63, %v12532_v35  ;;  %v6329_v52 = vsel %vm13712_vm10, %v6313_v44, 0.0  ;;  %vm13720_vm4 = vcmask 515072   ;;  %vm13721_vm11 = vmmov %vm13718_vm7 }
 0x9cf   : > { %v6099_v55 = vrot.slane %v6083_v24, 4  ;;  %5771 = vst [vmem:[#allocation3 + $0x8] sm:$0xf0] %v5755_v33  ;;  %6117 = vst [vmem:[#allocation3 + $0x90] sm:$0xf0] %v6101_v31  ;;  %v6337_v3 = vpack.c.bf16 %v6329_v52, %v6329_v52 }
 0x9d0   : > { %v6236_v4 = vpop.permute.xlu0 %6235  ;;  %v6362_v13 = vld [vmem:[#allocation3 + $0x40] sm:$0xff] }
 0x9d1   : > { %6115 = vst [vmem:[#allocation3 + $0x80] sm:$0xf0] %v6099_v55  ;;  %6345 = vst [vmem:[#allocation3 + $0x100] sm:$0xf] %v6337_v3  ;;  %v6253_v32 = vsel %vm13720_vm4, %v6236_v4, %v12465_v28  ;;  %vm13722_vm4 = vcmask 785408  }
 0x9d2   : > { %6269 = vst [vmem:[#allocation3 + $0xc0] sm:$0xf0] %v6253_v32 }
 0x9d4   : > { %v12542_v19 = vpop.permute.xlu0 %8623  ;;  %v6371_v36 = vld [vmem:[#allocation3 + $0x88] sm:$0xff] }
 0x9d5   : > { %v8626_v2 = vunpack.i.h.bf16 %v12542_v19  ;;  %v8625_v1 = vunpack.i.l.bf16 %v12542_v19 }
 0x9d6   : > { %v6355_v63 = vld [vmem:[#allocation3 + $0x8] sm:$0xff] }
 0x9d7   : > { %6428 = vmatprep.subr.bf16.mxu1 %v6355_v63  ;;  %v6314_v27 = vsel %vm13718_vm7, %v8621_v47, %v8625_v1  ;;  %v6315_v22 = vsel %vm13721_vm11, %v8625_v1, %v8626_v2  ;;  %v12554_v39 = vpop.permute.xlu1 %8628  ;;  %vm13723_vm7 = vmmov %vm13722_vm4  ;;  %vm13724_vm11 = vcmask 1031168  }
 0x9d8   : > { %6429 = vmatpush1.bf16.msra.mxu1 %v6354_v21  ;;  %v6330_v6 = vsel %vm13705_vm9, %v6314_v27, 0.0  ;;  %v6331_v51 = vsel %vm11313_vm3, %v6315_v22, 0.0  ;;  %v12556_v57 = vpop.permute.xlu0 %8633  ;;  %v8631_v43 = vunpack.i.h.bf16 %v12554_v39  ;;  %v8630_v45 = vunpack.i.l.bf16 %v12554_v39  ;;  %vm13725_vm3 = vmmov %vm13724_vm11  ;;  %v6370_v42 = vld [vmem:[#allocation3 + $0x80] sm:$0xff] }
 0x9d9   : > { %6430 = vmatprep.subr.bf16.mxu1 %v6363_v56  ;;  %v6338_v20 = vpack.c.bf16 %v6330_v6, %v6330_v6  ;;  %v6339_v26 = vpack.c.bf16 %v6331_v51, %v6331_v51  ;;  %v8636_v49 = vunpack.i.h.bf16 %v12556_v57  ;;  %v8635_v7 = vunpack.i.l.bf16 %v12556_v57  ;;  %v6378_v23 = vld [vmem:[#allocation3 + $0xc0] sm:$0xff] }
 0x9da   : > { %v5893_v37 = vsel %vm13722_vm4, %v8601_v34, %v8630_v45  ;;  %v5894_v29 = vsel %vm13723_vm7, %v8630_v45, %v8631_v43  ;;  %vm13727_vm4 = vcmask 769024  }
 0x9db   : > { %6346 = vst [vmem:[#allocation3 + $0x108] sm:$0xf] %v6338_v20  ;;  %6347 = vst [vmem:[#allocation3 + $0x110] sm:$0xf] %v6339_v26  ;;  %v5909_v50 = vsel %vm10477_vm1, %v5893_v37, 0.0  ;;  %v5910_v61 = vsel %vm10488_vm5, %v5894_v29, 0.0  ;;  %v5817_v24 = vsel %vm13724_vm11, %v8606_v62, %v8635_v7  ;;  %v5818_v8 = vsel %vm13725_vm3, %v8635_v7, %v8636_v49  ;;  %v12578_v34 = vpop.permute.xlu1 %8638 }
 0x9dc   : > { %6431 = vmatpush1.bf16.msra.mxu1 %v6362_v13  ;;  %v5988_v47 = vpop.permute.xlu0 %5987  ;;  %v5917_v0 = vpack.c.bf16 %v5909_v50, %v5909_v50  ;;  %v5918_v12 = vpack.c.bf16 %v5910_v61, %v5910_v61  ;;  %v5833_v31 = vsel %vm11372_vm6, %v5817_v24, 0.0  ;;  %v5834_v55 = vsel %vm11605_vm0, %v5818_v8, 0.0  ;;  %vm13728_vm7 = vmmov %vm13727_vm4 }
 0x9dd   : > { %6432 = vmatprep.subr.bf16.mxu1 %v6371_v36  ;;  %v5841_v44 = vpack.c.bf16 %v5833_v31, %v5833_v31  ;;  %v5842_v33 = vpack.c.bf16 %v5834_v55, %v5834_v55  ;;  %v8641_v62 = vunpack.i.h.bf16 %v12578_v34  ;;  %v8640_v52 = vunpack.i.l.bf16 %v12578_v34 }
 0x9de   : > { %v5933_v3 = vrot.slane %v5917_v0, 4  ;;  %v5934_v4 = vrot.slane %v5918_v12, 4  ;;  %vm13726_vm3 = vcmask 777216   ;;  %vm13729_vm11 = vcmask 515072   ;;  %v6386_v0 = vld [vmem:[#allocation3 + $0x100] sm:$0xf] }
 0x9df   : > { %v6001_v32 = vsel %vm13726_vm3, %v12515_v48, %v5988_v47  ;;  %5849 = vst [vmem:[#allocation3 + $0x58] sm:$0xf] %v5841_v44  ;;  %5850 = vst [vmem:[#allocation3 + $0x60] sm:$0xf] %v5842_v33  ;;  %v6062_v1 = vsel %vm13727_vm4, %v8611_v30, %v8640_v52  ;;  %v6063_v63 = vsel %vm13728_vm7, %v8640_v52, %v8641_v62  ;;  %v12594_v21 = vpop.permute.xlu1 %6239  ;;  %vm13730_vm3 = vcmask 1039360  }
 0x9e0   : > { %6433 = vmatpush1.bf16.msra.mxu1 %v6370_v42  ;;  %6017 = vst [vmem:[#allocation3 + $0x90] sm:$0xf] %v6001_v32  ;;  %v5743_v27 = vpop.permute.xlu0 %5742  ;;  %5949 = vst [vmem:[#allocation3 + $0x58] sm:$0xf0] %v5933_v3  ;;  %v6078_v22 = vsel %vm11372_vm6, %v6062_v1, 0.0  ;;  %v6079_v48 = vsel %vm11605_vm0, %v6063_v63, 0.0  ;;  %v6254_v40 = vsel %vm13729_vm11, %v12465_v28, %v12594_v21 }
 0x9e1   : > { %5950 = vst [vmem:[#allocation3 + $0x60] sm:$0xf0] %v5934_v4  ;;  %v5756_v30 = vsel %vm13730_vm3, %v12532_v35, %v5743_v27  ;;  %v6086_v56 = vpack.c.bf16 %v6078_v22, %v6078_v22  ;;  %v6087_v6 = vpack.c.bf16 %v6079_v48, %v6079_v48  ;;  %6270 = vst [vmem:[#allocation3 + $0xc8] sm:$0xf0] %v6254_v40  ;;  %vm13731_vm4 = vcmask 777216  }
 0x9e2   : > { %5772 = vst [vmem:[#allocation3 + $0x10] sm:$0xf0] %v5756_v30  ;;  %vm13732_vm7 = vcmask 523264   ;;  %v12636_v52 = vld [vmem:[%s13132_s11] sm:$0xf] }
 0x9e3   : > { %v6102_v51 = vrot.slane %v6086_v56, 4  ;;  %v6103_v20 = vrot.slane %v6087_v6, 4  ;;  %v5990_v26 = vpop.permute.xlu1 %5989  ;;  %vm13733_vm11 = vmmov %vm13732_vm7 }
 0x9e4   : > { %v12605_v45 = vpop.permute.xlu0 %8643  ;;  %v6002_v13 = vsel %vm13731_vm4, %v5988_v47, %v5990_v26  ;;  %vm13734_vm4 = vcmask 1043456  }
 0x9e5   : > { %v8646_v7 = vunpack.i.h.bf16 %v12605_v45  ;;  %v8645_v36 = vunpack.i.l.bf16 %v12605_v45  ;;  %6118 = vst [vmem:[#allocation3 + $0x98] sm:$0xf0] %v6102_v51  ;;  %6119 = vst [vmem:[#allocation3 + $0xa0] sm:$0xf0] %v6103_v20  ;;  %v6364_v51 = vld [vmem:[#allocation3 + $0x50] sm:$0xff] }
 0x9e6   : > { %6018 = vst [vmem:[#allocation3 + $0x98] sm:$0xf] %v6002_v13 }
 0x9e7   : > { %v6162_v28 = vsel %vm13732_vm7, %v8616_v16, %v8645_v36  ;;  %v6163_v35 = vsel %vm13733_vm11, %v8645_v36, %v8646_v7  ;;  %v5745_v50 = vpop.permute.xlu1 %5744  ;;  %v6387_v16 = vld [vmem:[#allocation3 + $0x108] sm:$0xf]  ;;  %vm13735_vm7 = vcmask 506880   ;;  %vm13736_vm11 = vmmov %vm13734_vm4  ;;  %v6365_v22 = vld [vmem:[#allocation3 + $0x58] sm:$0xff] }
 0x9e8   : > { %v6178_v37 = vsel %vm10477_vm1, %v6162_v28, 0.0  ;;  %v6179_v29 = vsel %vm10488_vm5, %v6163_v35, 0.0  ;;  %v5757_v8 = vsel %vm13730_vm3, %v5743_v27, %v5745_v50  ;;  %v6379_v47 = vld [vmem:[#allocation3 + $0xc8] sm:$0xff]  ;;  %v12621_v12 = vpop.permute.xlu0 %6243  ;;  %v6405_v33 = vsel %vm13736_vm11, %v6386_v0, 0  ;;  %v6372_v28 = vld [vmem:[#allocation3 + $0x90] sm:$0xff] }
 0x9e9   : > { %v6186_v61 = vpack.c.bf16 %v6178_v37, %v6178_v37  ;;  %v6187_v24 = vpack.c.bf16 %v6179_v29, %v6179_v29  ;;  %5773 = vst [vmem:[#allocation3 + $0x18] sm:$0xf0] %v5757_v8  ;;  %6434 = vmatprep.subr.bf16.mxu1 %v6379_v47  ;;  %vm13290_vm3 = vcmask 588800   ;;  %v6356_v63 = vld [vmem:[#allocation3 + $0x10] sm:$0xff]  ;;  %vm13739_vm11 = vcmask 769024  }
 0x9ea   : > { %6435 = vmatpush1.bf16.msra.mxu1 %v6378_v23 }
 0x9eb   : > { %6194 = vst [vmem:[#allocation3 + $0xd8] sm:$0xf] %v6186_v61  ;;  %6195 = vst [vmem:[#allocation3 + $0xe0] sm:$0xf] %v6187_v24  ;;  %v12623_v31 = vpop.permute.xlu1 %6303  ;;  %7867 = vmatprep.subr.msk.bf16.mxu1 %vm13734_vm4, %v6387_v16  ;;  %vm13737_vm4 = vcmask 785408  }
 0x9ec   : > { %v6316_v55 = vsel %vm13735_vm7, %v8626_v2, %v12623_v31  ;;  %vm13738_vm7 = vcmask 777216   ;;  %v6388_v16 = vld [vmem:[#allocation3 + $0x110] sm:$0xf] }
 0x9ed   : > { %v6332_v44 = vsel %vm11372_vm6, %v6316_v55, 0.0  ;;  %vm13746_vm6 = vcmask 1031168  }
 0x9ee   : > { %v6340_v42 = vpack.c.bf16 %v6332_v44, %v6332_v44  ;;  %6437 = vmatpush1.bf16.msra.mxu1 %v6405_v33 }
 0x9ef   : > { %v5992_v4 = vpop.permute.xlu1 %5991 }
 0x9f0   : > { %v12638_v3 = vpop.permute.xlu0 %5884  ;;  %6348 = vst [vmem:[#allocation3 + $0x118] sm:$0xf] %v6340_v42  ;;  %v6003_v2 = vsel %vm13738_vm7, %v5990_v26, %v5992_v4  ;;  %v6357_v32 = vld [vmem:[#allocation3 + $0x18] sm:$0xff] }
 0x9f1   : > { %v5895_v19 = vsel %vm13737_vm4, %v8631_v43, %v12638_v3  ;;  %6019 = vst [vmem:[#allocation3 + $0xa0] sm:$0xf] %v6003_v2  ;;  %7868 = vmatmul.mubr.msk.bf16.vlgmr.msra.gmra.mrb[16].mxu1 %vm13290_vm3, %v12636_v52  ;;  %6469 = vmatprep.subr.bf16.mxu1 %v6357_v32  ;;  %vm13740_vm4 = vcmask 515072   ;;  %vm13742_vm3 = vnez %v13481_v54  ;;  %v6373_v26 = vld [vmem:[#allocation3 + $0x98] sm:$0xff] }
 0x9f2   : > { %v5911_v1 = vsel %vm10509_vm2, %v5895_v19, 0.0  ;;  %6470 = vmatpush1.bf16.msra.mxu1 %v6356_v63  ;;  %6501 = vmatprep.mubr.bf16.mxu1 %v13673_v5  ;;  %vm13741_vm7 = vmmov %vm13740_vm4 }
 0x9f3   : > { %v5919_v27 = vpack.c.bf16 %v5911_v1, %v5911_v1  ;;  %v6242_v43 = vpop.permute.xlu1 %6241  ;;  %6471 = vmatprep.subr.bf16.mxu1 %v6365_v22 }
 0x9f4   : > { %v12650_v39 = vpop.permute.xlu0 %6053  ;;  %v6255_v30 = vsel %vm13740_vm4, %v12594_v21, %v6242_v43  ;;  %v6256_v56 = vsel %vm13741_vm7, %v6242_v43, %v12621_v12  ;;  %vm13745_vm7 = vcmask 777216  }
 0x9f5   : > { %v5935_v48 = vrot.slane %v5919_v27, 4  ;;  %v6064_v40 = vsel %vm13739_vm11, %v8641_v62, %v12650_v39  ;;  %6271 = vst [vmem:[#allocation3 + $0xd0] sm:$0xf0] %v6255_v30  ;;  %6272 = vst [vmem:[#allocation3 + $0xd8] sm:$0xf0] %v6256_v56  ;;  %vm13743_vm11 = vcmask 1039360  }
 0x9f6   : > { %v6080_v6 = vsel %vm13742_vm3, %v6064_v40, 0.0  ;;  %6472 = vmatpush1.bf16.msra.mxu1 %v6364_v51  ;;  %vm13744_vm4 = vmmov %vm13743_vm11 }
 0x9f7   : > { %5951 = vst [vmem:[#allocation3 + $0x68] sm:$0xf0] %v5935_v48  ;;  %v6088_v20 = vpack.c.bf16 %v6080_v6, %v6080_v6  ;;  %v5747_v34 = vpop.permute.xlu1 %5746  ;;  %6473 = vmatprep.subr.bf16.mxu1 %v6373_v26  ;;  %v6389_v23 = vld [vmem:[#allocation3 + $0x118] sm:$0xf] }
 0x9f8   : > { %v12662_v13 = vpop.permute.xlu0 %5748  ;;  %v5758_v21 = vsel %vm13743_vm11, %v5745_v50, %v5747_v34  ;;  %vm13747_vm11 = vcmask 1043456  }
 0x9f9   : > { %v6104_v62 = vrot.slane %v6088_v20, 4  ;;  %v5759_v36 = vsel %vm13744_vm4, %v5747_v34, %v12662_v13  ;;  %5774 = vst [vmem:[#allocation3 + $0x20] sm:$0xf0] %v5758_v21  ;;  %vm13748_vm4 = vcmask 515072  }
 0x9fa   : > { %5775 = vst [vmem:[#allocation3 + $0x28] sm:$0xf0] %v5759_v36  ;;  %6474 = vmatpush1.bf16.msra.mxu1 %v6372_v28  ;;  %v6366_v28 = vld [vmem:[#allocation3 + $0x60] sm:$0xff] }
 0x9fb   : > { %6120 = vst [vmem:[#allocation3 + $0xa8] sm:$0xf0] %v6104_v62  ;;  %v12669_v37 = vpop.permute.xlu1 %5808 }
 0x9fc   : > { %v12667_v35 = vpop.permute.xlu0 %5993  ;;  %v5819_v50 = vsel %vm13746_vm6, %v8636_v49, %v12669_v37  ;;  %v6381_v61 = vld [vmem:[#allocation3 + $0xd8] sm:$0xff]  ;;  %v6380_v24 = vld [vmem:[#allocation3 + $0xd0] sm:$0xff]  ;;  %vm13749_vm6 = vcmask 523264  }
 0x9fd   : > { %v6004_v29 = vsel %vm13745_vm7, %v5992_v4, %v12667_v35  ;;  %v5835_v8 = vsel %vm13742_vm3, %v5819_v50, 0.0  ;;  %6475 = vmatprep.subr.bf16.mxu1 %v6381_v61  ;;  %vm13750_vm7 = vmmov %vm13747_vm11 }
 0x9fe   : > { %6020 = vst [vmem:[#allocation3 + $0xa8] sm:$0xf] %v6004_v29  ;;  %v5843_v47 = vpack.c.bf16 %v5835_v8, %v5835_v8  ;;  %6476 = vmatpush1.bf16.msra.mxu1 %v6380_v24  ;;  %v6411_v42 = vsel %vm13750_vm7, %v6388_v16, 0  ;;  %vm13754_vm7 = vcmask 785408  }
 0x9ff   : > { %v12679_v55 = vpop.permute.xlu1 %6153  ;;  %7869 = vmatprep.subr.msk.bf16.mxu1 %vm13747_vm11, %v6389_v23  ;;  %vm13751_vm11 = vcmask 588800   ;;  %vm13755_vm9 = vmmov %vm13754_vm7 }
 0xa00   : > { %v6246_v0 = vpop.permute.xlu0 %6245  ;;  %5851 = vst [vmem:[#allocation3 + $0x68] sm:$0xf] %v5843_v47  ;;  %v6164_v49 = vsel %vm13749_vm6, %v8646_v7, %v12679_v55  ;;  %v6358_v1 = vld [vmem:[#allocation3 + $0x20] sm:$0xff] }
 0xa01   : > { %v6257_v57 = vsel %vm13748_vm4, %v12621_v12, %v6246_v0  ;;  %v6359_v44 = vld [vmem:[#allocation3 + $0x28] sm:$0xff]  ;;  %v6180_v33 = vsel %vm10509_vm2, %v6164_v49, 0.0  ;;  %vm13752_vm4 = vcmask 506880  }
 0xa02   : > { %6273 = vst [vmem:[#allocation3 + $0xe0] sm:$0xf0] %v6257_v57  ;;  %v6188_v4 = vpack.c.bf16 %v6180_v33, %v6180_v33  ;;  %6478 = vmatpush1.bf16.msra.mxu1 %v6411_v42  ;;  %vm13753_vm6 = vmmov %vm13752_vm4  ;;  %v6374_v33 = vld [vmem:[#allocation3 + $0xa0] sm:$0xff] }
 0xa03   : > { %v8654_v2 = vpop.permute.xlu1 %8653  ;;  %6510 = vmatprep.subr.bf16.mxu1 %v6359_v44 }
 0xa04   : > { %v12691_v19 = vpop.permute.xlu0 %8648  ;;  %6196 = vst [vmem:[#allocation3 + $0xe8] sm:$0xf] %v6188_v4  ;;  %v8656_v32 = vunpack.i.h.bf16 %v8654_v2  ;;  %v8655_v7 = vunpack.i.l.bf16 %v8654_v2 }
 0xa05   : > { %v8651_v12 = vunpack.i.h.bf16 %v12691_v19  ;;  %v8650_v45 = vunpack.i.l.bf16 %v12691_v19  ;;  %7870 = vmatmul.mubr.msk.bf16.vlgmr.msra.gmra.mrb[20].mxu1 %vm13751_vm11, %v12636_v52  ;;  %v6375_v61 = vld [vmem:[#allocation3 + $0xa8] sm:$0xff]  ;;  %vm13757_vm11 = vcmask 1031168  }
 0xa06   : > { %v5896_v22 = vsel %vm13754_vm7, %v12638_v3, %v8655_v7  ;;  %v5897_v43 = vsel %vm13755_vm9, %v8655_v7, %v8656_v32  ;;  %6511 = vmatpush1.bf16.msra.mxu1 %v6358_v1  ;;  %6542 = vmatprep.mubr.bf16.mxu1 %v13673_v5  ;;  %vm13756_vm9 = vcmask 515072   ;;  %vm13760_vm7 = vcmask 1039360  }
 0xa07   : > { %v6317_v63 = vsel %vm13752_vm4, %v12623_v31, %v8650_v45  ;;  %v6318_v27 = vsel %vm13753_vm6, %v8650_v45, %v8651_v12  ;;  %v5912_v30 = vsel %vm10515_vm8, %v5896_v22, 0.0  ;;  %v5913_v31 = vsel %vm10562_vm12, %v5897_v43, 0.0  ;;  %v12713_v6 = vpop.permute.xlu1 %6247  ;;  %v6367_v51 = vld [vmem:[#allocation3 + $0x68] sm:$0xff]  ;;  %vm13758_vm4 = vmmov %vm13757_vm11 }
 0xa08   : > { %v6333_v48 = vsel %vm11605_vm0, %v6317_v63, 0.0  ;;  %v6334_v40 = vsel %vm13742_vm3, %v6318_v27, 0.0  ;;  %v8659_v56 = vpop.permute.xlu0 %8658  ;;  %v5920_v26 = vpack.c.bf16 %v5912_v30, %v5912_v30  ;;  %v5921_v34 = vpack.c.bf16 %v5913_v31, %v5913_v31  ;;  %6512 = vmatprep.subr.bf16.mxu1 %v6367_v51 }
 0xa09   : > { %v6341_v3 = vpack.c.bf16 %v6333_v48, %v6333_v48  ;;  %v6342_v20 = vpack.c.bf16 %v6334_v40, %v6334_v40  ;;  %v8661_v62 = vunpack.i.h.bf16 %v8659_v56  ;;  %v8660_v21 = vunpack.i.l.bf16 %v8659_v56  ;;  %v6382_v27 = vld [vmem:[#allocation3 + $0xe0] sm:$0xff] }
 0xa0a   : > { %v6258_v36 = vsel %vm13756_vm9, %v6246_v0, %v12713_v6  ;;  %v5936_v29 = vrot.slane %v5920_v26, 4  ;;  %v5937_v50 = vrot.slane %v5921_v34, 4  ;;  %6513 = vmatpush1.bf16.msra.mxu1 %v6366_v28  ;;  %vm13759_vm6 = vnez %v13589_v15  ;;  %vm13761_vm9 = vmmov %vm13760_vm7 }
 0xa0b   : > { %6349 = vst [vmem:[#allocation3 + $0x120] sm:$0xf] %v6341_v3  ;;  %6350 = vst [vmem:[#allocation3 + $0x128] sm:$0xf] %v6342_v20  ;;  %v5820_v24 = vsel %vm13757_vm11, %v12669_v37, %v8660_v21  ;;  %v5821_v8 = vsel %vm13758_vm4, %v8660_v21, %v8661_v62  ;;  %v5753_v23 = vpop.permute.xlu1 %5752  ;;  %6514 = vmatprep.subr.bf16.mxu1 %v6375_v61  ;;  %vm13762_vm11 = vcmask 777216   ;;  %vm13763_vm4 = vcmask 769024  }
 0xa0c   : > { %6274 = vst [vmem:[#allocation3 + $0xe8] sm:$0xf0] %v6258_v36  ;;  %v5751_v47 = vpop.permute.xlu0 %5750  ;;  %5952 = vst [vmem:[#allocation3 + $0x70] sm:$0xf0] %v5936_v29  ;;  %v5836_v16 = vsel %vm11921_vm13, %v5820_v24, 0.0  ;;  %v5837_v0 = vsel %vm13759_vm6, %v5821_v8, 0.0 }
 0xa0d   : > { %5953 = vst [vmem:[#allocation3 + $0x78] sm:$0xf0] %v5937_v50  ;;  %v5760_v57 = vsel %vm13760_vm7, %v12662_v13, %v5751_v47  ;;  %v5761_v49 = vsel %vm13761_vm9, %v5751_v47, %v5753_v23  ;;  %v5844_v44 = vpack.c.bf16 %v5836_v16, %v5836_v16  ;;  %v5845_v37 = vpack.c.bf16 %v5837_v0, %v5837_v0  ;;  %vm13764_vm7 = vmmov %vm13763_vm4 }
 0xa0e   : > { %5776 = vst [vmem:[#allocation3 + $0x30] sm:$0xf0] %v5760_v57  ;;  %5777 = vst [vmem:[#allocation3 + $0x38] sm:$0xf0] %v5761_v49  ;;  %6515 = vmatpush1.bf16.msra.mxu1 %v6374_v33  ;;  %vm13765_vm9 = vcmask 1043456  }
 0xa0f   : > { %5852 = vst [vmem:[#allocation3 + $0x70] sm:$0xf] %v5844_v44  ;;  %5853 = vst [vmem:[#allocation3 + $0x78] sm:$0xf] %v5845_v37  ;;  %v8664_v4 = vpop.permute.xlu1 %8663 }
 0xa10   : > { %v5996_v42 = vpop.permute.xlu0 %5995  ;;  %v8666_v45 = vunpack.i.h.bf16 %v8664_v4  ;;  %v8665_v32 = vunpack.i.l.bf16 %v8664_v4 }
 0xa11   : > { %v6005_v2 = vsel %vm13762_vm11, %v12667_v35, %v5996_v42 }
 0xa12   : > { %6021 = vst [vmem:[#allocation3 + $0xb0] sm:$0xf] %v6005_v2  ;;  %v6391_v13 = vld [vmem:[#allocation3 + $0x128] sm:$0xf]  ;;  %v6065_v1 = vsel %vm13763_vm4, %v12650_v39, %v8665_v32  ;;  %v6066_v63 = vsel %vm13764_vm7, %v8665_v32, %v8666_v45  ;;  %v6390_v22 = vld [vmem:[#allocation3 + $0x120] sm:$0xf]  ;;  %vm13766_vm4 = vmmov %vm13765_vm9 }
 0xa13   : > { %v6383_v7 = vld [vmem:[#allocation3 + $0xe8] sm:$0xff]  ;;  %v6081_v43 = vsel %vm11921_vm13, %v6065_v1, 0.0  ;;  %v6082_v48 = vsel %vm13759_vm6, %v6066_v63, 0.0  ;;  %v5998_v40 = vpop.permute.xlu1 %5997  ;;  %v6417_v26 = vsel %vm13766_vm4, %v6390_v22, 0  ;;  %vm13767_vm7 = vcmask 523264  }
 0xa14   : > { %6516 = vmatprep.subr.bf16.mxu1 %v6383_v7  ;;  %v8669_v35 = vpop.permute.xlu0 %8668  ;;  %v6089_v30 = vpack.c.bf16 %v6081_v43, %v6081_v43  ;;  %v6090_v31 = vpack.c.bf16 %v6082_v48, %v6082_v48  ;;  %v6006_v20 = vsel %vm13762_vm11, %v5996_v42, %v5998_v40  ;;  %vm13768_vm3 = vmmov %vm13767_vm7  ;;  %vm13771_vm11 = vcmask 588800  }
 0xa15   : > { %6517 = vmatpush1.bf16.msra.mxu1 %v6382_v27  ;;  %v8671_v56 = vunpack.i.h.bf16 %v8669_v35  ;;  %v8670_v51 = vunpack.i.l.bf16 %v8669_v35  ;;  %v6361_v39 = vld [vmem:[#allocation3 + $0x38] sm:$0xff]  ;;  %v6360_v3 = vld [vmem:[#allocation3 + $0x30] sm:$0xff]  ;;  %6022 = vst [vmem:[#allocation3 + $0xb8] sm:$0xf] %v6006_v20  ;;  %vm13772_vm4 = vcmask 506880  }
 0xa16   : > { %7871 = vmatprep.subr.msk.bf16.mxu1 %vm13765_vm9, %v6391_v13  ;;  %6551 = vmatprep.subr.bf16.mxu0 %v6361_v39  ;;  %v6105_v34 = vrot.slane %v6089_v30, 4  ;;  %v6106_v62 = vrot.slane %v6090_v31, 4  ;;  %v6369_v28 = vld [vmem:[#allocation3 + $0x78] sm:$0xff]  ;;  %vm13769_vm9 = vcmask 515072   ;;  %v6368_v16 = vld [vmem:[#allocation3 + $0x70] sm:$0xff] }
 0xa17   : > { %v6165_v21 = vsel %vm13767_vm7, %v12679_v55, %v8670_v51  ;;  %v6166_v36 = vsel %vm13768_vm3, %v8670_v51, %v8671_v56  ;;  %6552 = vmatpush1.bf16.msra.mxu0 %v6360_v3  ;;  %v6250_v24 = vpop.permute.xlu1 %6249  ;;  %vm13770_vm3 = vmmov %vm13769_vm9 }
 0xa18   : > { %v6181_v29 = vsel %vm10515_vm8, %v6165_v21, 0.0  ;;  %v6182_v50 = vsel %vm10562_vm12, %v6166_v36, 0.0  ;;  %v6252_v61 = vpop.permute.xlu0 %6251  ;;  %6553 = vmatprep.subr.bf16.mxu0 %v6369_v28  ;;  %6121 = vst [vmem:[#allocation3 + $0xb0] sm:$0xf0] %v6105_v34  ;;  %6122 = vst [vmem:[#allocation3 + $0xb8] sm:$0xf0] %v6106_v62  ;;  %v6259_v55 = vsel %vm13769_vm9, %v12713_v6, %v6250_v24 }
 0xa19   : > { %6519 = vmatpush1.bf16.msra.mxu1 %v6417_v26  ;;  %v6189_v8 = vpack.c.bf16 %v6181_v29, %v6181_v29  ;;  %v6190_v47 = vpack.c.bf16 %v6182_v50, %v6182_v50  ;;  %v6260_v23 = vsel %vm13770_vm3, %v6250_v24, %v6252_v61  ;;  %6275 = vst [vmem:[#allocation3 + $0xf0] sm:$0xf0] %v6259_v55  ;;  %vm13773_vm7 = vmmov %vm13772_vm4  ;;  %vm13774_vm9 = vcmask 1043456  }
 0xa1a   : > { %6276 = vst [vmem:[#allocation3 + $0xf8] sm:$0xf0] %v6260_v23  ;;  %vm13775_vm3 = vmmov %vm13774_vm9 }
 0xa1b   : > { %6197 = vst [vmem:[#allocation3 + $0xf0] sm:$0xf] %v6189_v8  ;;  %6198 = vst [vmem:[#allocation3 + $0xf8] sm:$0xf] %v6190_v47  ;;  %6554 = vmatpush1.bf16.msra.mxu0 %v6368_v16  ;;  %v8674_v0 = vpop.permute.xlu1 %8673 }
 0xa1c   : > { %7872 = vmatmul.mubr.msk.bf16.vlgmr.msra.gmra.mrb[24].mxu1 %vm13771_vm11, %v12636_v52  ;;  %v8676_v57 = vunpack.i.h.bf16 %v8674_v0  ;;  %v8675_v49 = vunpack.i.l.bf16 %v8674_v0 }
 0xa1d   : > { %7465 = vmatprep.mubr.bf16.mxu1 %v13673_v5 }
 0xa1e   : > { %v6319_v6 = vsel %vm13772_vm4, %v8651_v12, %v8675_v49  ;;  %v6320_v44 = vsel %vm13773_vm7, %v8675_v49, %v8676_v57  ;;  %vm13776_vm4 = vcmask 269312   ;;  %vm13777_vm7 = vcmask 1047816  }
 0xa1f   : > { %v6335_v37 = vsel %vm11921_vm13, %v6319_v6, 0.0  ;;  %v6336_v33 = vsel %vm13759_vm6, %v6320_v44, 0.0  ;;  %v6377_v42 = vld [vmem:[#allocation3 + $0xb8] sm:$0xff]  ;;  %v6376_v4 = vld [vmem:[#allocation3 + $0xb0] sm:$0xff]  ;;  %vm13800_vm13 = vcmask 777216  }
 0xa20   : > { %v6343_v2 = vpack.c.bf16 %v6335_v37, %v6335_v37  ;;  %v6344_v45 = vpack.c.bf16 %v6336_v33, %v6336_v33  ;;  %6555 = vmatprep.subr.bf16.mxu0 %v6377_v42 }
 0xa21   : > { %6556 = vmatpush1.bf16.msra.mxu0 %v6376_v4 }
 0xa22   : > { %v6385_v32 = vld [vmem:[#allocation3 + $0xf8] sm:$0xff]  ;;  %6351 = vst [vmem:[#allocation3 + $0x130] sm:$0xf] %v6343_v2  ;;  %6352 = vst [vmem:[#allocation3 + $0x138] sm:$0xf] %v6344_v45  ;;  %v6384_v19 = vld [vmem:[#allocation3 + $0xf0] sm:$0xff] }
 0xa23   : > { %6557 = vmatprep.subr.bf16.mxu0 %v6385_v32 }
 0xa25   : > { %6558 = vmatpush1.bf16.msra.mxu0 %v6384_v19 }
 0xa29   : > { %v6393_v12 = vld [vmem:[#allocation3 + $0x138] sm:$0xf]  ;;  %v6392_v7 = vld [vmem:[#allocation3 + $0x130] sm:$0xf]  ;;  %v6398_v1 = vpop.permute.xlu0 %6397 }
 0xa2a   : > { %7873 = vmatprep.subr.msk.bf16.mxu0 %vm13774_vm9, %v6393_v12  ;;  %v6423_v13 = vsel %vm13775_vm3, %v6392_v7, 0  ;;  %vm13778_vm9 = vnez %v13687_v14  ;;  %vm13779_vm3 = vmmov %vm13776_vm4 }
 0xa2b   : > { %6560 = vmatpush1.bf16.msra.mxu0 %v6423_v13 }
 0xa2e   : > { %7874 = vmatmul.mubr.msk.bf16.vlgmr.msra.gmra.mrb[32].mxu0 %vm13771_vm11, %v12636_v52  ;;  %vm13780_vm11 = vmmov %vm13779_vm3 }
 0xa2f   : > { %7506 = vmatprep.mubr.bf16.mxu0 %v13673_v5 }
 0xac4   : > { %v6462_v63 = vpop.f32.mrb[16].mxu1 }
 0xac5   : > { %v6463_v27 = vadd.f32 %v6462_v63, %v6398_v1  ;;  %v6464_v22 = vpop.f32.mrb[17].mxu1 }
 0xac6   : > { %v6465_v43 = vadd.f32 %v6464_v22, %v6398_v1  ;;  %v6466_v48 = vpop.f32.mrb[18].mxu1 }
 0xac7   : > { %v6592_v35 = vmax.f32 %v6463_v27, 0.0  ;;  %v6467_v40 = vpop.f32.mrb[19].mxu1 }
 0xac8   : > { %v6593_v30 = vmax.f32 %v6465_v43, 0.0 }
 0xaca   : > { %v8677_v31 = vpack.i.bf16 %v6593_v30, %v6592_v35 }
 0xacc   : > { %8678 = vrot.lane.b32.xlu1 %v8677_v31, %s13356_s22 }
 0xad8   : > { %v6503_v56 = vpop.f32.mrb[20].mxu1 }
 0xad9   : > { %v6504_v51 = vadd.f32 %v6503_v56, %v6398_v1  ;;  %v6505_v39 = vpop.f32.mrb[21].mxu1 }
 0xada   : > { %v6506_v3 = vadd.f32 %v6505_v39, %v6398_v1  ;;  %v6507_v20 = vpop.f32.mrb[22].mxu1 }
 0xadb   : > { %v6594_v52 = vmax.f32 %v6504_v51, 0.0  ;;  %v6508_v26 = vpop.f32.mrb[23].mxu1 }
 0xadc   : > { %v6595_v34 = vmax.f32 %v6506_v3, 0.0 }
 0xade   : > { %v8682_v62 = vpack.i.bf16 %v6595_v34, %v6594_v52 }
 0xae0   : > { %8683 = vrot.lane.b32.xlu0 %v8682_v62, %s13356_s22 }
 0xaef   : > { %v6544_v21 = vpop.f32.mrb[24].mxu1 }
 0xaf0   : > { %v6545_v36 = vadd.f32 %v6544_v21, %v6398_v1  ;;  %v6546_v28 = vpop.f32.mrb[25].mxu1 }
 0xaf1   : > { %v6547_v29 = vadd.f32 %v6546_v28, %v6398_v1  ;;  %v6548_v50 = vpop.f32.mrb[26].mxu1 }
 0xaf2   : > { %v6596_v61 = vmax.f32 %v6545_v36, 0.0  ;;  %v6549_v24 = vpop.f32.mrb[27].mxu1 }
 0xaf3   : > { %v6597_v8 = vmax.f32 %v6547_v29, 0.0 }
 0xaf5   : > { %v8687_v47 = vpack.i.bf16 %v6597_v8, %v6596_v61 }
 0xaf7   : > { %8688 = vrot.lane.b32.xlu1 %v8687_v47, %s13356_s22 }
 0xb01   : > { %v6585_v55 = vpop.f32.mrb[32].mxu0 }
 0xb02   : > { %v6586_v23 = vadd.f32 %v6585_v55, %v6398_v1  ;;  %v6587_v16 = vpop.f32.mrb[33].mxu0 }
 0xb03   : > { %v6588_v0 = vadd.f32 %v6587_v16, %v6398_v1  ;;  %v6589_v57 = vpop.f32.mrb[34].mxu0 }
 0xb04   : > { %v6598_v49 = vmax.f32 %v6586_v23, 0.0  ;;  %v6590_v6 = vpop.f32.mrb[35].mxu0 }
 0xb05   : > { %v6599_v44 = vmax.f32 %v6588_v0, 0.0 }
 0xb07   : > { %v8692_v37 = vpack.i.bf16 %v6599_v44, %v6598_v49 }
 0xb09   : > { %8693 = vrot.lane.b32.xlu0 %v8692_v37, %s13356_s22 }
 0xb3e   : > { %v8679_v33 = vpop.permute.xlu1 %8678 }
 0xb3f   : > { %v8681_v42 = vunpack.i.h.bf16 %v8679_v33  ;;  %v8680_v4 = vunpack.i.l.bf16 %v8679_v33 }
 0xb41   : > { %v6649_v2 = vsel %vm13776_vm4, %v8680_v4, %v8681_v42  ;;  %6665 = vst.msk [vmem:[#allocation2] sm:$0xff] %vm13777_vm7, %v8680_v4  ;;  %vm13781_vm4 = vmmov %vm13779_vm3 }
 0xb42   : > { %v6683_v45 = vsel %vm13778_vm9, %v6649_v2, 0.0  ;;  %v6970_v63 = vpack.c.bf16 %v6649_v2, %v6649_v2  ;;  %vm13782_vm7 = vmmov %vm13779_vm3 }
 0xb43   : > { %v6691_v32 = vpack.c.bf16 %v6683_v45, %v6683_v45 }
 0xb44   : > { %v6734_v30 = vrot.slane %v6970_v63, 4 }
 0xb45   : > { %6699 = vst [vmem:[#allocation3 + $0x8] sm:$0xf] %v6691_v32 }
 0xb48   : > { %v6674_v19 = vld [vmem:[#allocation2] sm:$0xff] }
 0xb49   : > { %v6682_v12 = vsel %vm13690_vm15, %v6674_v19, 0.0  ;;  %v6969_v7 = vpack.c.bf16 %v6674_v19, %v6674_v19  ;;  %v8697_v13 = vpack.i.bf16 %v6649_v2, %v6674_v19 }
 0xb4a   : > { %v6690_v1 = vpack.c.bf16 %v6682_v12, %v6682_v12 }
 0xb4b   : > { %6987 = vrot.lane.b32.xlu1 %v6969_v7, %s9070_s26  ;;  %8698 = vrot.lane.b32.xlu0 %v8697_v13, %s13359_s27  ;;  %v6733_v27 = vrot.slane %v6969_v7, 4 }
 0xb4c   : > { %6698 = vst [vmem:[#allocation3] sm:$0xf] %v6690_v1 }
 0xb4f   : > { %6989 = vrot.lane.b32.xlu1 %v6970_v63, %s9070_s26  ;;  %6742 = vrot.lane.b32.xlu0 %v6733_v27, %s13360_s30 }
 0xb52   : > { %v8684_v22 = vpop.permute.xlu0 %8683 }
 0xb53   : > { %v8686_v43 = vunpack.i.h.bf16 %v8684_v22  ;;  %v8685_v48 = vunpack.i.l.bf16 %v8684_v22  ;;  %7241 = vrot.lane.b32.xlu1 %v6733_v27, %s9075_s28 }
 0xb55   : > { %v6650_v35 = vsel %vm13779_vm3, %v8681_v42, %v8685_v48  ;;  %v6651_v40 = vsel %vm13780_vm11, %v8685_v48, %v8686_v43  ;;  %vm13783_vm11 = vmmov %vm13779_vm3  ;;  %v7400_v48 = vld [vmem:[%s13135_s14] sm:$0x7] }
 0xb56   : > { %6667 = vst [vmem:[#allocation2 + $0x10] sm:$0xff] %v6650_v35  ;;  %v6684_v31 = vsel %vm13694_vm14, %v6650_v35, 0.0  ;;  %v6685_v56 = vsel %vm10477_vm1, %v6651_v40, 0.0  ;;  %v8712_v51 = vpack.i.bf16 %v6650_v35, %v6649_v2  ;;  %v6971_v20 = vpack.c.bf16 %v6650_v35, %v6650_v35 }
 0xb57   : > { %v6692_v39 = vpack.c.bf16 %v6684_v31, %v6684_v31  ;;  %v6693_v3 = vpack.c.bf16 %v6685_v56, %v6685_v56  ;;  %6744 = vrot.lane.b32.xlu1 %v6734_v30, %s13360_s30  ;;  %v8722_v26 = vpack.i.bf16 %v6651_v40, %v6650_v35  ;;  %v6972_v36 = vpack.c.bf16 %v6651_v40, %v6651_v40 }
 0xb58   : > { %8713 = vrot.lane.b32.xlu0 %v8712_v51, %s13318_s23  ;;  %v6735_v52 = vrot.slane %v6971_v20, 4 }
 0xb59   : > { %6700 = vst [vmem:[#allocation3 + $0x10] sm:$0xf] %v6692_v39  ;;  %6701 = vst [vmem:[#allocation3 + $0x18] sm:$0xf] %v6693_v3  ;;  %v6736_v55 = vrot.slane %v6972_v36, 4 }
 0xb5b   : > { %7243 = vrot.lane.b32.xlu1 %v6734_v30, %s9075_s28 }
 0xb5c   : > { %8718 = vrot.lane.b32.xlu0 %v8712_v51, %s13358_s25 }
 0xb5f   : > { %8703 = vrot.lane.b32.xlu1 %v8712_v51, %s13317_s21 }
 0xb60   : > { %6991 = vrot.lane.b32.xlu0 %v6971_v20, %s9070_s26 }
 0xb63   : > { %8708 = vrot.lane.b32.xlu1 %v8712_v51, %s13357_s24 }
 0xb64   : > { %6746 = vrot.lane.b32.xlu0 %v6735_v52, %s13360_s30 }
 0xb67   : > { %8723 = vrot.lane.b32.xlu1 %v8722_v26, %s13359_s27 }
 0xb68   : > { %7245 = vrot.lane.b32.xlu0 %v6735_v52, %s9075_s28 }
 0xb69   : > { %v8689_v34 = vpop.permute.xlu1 %8688 }
 0xb6a   : > { %v8691_v62 = vunpack.i.h.bf16 %v8689_v34  ;;  %v8690_v21 = vunpack.i.l.bf16 %v8689_v34 }
 0xb6b   : > { %6993 = vrot.lane.b32.xlu1 %v6972_v36, %s9070_s26 }
 0xb6c   : > { %v6652_v28 = vsel %vm13781_vm4, %v8686_v43, %v8690_v21  ;;  %v12799_v29 = vsel %vm13782_vm7, %v8690_v21, %v8691_v62  ;;  %vm13784_vm4 = vmmov %vm13779_vm3  ;;  %vm13785_vm7 = vcmask 506880  }
 0xb6d   : > { %6670 = vst [vmem:[#allocation2 + $0x28] sm:$0xff] %v12799_v29  ;;  %v6686_v50 = vsel %vm10488_vm5, %v6652_v28, 0.0  ;;  %v6687_v61 = vsel %vm10509_vm2, %v12799_v29, 0.0  ;;  %v8727_v24 = vpack.i.bf16 %v6652_v28, %v6651_v40  ;;  %v8757_v23 = vpack.i.bf16 %v12799_v29, %v6674_v19 }
 0xb6e   : > { %v6694_v8 = vpack.c.bf16 %v6686_v50, %v6686_v50  ;;  %v6695_v47 = vpack.c.bf16 %v6687_v61, %v6687_v61  ;;  %v6973_v45 = vpack.c.bf16 %v6652_v28, %v6652_v28  ;;  %v6974_v32 = vpack.c.bf16 %v12799_v29, %v12799_v29 }
 0xb6f   : > { %8728 = vrot.lane.b32.xlu0 %v8727_v24, %s13317_s21  ;;  %6748 = vrot.lane.b32.xlu1 %v6736_v55, %s13360_s30 }
 0xb70   : > { %6702 = vst [vmem:[#allocation3 + $0x20] sm:$0xf] %v6694_v8  ;;  %6703 = vst [vmem:[#allocation3 + $0x28] sm:$0xf] %v6695_v47  ;;  %v6737_v19 = vrot.slane %v6973_v45, 4  ;;  %v6738_v13 = vrot.slane %v6974_v32, 4 }
 0xb73   : > { %8733 = vrot.lane.b32.xlu0 %v8727_v24, %s13357_s24  ;;  %7247 = vrot.lane.b32.xlu1 %v6736_v55, %s9075_s28 }
 0xb77   : > { %7309 = vrot.lane.b32.xlu0 %v6652_v28, %s13359_s27  ;;  %8738 = vrot.lane.b32.xlu1 %v8727_v24, %s13318_s23 }
 0xb7b   : > { %8758 = vrot.lane.b32.xlu0 %v8757_v23, %s13318_s23  ;;  %v8694_v16 = vpop.permute.xlu0 %8693  ;;  %8743 = vrot.lane.b32.xlu1 %v8727_v24, %s13358_s25 }
 0xb7c   : > { %v8696_v0 = vunpack.i.h.bf16 %v8694_v16  ;;  %v8695_v57 = vunpack.i.l.bf16 %v8694_v16 }
 0xb7e   : > { %6673 = vst.msk [vmem:[#allocation2 + $0x40] sm:$0xff] %vm13779_vm3, %v8696_v0  ;;  %v6654_v49 = vsel %vm13783_vm11, %v8691_v62, %v8695_v57  ;;  %v6655_v6 = vsel %vm13784_vm4, %v8695_v57, %v8696_v0  ;;  %vm13786_vm3 = vcmask 777216   ;;  %vm13787_vm11 = vcmask 1039360  }
 0xb7f   : > { %8763 = vrot.lane.b32.xlu0 %v8757_v23, %s13358_s25  ;;  %6671 = vst [vmem:[#allocation2 + $0x30] sm:$0xff] %v6654_v49  ;;  %6672 = vst [vmem:[#allocation2 + $0x38] sm:$0xff] %v6655_v6  ;;  %v6688_v44 = vsel %vm10515_vm8, %v6654_v49, 0.0  ;;  %v6689_v37 = vsel %vm10562_vm12, %v6655_v6, 0.0  ;;  %8748 = vrot.lane.b32.xlu1 %v8757_v23, %s13317_s21  ;;  %v8767_v2 = vpack.i.bf16 %v6655_v6, %v6654_v49  ;;  %vm13788_vm4 = vcmask 769024  }
 0xb80   : > { %v6696_v33 = vpack.c.bf16 %v6688_v44, %v6688_v44  ;;  %v6697_v42 = vpack.c.bf16 %v6689_v37, %v6689_v37  ;;  %v6976_v12 = vpack.c.bf16 %v6655_v6, %v6655_v6  ;;  %v6975_v7 = vpack.c.bf16 %v6654_v49, %v6654_v49 }
 0xb81   : > { %v8787_v43 = vpack.i.bf16 %v6654_v49, %v12799_v29 }
 0xb82   : > { %6704 = vst [vmem:[#allocation3 + $0x30] sm:$0xf] %v6696_v33  ;;  %6705 = vst [vmem:[#allocation3 + $0x38] sm:$0xf] %v6697_v42  ;;  %v6740_v63 = vrot.slane %v6976_v12, 4  ;;  %v6739_v27 = vrot.slane %v6975_v7, 4 }
 0xb83   : > { %8753 = vrot.lane.b32.xlu1 %v8757_v23, %s13357_s24 }
 0xb85   : > { %v6868_v4 = vld [vmem:[#allocation2 + $0x40] sm:$0xff] }
 0xb86   : > { %6894 = vrot.lane.b32.xlu0 %v6868_v4, %s13317_s21  ;;  %v6977_v1 = vpack.c.bf16 %v6868_v4, %v6868_v4  ;;  %v8792_v35 = vpack.i.bf16 %v6868_v4, %v6655_v6 }
 0xb87   : > { %8768 = vrot.lane.b32.xlu1 %v8767_v2, %s13317_s21 }
 0xb88   : > { %v6741_v22 = vrot.slane %v6977_v1, 4 }
 0xb8a   : > { %6818 = vrot.lane.b32.xlu0 %v6868_v4, %s13357_s24 }
 0xb8b   : > { %8773 = vrot.lane.b32.xlu1 %v8767_v2, %s13357_s24  ;;  %s13865_s24 = sshll.u32 %s13867_s19, 5 }
 0xb8e   : > { %7063 = vrot.lane.b32.xlu0 %v6868_v4, %s13318_s23 }
 0xb8f   : > { %8778 = vrot.lane.b32.xlu1 %v8767_v2, %s13318_s23 }
 0xb92   : > { %6995 = vrot.lane.b32.xlu0 %v6973_v45, %s9070_s26 }
 0xb93   : > { %6997 = vrot.lane.b32.xlu1 %v6974_v32, %s9070_s26 }
 0xb96   : > { %6750 = vrot.lane.b32.xlu0 %v6737_v19, %s13360_s30 }
 0xb97   : > { %7001 = vrot.lane.b32.xlu1 %v6976_v12, %s9070_s26 }
 0xb9a   : > { %6999 = vrot.lane.b32.xlu0 %v6975_v7, %s9070_s26 }
 0xb9b   : > { %6752 = vrot.lane.b32.xlu1 %v6738_v13, %s13360_s30 }
 0xb9e   : > { %7003 = vrot.lane.b32.xlu0 %v6977_v1, %s9070_s26 }
 0xb9f   : > { %6756 = vrot.lane.b32.xlu1 %v6740_v63, %s13360_s30 }
 0xba2   : > { %7249 = vrot.lane.b32.xlu0 %v6737_v19, %s9075_s28 }
 0xba3   : > { %8783 = vrot.lane.b32.xlu1 %v8767_v2, %s13358_s25 }
 0xba6   : > { %6754 = vrot.lane.b32.xlu0 %v6739_v27, %s13360_s30 }
 0xba7   : > { %7251 = vrot.lane.b32.xlu1 %v6738_v13, %s9075_s28 }
 0xbaa   : > { %6758 = vrot.lane.b32.xlu0 %v6741_v22, %s13360_s30  ;;  %s534_s30 = scalar_lea.vmem %s13136_s15, %s13865_s24 }
 0xbab   : > { %7255 = vrot.lane.b32.xlu1 %v6740_v63, %s9075_s28 }
 0xbae   : > { %7163 = vrot.lane.b32.xlu0 %v6868_v4, %s13358_s25 }
 0xbaf   : > { %8788 = vrot.lane.b32.xlu1 %v8787_v43, %s13359_s27 }
 0xbb2   : > { %7253 = vrot.lane.b32.xlu0 %v6739_v27, %s9075_s28 }
 0xbb3   : > { %7403 = vperm.xlu1 %8156, %v7400_v48  }
 0xbb6   : > { %7257 = vrot.lane.b32.xlu0 %v6741_v22, %s9075_s28 }
 0xbba   : > { %8793 = vrot.lane.b32.xlu0 %v8792_v35, %s13359_s27 }
 0xbbd   : > { %v6988_v40 = vpop.permute.xlu1 %6987  ;;  %v8699_v30 = vpop.permute.xlu0 %8698 }
 0xbbe   : > { %v8701_v31 = vunpack.i.h.bf16 %v8699_v30  ;;  %v8700_v56 = vunpack.i.l.bf16 %v8699_v30 }
 0xbc0   : > { %v7319_v51 = vsel %vm13785_vm7, %v8700_v56, %v8701_v31  ;;  %vm13789_vm7 = vcmask 515072  }
 0xbc1   : > { %v7335_v39 = vsel %vm13712_vm10, %v7319_v51, 0.0  ;;  %v6990_v3 = vpop.permute.xlu1 %6989  ;;  %v6743_v34 = vpop.permute.xlu0 %6742 }
 0xbc2   : > { %v7343_v20 = vpack.c.bf16 %v7335_v39, %v7335_v39  ;;  %v7005_v52 = vsel %vm13786_vm3, %v6988_v40, %v6990_v3  ;;  %vm13790_vm3 = vnez %v13704_v53 }
 0xbc3   : > { %7021 = vst [vmem:[#allocation3 + $0x80] sm:$0xf] %v7005_v52 }
 0xbc4   : > { %7351 = vst [vmem:[#allocation3 + $0x100] sm:$0xf] %v7343_v20 }
 0xbc5   : > { %v7242_v26 = vpop.permute.xlu1 %7241 }
 0xbc9   : > { %v6745_v62 = vpop.permute.xlu1 %6744 }
 0xbca   : > { %v6760_v21 = vsel %vm13787_vm11, %v6743_v34, %v6745_v62  ;;  %v12863_v36 = vpop.permute.xlu0 %8713  ;;  %vm13791_vm11 = vcmask 523264  }
 0xbcb   : > { %6776 = vst [vmem:[#allocation3] sm:$0xf0] %v6760_v21  ;;  %v8716_v28 = vunpack.i.h.bf16 %v12863_v36  ;;  %v8715_v29 = vunpack.i.l.bf16 %v12863_v36 }
 0xbcd   : > { %v7244_v50 = vpop.permute.xlu1 %7243  ;;  %v7066_v61 = vsel %vm13788_vm4, %v8715_v29, %v8716_v28  ;;  %vm13792_vm4 = vcmask 777216  }
 0xbce   : > { %v7259_v24 = vsel %vm13789_vm7, %v7242_v26, %v7244_v50  ;;  %v7082_v8 = vsel %vm13790_vm3, %v7066_v61, 0.0  ;;  %v12875_v47 = vpop.permute.xlu0 %8718  ;;  %vm13793_vm7 = vcmask 785408  }
 0xbcf   : > { %7275 = vst [vmem:[#allocation3 + $0xc0] sm:$0xf0] %v7259_v24  ;;  %v7090_v55 = vpack.c.bf16 %v7082_v8, %v7082_v8  ;;  %v8721_v23 = vunpack.i.h.bf16 %v12875_v47  ;;  %v8720_v16 = vunpack.i.l.bf16 %v12875_v47 }
 0xbd1   : > { %v7106_v0 = vrot.slane %v7090_v55, 4  ;;  %v12879_v57 = vpop.permute.xlu1 %8703  ;;  %v7166_v49 = vsel %vm13791_vm11, %v8720_v16, %v8721_v23  ;;  %vm13794_vm11 = vcmask 1039360  }
 0xbd2   : > { %v8706_v6 = vunpack.i.h.bf16 %v12879_v57  ;;  %v8705_v44 = vunpack.i.l.bf16 %v12879_v57  ;;  %v7182_v37 = vsel %vm13778_vm9, %v7166_v49, 0.0  ;;  %v6992_v33 = vpop.permute.xlu0 %6991 }
 0xbd3   : > { %7122 = vst [vmem:[#allocation3 + $0x88] sm:$0xf0] %v7106_v0  ;;  %v7190_v42 = vpack.c.bf16 %v7182_v37, %v7182_v37  ;;  %v7006_v4 = vsel %vm13792_vm4, %v6990_v3, %v6992_v33  ;;  %vm13795_vm4 = vcmask 1031168  }
 0xbd4   : > { %v6897_v2 = vsel %vm13793_vm7, %v8705_v44, %v8706_v6  ;;  %7022 = vst [vmem:[#allocation3 + $0x88] sm:$0xf] %v7006_v4  ;;  %vm13797_vm7 = vcmask 506880  }
 0xbd5   : > { %v6913_v45 = vsel %vm13778_vm9, %v6897_v2, 0.0  ;;  %7198 = vst [vmem:[#allocation3 + $0xc8] sm:$0xf] %v7190_v42  ;;  %v12896_v32 = vpop.permute.xlu1 %8708  ;;  %vm13796_vm9 = vcmask 515072  }
 0xbd6   : > { %v6921_v19 = vpack.c.bf16 %v6913_v45, %v6913_v45  ;;  %v8711_v12 = vunpack.i.h.bf16 %v12896_v32  ;;  %v8710_v7 = vunpack.i.l.bf16 %v12896_v32  ;;  %v6747_v13 = vpop.permute.xlu0 %6746 }
 0xbd7   : > { %v6761_v1 = vsel %vm13794_vm11, %v6745_v62, %v6747_v13  ;;  %vm13798_vm11 = vmmov %vm13797_vm7 }
 0xbd8   : > { %v6937_v63 = vrot.slane %v6921_v19, 4  ;;  %v6821_v27 = vsel %vm13795_vm4, %v8710_v7, %v8711_v12  ;;  %6777 = vst [vmem:[#allocation3 + $0x8] sm:$0xf0] %v6761_v1  ;;  %vm13799_vm4 = vnez %v13419_v38 }
 0xbd9   : > { %v6837_v14 = vsel %vm13790_vm3, %v6821_v27, 0.0  ;;  %v8724_v22 = vpop.permute.xlu1 %8723 }
 0xbda   : > { %6953 = vst [vmem:[#allocation3 + $0x48] sm:$0xf0] %v6937_v63  ;;  %v6845_v43 = vpack.c.bf16 %v6837_v14, %v6837_v14  ;;  %v8726_v48 = vunpack.i.h.bf16 %v8724_v22  ;;  %v8725_v35 = vunpack.i.l.bf16 %v8724_v22  ;;  %v7246_v40 = vpop.permute.xlu0 %7245 }
 0xbdb   : > { %v7260_v30 = vsel %vm13796_vm9, %v7244_v50, %v7246_v40  ;;  %v7360_v50 = vld [vmem:[#allocation3] sm:$0xff]  ;;  %vm13802_vm9 = vcmask 785408  }
 0xbdc   : > { %6853 = vst [vmem:[#allocation3 + $0x48] sm:$0xf] %v6845_v43  ;;  %v7320_v56 = vsel %vm13797_vm7, %v8701_v31, %v8725_v35  ;;  %v7321_v51 = vsel %vm13798_vm11, %v8725_v35, %v8726_v48  ;;  %7276 = vst [vmem:[#allocation3 + $0xc8] sm:$0xf0] %v7260_v30  ;;  %vm13804_vm7 = vcmask 515072   ;;  %vm13805_vm11 = vcmask 1031168  }
 0xbdd   : > { %v7336_v39 = vsel %vm13790_vm3, %v7320_v56, 0.0  ;;  %v7337_v3 = vsel %vm13799_vm4, %v7321_v51, 0.0  ;;  %v12913_v20 = vpop.permute.xlu1 %6993  ;;  %vm13801_vm3 = vcmask 1039360  }
 0xbde   : > { %v7344_v52 = vpack.c.bf16 %v7336_v39, %v7336_v39  ;;  %v7345_v26 = vpack.c.bf16 %v7337_v3, %v7337_v3  ;;  %v7007_v34 = vsel %vm13800_vm13, %v6992_v33, %v12913_v20  ;;  %vm13803_vm13 = vmmov %vm13802_vm9 }
 0xbdf   : > { %7023 = vst [vmem:[#allocation3 + $0x90] sm:$0xf] %v7007_v34  ;;  %v7361_v31 = vld [vmem:[#allocation3 + $0x8] sm:$0xff] }
 0xbe0   : > { %7352 = vst [vmem:[#allocation3 + $0x108] sm:$0xf] %v7344_v52  ;;  %7353 = vst [vmem:[#allocation3 + $0x110] sm:$0xf] %v7345_v26  ;;  %7433 = vmatprep.subr.bf16.mxu1 %v7361_v31 }
 0xbe1   : > { %v12917_v62 = vpop.permute.xlu0 %8728  ;;  %v12921_v61 = vpop.permute.xlu1 %6748  ;;  %7434 = vmatpush1.bf16.msra.mxu1 %v7360_v50 }
 0xbe2   : > { %v8731_v21 = vunpack.i.h.bf16 %v12917_v62  ;;  %v8730_v53 = vunpack.i.l.bf16 %v12917_v62  ;;  %v6762_v24 = vsel %vm13801_vm3, %v6747_v13, %v12921_v61  ;;  %vm13806_vm3 = vmmov %vm13805_vm11 }
 0xbe3   : > { %6778 = vst [vmem:[#allocation3 + $0x10] sm:$0xf0] %v6762_v24  ;;  %v7369_v33 = vld [vmem:[#allocation3 + $0x48] sm:$0xff] }
 0xbe4   : > { %v6898_v8 = vsel %vm13802_vm9, %v8706_v6, %v8730_v53  ;;  %v6899_v55 = vsel %vm13803_vm13, %v8730_v53, %v8731_v21  ;;  %7435 = vmatprep.subr.bf16.mxu1 %v7369_v33  ;;  %vm13807_vm9 = vnez %v13432_v9  ;;  %vm13808_vm13 = vcmask 506880  }
 0xbe5   : > { %v6914_v0 = vsel %vm13694_vm14, %v6898_v8, 0.0  ;;  %v6915_v49 = vsel %vm10477_vm1, %v6899_v55, 0.0  ;;  %v12933_v37 = vpop.permute.xlu0 %8733  ;;  %v12937_v45 = vpop.permute.xlu1 %7247 }
 0xbe6   : > { %v6922_v42 = vpack.c.bf16 %v6914_v0, %v6914_v0  ;;  %v6923_v4 = vpack.c.bf16 %v6915_v49, %v6915_v49  ;;  %v8736_v2 = vunpack.i.h.bf16 %v12933_v37  ;;  %v8735_v6 = vunpack.i.l.bf16 %v12933_v37 }
 0xbe7   : > { %v7261_v1 = vsel %vm13804_vm7, %v7246_v40, %v12937_v45  ;;  %vm13809_vm7 = vcmask 769024  }
 0xbe8   : > { %v6938_v19 = vrot.slane %v6922_v42, 4  ;;  %v6939_v13 = vrot.slane %v6923_v4, 4  ;;  %v6822_v63 = vsel %vm13805_vm11, %v8711_v12, %v8735_v6  ;;  %7277 = vst [vmem:[#allocation3 + $0xd0] sm:$0xf0] %v7261_v1  ;;  %v6823_v27 = vsel %vm13806_vm3, %v8735_v6, %v8736_v2  ;;  %vm13810_vm11 = vmmov %vm13809_vm7 }
 0xbe9   : > { %v6838_v14 = vsel %vm13799_vm4, %v6822_v63, 0.0  ;;  %v12947_v22 = vpop.permute.xlu0 %7309  ;;  %v6839_v43 = vsel %vm13807_vm9, %v6823_v27, 0.0  ;;  %v8739_v30 = vpop.permute.xlu1 %8738  ;;  %vm13811_vm3 = vmmov %vm13809_vm7 }
 0xbea   : > { %6954 = vst [vmem:[#allocation3 + $0x50] sm:$0xf0] %v6938_v19  ;;  %6955 = vst [vmem:[#allocation3 + $0x58] sm:$0xf0] %v6939_v13  ;;  %v6846_v35 = vpack.c.bf16 %v6838_v14, %v6838_v14  ;;  %v7322_v40 = vsel %vm13808_vm13, %v8726_v48, %v12947_v22  ;;  %v6847_v12 = vpack.c.bf16 %v6839_v43, %v6839_v43  ;;  %v8741_v51 = vunpack.i.h.bf16 %v8739_v30 }
 0xbeb   : > { %v7338_v56 = vsel %vm13807_vm9, %v7322_v40, 0.0  ;;  %v8740_v39 = vunpack.i.l.bf16 %v8739_v30  ;;  %vm13812_vm13 = vmmov %vm13811_vm3 }
 0xbec   : > { %6854 = vst [vmem:[#allocation3 + $0x50] sm:$0xf] %v6846_v35  ;;  %v7346_v3 = vpack.c.bf16 %v7338_v56, %v7338_v56  ;;  %6855 = vst [vmem:[#allocation3 + $0x58] sm:$0xf] %v6847_v12 }
 0xbed   : > { %v12955_v52 = vpop.permute.xlu0 %8758  ;;  %v7067_v26 = vsel %vm13809_vm7, %v8716_v28, %v8740_v39  ;;  %v7068_v34 = vsel %vm13810_vm11, %v8740_v39, %v8741_v51  ;;  %v8744_v24 = vpop.permute.xlu1 %8743 }
 0xbee   : > { %7354 = vst [vmem:[#allocation3 + $0x118] sm:$0xf] %v7346_v3  ;;  %v8761_v48 = vunpack.i.h.bf16 %v12955_v52  ;;  %v8760_v31 = vunpack.i.l.bf16 %v12955_v52  ;;  %v7083_v53 = vsel %vm13799_vm4, %v7067_v26, 0.0  ;;  %v7084_v50 = vsel %vm13807_vm9, %v7068_v34, 0.0 }
 0xbef   : > { %v7091_v8 = vpack.c.bf16 %v7083_v53, %v7083_v53  ;;  %v7092_v55 = vpack.c.bf16 %v7084_v50, %v7084_v50  ;;  %v8746_v0 = vunpack.i.h.bf16 %v8744_v24  ;;  %v8745_v49 = vunpack.i.l.bf16 %v8744_v24 }
 0xbf0   : > { %v7065_v28 = vsel %vm13811_vm3, %v8760_v31, %v8715_v29  ;;  %v7069_v33 = vsel %vm13812_vm13, %v8741_v51, %v8761_v48  ;;  %vm13813_vm4 = vcmask 523264   ;;  %vm13819_vm3 = vcmask 1031168  }
 0xbf1   : > { %v7107_v42 = vrot.slane %v7091_v8, 4  ;;  %v7108_v4 = vrot.slane %v7092_v55, 4  ;;  %v7167_v9 = vsel %vm13813_vm4, %v8721_v23, %v8745_v49  ;;  %vm13814_vm9 = vmmov %vm13813_vm4  ;;  %v12977_v6 = vpop.permute.xlu0 %8763  ;;  %v7081_v29 = vsel %vm13712_vm10, %v7065_v28, 0.0  ;;  %v8749_v1 = vpop.permute.xlu1 %8748 }
 0xbf2   : > { %v7168_v38 = vsel %vm13814_vm9, %v8745_v49, %v8746_v0  ;;  %v7183_v19 = vsel %vm13694_vm14, %v7167_v9, 0.0  ;;  %v7085_v13 = vsel %vm11605_vm0, %v7069_v33, 0.0  ;;  %v7089_v27 = vpack.c.bf16 %v7081_v29, %v7081_v29  ;;  %vm13817_vm7 = vmmov %vm13813_vm4 }
 0xbf3   : > { %v7184_v36 = vsel %vm10477_vm1, %v7168_v38, 0.0  ;;  %7123 = vst [vmem:[#allocation3 + $0x90] sm:$0xf0] %v7107_v42  ;;  %7124 = vst [vmem:[#allocation3 + $0x98] sm:$0xf0] %v7108_v4  ;;  %v7191_v23 = vpack.c.bf16 %v7183_v19, %v7183_v19  ;;  %v7093_v14 = vpack.c.bf16 %v7085_v13, %v7085_v13  ;;  %v8751_v43 = vunpack.i.h.bf16 %v8749_v1 }
 0xbf4   : > { %v7192_v63 = vpack.c.bf16 %v7184_v36, %v7184_v36  ;;  %v8750_v35 = vunpack.i.l.bf16 %v8749_v1  ;;  %v8766_v10 = vunpack.i.h.bf16 %v12977_v6  ;;  %v8765_v41 = vunpack.i.l.bf16 %v12977_v6  ;;  %vm13818_vm11 = vmmov %vm13813_vm4 }
 0xbf5   : > { %7199 = vst [vmem:[#allocation3 + $0xd0] sm:$0xf] %v7191_v23  ;;  %v7105_v40 = vrot.slane %v7089_v27, 4  ;;  %v7109_v12 = vrot.slane %v7093_v14, 4  ;;  %vm13815_vm1 = vcmask 785408   ;;  %v8754_v3 = vpop.permute.xlu1 %8753  ;;  %vm13825_vm9 = vmmov %vm13819_vm3 }
 0xbf6   : > { %7200 = vst [vmem:[#allocation3 + $0xd8] sm:$0xf] %v7192_v63  ;;  %v6900_v30 = vsel %vm13815_vm1, %v8731_v21, %v8751_v43  ;;  %vm13816_vm14 = vmmov %vm13815_vm1  ;;  %v7165_v51 = vsel %vm13817_vm7, %v8765_v41, %v8720_v16  ;;  %v7169_v39 = vsel %vm13818_vm11, %v8746_v0, %v8766_v10  ;;  %v8756_v31 = vunpack.i.h.bf16 %v8754_v3 }
 0xbf7   : > { %v6896_v56 = vsel %vm13816_vm14, %v8750_v35, %v8705_v44  ;;  %7121 = vst [vmem:[#allocation3 + $0x80] sm:$0xf0] %v7105_v40  ;;  %7125 = vst [vmem:[#allocation3 + $0xa0] sm:$0xf0] %v7109_v12  ;;  %v6916_v62 = vsel %vm10488_vm5, %v6900_v30, 0.0  ;;  %v7181_v57 = vsel %vm13690_vm15, %v7165_v51, 0.0  ;;  %v8755_v53 = vunpack.i.l.bf16 %v8754_v3 }
 0xbf8   : > { %v6912_v21 = vsel %vm13690_vm15, %v6896_v56, 0.0  ;;  %v7185_v47 = vsel %vm10488_vm5, %v7169_v39, 0.0  ;;  %v6924_v16 = vpack.c.bf16 %v6916_v62, %v6916_v62  ;;  %v7189_v26 = vpack.c.bf16 %v7181_v57, %v7181_v57  ;;  %v6895_v50 = vpop.permute.xlu0 %6894  ;;  %vm13820_vm15 = vmmov %vm13819_vm3 }
 0xbf9   : > { %v6920_v44 = vpack.c.bf16 %v6912_v21, %v6912_v21  ;;  %v7193_v34 = vpack.c.bf16 %v7185_v47, %v7185_v47  ;;  %v8769_v55 = vpop.permute.xlu1 %8768  ;;  %v6824_v46 = vsel %vm13819_vm3, %v8736_v2, %v8756_v31  ;;  %v6820_v58 = vsel %vm13820_vm15, %v8755_v53, %v8710_v7  ;;  %vm13821_vm5 = vmmov %vm13815_vm1 }
 0xbfa   : > { %v6940_v24 = vrot.slane %v6924_v16, 4  ;;  %7197 = vst [vmem:[#allocation3 + $0xc0] sm:$0xf] %v7189_v26  ;;  %v8771_v0 = vunpack.i.h.bf16 %v8769_v55  ;;  %v8770_v49 = vunpack.i.l.bf16 %v8769_v55  ;;  %v6840_v28 = vsel %vm11605_vm0, %v6824_v46, 0.0  ;;  %vm13822_vm13 = vmmov %vm13815_vm1  ;;  %v7377_v46 = vld [vmem:[#allocation3 + $0x88] sm:$0xff] }
 0xbfb   : > { %v6936_v8 = vrot.slane %v6920_v44, 4  ;;  %7201 = vst [vmem:[#allocation3 + $0xe0] sm:$0xf] %v7193_v34  ;;  %v6836_v33 = vsel %vm13712_vm10, %v6820_v58, 0.0  ;;  %v6848_v42 = vpack.c.bf16 %v6840_v28, %v6840_v28  ;;  %vm13823_vm4 = vmmov %vm13815_vm1  ;;  %vm13827_vm14 = vnez %v13481_v54 }
 0xbfc   : > { %6956 = vst [vmem:[#allocation3 + $0x60] sm:$0xf0] %v6940_v24  ;;  %v6844_v4 = vpack.c.bf16 %v6836_v33, %v6836_v33  ;;  %v6903_v37 = vsel %vm13821_vm5, %v8771_v0, %v6895_v50  ;;  %v6901_v2 = vsel %vm13822_vm13, %v8751_v43, %v8770_v49  ;;  %v6819_v9 = vpop.permute.xlu0 %6818  ;;  %v6902_v7 = vsel %vm13823_vm4, %v8770_v49, %v8771_v0  ;;  %vm13824_vm10 = vmmov %vm13819_vm3 }
 0xbfd   : > { %6952 = vst [vmem:[#allocation3 + $0x40] sm:$0xf0] %v6936_v8  ;;  %v6919_v32 = vsel %vm10562_vm12, %v6903_v37, 0.0  ;;  %v6917_v38 = vsel %vm10509_vm2, %v6901_v2, 0.0  ;;  %v8774_v19 = vpop.permute.xlu1 %8773  ;;  %6856 = vst [vmem:[#allocation3 + $0x60] sm:$0xf] %v6848_v42  ;;  %vm13828_vm7 = vnez %v13575_v59 }
 0xbfe   : > { %6852 = vst [vmem:[#allocation3 + $0x40] sm:$0xf] %v6844_v4  ;;  %v6927_v60 = vpack.c.bf16 %v6919_v32, %v6919_v32  ;;  %v6918_v36 = vsel %vm10515_vm8, %v6902_v7, 0.0  ;;  %v6925_v29 = vpack.c.bf16 %v6917_v38, %v6917_v38  ;;  %v8776_v13 = vunpack.i.h.bf16 %v8774_v19  ;;  %vm13826_vm1 = vmmov %vm13819_vm3  ;;  %v7376_v33 = vld [vmem:[#allocation3 + $0x80] sm:$0xff]  ;;  %v7385_v37 = vld [vmem:[#allocation3 + $0xc8] sm:$0xff] }
 0xbff   : > { %v6926_v1 = vpack.c.bf16 %v6918_v36, %v6918_v36  ;;  %v8775_v23 = vunpack.i.l.bf16 %v8774_v19  ;;  %vm13829_vm11 = vcmask 769024   ;;  %vm13832_vm5 = vcmask 777216   ;;  %v7393_v19 = vld [vmem:[#allocation3 + $0x108] sm:$0xf] }
 0xc00   : > { %v6943_v63 = vrot.slane %v6927_v60, 4  ;;  %v6941_v27 = vrot.slane %v6925_v29, 4  ;;  %v6827_v14 = vsel %vm13824_vm10, %v8776_v13, %v6819_v9  ;;  %v7064_v43 = vpop.permute.xlu0 %7063  ;;  %vm13830_vm3 = vmmov %vm13829_vm11  ;;  %vm13834_vm4 = vcmask 1039360   ;;  %v7392_v60 = vld [vmem:[#allocation3 + $0x100] sm:$0xf] }
 0xc01   : > { %v6942_v35 = vrot.slane %v6926_v1, 4  ;;  %v6843_v41 = vsel %vm13759_vm6, %v6827_v14, 0.0  ;;  %v6825_v40 = vsel %vm13825_vm9, %v8756_v31, %v8775_v23  ;;  %v6826_v12 = vsel %vm13826_vm1, %v8775_v23, %v8776_v13  ;;  %v8779_v30 = vpop.permute.xlu1 %8778  ;;  %vm13831_vm15 = vmmov %vm13830_vm3  ;;  %v7384_v9 = vld [vmem:[#allocation3 + $0xc0] sm:$0xff]  ;;  %v7371_v14 = vld [vmem:[#allocation3 + $0x58] sm:$0xff] }
 0xc02   : > { %6959 = vst [vmem:[#allocation3 + $0x78] sm:$0xf0] %v6943_v63  ;;  %6957 = vst [vmem:[#allocation3 + $0x68] sm:$0xf0] %v6941_v27  ;;  %v6851_v56 = vpack.c.bf16 %v6843_v41, %v6843_v41  ;;  %v6841_v51 = vsel %vm13827_vm14, %v6825_v40, 0.0  ;;  %v6842_v39 = vsel %vm13828_vm7, %v6826_v12, 0.0  ;;  %v8781_v3 = vunpack.i.h.bf16 %v8779_v30 }
 0xc03   : > { %6958 = vst [vmem:[#allocation3 + $0x70] sm:$0xf0] %v6942_v35  ;;  %v6849_v62 = vpack.c.bf16 %v6841_v51, %v6841_v51  ;;  %v6850_v21 = vpack.c.bf16 %v6842_v39, %v6842_v39  ;;  %v8780_v57 = vunpack.i.l.bf16 %v8779_v30  ;;  %vm13833_vm13 = vmmov %vm13832_vm5  ;;  %v13062_v63 = vld [vmem:[%s13134_s13] sm:$0x3] }
 0xc04   : > { %6859 = vst [vmem:[#allocation3 + $0x78] sm:$0xf] %v6851_v56  ;;  %v7072_v47 = vsel %vm13829_vm11, %v8781_v3, %v7064_v43  ;;  %v6996_v16 = vpop.permute.xlu0 %6995  ;;  %vm13835_vm10 = vmmov %vm13832_vm5  ;;  %vm13838_vm11 = vcmask 1043456   ;;  %v7362_v27 = vld [vmem:[#allocation3 + $0x10] sm:$0xff] }
 0xc05   : > { %6857 = vst [vmem:[#allocation3 + $0x68] sm:$0xf] %v6849_v62  ;;  %6858 = vst [vmem:[#allocation3 + $0x70] sm:$0xf] %v6850_v21  ;;  %v7088_v44 = vsel %vm13759_vm6, %v7072_v47, 0.0  ;;  %v7070_v26 = vsel %vm13830_vm3, %v8761_v48, %v8780_v57  ;;  %v7071_v34 = vsel %vm13831_vm15, %v8780_v57, %v8781_v3  ;;  %v7368_v31 = vld [vmem:[#allocation3 + $0x40] sm:$0xff]  ;;  %v7008_v53 = vsel %vm13832_vm5, %v12913_v20, %v6996_v16  ;;  %v6998_v50 = vpop.permute.xlu1 %6997 }
 0xc06   : > { %v7096_v24 = vpack.c.bf16 %v7088_v44, %v7088_v44  ;;  %v7086_v8 = vsel %vm13827_vm14, %v7070_v26, 0.0  ;;  %v7087_v55 = vsel %vm13828_vm7, %v7071_v34, 0.0  ;;  %7436 = vmatpush1.bf16.msra.mxu1 %v7368_v31  ;;  %7024 = vst [vmem:[#allocation3 + $0x98] sm:$0xf] %v7008_v53  ;;  %v7009_v52 = vsel %vm13833_vm13, %v6996_v16, %v6998_v50  ;;  %vm13836_vm9 = vmmov %vm13832_vm5  ;;  %v7370_v30 = vld [vmem:[#allocation3 + $0x50] sm:$0xff] }
 0xc07   : > { %v7094_v48 = vpack.c.bf16 %v7086_v8, %v7086_v8  ;;  %v7095_v58 = vpack.c.bf16 %v7087_v55, %v7087_v55  ;;  %7437 = vmatprep.subr.bf16.mxu1 %v7377_v46  ;;  %7025 = vst [vmem:[#allocation3 + $0xa0] sm:$0xf] %v7009_v52  ;;  %vm13837_vm1 = vmmov %vm13834_vm4  ;;  %vm13842_vm13 = vcmask 515072   ;;  %v7386_v31 = vld [vmem:[#allocation3 + $0xd0] sm:$0xff]  ;;  %v7395_v53 = vld [vmem:[#allocation3 + $0x118] sm:$0xf] }
 0xc08   : > { %v7112_v0 = vrot.slane %v7096_v24, 4  ;;  %v6751_v49 = vpop.permute.xlu0 %6750  ;;  %vm13839_vm3 = vmmov %vm13838_vm11 }
 0xc09   : > { %v7110_v20 = vrot.slane %v7094_v48, 4  ;;  %v7111_v28 = vrot.slane %v7095_v58, 4  ;;  %v6763_v42 = vsel %vm13834_vm4, %v12921_v61, %v6751_v49  ;;  %v7002_v4 = vpop.permute.xlu1 %7001  ;;  %v7410_v29 = vsel %vm13839_vm3, %v7392_v60, 0  ;;  %vm13840_vm15 = vmmov %vm13832_vm5 }
 0xc0a   : > { %7128 = vst [vmem:[#allocation3 + $0xb8] sm:$0xf0] %v7112_v0  ;;  %7438 = vmatpush1.bf16.msra.mxu1 %v7376_v33  ;;  %6779 = vst [vmem:[#allocation3 + $0x18] sm:$0xf0] %v6763_v42  ;;  %vm13841_vm5 = vcmask 588800   ;;  %vm13843_vm4 = vcmask 523264  }
 0xc0b   : > { %7126 = vst [vmem:[#allocation3 + $0xa8] sm:$0xf0] %v7110_v20  ;;  %7127 = vst [vmem:[#allocation3 + $0xb0] sm:$0xf0] %v7111_v28  ;;  %7439 = vmatprep.subr.bf16.mxu1 %v7385_v37  ;;  %v7375_v54 = vld [vmem:[#allocation3 + $0x78] sm:$0xff] }
 0xc0c   : > { %v7000_v2 = vpop.permute.xlu0 %6999  ;;  %v7373_v28 = vld [vmem:[#allocation3 + $0x68] sm:$0xff] }
 0xc0d   : > { %v7010_v32 = vsel %vm13835_vm10, %v6998_v50, %v7000_v2  ;;  %v7011_v7 = vsel %vm13836_vm9, %v7000_v2, %v7002_v4  ;;  %v6753_v38 = vpop.permute.xlu1 %6752  ;;  %v7379_v56 = vld [vmem:[#allocation3 + $0x98] sm:$0xff]  ;;  %vm13844_vm10 = vmmov %vm13843_vm4  ;;  %v7394_v50 = vld [vmem:[#allocation3 + $0x110] sm:$0xf] }
 0xc0e   : > { %7440 = vmatpush1.bf16.msra.mxu1 %v7384_v9  ;;  %7026 = vst [vmem:[#allocation3 + $0xa8] sm:$0xf] %v7010_v32  ;;  %7027 = vst [vmem:[#allocation3 + $0xb0] sm:$0xf] %v7011_v7  ;;  %v6764_v61 = vsel %vm13837_vm1, %v6751_v49, %v6753_v38 }
 0xc0f   : > { %7875 = vmatprep.subr.msk.bf16.mxu1 %vm13838_vm11, %v7393_v19  ;;  %6780 = vst [vmem:[#allocation3 + $0x20] sm:$0xf0] %v6764_v61  ;;  %vm13845_vm9 = vmmov %vm13837_vm1 }
 0xc10   : > { %v7004_v36 = vpop.permute.xlu0 %7003  ;;  %vm13846_vm11 = vmmov %vm13842_vm13 }
 0xc11   : > { %v7012_v13 = vsel %vm13840_vm15, %v7002_v4, %v7004_v36  ;;  %v6757_v1 = vpop.permute.xlu1 %6756  ;;  %v7363_v23 = vld [vmem:[#allocation3 + $0x18] sm:$0xff]  ;;  %v7380_v36 = vld [vmem:[#allocation3 + $0xa0] sm:$0xff] }
 0xc12   : > { %7442 = vmatpush1.bf16.msra.mxu1 %v7410_v29  ;;  %7028 = vst [vmem:[#allocation3 + $0xb8] sm:$0xf] %v7012_v13  ;;  %7474 = vmatprep.subr.bf16.mxu0 %v7363_v23  ;;  %v7374_v29 = vld [vmem:[#allocation3 + $0x70] sm:$0xff] }
 0xc13   : > { %7475 = vmatpush1.bf16.msra.mxu0 %v7362_v27 }
 0xc14   : > { %v7250_v43 = vpop.permute.xlu0 %7249  ;;  %7476 = vmatprep.subr.bf16.mxu0 %v7371_v14 }
 0xc15   : > { %7876 = vmatmul.mubr.msk.bf16.vlgmr.msra.gmra.mrb[28].mxu1 %vm13841_vm5, %v13062_v63  ;;  %v7262_v35 = vsel %vm13842_vm13, %v12937_v45, %v7250_v43  ;;  %v8784_v41 = vpop.permute.xlu1 %8783  ;;  %vm13851_vm5 = vcmask 506880   ;;  %v7381_v18 = vld [vmem:[#allocation3 + $0xa8] sm:$0xff] }
 0xc16   : > { %7278 = vst [vmem:[#allocation3 + $0xd8] sm:$0xf0] %v7262_v35  ;;  %v8786_v40 = vunpack.i.h.bf16 %v8784_v41  ;;  %v8785_v12 = vunpack.i.l.bf16 %v8784_v41  ;;  %7547 = vmatprep.mubr.bf16.mxu1 %v13673_v5  ;;  %v7364_v49 = vld [vmem:[#allocation3 + $0x20] sm:$0xff]  ;;  %vm13852_vm13 = vmmov %vm13851_vm5  ;;  %v7382_v35 = vld [vmem:[#allocation3 + $0xb0] sm:$0xff] }
 0xc17   : > { %7477 = vmatpush1.bf16.msra.mxu0 %v7370_v30 }
 0xc18   : > { %v7170_v51 = vsel %vm13843_vm4, %v8766_v10, %v8785_v12  ;;  %v7171_v39 = vsel %vm13844_vm10, %v8785_v12, %v8786_v40  ;;  %v6755_v3 = vpop.permute.xlu0 %6754  ;;  %7478 = vmatprep.subr.bf16.mxu0 %v7379_v56  ;;  %v7378_v10 = vld [vmem:[#allocation3 + $0x90] sm:$0xff]  ;;  %vm13855_vm10 = vcmask 588800  }
 0xc19   : > { %v7186_v45 = vsel %vm10509_vm2, %v7170_v51, 0.0  ;;  %v7187_v62 = vsel %vm10515_vm8, %v7171_v39, 0.0  ;;  %v6765_v21 = vsel %vm13845_vm9, %v6753_v38, %v6755_v3  ;;  %v6766_v57 = vsel %vm13837_vm1, %v6755_v3, %v6757_v1  ;;  %v7252_v47 = vpop.permute.xlu1 %7251  ;;  %vm13847_vm2 = vmmov %vm13837_vm1  ;;  %v7383_v13 = vld [vmem:[#allocation3 + $0xb8] sm:$0xff] }
 0xc1a   : > { %v7194_v16 = vpack.c.bf16 %v7186_v45, %v7186_v45  ;;  %v7195_v44 = vpack.c.bf16 %v7187_v62, %v7187_v62  ;;  %6781 = vst [vmem:[#allocation3 + $0x28] sm:$0xf0] %v6765_v21  ;;  %6782 = vst [vmem:[#allocation3 + $0x30] sm:$0xf0] %v6766_v57  ;;  %v7263_v6 = vsel %vm13846_vm11, %v7250_v43, %v7252_v47 }
 0xc1b   : > { %7279 = vst [vmem:[#allocation3 + $0xe0] sm:$0xf0] %v7263_v6  ;;  %7479 = vmatpush1.bf16.msra.mxu0 %v7378_v10  ;;  %vm13848_vm8 = vmmov %vm13839_vm3 }
 0xc1c   : > { %7202 = vst [vmem:[#allocation3 + $0xe8] sm:$0xf] %v7194_v16  ;;  %7203 = vst [vmem:[#allocation3 + $0xf0] sm:$0xf] %v7195_v44  ;;  %v6759_v11 = vpop.permute.xlu0 %6758 }
 0xc1d   : > { %v6767_v25 = vsel %vm13847_vm2, %v6757_v1, %v6759_v11  ;;  %v7256_v26 = vpop.permute.xlu1 %7255  ;;  %v7387_v34 = vld [vmem:[#allocation3 + $0xd8] sm:$0xff]  ;;  %vm13849_vm3 = vmmov %vm13843_vm4 }
 0xc1e   : > { %6783 = vst [vmem:[#allocation3 + $0x38] sm:$0xf0] %v6767_v25  ;;  %7480 = vmatprep.subr.bf16.mxu0 %v7387_v34  ;;  %vm13850_vm15 = vmmov %vm13848_vm8 }
 0xc1f   : > { %7481 = vmatpush1.bf16.msra.mxu0 %v7386_v31  ;;  %v7416_v0 = vsel %vm13850_vm15, %v7394_v50, 0  ;;  %vm13854_vm4 = vmmov %vm13846_vm11 }
 0xc20   : > { %v7164_v24 = vpop.permute.xlu0 %7163  ;;  %7877 = vmatprep.subr.msk.bf16.mxu0 %vm13848_vm8, %v7395_v53  ;;  %vm13858_vm9 = vmmov %vm13851_vm5 }
 0xc21   : > { %v7172_v8 = vsel %vm13849_vm3, %v8786_v40, %v7164_v24  ;;  %v8789_v55 = vpop.permute.xlu1 %8788  ;;  %v7365_v46 = vld [vmem:[#allocation3 + $0x28] sm:$0xff]  ;;  %v7366_v19 = vld [vmem:[#allocation3 + $0x30] sm:$0xff]  ;;  %vm13859_vm1 = vmmov %vm13848_vm8 }
 0xc22   : > { %v7188_v52 = vsel %vm10562_vm12, %v7172_v8, 0.0  ;;  %v8791_v48 = vunpack.i.h.bf16 %v8789_v55  ;;  %v8790_v58 = vunpack.i.l.bf16 %v8789_v55  ;;  %7515 = vmatprep.subr.bf16.mxu1 %v7365_v46  ;;  %vm13853_vm12 = vmmov %vm13846_vm11  ;;  %v7388_v43 = vld [vmem:[#allocation3 + $0xe0] sm:$0xff] }
 0xc23   : > { %v7196_v20 = vpack.c.bf16 %v7188_v52, %v7188_v52  ;;  %7483 = vmatpush1.bf16.msra.mxu0 %v7416_v0  ;;  %7516 = vmatpush1.bf16.msra.mxu1 %v7364_v49  ;;  %vm13860_vm11 = vmmov %vm13859_vm1 }
 0xc24   : > { %v7323_v33 = vsel %vm13851_vm5, %v12947_v22, %v8790_v58  ;;  %v7324_v42 = vsel %vm13852_vm13, %v8790_v58, %v8791_v48  ;;  %v7254_v4 = vpop.permute.xlu0 %7253  ;;  %7517 = vmatprep.subr.bf16.mxu1 %v7373_v28  ;;  %v7372_v22 = vld [vmem:[#allocation3 + $0x60] sm:$0xff]  ;;  %vm13861_vm2 = vmmov %vm13855_vm10 }
 0xc25   : > { %7204 = vst [vmem:[#allocation3 + $0xf8] sm:$0xf] %v7196_v20  ;;  %v7339_v17 = vsel %vm11605_vm0, %v7323_v33, 0.0  ;;  %v7340_v37 = vsel %vm13827_vm14, %v7324_v42, 0.0  ;;  %v7264_v2 = vsel %vm13853_vm12, %v7252_v47, %v7254_v4  ;;  %v7265_v9 = vsel %vm13854_vm4, %v7254_v4, %v7256_v26  ;;  %v7367_v32 = vld [vmem:[#allocation3 + $0x38] sm:$0xff]  ;;  %vm13856_vm0 = vmmov %vm13854_vm4 }
 0xc26   : > { %v7347_v7 = vpack.c.bf16 %v7339_v17, %v7339_v17  ;;  %v7348_v38 = vpack.c.bf16 %v7340_v37, %v7340_v37  ;;  %7280 = vst [vmem:[#allocation3 + $0xe8] sm:$0xf0] %v7264_v2  ;;  %7281 = vst [vmem:[#allocation3 + $0xf0] sm:$0xf0] %v7265_v9  ;;  %7878 = vmatmul.mubr.msk.bf16.vlgmr.msra.gmra.mrb[36].mxu0 %vm13855_vm10, %v13062_v63  ;;  %7556 = vmatprep.subr.bf16.mxu0 %v7367_v32 }
 0xc27   : > { %7518 = vmatpush1.bf16.msra.mxu1 %v7372_v22  ;;  %7557 = vmatpush1.bf16.msra.mxu0 %v7366_v19  ;;  %vm13857_vm14 = vmmov %vm13851_vm5 }
 0xc28   : > { %7355 = vst [vmem:[#allocation3 + $0x120] sm:$0xf] %v7347_v7  ;;  %7356 = vst [vmem:[#allocation3 + $0x128] sm:$0xf] %v7348_v38  ;;  %v7258_v61 = vpop.permute.xlu0 %7257  ;;  %7519 = vmatprep.subr.bf16.mxu1 %v7381_v18  ;;  %7558 = vmatprep.subr.bf16.mxu0 %v7375_v54 }
 0xc29   : > { %v7266_v60 = vsel %vm13856_vm0, %v7256_v26, %v7258_v61  ;;  %7588 = vmatprep.mubr.bf16.mxu0 %v13673_v5  ;;  %vm13864_vm8 = vmmov %vm13861_vm2 }
 0xc2a   : > { %7282 = vst [vmem:[#allocation3 + $0xf8] sm:$0xf0] %v7266_v60 }
 0xc2b   : > { %7520 = vmatpush1.bf16.msra.mxu1 %v7380_v36  ;;  %7559 = vmatpush1.bf16.msra.mxu0 %v7374_v29 }
 0xc2c   : > { %v8794_v1 = vpop.permute.xlu0 %8793  ;;  %7560 = vmatprep.subr.bf16.mxu0 %v7383_v13 }
 0xc2d   : > { %v8796_v23 = vunpack.i.h.bf16 %v8794_v1  ;;  %v8795_v27 = vunpack.i.l.bf16 %v8794_v1  ;;  %v7389_v14 = vld [vmem:[#allocation3 + $0xe8] sm:$0xff]  ;;  %v7390_v62 = vld [vmem:[#allocation3 + $0xf0] sm:$0xff] }
 0xc2e   : > { %7521 = vmatprep.subr.bf16.mxu1 %v7389_v14 }
 0xc2f   : > { %v7325_v41 = vsel %vm13857_vm14, %v8791_v48, %v8795_v27  ;;  %v7326_v40 = vsel %vm13858_vm9, %v8795_v27, %v8796_v23  ;;  %7522 = vmatpush1.bf16.msra.mxu1 %v7388_v43  ;;  %7561 = vmatpush1.bf16.msra.mxu0 %v7382_v35  ;;  %v7397_v5 = vld [vmem:[#allocation3 + $0x128] sm:$0xf]  ;;  %v7396_v12 = vld [vmem:[#allocation3 + $0x120] sm:$0xf] }
 0xc30   : > { %v7341_v30 = vsel %vm13828_vm7, %v7325_v41, 0.0  ;;  %v7342_v56 = vsel %vm13759_vm6, %v7326_v40, 0.0  ;;  %7879 = vmatprep.subr.msk.bf16.mxu1 %vm13859_vm1, %v7397_v5  ;;  %v7422_v45 = vsel %vm13860_vm11, %v7396_v12, 0  ;;  %vm13862_vm6 = vmmov %vm13859_vm1 }
 0xc31   : > { %v7349_v51 = vpack.c.bf16 %v7341_v30, %v7341_v30  ;;  %v7350_v39 = vpack.c.bf16 %v7342_v56, %v7342_v56  ;;  %v7391_v3 = vld [vmem:[#allocation3 + $0xf8] sm:$0xff]  ;;  %vm13863_vm7 = vmmov %vm13859_vm1 }
 0xc32   : > { %7562 = vmatprep.subr.bf16.mxu0 %v7391_v3  ;;  %v7404_v57 = vpop.permute.xlu1 %7403 }
 0xc33   : > { %7357 = vst [vmem:[#allocation3 + $0x130] sm:$0xf] %v7349_v51  ;;  %7358 = vst [vmem:[#allocation3 + $0x138] sm:$0xf] %v7350_v39  ;;  %7524 = vmatpush1.bf16.msra.mxu1 %v7422_v45  ;;  %7563 = vmatpush1.bf16.msra.mxu0 %v7390_v62 }
 0xc36   : > { %7880 = vmatmul.mubr.msk.bf16.vlgmr.msra.gmra.mrb[32].mxu1 %vm13861_vm2, %v13062_v63 }
 0xc3a   : > { %v7399_v59 = vld [vmem:[#allocation3 + $0x138] sm:$0xf]  ;;  %v7398_v15 = vld [vmem:[#allocation3 + $0x130] sm:$0xf] }
 0xc3b   : > { %7881 = vmatprep.subr.msk.bf16.mxu0 %vm13862_vm6, %v7399_v59  ;;  %v7428_v21 = vsel %vm13863_vm7, %v7398_v15, 0 }
 0xc3c   : > { %7565 = vmatpush1.bf16.msra.mxu0 %v7428_v21 }
 0xc3f   : > { %7882 = vmatmul.mubr.msk.bf16.vlgmr.msra.gmra.mrb[40].mxu0 %vm13864_vm8, %v13062_v63 }
 0xce8   : > { %v7467_v47 = vpop.f32.mrb[28].mxu1 }
 0xce9   : > { %v7468_v16 = vadd.f32 %v7467_v47, %v7404_v57  ;;  %v7469_v44 = vpop.f32.mrb[29].mxu1 }
 0xcea   : > { %v7470_v6 = vadd.f32 %v7469_v44, %v7404_v57  ;;  %v7471_v10 = vpop.f32.mrb[30].mxu1 }
 0xceb   : > { %v7472_v11 = vpop.f32.mrb[31].mxu1 }
 0xcec   : > { %v7605_v25 = vcombine.low %v7468_v16, %v7470_v6 }
 0xcee   : > { %7613 = vst [vmem:[%s534_s30] sm:$0x77] %v7605_v25 }
 0xcf9   : > { %v7508_v26 = vpop.f32.mrb[36].mxu0 }
 0xcfa   : > { %v7509_v34 = vadd.f32 %v7508_v26, %v7404_v57  ;;  %v7510_v31 = vpop.f32.mrb[37].mxu0 }
 0xcfb   : > { %v7511_v53 = vadd.f32 %v7510_v31, %v7404_v57  ;;  %v7512_v50 = vpop.f32.mrb[38].mxu0 }
 0xcfc   : > { %v7513_v63 = vpop.f32.mrb[39].mxu0 }
 0xcfd   : > { %v7606_v24 = vcombine.low %v7509_v34, %v7511_v53 }
 0xcff   : > { %7614 = vst [vmem:[%s534_s30 + $0x8] sm:$0x77] %v7606_v24 }
 0xd09   : > { %v7549_v8 = vpop.f32.mrb[32].mxu1 }
 0xd0a   : > { %v7550_v55 = vadd.f32 %v7549_v8, %v7404_v57  ;;  %v7551_v46 = vpop.f32.mrb[33].mxu1 }
 0xd0b   : > { %v7552_v52 = vadd.f32 %v7551_v46, %v7404_v57  ;;  %v7553_v48 = vpop.f32.mrb[34].mxu1 }
 0xd0c   : > { %v7554_v58 = vpop.f32.mrb[35].mxu1 }
 0xd0d   : > { %v7607_v0 = vcombine.low %v7550_v55, %v7552_v52 }
 0xd0f   : > { %7615 = vst [vmem:[%s534_s30 + $0x10] sm:$0x77] %v7607_v0 }
 0xd12   : > { %v7590_v49 = vpop.f32.mrb[40].mxu0 }
 0xd13   : > { %v7591_v20 = vadd.f32 %v7590_v49, %v7404_v57  ;;  %v7592_v28 = vpop.f32.mrb[41].mxu0 }
 0xd14   : > { %v7593_v33 = vadd.f32 %v7592_v28, %v7404_v57  ;;  %v7594_v42 = vpop.f32.mrb[42].mxu0 }
 0xd15   : > { %v7595_v4 = vpop.f32.mrb[43].mxu0 }
 0xd16   : > { %v7608_v17 = vcombine.low %v7591_v20, %v7593_v33 }
 0xd18   : > { %7616 = vst [vmem:[%s534_s30 + $0x18] sm:$0x77] %v7608_v17 }
 0xd19 PF: > { %s25_s18 = sadd.s32 1, %s9059_s18  }
 0xd1a   : > { %p22_p4 = scmp.ge.s32.totalorder %s25_s18, 4  }
 0xd1c   :  { %24 = sbr.rel (!%p22_p4) target bundleno = 1 (0x1), region = 116 }

</bundles_post_ra>
